<compile_context>
chip_gen: v7x
topology: tpu7x:2x2x1
jax: 0.10.0
libtpu: 0.0.40
codegen_flags: <defaults>
</compile_context>

<pallas_src>
import functools

import jax
import jax.numpy as jnp
from jax.experimental import pallas as pl
from jax.experimental.pallas import tpu as pltpu

LANES = 128


def _layer_norm(x, w, b, eps=1e-5):
    # PyTorch nn.LayerNorm semantics (biased variance, eps inside rsqrt).
    mu = jnp.mean(x, axis=-1, keepdims=True)
    xc = x - mu
    var = jnp.mean(xc * xc, axis=-1, keepdims=True)
    return xc * jax.lax.rsqrt(var + eps) * w + b


def critic_transformer_kernel(
    # inputs
    x_ref, pe_ref, w_in_ref, b_in_ref,
    ln1w_ref, ln1b_ref, wqkv_ref, bqkv_ref, wo_ref, bo_ref,
    ln2w_ref, ln2b_ref, w1_ref, b1_ref, w2_ref, b2_ref,
    wq1_ref, bq1_ref, wq2_ref, bq2_ref,
    # output
    o_ref,
    # scratch
    h_ref,
    *, hidden_dim, num_heads, seq_len, batch_block, ff_dim, ff_chunk):
    H = hidden_dim
    S = seq_len
    TB = batch_block
    nH = num_heads
    hd = H // nH
    M = TB * S                          # rows fed to every big matmul
    FF = ff_dim
    FC = ff_chunk
    scale = 1.0 / float(hd) ** 0.5
    bf16 = jnp.bfloat16

    layer = pl.program_id(1)
    n_layers = pl.num_programs(1)

    # ---- layer step 0: input projection + positional encoding -> carry ----
    @pl.when(layer == 0)
    def _():
        x = x_ref[...].reshape(M, x_ref.shape[-1]).astype(bf16)
        h0 = jnp.dot(x, w_in_ref[...], preferred_element_type=jnp.float32)
        h0 = h0 + b_in_ref[...]
        h_ref[...] = (h0.reshape(TB, S, H) + pe_ref[...]).reshape(M, H)

    h = h_ref[...]                      # f32 (M, H) residual-stream carry

    # ---- self-attention block: h += out_proj(MHA(norm1(h))) ----
    y = _layer_norm(h, ln1w_ref[0], ln1b_ref[0]).astype(bf16)
    qkv = jnp.dot(y, wqkv_ref[0], preferred_element_type=jnp.float32) + bqkv_ref[0]
    qkv3 = qkv.reshape(TB, S, 3 * H)

    heads = []
    for hh in range(nH):
        qh = qkv3[:, :, hh * hd:(hh + 1) * hd].astype(bf16)
        kh = qkv3[:, :, H + hh * hd:H + (hh + 1) * hd].astype(bf16)
        vh = qkv3[:, :, 2 * H + hh * hd:2 * H + (hh + 1) * hd].astype(bf16)
        s = jnp.einsum('bqd,bkd->bqk', qh, kh,
                       preferred_element_type=jnp.float32) * scale
        m = jnp.max(s, axis=-1, keepdims=True)
        e = jnp.exp(s - m)
        p = e * pl.reciprocal(jnp.sum(e, axis=-1, keepdims=True), approx=True)
        heads.append(jnp.einsum('bqk,bkd->bqd', p.astype(bf16), vh,
                                preferred_element_type=jnp.float32))
    # merged out_proj: one (M, H) @ (H, H) K=128 MXU matmul instead of nH K=hd ones
    attn_in = jnp.concatenate(heads, axis=-1).reshape(M, H).astype(bf16)
    h = h + jnp.dot(attn_in, wo_ref[0], preferred_element_type=jnp.float32) + bo_ref[0]

    # ---- feed-forward block (column-chunked): h += W2(relu(W1 norm2(h))) ----
    y = _layer_norm(h, ln2w_ref[0], ln2b_ref[0]).astype(bf16)
    ffo = jnp.zeros((M, H), jnp.float32)
    for c in range(0, FF, FC):
        f = jnp.dot(y, w1_ref[0, :, c:c + FC], preferred_element_type=jnp.float32)
        f = jnp.maximum(f + b1_ref[0, :, c:c + FC], 0.0).astype(bf16)
        ffo = ffo + jnp.dot(f, w2_ref[0, c:c + FC, :],
                            preferred_element_type=jnp.float32)
    h = h + ffo + b2_ref[0]
    h_ref[...] = h                      # carry to the next layer step

    # ---- last layer step: last token + q_head MLP, lane-dense 128-wide store ----
    @pl.when(layer == n_layers - 1)
    def _():
        last = h.reshape(TB, S, H)[:, S - 1:S, :].reshape(TB, H).astype(bf16)
        z = jnp.dot(last, wq1_ref[...], preferred_element_type=jnp.float32)
        z = jnp.maximum(z + bq1_ref[...], 0.0).astype(bf16)
        q = jnp.dot(z, wq2_ref[...], preferred_element_type=jnp.float32) + bq2_ref[...]
        o_ref[...] = q                  # (TB, 128); the real q value lives in lane 0


def sinusoidal_pe(seq_len, d_model):
    pos = jnp.arange(seq_len, dtype=jnp.float32)[:, None]
    div = jnp.exp(jnp.arange(0, d_model, 2, dtype=jnp.float32)
                  * (-jnp.log(10000.0) / d_model))
    ang = pos * div                                                 # (S, d/2)
    pe = jnp.zeros((seq_len, d_model), jnp.float32)
    pe = pe.at[:, 0::2].set(jnp.sin(ang))
    pe = pe.at[:, 1::2].set(jnp.cos(ang))
    return pe


def make_params(key, in_dim, hidden_dim, ff_dim, num_layers):
    H, FF, L = hidden_dim, ff_dim, num_layers
    ks = jax.random.split(key, 14)

    def init(k, shape, scale=0.05):
        return (scale * jax.random.normal(k, shape)).astype(jnp.float32)

    return dict(
        w_in_t=init(ks[0], (in_dim, H)),
        b_in=init(ks[1], (1, H)),
        ln1_w=jnp.ones((L, H), jnp.float32),
        ln1_b=jnp.zeros((L, H), jnp.float32),
        wqkv_t=init(ks[2], (L, H, 3 * H)),    # MHA in_proj, pre-transposed
        bqkv=init(ks[3], (L, 3 * H)),
        wo_t=init(ks[4], (L, H, H)),          # MHA out_proj, pre-transposed
        bo=init(ks[5], (L, H)),
        ln2_w=jnp.ones((L, H), jnp.float32),
        ln2_b=jnp.zeros((L, H), jnp.float32),
        w1_t=init(ks[6], (L, H, FF)),         # FFN linear1, pre-transposed
        b1=init(ks[7], (L, FF)),
        w2_t=init(ks[8], (L, FF, H)),         # FFN linear2, pre-transposed
        b2=init(ks[9], (L, H)),
        wq1_t=init(ks[10], (H, H)),
        bq1=init(ks[11], (1, H)),
        wq2_t=init(ks[12], (H, 1)),
        bq2=init(ks[13], (1, 1)),
    )


def pack_params(params, *, hidden_dim, max_seq_len):
    """One-time packing: pad, reshape per-layer vectors to (L,1,D), pre-cast
    matmul weights to bf16, precompute the positional-encoding table."""
    H = hidden_dim
    L, FF = params['w1_t'].shape[0], params['w1_t'].shape[-1]
    IN = params['w_in_t'].shape[0]
    IN_pad = max(LANES, ((IN + LANES - 1) // LANES) * LANES)

    def bf(a):
        return a.astype(jnp.bfloat16)

    # q_head's last Linear padded to 128 output lanes (real column 0, rest zero)
    wq2_pad = jnp.zeros((H, LANES), jnp.float32).at[:, :1].set(params['wq2_t'])
    bq2_pad = jnp.zeros((1, LANES), jnp.float32).at[:, :1].set(params['bq2'])

    return dict(
        pe=sinusoidal_pe(max_seq_len, H),
        w_in=bf(jnp.pad(params['w_in_t'], ((0, IN_pad - IN), (0, 0)))),
        b_in=params['b_in'],
        ln1_w=params['ln1_w'].reshape(L, 1, H),
        ln1_b=params['ln1_b'].reshape(L, 1, H),
        wqkv=bf(params['wqkv_t']),
        bqkv=params['bqkv'].reshape(L, 1, 3 * H),
        wo=bf(params['wo_t']),
        bo=params['bo'].reshape(L, 1, H),
        ln2_w=params['ln2_w'].reshape(L, 1, H),
        ln2_b=params['ln2_b'].reshape(L, 1, H),
        w1=bf(params['w1_t']),
        b1=params['b1'].reshape(L, 1, FF),
        w2=bf(params['w2_t']),
        b2=params['b2'].reshape(L, 1, H),
        wq1=bf(params['wq1_t']),
        bq1=params['bq1'],
        wq2=bf(wq2_pad),
        bq2=bq2_pad,
    )


def _pick_batch_block(B, S, target_rows, min_grid_steps):
    cands = [c for c in range(1, B + 1)
             if B % c == 0 and (c % 8 == 0 or c == B) and c * S <= target_rows]
    if not cands:
        cands = [c for c in range(1, B + 1)
                 if B % c == 0 and (c % 8 == 0 or c == B)]
    # prefer >= min_grid_steps grid steps so both v7x cores get pipelined steps
    pref = [c for c in cands if B // c >= min_grid_steps]
    return max(pref) if pref else max(cands)


def critic_transformer_forward(state, error, action, packed, *,
                               hidden_dim, num_heads,
                               target_rows=256, min_grid_steps=4):
    """Forward pass. `packed` comes from pack_params (done once); jit this."""
    H = hidden_dim
    x = jnp.concatenate([state, error, action], axis=-1).astype(jnp.float32)
    B, S, IN = x.shape
    IN_pad = packed['w_in'].shape[0]
    FF = packed['w1'].shape[-1]
    L = packed['wqkv'].shape[0]
    x = jnp.pad(x, ((0, 0), (0, 0), (0, IN_pad - IN)))
    pe = packed['pe'][:S]

    TB = _pick_batch_block(B, S, target_rows, min_grid_steps)
    M = TB * S
    FC = 512 if (FF > 512 and FF % 512 == 0) else FF
    grid = (B // TB, L)

    kernel = functools.partial(
        critic_transformer_kernel,
        hidden_dim=H, num_heads=num_heads, seq_len=S,
        batch_block=TB, ff_dim=FF, ff_chunk=FC)

    args = (x, pe, packed['w_in'], packed['b_in'],
            packed['ln1_w'], packed['ln1_b'],
            packed['wqkv'], packed['bqkv'], packed['wo'], packed['bo'],
            packed['ln2_w'], packed['ln2_b'],
            packed['w1'], packed['b1'], packed['w2'], packed['b2'],
            packed['wq1'], packed['bq1'], packed['wq2'], packed['bq2'])

    def const_spec(a):                   # fetched once (constant block index)
        nd = a.ndim
        return pl.BlockSpec(a.shape, lambda b, l: (0,) * nd)

    def layer_spec(a):                   # streamed per layer step
        nd = a.ndim
        return pl.BlockSpec((1,) + tuple(a.shape[1:]),
                            lambda b, l: (l,) + (0,) * (nd - 1))

    in_specs = [
        pl.BlockSpec((TB, S, IN_pad), lambda b, l: (b, 0, 0)),   # x
        const_spec(pe),
        const_spec(packed['w_in']), const_spec(packed['b_in']),
        layer_spec(packed['ln1_w']), layer_spec(packed['ln1_b']),
        layer_spec(packed['wqkv']), layer_spec(packed['bqkv']),
        layer_spec(packed['wo']), layer_spec(packed['bo']),
        layer_spec(packed['ln2_w']), layer_spec(packed['ln2_b']),
        layer_spec(packed['w1']), layer_spec(packed['b1']),
        layer_spec(packed['w2']), layer_spec(packed['b2']),
        const_spec(packed['wq1']), const_spec(packed['bq1']),
        const_spec(packed['wq2']), const_spec(packed['bq2']),
    ]
    # per-batch-block, lane-dense output; written only at the last layer step
    out_specs = pl.BlockSpec((TB, LANES), lambda b, l: (b, 0))

    # VMEM budget: streamed layer weights (double-buffered), constants, the
    # input block, the h carry, and a rough f32 activation working set.
    def nbytes(a):
        return a.size * a.dtype.itemsize
    layer_keys = ('ln1_w', 'ln1_b', 'wqkv', 'bqkv', 'wo', 'bo',
                  'ln2_w', 'ln2_b', 'w1', 'b1', 'w2', 'b2')
    const_keys = ('w_in', 'b_in', 'wq1', 'bq1', 'wq2', 'bq2')
    layer_bytes = sum(nbytes(packed[k]) // L for k in layer_keys)
    const_bytes = sum(nbytes(packed[k]) for k in const_keys) + nbytes(pe)
    act_bytes = 4 * M * (7 * H + 2 * FC)
    est = (2 * layer_bytes + 2 * const_bytes + M * H * 4
           + 2 * (TB * S * IN_pad + TB * LANES) * 4 + act_bytes)
    vmem_limit = int(min(max(32 << 20, 2 * est), 48 << 20))

    q_pad = pl.pallas_call(
        kernel,
        out_shape=jax.ShapeDtypeStruct((B, LANES), jnp.float32),
        grid=grid,
        in_specs=in_specs,
        out_specs=out_specs,
        scratch_shapes=[pltpu.VMEM((M, H), jnp.float32)],
        compiler_params=pltpu.CompilerParams(
            dimension_semantics=("parallel", "arbitrary"),
            vmem_limit_bytes=vmem_limit),
    )(*args)
    return q_pad[:, :1]                                             # (B, 1)


# ---------------- pure-JAX reference (for correctness check) ----------------
def reference_forward(state, error, action, params, *,
                      hidden_dim, num_heads, num_layers):
    hp = 'highest'
    x = jnp.concatenate([state, error, action], axis=-1).astype(jnp.float32)
    B, S, _ = x.shape
    H, nH = hidden_dim, num_heads
    hd = H // nH
    pe = sinusoidal_pe(S, H)
    h = jnp.einsum('bsi,io->bso', x, params['w_in_t'], precision=hp) \
        + params['b_in'][0] + pe[None]
    for l in range(num_layers):
        y = _layer_norm(h, params['ln1_w'][l], params['ln1_b'][l])
        qkv = jnp.einsum('bsi,io->bso', y, params['wqkv_t'][l], precision=hp) \
            + params['bqkv'][l]
        q = qkv[..., :H].reshape(B, S, nH, hd)
        k = qkv[..., H:2 * H].reshape(B, S, nH, hd)
        v = qkv[..., 2 * H:].reshape(B, S, nH, hd)
        s = jnp.einsum('bqhd,bkhd->bhqk', q, k, precision=hp) / jnp.sqrt(float(hd))
        p = jax.nn.softmax(s, axis=-1)
        o = jnp.einsum('bhqk,bkhd->bqhd', p, v, precision=hp).reshape(B, S, H)
        h = h + jnp.einsum('bsi,io->bso', o, params['wo_t'][l], precision=hp) \
            + params['bo'][l]
        y = _layer_norm(h, params['ln2_w'][l], params['ln2_b'][l])
        ff = jax.nn.relu(jnp.einsum('bsi,io->bso', y, params['w1_t'][l],
                                    precision=hp) + params['b1'][l])
        h = h + jnp.einsum('bsi,io->bso', ff, params['w2_t'][l], precision=hp) \
            + params['b2'][l]
    z = jax.nn.relu(jnp.dot(h[:, -1, :], params['wq1_t'], precision=hp)
                    + params['bq1'][0])
    return jnp.dot(z, params['wq2_t'], precision=hp) + params['bq2'][0]


if __name__ == "__main__":
    # small, module-consistent shapes (hidden_dim=128 is the module default)
    B, S = 64, 8
    state_dim, error_dim, action_dim = 12, 4, 4
    hidden_dim, num_heads, num_layers = 128, 4, 2
    ff_dim = 256  # PyTorch default dim_feedforward is 2048; smaller for the test

    key = jax.random.PRNGKey(0)
    ks = jax.random.split(key, 4)
    state = jax.random.normal(ks[0], (B, S, state_dim), jnp.float32)
    error = jax.random.normal(ks[1], (B, S, error_dim), jnp.float32)
    action = jax.random.normal(ks[2], (B, S, action_dim), jnp.float32)
    params = make_params(ks[3], state_dim + error_dim + action_dim,
                         hidden_dim, ff_dim, num_layers)

    # one-time packing + jitted forward (no per-call host sync / padding work)
    packed = pack_params(params, hidden_dim=hidden_dim, max_seq_len=S)
    fwd = jax.jit(functools.partial(critic_transformer_forward,
                                    hidden_dim=hidden_dim, num_heads=num_heads))

    q = jax.block_until_ready(fwd(state, error, action, packed))
    assert q.shape == (B, 1) and bool(jnp.all(jnp.isfinite(q)))

    q_ref = reference_forward(state, error, action, params,
                              hidden_dim=hidden_dim,
                              num_heads=num_heads,
                              num_layers=num_layers)
    err = float(jnp.max(jnp.abs(q - q_ref)))
    # bf16 MXU operands + approx-reciprocal softmax vs. the f32 reference.
    assert err < 7.5e-2, f"kernel/reference mismatch: max abs err = {err}"
    print("KERNEL_OK")
</pallas_src>

<mosaic_0001>
module attributes {stable_mosaic.version = 11 : i64} {
  func.func @critic_transformer_kernel(%arg0: i32, %arg1: i32, %arg2: memref<16x8x128xf32, #tpu.memory_space<vmem>>, %arg3: memref<8x128xf32, #tpu.memory_space<vmem>>, %arg4: memref<128x128xbf16, #tpu.memory_space<vmem>>, %arg5: memref<1x128xf32, #tpu.memory_space<vmem>>, %arg6: memref<1x1x128xf32, #tpu.memory_space<vmem>>, %arg7: memref<1x1x128xf32, #tpu.memory_space<vmem>>, %arg8: memref<1x128x384xbf16, #tpu.memory_space<vmem>>, %arg9: memref<1x1x384xf32, #tpu.memory_space<vmem>>, %arg10: memref<1x128x128xbf16, #tpu.memory_space<vmem>>, %arg11: memref<1x1x128xf32, #tpu.memory_space<vmem>>, %arg12: memref<1x1x128xf32, #tpu.memory_space<vmem>>, %arg13: memref<1x1x128xf32, #tpu.memory_space<vmem>>, %arg14: memref<1x128x256xbf16, #tpu.memory_space<vmem>>, %arg15: memref<1x1x256xf32, #tpu.memory_space<vmem>>, %arg16: memref<1x256x128xbf16, #tpu.memory_space<vmem>>, %arg17: memref<1x1x128xf32, #tpu.memory_space<vmem>>, %arg18: memref<128x128xbf16, #tpu.memory_space<vmem>>, %arg19: memref<1x128xf32, #tpu.memory_space<vmem>>, %arg20: memref<128x128xbf16, #tpu.memory_space<vmem>>, %arg21: memref<1x128xf32, #tpu.memory_space<vmem>>, %arg22: memref<16x128xf32, #tpu.memory_space<vmem>>, %arg23: memref<128x128xf32, #tpu.memory_space<vmem>>) attributes {dimension_semantics = [#tpu.dimension_semantics<parallel>, #tpu.dimension_semantics<arbitrary>], iteration_bounds = array<i64: 4, 2>, scalar_prefetch = 0 : i64, scratch_operands = 1 : i64, tpu.core_type = #tpu.core_type<tc>, window_params = [{transform_indices = @transform_0, window_bounds = array<i64: 16, 8, 128>}, {pipeline_mode = #tpu.pipeline_mode<synchronous>, transform_indices = @transform_1, window_bounds = array<i64: 8, 128>}, {pipeline_mode = #tpu.pipeline_mode<synchronous>, transform_indices = @transform_2, window_bounds = array<i64: 128, 128>}, {pipeline_mode = #tpu.pipeline_mode<synchronous>, transform_indices = @transform_3, window_bounds = array<i64: 1, 128>}, {transform_indices = @transform_4, window_bounds = array<i64: 1, 1, 128>}, {transform_indices = @transform_5, window_bounds = array<i64: 1, 1, 128>}, {transform_indices = @transform_6, window_bounds = array<i64: 1, 128, 384>}, {transform_indices = @transform_7, window_bounds = array<i64: 1, 1, 384>}, {transform_indices = @transform_8, window_bounds = array<i64: 1, 128, 128>}, {transform_indices = @transform_9, window_bounds = array<i64: 1, 1, 128>}, {transform_indices = @transform_10, window_bounds = array<i64: 1, 1, 128>}, {transform_indices = @transform_11, window_bounds = array<i64: 1, 1, 128>}, {transform_indices = @transform_12, window_bounds = array<i64: 1, 128, 256>}, {transform_indices = @transform_13, window_bounds = array<i64: 1, 1, 256>}, {transform_indices = @transform_14, window_bounds = array<i64: 1, 256, 128>}, {transform_indices = @transform_15, window_bounds = array<i64: 1, 1, 128>}, {pipeline_mode = #tpu.pipeline_mode<synchronous>, transform_indices = @transform_16, window_bounds = array<i64: 128, 128>}, {pipeline_mode = #tpu.pipeline_mode<synchronous>, transform_indices = @transform_17, window_bounds = array<i64: 1, 128>}, {pipeline_mode = #tpu.pipeline_mode<synchronous>, transform_indices = @transform_18, window_bounds = array<i64: 128, 128>}, {pipeline_mode = #tpu.pipeline_mode<synchronous>, transform_indices = @transform_19, window_bounds = array<i64: 1, 128>}, {transform_indices = @transform_20, window_bounds = array<i64: 16, 128>}]} {
    %c0_i32 = arith.constant 0 : i32
    %0 = arith.cmpi eq, %arg1, %c0_i32 : i32
    %1 = arith.extui %0 : i1 to i32
    %c0_i32_0 = arith.constant 0 : i32
    %2 = arith.cmpi ne, %1, %c0_i32_0 : i32
    scf.if %2 {
      %c0_76 = arith.constant 0 : index
      %c0_77 = arith.constant 0 : index
      %c0_78 = arith.constant 0 : index
      %181 = vector.load %arg2[%c0_76, %c0_77, %c0_78] : memref<16x8x128xf32, #tpu.memory_space<vmem>>, vector<16x8x128xf32>
      %182 = vector.shape_cast %181 : vector<16x8x128xf32> to vector<128x128xf32>
      %183 = arith.truncf %182 : vector<128x128xf32> to vector<128x128xbf16>
      %c0_79 = arith.constant 0 : index
      %c0_80 = arith.constant 0 : index
      %184 = vector.load %arg4[%c0_79, %c0_80] : memref<128x128xbf16, #tpu.memory_space<vmem>>, vector<128x128xbf16>
      %cst_81 = arith.constant dense<0.000000e+00> : vector<128x128xf32>
      %185 = tpu.matmul %183, %184, %cst_81 {dimension_numbers = #tpu.dot_dimension_numbers<[1], [0], [0], [1], [0, 0, 1, 1], [], []>} : vector<128x128xbf16>, vector<128x128xbf16>, vector<128x128xf32> -> vector<128x128xf32>
      %c0_82 = arith.constant 0 : index
      %c0_83 = arith.constant 0 : index
      %186 = vector.load %arg5[%c0_82, %c0_83] : memref<1x128xf32, #tpu.memory_space<vmem>>, vector<1x128xf32>
      %187 = vector.broadcast %186 : vector<1x128xf32> to vector<128x128xf32>
      %188 = arith.addf %185, %187 : vector<128x128xf32>
      %189 = vector.shape_cast %188 : vector<128x128xf32> to vector<16x8x128xf32>
      %c0_84 = arith.constant 0 : index
      %c0_85 = arith.constant 0 : index
      %190 = vector.load %arg3[%c0_84, %c0_85] : memref<8x128xf32, #tpu.memory_space<vmem>>, vector<8x128xf32>
      %191 = vector.shape_cast %190 : vector<8x128xf32> to vector<1x8x128xf32>
      %192 = vector.broadcast %191 : vector<1x8x128xf32> to vector<16x8x128xf32>
      %193 = arith.addf %189, %192 : vector<16x8x128xf32>
      %194 = vector.shape_cast %193 : vector<16x8x128xf32> to vector<128x128xf32>
      %c0_86 = arith.constant 0 : index
      %c0_87 = arith.constant 0 : index
      %195 = vector.load %arg23[%c0_86, %c0_87] : memref<128x128xf32, #tpu.memory_space<vmem>>, vector<128x128xf32>
      tpu.vector_store %arg23[%c0_86, %c0_87], %194 {strides = array<i32>} : memref<128x128xf32, #tpu.memory_space<vmem>>, vector<128x128xf32>,
    } else {
    }
    %c0 = arith.constant 0 : index
    %c0_1 = arith.constant 0 : index
    %3 = vector.load %arg23[%c0, %c0_1] : memref<128x128xf32, #tpu.memory_space<vmem>>, vector<128x128xf32>
    %c0_2 = arith.constant 0 : index
    %c0_3 = arith.constant 0 : index
    %c0_4 = arith.constant 0 : index
    %4 = vector.load %arg6[%c0_2, %c0_3, %c0_4] : memref<1x1x128xf32, #tpu.memory_space<vmem>>, vector<1x1x128xf32>
    %5 = vector.shape_cast %4 : vector<1x1x128xf32> to vector<1x128xf32>
    %c0_5 = arith.constant 0 : index
    %c0_6 = arith.constant 0 : index
    %c0_7 = arith.constant 0 : index
    %6 = vector.load %arg7[%c0_5, %c0_6, %c0_7] : memref<1x1x128xf32, #tpu.memory_space<vmem>>, vector<1x1x128xf32>
    %7 = vector.shape_cast %6 : vector<1x1x128xf32> to vector<1x128xf32>
    %cst = arith.constant dense<0.000000e+00> : vector<128xf32>
    %8 = vector.multi_reduction <add>, %3, %cst [1] : vector<128x128xf32> to vector<128xf32>
    %9 = vector.shape_cast %8 : vector<128xf32> to vector<128x1xf32>
    %cst_8 = arith.constant 1.280000e+02 : f32
    %10 = vector.broadcast %cst_8 : f32 to vector<128x1xf32>
    %11 = arith.divf %9, %10 : vector<128x1xf32>
    %12 = vector.broadcast %11 : vector<128x1xf32> to vector<128x128xf32>
    %13 = arith.subf %3, %12 : vector<128x128xf32>
    %14 = arith.mulf %13, %13 : vector<128x128xf32>
    %cst_9 = arith.constant dense<0.000000e+00> : vector<128xf32>
    %15 = vector.multi_reduction <add>, %14, %cst_9 [1] : vector<128x128xf32> to vector<128xf32>
    %16 = vector.shape_cast %15 : vector<128xf32> to vector<128x1xf32>
    %cst_10 = arith.constant 1.280000e+02 : f32
    %17 = vector.broadcast %cst_10 : f32 to vector<128x1xf32>
    %18 = arith.divf %16, %17 : vector<128x1xf32>
    %cst_11 = arith.constant 9.99999974E-6 : f32
    %19 = vector.broadcast %cst_11 : f32 to vector<128x1xf32>
    %20 = arith.addf %18, %19 : vector<128x1xf32>
    %21 = math.rsqrt %20 : vector<128x1xf32>
    %22 = vector.broadcast %21 : vector<128x1xf32> to vector<128x128xf32>
    %23 = arith.mulf %13, %22 : vector<128x128xf32>
    %24 = vector.broadcast %5 : vector<1x128xf32> to vector<128x128xf32>
    %25 = arith.mulf %23, %24 : vector<128x128xf32>
    %26 = vector.broadcast %7 : vector<1x128xf32> to vector<128x128xf32>
    %27 = arith.addf %25, %26 : vector<128x128xf32>
    %28 = arith.truncf %27 : vector<128x128xf32> to vector<128x128xbf16>
    %c0_12 = arith.constant 0 : index
    %c0_13 = arith.constant 0 : index
    %c0_14 = arith.constant 0 : index
    %29 = vector.load %arg8[%c0_12, %c0_13, %c0_14] : memref<1x128x384xbf16, #tpu.memory_space<vmem>>, vector<1x128x384xbf16>
    %30 = vector.shape_cast %29 : vector<1x128x384xbf16> to vector<128x384xbf16>
    %cst_15 = arith.constant dense<0.000000e+00> : vector<128x384xf32>
    %31 = tpu.matmul %28, %30, %cst_15 {dimension_numbers = #tpu.dot_dimension_numbers<[1], [0], [0], [1], [0, 0, 1, 1], [], []>} : vector<128x128xbf16>, vector<128x384xbf16>, vector<128x384xf32> -> vector<128x384xf32>
    %c0_16 = arith.constant 0 : index
    %c0_17 = arith.constant 0 : index
    %c0_18 = arith.constant 0 : index
    %32 = vector.load %arg9[%c0_16, %c0_17, %c0_18] : memref<1x1x384xf32, #tpu.memory_space<vmem>>, vector<1x1x384xf32>
    %33 = vector.shape_cast %32 : vector<1x1x384xf32> to vector<1x384xf32>
    %34 = vector.broadcast %33 : vector<1x384xf32> to vector<128x384xf32>
    %35 = arith.addf %31, %34 : vector<128x384xf32>
    %36 = vector.shape_cast %35 : vector<128x384xf32> to vector<16x8x384xf32>
    %37 = vector.extract_strided_slice %36 {offsets = [0, 0, 0], sizes = [16, 8, 32], strides = [1, 1, 1]} : vector<16x8x384xf32> to vector<16x8x32xf32>
    %38 = arith.truncf %37 : vector<16x8x32xf32> to vector<16x8x32xbf16>
    %39 = vector.extract_strided_slice %36 {offsets = [0, 0, 128], sizes = [16, 8, 32], strides = [1, 1, 1]} : vector<16x8x384xf32> to vector<16x8x32xf32>
    %40 = arith.truncf %39 : vector<16x8x32xf32> to vector<16x8x32xbf16>
    %41 = vector.extract_strided_slice %36 {offsets = [0, 0, 256], sizes = [16, 8, 32], strides = [1, 1, 1]} : vector<16x8x384xf32> to vector<16x8x32xf32>
    %42 = arith.truncf %41 : vector<16x8x32xf32> to vector<16x8x32xbf16>
    "tpu.trace_start"() <{level = 10 : i32, message = "bqd,bkd->bqk"}> : () -> ()
    %cst_19 = arith.constant dense<0.000000e+00> : vector<16x8x8xf32>
    %43 = tpu.matmul %38, %40, %cst_19 {dimension_numbers = #tpu.dot_dimension_numbers<[2], [2], [1], [1], [0, 0, 0, 1, 1, 1], [0], [0]>} : vector<16x8x32xbf16>, vector<16x8x32xbf16>, vector<16x8x8xf32> -> vector<16x8x8xf32>
    "tpu.trace_stop"() : () -> ()
    %cst_20 = arith.constant 0.176776692 : f32
    %44 = vector.broadcast %cst_20 : f32 to vector<16x8x8xf32>
    %45 = arith.mulf %43, %44 : vector<16x8x8xf32>
    %cst_21 = arith.constant dense<0xFF800000> : vector<16x8xf32>
    %46 = vector.multi_reduction <maximumf>, %45, %cst_21 [2] : vector<16x8x8xf32> to vector<16x8xf32>
    %47 = vector.shape_cast %46 : vector<16x8xf32> to vector<16x8x1xf32>
    %48 = vector.broadcast %47 : vector<16x8x1xf32> to vector<16x8x8xf32>
    %49 = arith.subf %45, %48 : vector<16x8x8xf32>
    %50 = math.exp %49 : vector<16x8x8xf32>
    %cst_22 = arith.constant dense<0.000000e+00> : vector<16x8xf32>
    %51 = vector.multi_reduction <add>, %50, %cst_22 [2] : vector<16x8x8xf32> to vector<16x8xf32>
    %52 = vector.shape_cast %51 : vector<16x8xf32> to vector<16x8x1xf32>
    %53 = tpu.reciprocal %52 {approx = true} : vector<16x8x1xf32> -> vector<16x8x1xf32>
    %54 = vector.broadcast %53 : vector<16x8x1xf32> to vector<16x8x8xf32>
    %55 = arith.mulf %50, %54 : vector<16x8x8xf32>
    %56 = arith.truncf %55 : vector<16x8x8xf32> to vector<16x8x8xbf16>
    "tpu.trace_start"() <{level = 10 : i32, message = "bqk,bkd->bqd"}> : () -> ()
    %cst_23 = arith.constant dense<0.000000e+00> : vector<16x8x32xf32>
    %57 = tpu.matmul %56, %42, %cst_23 {dimension_numbers = #tpu.dot_dimension_numbers<[2], [1], [1], [2], [0, 0, 0, 1, 1, 2], [0], [0]>} : vector<16x8x8xbf16>, vector<16x8x32xbf16>, vector<16x8x32xf32> -> vector<16x8x32xf32>
    "tpu.trace_stop"() : () -> ()
    %58 = vector.extract_strided_slice %36 {offsets = [0, 0, 32], sizes = [16, 8, 32], strides = [1, 1, 1]} : vector<16x8x384xf32> to vector<16x8x32xf32>
    %59 = arith.truncf %58 : vector<16x8x32xf32> to vector<16x8x32xbf16>
    %60 = vector.extract_strided_slice %36 {offsets = [0, 0, 160], sizes = [16, 8, 32], strides = [1, 1, 1]} : vector<16x8x384xf32> to vector<16x8x32xf32>
    %61 = arith.truncf %60 : vector<16x8x32xf32> to vector<16x8x32xbf16>
    %62 = vector.extract_strided_slice %36 {offsets = [0, 0, 288], sizes = [16, 8, 32], strides = [1, 1, 1]} : vector<16x8x384xf32> to vector<16x8x32xf32>
    %63 = arith.truncf %62 : vector<16x8x32xf32> to vector<16x8x32xbf16>
    "tpu.trace_start"() <{level = 10 : i32, message = "bqd,bkd->bqk"}> : () -> ()
    %cst_24 = arith.constant dense<0.000000e+00> : vector<16x8x8xf32>
    %64 = tpu.matmul %59, %61, %cst_24 {dimension_numbers = #tpu.dot_dimension_numbers<[2], [2], [1], [1], [0, 0, 0, 1, 1, 1], [0], [0]>} : vector<16x8x32xbf16>, vector<16x8x32xbf16>, vector<16x8x8xf32> -> vector<16x8x8xf32>
    "tpu.trace_stop"() : () -> ()
    %cst_25 = arith.constant 0.176776692 : f32
    %65 = vector.broadcast %cst_25 : f32 to vector<16x8x8xf32>
    %66 = arith.mulf %64, %65 : vector<16x8x8xf32>
    %cst_26 = arith.constant dense<0xFF800000> : vector<16x8xf32>
    %67 = vector.multi_reduction <maximumf>, %66, %cst_26 [2] : vector<16x8x8xf32> to vector<16x8xf32>
    %68 = vector.shape_cast %67 : vector<16x8xf32> to vector<16x8x1xf32>
    %69 = vector.broadcast %68 : vector<16x8x1xf32> to vector<16x8x8xf32>
    %70 = arith.subf %66, %69 : vector<16x8x8xf32>
    %71 = math.exp %70 : vector<16x8x8xf32>
    %cst_27 = arith.constant dense<0.000000e+00> : vector<16x8xf32>
    %72 = vector.multi_reduction <add>, %71, %cst_27 [2] : vector<16x8x8xf32> to vector<16x8xf32>
    %73 = vector.shape_cast %72 : vector<16x8xf32> to vector<16x8x1xf32>
    %74 = tpu.reciprocal %73 {approx = true} : vector<16x8x1xf32> -> vector<16x8x1xf32>
    %75 = vector.broadcast %74 : vector<16x8x1xf32> to vector<16x8x8xf32>
    %76 = arith.mulf %71, %75 : vector<16x8x8xf32>
    %77 = arith.truncf %76 : vector<16x8x8xf32> to vector<16x8x8xbf16>
    "tpu.trace_start"() <{level = 10 : i32, message = "bqk,bkd->bqd"}> : () -> ()
    %cst_28 = arith.constant dense<0.000000e+00> : vector<16x8x32xf32>
    %78 = tpu.matmul %77, %63, %cst_28 {dimension_numbers = #tpu.dot_dimension_numbers<[2], [1], [1], [2], [0, 0, 0, 1, 1, 2], [0], [0]>} : vector<16x8x8xbf16>, vector<16x8x32xbf16>, vector<16x8x32xf32> -> vector<16x8x32xf32>
    "tpu.trace_stop"() : () -> ()
    %79 = vector.extract_strided_slice %36 {offsets = [0, 0, 64], sizes = [16, 8, 32], strides = [1, 1, 1]} : vector<16x8x384xf32> to vector<16x8x32xf32>
    %80 = arith.truncf %79 : vector<16x8x32xf32> to vector<16x8x32xbf16>
    %81 = vector.extract_strided_slice %36 {offsets = [0, 0, 192], sizes = [16, 8, 32], strides = [1, 1, 1]} : vector<16x8x384xf32> to vector<16x8x32xf32>
    %82 = arith.truncf %81 : vector<16x8x32xf32> to vector<16x8x32xbf16>
    %83 = vector.extract_strided_slice %36 {offsets = [0, 0, 320], sizes = [16, 8, 32], strides = [1, 1, 1]} : vector<16x8x384xf32> to vector<16x8x32xf32>
    %84 = arith.truncf %83 : vector<16x8x32xf32> to vector<16x8x32xbf16>
    "tpu.trace_start"() <{level = 10 : i32, message = "bqd,bkd->bqk"}> : () -> ()
    %cst_29 = arith.constant dense<0.000000e+00> : vector<16x8x8xf32>
    %85 = tpu.matmul %80, %82, %cst_29 {dimension_numbers = #tpu.dot_dimension_numbers<[2], [2], [1], [1], [0, 0, 0, 1, 1, 1], [0], [0]>} : vector<16x8x32xbf16>, vector<16x8x32xbf16>, vector<16x8x8xf32> -> vector<16x8x8xf32>
    "tpu.trace_stop"() : () -> ()
    %cst_30 = arith.constant 0.176776692 : f32
    %86 = vector.broadcast %cst_30 : f32 to vector<16x8x8xf32>
    %87 = arith.mulf %85, %86 : vector<16x8x8xf32>
    %cst_31 = arith.constant dense<0xFF800000> : vector<16x8xf32>
    %88 = vector.multi_reduction <maximumf>, %87, %cst_31 [2] : vector<16x8x8xf32> to vector<16x8xf32>
    %89 = vector.shape_cast %88 : vector<16x8xf32> to vector<16x8x1xf32>
    %90 = vector.broadcast %89 : vector<16x8x1xf32> to vector<16x8x8xf32>
    %91 = arith.subf %87, %90 : vector<16x8x8xf32>
    %92 = math.exp %91 : vector<16x8x8xf32>
    %cst_32 = arith.constant dense<0.000000e+00> : vector<16x8xf32>
    %93 = vector.multi_reduction <add>, %92, %cst_32 [2] : vector<16x8x8xf32> to vector<16x8xf32>
    %94 = vector.shape_cast %93 : vector<16x8xf32> to vector<16x8x1xf32>
    %95 = tpu.reciprocal %94 {approx = true} : vector<16x8x1xf32> -> vector<16x8x1xf32>
    %96 = vector.broadcast %95 : vector<16x8x1xf32> to vector<16x8x8xf32>
    %97 = arith.mulf %92, %96 : vector<16x8x8xf32>
    %98 = arith.truncf %97 : vector<16x8x8xf32> to vector<16x8x8xbf16>
    "tpu.trace_start"() <{level = 10 : i32, message = "bqk,bkd->bqd"}> : () -> ()
    %cst_33 = arith.constant dense<0.000000e+00> : vector<16x8x32xf32>
    %99 = tpu.matmul %98, %84, %cst_33 {dimension_numbers = #tpu.dot_dimension_numbers<[2], [1], [1], [2], [0, 0, 0, 1, 1, 2], [0], [0]>} : vector<16x8x8xbf16>, vector<16x8x32xbf16>, vector<16x8x32xf32> -> vector<16x8x32xf32>
    "tpu.trace_stop"() : () -> ()
    %100 = vector.extract_strided_slice %36 {offsets = [0, 0, 96], sizes = [16, 8, 32], strides = [1, 1, 1]} : vector<16x8x384xf32> to vector<16x8x32xf32>
    %101 = arith.truncf %100 : vector<16x8x32xf32> to vector<16x8x32xbf16>
    %102 = vector.extract_strided_slice %36 {offsets = [0, 0, 224], sizes = [16, 8, 32], strides = [1, 1, 1]} : vector<16x8x384xf32> to vector<16x8x32xf32>
    %103 = arith.truncf %102 : vector<16x8x32xf32> to vector<16x8x32xbf16>
    %104 = vector.extract_strided_slice %36 {offsets = [0, 0, 352], sizes = [16, 8, 32], strides = [1, 1, 1]} : vector<16x8x384xf32> to vector<16x8x32xf32>
    %105 = arith.truncf %104 : vector<16x8x32xf32> to vector<16x8x32xbf16>
    "tpu.trace_start"() <{level = 10 : i32, message = "bqd,bkd->bqk"}> : () -> ()
    %cst_34 = arith.constant dense<0.000000e+00> : vector<16x8x8xf32>
    %106 = tpu.matmul %101, %103, %cst_34 {dimension_numbers = #tpu.dot_dimension_numbers<[2], [2], [1], [1], [0, 0, 0, 1, 1, 1], [0], [0]>} : vector<16x8x32xbf16>, vector<16x8x32xbf16>, vector<16x8x8xf32> -> vector<16x8x8xf32>
    "tpu.trace_stop"() : () -> ()
    %cst_35 = arith.constant 0.176776692 : f32
    %107 = vector.broadcast %cst_35 : f32 to vector<16x8x8xf32>
    %108 = arith.mulf %106, %107 : vector<16x8x8xf32>
    %cst_36 = arith.constant dense<0xFF800000> : vector<16x8xf32>
    %109 = vector.multi_reduction <maximumf>, %108, %cst_36 [2] : vector<16x8x8xf32> to vector<16x8xf32>
    %110 = vector.shape_cast %109 : vector<16x8xf32> to vector<16x8x1xf32>
    %111 = vector.broadcast %110 : vector<16x8x1xf32> to vector<16x8x8xf32>
    %112 = arith.subf %108, %111 : vector<16x8x8xf32>
    %113 = math.exp %112 : vector<16x8x8xf32>
    %cst_37 = arith.constant dense<0.000000e+00> : vector<16x8xf32>
    %114 = vector.multi_reduction <add>, %113, %cst_37 [2] : vector<16x8x8xf32> to vector<16x8xf32>
    %115 = vector.shape_cast %114 : vector<16x8xf32> to vector<16x8x1xf32>
    %116 = tpu.reciprocal %115 {approx = true} : vector<16x8x1xf32> -> vector<16x8x1xf32>
    %117 = vector.broadcast %116 : vector<16x8x1xf32> to vector<16x8x8xf32>
    %118 = arith.mulf %113, %117 : vector<16x8x8xf32>
    %119 = arith.truncf %118 : vector<16x8x8xf32> to vector<16x8x8xbf16>
    "tpu.trace_start"() <{level = 10 : i32, message = "bqk,bkd->bqd"}> : () -> ()
    %cst_38 = arith.constant dense<0.000000e+00> : vector<16x8x32xf32>
    %120 = tpu.matmul %119, %105, %cst_38 {dimension_numbers = #tpu.dot_dimension_numbers<[2], [1], [1], [2], [0, 0, 0, 1, 1, 2], [0], [0]>} : vector<16x8x8xbf16>, vector<16x8x32xbf16>, vector<16x8x32xf32> -> vector<16x8x32xf32>
    "tpu.trace_stop"() : () -> ()
    %121 = tpu.concatenate %57, %78, %99, %120 in 2 : vector<16x8x32xf32>, vector<16x8x32xf32>, vector<16x8x32xf32>, vector<16x8x32xf32> -> vector<16x8x128xf32>
    %122 = vector.shape_cast %121 : vector<16x8x128xf32> to vector<128x128xf32>
    %123 = arith.truncf %122 : vector<128x128xf32> to vector<128x128xbf16>
    %c0_39 = arith.constant 0 : index
    %c0_40 = arith.constant 0 : index
    %c0_41 = arith.constant 0 : index
    %124 = vector.load %arg10[%c0_39, %c0_40, %c0_41] : memref<1x128x128xbf16, #tpu.memory_space<vmem>>, vector<1x128x128xbf16>
    %125 = vector.shape_cast %124 : vector<1x128x128xbf16> to vector<128x128xbf16>
    %cst_42 = arith.constant dense<0.000000e+00> : vector<128x128xf32>
    %126 = tpu.matmul %123, %125, %cst_42 {dimension_numbers = #tpu.dot_dimension_numbers<[1], [0], [0], [1], [0, 0, 1, 1], [], []>} : vector<128x128xbf16>, vector<128x128xbf16>, vector<128x128xf32> -> vector<128x128xf32>
    %127 = arith.addf %3, %126 : vector<128x128xf32>
    %c0_43 = arith.constant 0 : index
    %c0_44 = arith.constant 0 : index
    %c0_45 = arith.constant 0 : index
    %128 = vector.load %arg11[%c0_43, %c0_44, %c0_45] : memref<1x1x128xf32, #tpu.memory_space<vmem>>, vector<1x1x128xf32>
    %129 = vector.shape_cast %128 : vector<1x1x128xf32> to vector<1x128xf32>
    %130 = vector.broadcast %129 : vector<1x128xf32> to vector<128x128xf32>
    %131 = arith.addf %127, %130 : vector<128x128xf32>
    %c0_46 = arith.constant 0 : index
    %c0_47 = arith.constant 0 : index
    %c0_48 = arith.constant 0 : index
    %132 = vector.load %arg12[%c0_46, %c0_47, %c0_48] : memref<1x1x128xf32, #tpu.memory_space<vmem>>, vector<1x1x128xf32>
    %133 = vector.shape_cast %132 : vector<1x1x128xf32> to vector<1x128xf32>
    %c0_49 = arith.constant 0 : index
    %c0_50 = arith.constant 0 : index
    %c0_51 = arith.constant 0 : index
    %134 = vector.load %arg13[%c0_49, %c0_50, %c0_51] : memref<1x1x128xf32, #tpu.memory_space<vmem>>, vector<1x1x128xf32>
    %135 = vector.shape_cast %134 : vector<1x1x128xf32> to vector<1x128xf32>
    %cst_52 = arith.constant dense<0.000000e+00> : vector<128xf32>
    %136 = vector.multi_reduction <add>, %131, %cst_52 [1] : vector<128x128xf32> to vector<128xf32>
    %137 = vector.shape_cast %136 : vector<128xf32> to vector<128x1xf32>
    %cst_53 = arith.constant 1.280000e+02 : f32
    %138 = vector.broadcast %cst_53 : f32 to vector<128x1xf32>
    %139 = arith.divf %137, %138 : vector<128x1xf32>
    %140 = vector.broadcast %139 : vector<128x1xf32> to vector<128x128xf32>
    %141 = arith.subf %131, %140 : vector<128x128xf32>
    %142 = arith.mulf %141, %141 : vector<128x128xf32>
    %cst_54 = arith.constant dense<0.000000e+00> : vector<128xf32>
    %143 = vector.multi_reduction <add>, %142, %cst_54 [1] : vector<128x128xf32> to vector<128xf32>
    %144 = vector.shape_cast %143 : vector<128xf32> to vector<128x1xf32>
    %cst_55 = arith.constant 1.280000e+02 : f32
    %145 = vector.broadcast %cst_55 : f32 to vector<128x1xf32>
    %146 = arith.divf %144, %145 : vector<128x1xf32>
    %cst_56 = arith.constant 9.99999974E-6 : f32
    %147 = vector.broadcast %cst_56 : f32 to vector<128x1xf32>
    %148 = arith.addf %146, %147 : vector<128x1xf32>
    %149 = math.rsqrt %148 : vector<128x1xf32>
    %150 = vector.broadcast %149 : vector<128x1xf32> to vector<128x128xf32>
    %151 = arith.mulf %141, %150 : vector<128x128xf32>
    %152 = vector.broadcast %133 : vector<1x128xf32> to vector<128x128xf32>
    %153 = arith.mulf %151, %152 : vector<128x128xf32>
    %154 = vector.broadcast %135 : vector<1x128xf32> to vector<128x128xf32>
    %155 = arith.addf %153, %154 : vector<128x128xf32>
    %156 = arith.truncf %155 : vector<128x128xf32> to vector<128x128xbf16>
    %cst_57 = arith.constant 0.000000e+00 : f32
    %157 = vector.broadcast %cst_57 : f32 to vector<128x128xf32>
    %c0_58 = arith.constant 0 : index
    %c0_59 = arith.constant 0 : index
    %c0_60 = arith.constant 0 : index
    %158 = vector.load %arg14[%c0_58, %c0_59, %c0_60] : memref<1x128x256xbf16, #tpu.memory_space<vmem>>, vector<1x128x256xbf16>
    %159 = vector.shape_cast %158 : vector<1x128x256xbf16> to vector<128x256xbf16>
    %cst_61 = arith.constant dense<0.000000e+00> : vector<128x256xf32>
    %160 = tpu.matmul %156, %159, %cst_61 {dimension_numbers = #tpu.dot_dimension_numbers<[1], [0], [0], [1], [0, 0, 1, 1], [], []>} : vector<128x128xbf16>, vector<128x256xbf16>, vector<128x256xf32> -> vector<128x256xf32>
    %c0_62 = arith.constant 0 : index
    %c0_63 = arith.constant 0 : index
    %c0_64 = arith.constant 0 : index
    %161 = vector.load %arg15[%c0_62, %c0_63, %c0_64] : memref<1x1x256xf32, #tpu.memory_space<vmem>>, vector<1x1x256xf32>
    %162 = vector.shape_cast %161 : vector<1x1x256xf32> to vector<1x256xf32>
    %163 = vector.broadcast %162 : vector<1x256xf32> to vector<128x256xf32>
    %164 = arith.addf %160, %163 : vector<128x256xf32>
    %cst_65 = arith.constant 0.000000e+00 : f32
    %165 = vector.broadcast %cst_65 : f32 to vector<128x256xf32>
    %166 = arith.maximumf %164, %165 : vector<128x256xf32>
    %167 = arith.truncf %166 : vector<128x256xf32> to vector<128x256xbf16>
    %c0_66 = arith.constant 0 : index
    %c0_67 = arith.constant 0 : index
    %c0_68 = arith.constant 0 : index
    %168 = vector.load %arg16[%c0_66, %c0_67, %c0_68] : memref<1x256x128xbf16, #tpu.memory_space<vmem>>, vector<1x256x128xbf16>
    %169 = vector.shape_cast %168 : vector<1x256x128xbf16> to vector<256x128xbf16>
    %cst_69 = arith.constant dense<0.000000e+00> : vector<128x128xf32>
    %170 = tpu.matmul %167, %169, %cst_69 {dimension_numbers = #tpu.dot_dimension_numbers<[1], [0], [0], [1], [0, 0, 1, 1], [], []>} : vector<128x256xbf16>, vector<256x128xbf16>, vector<128x128xf32> -> vector<128x128xf32>
    %171 = arith.addf %157, %170 : vector<128x128xf32>
    %172 = arith.addf %131, %171 : vector<128x128xf32>
    %c0_70 = arith.constant 0 : index
    %c0_71 = arith.constant 0 : index
    %c0_72 = arith.constant 0 : index
    %173 = vector.load %arg17[%c0_70, %c0_71, %c0_72] : memref<1x1x128xf32, #tpu.memory_space<vmem>>, vector<1x1x128xf32>
    %174 = vector.shape_cast %173 : vector<1x1x128xf32> to vector<1x128xf32>
    %175 = vector.broadcast %174 : vector<1x128xf32> to vector<128x128xf32>
    %176 = arith.addf %172, %175 : vector<128x128xf32>
    %c0_73 = arith.constant 0 : index
    %c0_74 = arith.constant 0 : index
    %177 = vector.load %arg23[%c0_73, %c0_74] : memref<128x128xf32, #tpu.memory_space<vmem>>, vector<128x128xf32>
    tpu.vector_store %arg23[%c0_73, %c0_74], %176 {strides = array<i32>} : memref<128x128xf32, #tpu.memory_space<vmem>>, vector<128x128xf32>,
    %c1_i32 = arith.constant 1 : i32
    %178 = arith.cmpi eq, %arg1, %c1_i32 : i32
    %179 = arith.extui %178 : i1 to i32
    %c0_i32_75 = arith.constant 0 : i32
    %180 = arith.cmpi ne, %179, %c0_i32_75 : i32
    scf.if %180 {
      %181 = vector.shape_cast %176 : vector<128x128xf32> to vector<16x8x128xf32>
      %182 = vector.extract_strided_slice %181 {offsets = [0, 7, 0], sizes = [16, 1, 128], strides = [1, 1, 1]} : vector<16x8x128xf32> to vector<16x1x128xf32>
      %183 = vector.shape_cast %182 : vector<16x1x128xf32> to vector<16x128xf32>
      %184 = arith.truncf %183 : vector<16x128xf32> to vector<16x128xbf16>
      %c0_76 = arith.constant 0 : index
      %c0_77 = arith.constant 0 : index
      %185 = vector.load %arg18[%c0_76, %c0_77] : memref<128x128xbf16, #tpu.memory_space<vmem>>, vector<128x128xbf16>
      %cst_78 = arith.constant dense<0.000000e+00> : vector<16x128xf32>
      %186 = tpu.matmul %184, %185, %cst_78 {dimension_numbers = #tpu.dot_dimension_numbers<[1], [0], [0], [1], [0, 0, 1, 1], [], []>} : vector<16x128xbf16>, vector<128x128xbf16>, vector<16x128xf32> -> vector<16x128xf32>
      %c0_79 = arith.constant 0 : index
      %c0_80 = arith.constant 0 : index
      %187 = vector.load %arg19[%c0_79, %c0_80] : memref<1x128xf32, #tpu.memory_space<vmem>>, vector<1x128xf32>
      %188 = vector.broadcast %187 : vector<1x128xf32> to vector<16x128xf32>
      %189 = arith.addf %186, %188 : vector<16x128xf32>
      %cst_81 = arith.constant 0.000000e+00 : f32
      %190 = vector.broadcast %cst_81 : f32 to vector<16x128xf32>
      %191 = arith.maximumf %189, %190 : vector<16x128xf32>
      %192 = arith.truncf %191 : vector<16x128xf32> to vector<16x128xbf16>
      %c0_82 = arith.constant 0 : index
      %c0_83 = arith.constant 0 : index
      %193 = vector.load %arg20[%c0_82, %c0_83] : memref<128x128xbf16, #tpu.memory_space<vmem>>, vector<128x128xbf16>
      %cst_84 = arith.constant dense<0.000000e+00> : vector<16x128xf32>
      %194 = tpu.matmul %192, %193, %cst_84 {dimension_numbers = #tpu.dot_dimension_numbers<[1], [0], [0], [1], [0, 0, 1, 1], [], []>} : vector<16x128xbf16>, vector<128x128xbf16>, vector<16x128xf32> -> vector<16x128xf32>
      %c0_85 = arith.constant 0 : index
      %c0_86 = arith.constant 0 : index
      %195 = vector.load %arg21[%c0_85, %c0_86] : memref<1x128xf32, #tpu.memory_space<vmem>>, vector<1x128xf32>
      %196 = vector.broadcast %195 : vector<1x128xf32> to vector<16x128xf32>
      %197 = arith.addf %194, %196 : vector<16x128xf32>
      %c0_87 = arith.constant 0 : index
      %c0_88 = arith.constant 0 : index
      %198 = vector.load %arg22[%c0_87, %c0_88] : memref<16x128xf32, #tpu.memory_space<vmem>>, vector<16x128xf32>
      tpu.vector_store %arg22[%c0_87, %c0_88], %197 {strides = array<i32>} : memref<16x128xf32, #tpu.memory_space<vmem>>, vector<16x128xf32>,
    } else {
    }
    return
  }
  func.func @transform_0(%arg0: i32, %arg1: i32) -> (i32, i32, i32) {
    %c0_i32 = arith.constant 0 : i32
    %c0_i32_0 = arith.constant 0 : i32
    %c0_i32_1 = arith.constant 0 : i32
    return %arg0, %c0_i32, %c0_i32_0 : i32, i32, i32
  }
  func.func @transform_1(%arg0: i32, %arg1: i32) -> (i32, i32) {
    %c0_i32 = arith.constant 0 : i32
    %c0_i32_0 = arith.constant 0 : i32
    %c0_i32_1 = arith.constant 0 : i32
    return %c0_i32, %c0_i32_0 : i32, i32
  }
  func.func @transform_2(%arg0: i32, %arg1: i32) -> (i32, i32) {
    %c0_i32 = arith.constant 0 : i32
    %c0_i32_0 = arith.constant 0 : i32
    %c0_i32_1 = arith.constant 0 : i32
    return %c0_i32, %c0_i32_0 : i32, i32
  }
  func.func @transform_3(%arg0: i32, %arg1: i32) -> (i32, i32) {
    %c0_i32 = arith.constant 0 : i32
    %c0_i32_0 = arith.constant 0 : i32
    %c0_i32_1 = arith.constant 0 : i32
    return %c0_i32, %c0_i32_0 : i32, i32
  }
  func.func @transform_4(%arg0: i32, %arg1: i32) -> (i32, i32, i32) {
    %c0_i32 = arith.constant 0 : i32
    %c0_i32_0 = arith.constant 0 : i32
    %c0_i32_1 = arith.constant 0 : i32
    return %arg1, %c0_i32, %c0_i32_0 : i32, i32, i32
  }
  func.func @transform_5(%arg0: i32, %arg1: i32) -> (i32, i32, i32) {
    %c0_i32 = arith.constant 0 : i32
    %c0_i32_0 = arith.constant 0 : i32
    %c0_i32_1 = arith.constant 0 : i32
    return %arg1, %c0_i32, %c0_i32_0 : i32, i32, i32
  }
  func.func @transform_6(%arg0: i32, %arg1: i32) -> (i32, i32, i32) {
    %c0_i32 = arith.constant 0 : i32
    %c0_i32_0 = arith.constant 0 : i32
    %c0_i32_1 = arith.constant 0 : i32
    return %arg1, %c0_i32, %c0_i32_0 : i32, i32, i32
  }
  func.func @transform_7(%arg0: i32, %arg1: i32) -> (i32, i32, i32) {
    %c0_i32 = arith.constant 0 : i32
    %c0_i32_0 = arith.constant 0 : i32
    %c0_i32_1 = arith.constant 0 : i32
    return %arg1, %c0_i32, %c0_i32_0 : i32, i32, i32
  }
  func.func @transform_8(%arg0: i32, %arg1: i32) -> (i32, i32, i32) {
    %c0_i32 = arith.constant 0 : i32
    %c0_i32_0 = arith.constant 0 : i32
    %c0_i32_1 = arith.constant 0 : i32
    return %arg1, %c0_i32, %c0_i32_0 : i32, i32, i32
  }
  func.func @transform_9(%arg0: i32, %arg1: i32) -> (i32, i32, i32) {
    %c0_i32 = arith.constant 0 : i32
    %c0_i32_0 = arith.constant 0 : i32
    %c0_i32_1 = arith.constant 0 : i32
    return %arg1, %c0_i32, %c0_i32_0 : i32, i32, i32
  }
  func.func @transform_10(%arg0: i32, %arg1: i32) -> (i32, i32, i32) {
    %c0_i32 = arith.constant 0 : i32
    %c0_i32_0 = arith.constant 0 : i32
    %c0_i32_1 = arith.constant 0 : i32
    return %arg1, %c0_i32, %c0_i32_0 : i32, i32, i32
  }
  func.func @transform_11(%arg0: i32, %arg1: i32) -> (i32, i32, i32) {
    %c0_i32 = arith.constant 0 : i32
    %c0_i32_0 = arith.constant 0 : i32
    %c0_i32_1 = arith.constant 0 : i32
    return %arg1, %c0_i32, %c0_i32_0 : i32, i32, i32
  }
  func.func @transform_12(%arg0: i32, %arg1: i32) -> (i32, i32, i32) {
    %c0_i32 = arith.constant 0 : i32
    %c0_i32_0 = arith.constant 0 : i32
    %c0_i32_1 = arith.constant 0 : i32
    return %arg1, %c0_i32, %c0_i32_0 : i32, i32, i32
  }
  func.func @transform_13(%arg0: i32, %arg1: i32) -> (i32, i32, i32) {
    %c0_i32 = arith.constant 0 : i32
    %c0_i32_0 = arith.constant 0 : i32
    %c0_i32_1 = arith.constant 0 : i32
    return %arg1, %c0_i32, %c0_i32_0 : i32, i32, i32
  }
  func.func @transform_14(%arg0: i32, %arg1: i32) -> (i32, i32, i32) {
    %c0_i32 = arith.constant 0 : i32
    %c0_i32_0 = arith.constant 0 : i32
    %c0_i32_1 = arith.constant 0 : i32
    return %arg1, %c0_i32, %c0_i32_0 : i32, i32, i32
  }
  func.func @transform_15(%arg0: i32, %arg1: i32) -> (i32, i32, i32) {
    %c0_i32 = arith.constant 0 : i32
    %c0_i32_0 = arith.constant 0 : i32
    %c0_i32_1 = arith.constant 0 : i32
    return %arg1, %c0_i32, %c0_i32_0 : i32, i32, i32
  }
  func.func @transform_16(%arg0: i32, %arg1: i32) -> (i32, i32) {
    %c0_i32 = arith.constant 0 : i32
    %c0_i32_0 = arith.constant 0 : i32
    %c0_i32_1 = arith.constant 0 : i32
    return %c0_i32, %c0_i32_0 : i32, i32
  }
  func.func @transform_17(%arg0: i32, %arg1: i32) -> (i32, i32) {
    %c0_i32 = arith.constant 0 : i32
    %c0_i32_0 = arith.constant 0 : i32
    %c0_i32_1 = arith.constant 0 : i32
    return %c0_i32, %c0_i32_0 : i32, i32
  }
  func.func @transform_18(%arg0: i32, %arg1: i32) -> (i32, i32) {
    %c0_i32 = arith.constant 0 : i32
    %c0_i32_0 = arith.constant 0 : i32
    %c0_i32_1 = arith.constant 0 : i32
    return %c0_i32, %c0_i32_0 : i32, i32
  }
  func.func @transform_19(%arg0: i32, %arg1: i32) -> (i32, i32) {
    %c0_i32 = arith.constant 0 : i32
    %c0_i32_0 = arith.constant 0 : i32
    %c0_i32_1 = arith.constant 0 : i32
    return %c0_i32, %c0_i32_0 : i32, i32
  }
  func.func @transform_20(%arg0: i32, %arg1: i32) -> (i32, i32) {
    %c0_i32 = arith.constant 0 : i32
    %c0_i32_0 = arith.constant 0 : i32
    return %arg0, %c0_i32 : i32, i32
  }
}

</mosaic_0001>

<bundles_post_ra>
// kernel: critic_transformer_forward.1
= control target key start
LH: loop header
LB: loop body
LE: loop exit
PB: predicated region body
PF: predicated region fallthrough
CT: control target
= control target key end

     0   :  { %s12891_s22 = smov 0   ;;  %s12893_s23 = smov 0   ;;  %s16001_s0 = inlined_call_operand.vmem [shape: f32[64,8,128], index: 0, kind: input, shape index: {}]   ;;  %s16002_s1 = inlined_call_operand.vmem [shape: f32[8,128], index: 1, kind: input, shape index: {}]   ;;  %s16003_s2 = inlined_call_operand.vmem [shape: bf16[128,128], index: 2, kind: input, shape index: {}]   ;;  %s16004_s3 = inlined_call_operand.vmem [shape: f32[1,128], index: 3, kind: input, shape index: {}]   ;;  %s16005_s4 = inlined_call_operand.vmem [shape: f32[2,1,128], index: 4, kind: input, shape index: {}]   ;;  %s16006_s5 = inlined_call_operand.vmem [shape: f32[2,1,128], index: 5, kind: input, shape index: {}]   ;;  %s16007_s6 = inlined_call_operand.vmem [shape: bf16[2,128,384], index: 6, kind: input, shape index: {}]   ;;  %s16008_s7 = inlined_call_operand.vmem [shape: f32[2,1,384], index: 7, kind: input, shape index: {}]   ;;  %s16009_s8 = inlined_call_operand.vmem [shape: bf16[2,128,128], index: 8, kind: input, shape index: {}]   ;;  %s16010_s9 = inlined_call_operand.vmem [shape: f32[2,1,128], index: 9, kind: input, shape index: {}]   ;;  %s16011_s10 = inlined_call_operand.vmem [shape: f32[2,1,128], index: 10, kind: input, shape index: {}]   ;;  %s16012_s11 = inlined_call_operand.vmem [shape: f32[2,1,128], index: 11, kind: input, shape index: {}]   ;;  %s16013_s12 = inlined_call_operand.vmem [shape: bf16[2,128,256], index: 12, kind: input, shape index: {}]   ;;  %s16014_s13 = inlined_call_operand.vmem [shape: f32[2,1,256], index: 13, kind: input, shape index: {}]   ;;  %s16015_s14 = inlined_call_operand.vmem [shape: bf16[2,256,128], index: 14, kind: input, shape index: {}]   ;;  %s16016_s15 = inlined_call_operand.vmem [shape: f32[2,1,128], index: 15, kind: input, shape index: {}]   ;;  %s16017_s16 = inlined_call_operand.vmem [shape: bf16[128,128], index: 16, kind: input, shape index: {}]   ;;  %s16018_s17 = inlined_call_operand.vmem [shape: f32[1,128], index: 17, kind: input, shape index: {}]   ;;  %s16019_s18 = inlined_call_operand.vmem [shape: bf16[128,128], index: 18, kind: input, shape index: {}]   ;;  %s16020_s19 = inlined_call_operand.vmem [shape: f32[1,128], index: 19, kind: input, shape index: {}]   ;;  %s16021_s20 = inlined_call_operand.vmem [shape: f32[64,128], index: 20, kind: output, shape index: {}]  }
   0x1   :  { %16105 = sst [smem:[#allocation64_spill]] %s16001_s0  ;;  %s12895_s24 = smov 0  }
   0x2   :  { %16106 = sst [smem:[#allocation65_spill]] %s16002_s1  ;;  %s12889_s1 = smov 0  }
   0x3   :  { %16107 = sst [smem:[#allocation66_spill]] %s16003_s2  ;;  %s12897_s2 = smov 0  }
   0x4   :  { %16108 = sst [smem:[#allocation67_spill]] %s16004_s3 }
   0x5   :  { %16109 = sst [smem:[#allocation68_spill]] %s16005_s4 }
   0x6   :  { %16110 = sst [smem:[#allocation69_spill]] %s16007_s6 }
   0x7   :  { %16111 = sst [smem:[#allocation70_spill]] %s16008_s7 }
   0x8   :  { %16112 = sst [smem:[#allocation71_spill]] %s16009_s8 }
   0x9   :  { %16113 = sst [smem:[#allocation72_spill]] %s16017_s16 }
   0xa   :  { %16114 = sst [smem:[#allocation73_spill]] %s16018_s17 }
   0xb   :  { %16115 = sst [smem:[#allocation74_spill]] %s16019_s18 }
   0xc   :  { %16116 = sst [smem:[#allocation75_spill]] %s16020_s19 }
   0xd   :  { %16117 = sst [smem:[#allocation76_spill]] %s16021_s20 }
   0xe LB: > { %16118 = sst [smem:[#allocation3_spill]] %s12758_s1  ;;  %s39_s25 = sadd.s32 1, %s12766_s23  ;;  %s12774_s2 = sphi %s12897_s2, %s30_s2   ;;  %s12770_s24 = sphi %s12895_s24, %s16326_s24   ;;  %s12766_s23 = sphi %s12893_s23, %s16325_s23   ;;  %s12762_s22 = sphi %s12891_s22, %s16324_s22   ;;  %s12758_s1 = sphi %s12889_s1, %s16323_s1  }
   0xf   : > { %16119 = sst [smem:[#allocation4_spill]] %s12766_s23  ;;  %s42_s3 = sadd.s32 1, %s12770_s24 }
  0x10   : > { %16120 = sst [smem:[#allocation5_spill]] %s12770_s24  ;;  %p40_p0 = scmp.ge.s32.totalorder %s39_s25, 2 }
  0x11   : > { %16121 = sst [smem:[#allocation6_spill]] %s12774_s2  ;;  %p10559_p1 = scmp.ge.s32.totalorder %s12774_s2, 1 }
  0x12   : > { %p681_p2 = scmp.lt.s32.totalorder %s12774_s2, 9  ;;  %s16328_s25 = smov (%p40_p0, %s39_s25), 0 }
  0x13   : > { %16122 = sst [smem:[#allocation7_spill]] %s16328_s25  ;;  %s16330_s3 = smov (!%p40_p0, %s42_s3), %s12770_s24 }
  0x14   : > { %p682_p3 = pnand %p10559_p1, %p681_p2  ;;  %p44_p4 = scmp.ge.s32.totalorder %s16330_s3, 4 }
  0x16   : > { %s16332_s3 = smov (%p44_p4, %s16330_s3), 0  ;;  %685 = sbr.rel (%p682_p3) target bundleno = 5253 (0x1485), region = 100 }
  0x17   : > { %16123 = sst [smem:[#allocation8_spill]] %s16332_s3 }
  0x1d   : > { %s10560_s26 = sshll.u32 %s12762_s22, 4  ;;  %p791_p5 = scmp.lt.s32.totalorder %s12758_s1, 1 }
  0x1e   : > { %p786_p6 = scmp.lt.s32.totalorder %s10560_s26, 63  ;;  %s10570_s27 = sshll.u32 %s12762_s22, 1 }
  0x1f   : > { %s12927_s28 = scalar_select %p791_p5, %s12758_s1, 1 }
  0x20   : > { %s16334_s26 = smov (!%p786_p6, %s10560_s26), 63  ;;  %s16125_s19 = sld [smem:[#allocation64_spill]] }
  0x21   : > { %s10561_s25 = sshll.u32 %s16334_s26, 3  ;;  %s12126_s24 = smul.u32 192, %s12927_s28 }
  0x22   : > { %s12127_s18 = smul.u32 3, %s12927_s28  ;;  %s16126_s6 = sld [smem:[#allocation69_spill]] }
  0x23   : > { %s10801_s4 = sshll.u32 %s12927_s28, 6  ;;  %s16127_s7 = sld [smem:[#allocation70_spill]] }
  0x24   : > { %s16128_s8 = sld [smem:[#allocation71_spill]]  ;;  %s10802_s29 = sshll.u32 %s12927_s28, 7 }
  0x25   : > { %s12987_s0 = scalar_lea.vmem %s16015_s14, %s10802_s29  ;;  %p838_p7 = scmp.lt.s32.totalorder %s10570_s27, 7 }
  0x26   : > { %s12941_s17 = scalar_lea.vmem %s16125_s19, %s10561_s25  ;;  %s16129_s16 = sld [smem:[#allocation76_spill]] }
  0x27   : > { %s16336_s27 = smov (!%p838_p7, %s10570_s27), 7  ;;  %s16130_s26 = sld [smem:[#allocation3_spill]] }
  0x28   : > { %s12947_s20 = scalar_lea.vmem %s16126_s6, %s12126_s24  ;;  %s836_s24 = scalar_lea.vmem %s16016_s15, %s12927_s28 }
  0x29   : > { %s12953_s3 = scalar_lea.vmem %s16127_s7, %s12127_s18  ;;  %s12976_s7 = scalar_lea.vmem %s16013_s12, %s10802_s29 }
  0x2a   : > { %s12958_s22 = scalar_lea.vmem %s16128_s8, %s10801_s4  ;;  %s10567_s4 = sshll.u32 %s12927_s28, 1 }
  0x2b   : > { %s12982_s23 = scalar_lea.vmem %s16014_s13, %s10567_s4  ;;  %s10571_s18 = sshll.u32 %s16336_s27, 3 }
  0x2c   : > { %s12996_s8 = scalar_lea.vmem %s16129_s16, %s10571_s18 }
  0x2d   : > { %p10572_p8 = scmp.ne.s32.totalorder %s16130_s26, 0 }
  0x2e   : > { %s16131_s2 = sld [smem:[#allocation66_spill]] (!%p10572_p8)  ;;  %v848_v4 = vld [vmem:[%s12941_s17] sm:$0xff] (!%p10572_p8)  ;;  %v849_v5 = vld [vmem:[%s12941_s17 + $0x8] sm:$0xff] (!%p10572_p8)  ;;  %v850_v14 = vld [vmem:[%s12941_s17 + $0x10] sm:$0xff] (!%p10572_p8)  ;;  %s16133_s16 = sld [smem:[#allocation67_spill]] (!%p10572_p8) }
  0x2f   : > { %847 = sbr.rel (%p10572_p8) target bundleno = 313 (0x139), region = 104  ;;  %v856_v6 = vld [vmem:[%s12941_s17 + $0x40] sm:$0xff] (!%p10572_p8)  ;;  %v864_v7 = vpack.c.bf16 (!%p10572_p8), %v849_v5, %v848_v4  ;;  %v857_v8 = vld [vmem:[%s12941_s17 + $0x48] sm:$0xff] (!%p10572_p8)  ;;  %v851_v15 = vld [vmem:[%s12941_s17 + $0x18] sm:$0xff] (!%p10572_p8)  ;;  %s16134_s30 = sld [smem:[#allocation65_spill]] (!%p10572_p8) }
  0x30   : > { %v868_v9 = vpack.c.bf16 (!%p10572_p8), %v857_v8, %v856_v6  ;;  %v858_v16 = vld [vmem:[%s12941_s17 + $0x50] sm:$0xff] (!%p10572_p8)  ;;  %v859_v17 = vld [vmem:[%s12941_s17 + $0x58] sm:$0xff] (!%p10572_p8)  ;;  %v852_v18 = vld [vmem:[%s12941_s17 + $0x20] sm:$0xff] (!%p10572_p8)  ;;  %v865_v22 = vpack.c.bf16 (!%p10572_p8), %v851_v15, %v850_v14 }
  0x31   : > { %11206 = vmatprep.mubr.bf16.mxu0 (!%p10572_p8), %v864_v7  ;;  %v853_v19 = vld [vmem:[%s12941_s17 + $0x28] sm:$0xff] (!%p10572_p8)  ;;  %v860_v20 = vld [vmem:[%s12941_s17 + $0x60] sm:$0xff] (!%p10572_p8)  ;;  %v869_v23 = vpack.c.bf16 (!%p10572_p8), %v859_v17, %v858_v16  ;;  %v854_v26 = vld [vmem:[%s12941_s17 + $0x30] sm:$0xff] (!%p10572_p8) }
  0x32   : > { %11214 = vmatprep.mubr.bf16.mxu1 (!%p10572_p8), %v868_v9  ;;  %v861_v21 = vld [vmem:[%s12941_s17 + $0x68] sm:$0xff] (!%p10572_p8)  ;;  %v866_v24 = vpack.c.bf16 (!%p10572_p8), %v853_v19, %v852_v18  ;;  %v855_v27 = vld [vmem:[%s12941_s17 + $0x38] sm:$0xff] (!%p10572_p8)  ;;  %v862_v28 = vld [vmem:[%s12941_s17 + $0x70] sm:$0xff] (!%p10572_p8) }
  0x33   : > { %v870_v25 = vpack.c.bf16 (!%p10572_p8), %v861_v21, %v860_v20  ;;  %v863_v29 = vld [vmem:[%s12941_s17 + $0x78] sm:$0xff] (!%p10572_p8)  ;;  %v867_v30 = vpack.c.bf16 (!%p10572_p8), %v855_v27, %v854_v26 }
  0x34   : > { %s16132_s19 = smov (!%p10572_p8), %s16131_s2  ;;  %v12176_v0 = vld [vmem:[%s16131_s2] sm:$0xff] (!%p10572_p8)   ;;  %v871_v31 = vpack.c.bf16 (!%p10572_p8), %v863_v29, %v862_v28 }
  0x35   : > { %v12177_v1 = vld [vmem:[%s16132_s19 + $0x8] sm:$0xff] (!%p10572_p8)   ;;  %11190 = vmatprep.subr.bf16.mxu0 (!%p10572_p8), %v12176_v0  ;;  %12094 = vmatprep.subr.bf16.mxu1 (!%p10572_p8), %v12176_v0  ;;  %v12178_v2 = vld [vmem:[%s16132_s19 + $0x10] sm:$0xff] (!%p10572_p8)   ;;  %v12179_v3 = vld [vmem:[%s16132_s19 + $0x18] sm:$0xff] (!%p10572_p8)  }
  0x36   : > { %11191 = vmatpush3.bf16.msra.mxu0 %v12176_v0  ;;  %12102 = vmatpush3.bf16.msra.mxu1 %v12176_v0  ;;  %v12180_v10 = vld [vmem:[%s16132_s19 + $0x20] sm:$0xff]   ;;  %v12181_v11 = vld [vmem:[%s16132_s19 + $0x28] sm:$0xff]   ;;  %v12182_v12 = vld [vmem:[%s16132_s19 + $0x30] sm:$0xff]  }
  0x37   : > { %11192 = vmatprep.subr.bf16.mxu0 %v12177_v1  ;;  %12095 = vmatprep.subr.bf16.mxu1 %v12177_v1  ;;  %v12183_v13 = vld [vmem:[%s16132_s19 + $0x38] sm:$0xff]   ;;  %v10573_v32 = vld [vmem:[%s16133_s16] ss:$0 sm:$0xff] }
  0x38   : > { %v1040_v34 = vld [vmem:[%s16134_s30] sm:$0xff] }
  0x3a   : > { %11193 = vmatpush3.bf16.msra.mxu0 %v12177_v1  ;;  %12103 = vmatpush3.bf16.msra.mxu1 %v12177_v1 }
  0x3b   : > { %11194 = vmatprep.subr.bf16.mxu0 %v12178_v2  ;;  %12096 = vmatprep.subr.bf16.mxu1 %v12178_v2 }
  0x3e   : > { %11195 = vmatpush3.bf16.msra.mxu0 %v12178_v2  ;;  %12104 = vmatpush3.bf16.msra.mxu1 %v12178_v2 }
  0x3f   : > { %11196 = vmatprep.subr.bf16.mxu0 %v12179_v3  ;;  %12097 = vmatprep.subr.bf16.mxu1 %v12179_v3 }
  0x42   : > { %11197 = vmatpush3.bf16.msra.mxu0 %v12179_v3  ;;  %12105 = vmatpush3.bf16.msra.mxu1 %v12179_v3 }
  0x43   : > { %11198 = vmatprep.subr.bf16.mxu0 %v12180_v10  ;;  %12098 = vmatprep.subr.bf16.mxu1 %v12180_v10 }
  0x46   : > { %11199 = vmatpush3.bf16.msra.mxu0 %v12180_v10  ;;  %12106 = vmatpush3.bf16.msra.mxu1 %v12180_v10 }
  0x47   : > { %11200 = vmatprep.subr.bf16.mxu0 %v12181_v11  ;;  %12099 = vmatprep.subr.bf16.mxu1 %v12181_v11 }
  0x4a   : > { %11201 = vmatpush3.bf16.msra.mxu0 %v12181_v11  ;;  %12107 = vmatpush3.bf16.msra.mxu1 %v12181_v11 }
  0x4b   : > { %11202 = vmatprep.subr.bf16.mxu0 %v12182_v12  ;;  %12100 = vmatprep.subr.bf16.mxu1 %v12182_v12 }
  0x4e   : > { %11203 = vmatpush3.bf16.msra.mxu0 %v12182_v12  ;;  %12108 = vmatpush3.bf16.msra.mxu1 %v12182_v12 }
  0x4f   : > { %11204 = vmatprep.subr.bf16.mxu0 %v12183_v13  ;;  %12101 = vmatprep.subr.bf16.mxu1 %v12183_v13 }
  0x52   : > { %11205 = vmatpush3.bf16.msra.mxu0 %v12183_v13  ;;  %12109 = vmatpush3.bf16.msra.mxu1 %v12183_v13 }
  0x55   : > { %11207 = vmatmul.mubr.bf16.vlgmr.msra.gmra.mrb[0].mxu0 %v865_v22  ;;  %11215 = vmatmul.mubr.bf16.vlgmr.msra.gmra.mrb[0].mxu1 %v869_v23 }
  0x56   : > { %11210 = vmatprep.mubr.bf16.mxu0 %v866_v24  ;;  %11218 = vmatprep.mubr.bf16.mxu1 %v870_v25 }
  0x5d   : > { %11211 = vmatmul.mubr.bf16.gmra.mrb[4].mxu0 %v867_v30  ;;  %11219 = vmatmul.mubr.bf16.gmra.mrb[4].mxu1 %v871_v31 }
 0x128   : > { %v11208_v33 = vpop.f32.mrb[0].mxu0  ;;  %v11216_v35 = vpop.f32.mrb[0].mxu1 }
 0x129   : > { %v986_v36 = vadd.f32 %v11208_v33, %v10573_v32  ;;  %v1018_v37 = vadd.f32 %v11216_v35, %v10573_v32  ;;  %v977_v38 = vpop.f32.mrb[1].mxu0  ;;  %v1009_v39 = vpop.f32.mrb[1].mxu1 }
 0x12a   : > { %v978_v40 = vadd.f32 %v10573_v32, %v977_v38  ;;  %v1010_v41 = vadd.f32 %v10573_v32, %v1009_v39  ;;  %v11209_v42 = vpop.f32.mrb[2].mxu0  ;;  %v11217_v43 = vpop.f32.mrb[2].mxu1 }
 0x12b   : > { %v1043_v44 = vadd.f32 %v1040_v34, %v986_v36  ;;  %v1051_v45 = vadd.f32 %v1040_v34, %v1018_v37  ;;  %v989_v46 = vadd.f32 %v11209_v42, %v10573_v32  ;;  %v1021_v47 = vadd.f32 %v11217_v43, %v10573_v32  ;;  %v980_v48 = vpop.f32.mrb[3].mxu0  ;;  %v1012_v49 = vpop.f32.mrb[3].mxu1 }
 0x12c   : > { %v1041_v50 = vadd.f32 %v1040_v34, %v978_v40  ;;  %v1049_v51 = vadd.f32 %v1040_v34, %v1010_v41  ;;  %v981_v52 = vadd.f32 %v10573_v32, %v980_v48  ;;  %v1013_v53 = vadd.f32 %v10573_v32, %v1012_v49 }
 0x12d   : > { %1059 = vst [vmem:[#allocation2 + $0x10] sm:$0xff] %v1043_v44  ;;  %1067 = vst [vmem:[#allocation2 + $0x50] sm:$0xff] %v1051_v45  ;;  %v1044_v54 = vadd.f32 %v1040_v34, %v989_v46  ;;  %v1052_v55 = vadd.f32 %v1040_v34, %v1021_v47 }
 0x12e   : > { %1057 = vst [vmem:[#allocation2] sm:$0xff] %v1041_v50  ;;  %1065 = vst [vmem:[#allocation2 + $0x40] sm:$0xff] %v1049_v51  ;;  %v1042_v56 = vadd.f32 %v1040_v34, %v981_v52  ;;  %v1050_v57 = vadd.f32 %v1040_v34, %v1013_v53 }
 0x12f   : > { %1060 = vst [vmem:[#allocation2 + $0x18] sm:$0xff] %v1044_v54  ;;  %1068 = vst [vmem:[#allocation2 + $0x58] sm:$0xff] %v1052_v55 }
 0x130   : > { %1058 = vst [vmem:[#allocation2 + $0x8] sm:$0xff] %v1042_v56  ;;  %1066 = vst [vmem:[#allocation2 + $0x48] sm:$0xff] %v1050_v57  ;;  %v11212_v58 = vpop.f32.mrb[4].mxu0  ;;  %v11220_v59 = vpop.f32.mrb[4].mxu1 }
 0x131   : > { %v1002_v60 = vadd.f32 %v11212_v58, %v10573_v32  ;;  %v1034_v61 = vadd.f32 %v11220_v59, %v10573_v32  ;;  %v993_v62 = vpop.f32.mrb[5].mxu0  ;;  %v1025_v63 = vpop.f32.mrb[5].mxu1 }
 0x132   : > { %v994_v0 = vadd.f32 %v10573_v32, %v993_v62  ;;  %v1026_v1 = vadd.f32 %v10573_v32, %v1025_v63  ;;  %v11213_v2 = vpop.f32.mrb[6].mxu0  ;;  %v11221_v3 = vpop.f32.mrb[6].mxu1 }
 0x133   : > { %v1047_v4 = vadd.f32 %v1040_v34, %v1002_v60  ;;  %v1055_v5 = vadd.f32 %v1040_v34, %v1034_v61  ;;  %v1005_v6 = vadd.f32 %v11213_v2, %v10573_v32  ;;  %v1037_v7 = vadd.f32 %v11221_v3, %v10573_v32  ;;  %v996_v8 = vpop.f32.mrb[7].mxu0  ;;  %v1028_v9 = vpop.f32.mrb[7].mxu1 }
 0x134   : > { %v1045_v10 = vadd.f32 %v1040_v34, %v994_v0  ;;  %v1053_v11 = vadd.f32 %v1040_v34, %v1026_v1  ;;  %v997_v12 = vadd.f32 %v10573_v32, %v996_v8  ;;  %v1029_v13 = vadd.f32 %v10573_v32, %v1028_v9 }
 0x135   : > { %1063 = vst [vmem:[#allocation2 + $0x30] sm:$0xff] %v1047_v4  ;;  %1071 = vst [vmem:[#allocation2 + $0x70] sm:$0xff] %v1055_v5  ;;  %v1048_v14 = vadd.f32 %v1040_v34, %v1005_v6  ;;  %v1056_v15 = vadd.f32 %v1040_v34, %v1037_v7 }
 0x136   : > { %1061 = vst [vmem:[#allocation2 + $0x20] sm:$0xff] %v1045_v10  ;;  %1069 = vst [vmem:[#allocation2 + $0x60] sm:$0xff] %v1053_v11  ;;  %v1046_v16 = vadd.f32 %v1040_v34, %v997_v12  ;;  %v1054_v17 = vadd.f32 %v1040_v34, %v1029_v13 }
 0x137   : > { %1064 = vst [vmem:[#allocation2 + $0x38] sm:$0xff] %v1048_v14  ;;  %1072 = vst [vmem:[#allocation2 + $0x78] sm:$0xff] %v1056_v15 }
 0x138   : > { %1062 = vst [vmem:[#allocation2 + $0x28] sm:$0xff] %v1046_v16  ;;  %1070 = vst [vmem:[#allocation2 + $0x68] sm:$0xff] %v1054_v17 }
 0x139 PF: > { %v1073_v18 = vld [vmem:[#allocation2] sm:$0xff]  ;;  %v1075_v19 = vld [vmem:[#allocation2 + $0x10] sm:$0xff]  ;;  %v1074_v20 = vld [vmem:[#allocation2 + $0x8] sm:$0xff]  ;;  %s16135_s26 = sld [smem:[#allocation68_spill]]  ;;  %s16137_s29 = scalar_lea.vmem %s16006_s5, %s12927_s28  ;;  %vm12778_vm0 = vmmov 0   ;;  %vm1755_vm1 = vcmask 261120  }
 0x13a   : > { %1091 = vadd.xlane.f32.xlu0 %v1073_v18  ;;  %1095 = vadd.xlane.f32.xlu1 %v1075_v19  ;;  %v1076_v21 = vld [vmem:[#allocation2 + $0x18] sm:$0xff]  ;;  %v13049_v26 = vld [vmem:[#allocation2 + $0x40] sm:$0xff]  ;;  %v13051_v27 = vld [vmem:[#allocation2 + $0x48] sm:$0xff]  ;;  %vm2704_vm2 = vcmask 1043456   ;;  %vm2508_vm3 = vcmask 64512   ;;  %s12780_s25 = smov 64   ;;  %s16310_s16 = scalar_lea.vmem %s16010_s9, %s12927_s28 }
 0x13b   : > { %v13055_v28 = vld [vmem:[#allocation2 + $0x50] sm:$0xff]  ;;  %v13057_v29 = vld [vmem:[#allocation2 + $0x58] sm:$0xff]  ;;  %v12306_v35 = vld [vmem:[%s12947_s20] ss:$12 sps:$4 sm:$0xff]   ;;  %s12781_s6 = smov 32   ;;  %vm9022_vm4 = vcmask 523264   ;;  %s16311_s18 = scalar_lea.vmem %s16011_s10, %s12927_s28 }
 0x13c   : > { %v13045_v24 = vld [vmem:[#allocation2 + $0x30] sm:$0xff]  ;;  %v12307_v36 = vld [vmem:[%s12947_s20 + $0x1c] ss:$12 sps:$4 sm:$0xff]   ;;  %v12310_v12 = vld [vmem:[%s12947_s20 + $0x18] ss:$12 sps:$4 sm:$0xff]   ;;  %vm9039_vm5 = vcmask 785408  }
 0x13d   : > { %v1077_v22 = vld [vmem:[#allocation2 + $0x20] sm:$0xff]  ;;  %v13067_v32 = vld [vmem:[#allocation2 + $0x70] sm:$0xff] }
 0x13e   : > { %1093 = vadd.xlane.f32.xlu0 %v1074_v20  ;;  %1097 = vadd.xlane.f32.xlu1 %v1076_v21  ;;  %v13047_v25 = vld [vmem:[#allocation2 + $0x38] sm:$0xff]  ;;  %v13061_v30 = vld [vmem:[#allocation2 + $0x60] sm:$0xff]  ;;  %v12309_v37 = vld [vmem:[%s12947_s20 + $0x8] ss:$12 sps:$4 sm:$0xff]  }
 0x13f   : > { %v1078_v23 = vld [vmem:[#allocation2 + $0x28] sm:$0xff]  ;;  %v13069_v33 = vld [vmem:[#allocation2 + $0x78] sm:$0xff]  ;;  %v12304_v34 = vld [vmem:[%s12947_s20 + $0x4] ss:$12 sps:$4 sm:$0xff]   ;;  %11222 = vmatprep.subr.bf16.mxu1 %v12309_v37  ;;  %s16136_s4 = scalar_lea.vmem %s16135_s26, %s12927_s28 }
 0x140   : > { %v13063_v31 = vld [vmem:[#allocation2 + $0x68] sm:$0xff]  ;;  %1497 = vmatprep.subr.bf16.mxu0 %v12304_v34  ;;  %11223 = vmatpush3.bf16.msra.mxu1 %v12309_v37  ;;  %v12317_v37 = vld [vmem:[%s12947_s20 + $0x38] ss:$12 sps:$4 sm:$0xff]  }
 0x141   : > { %1498 = vmatpush1.bf16.msra.mxu0 %v12306_v35 }
 0x142   : > { %1099 = vadd.xlane.f32.xlu0 %v1077_v22  ;;  %1101 = vadd.xlane.f32.xlu1 %v1078_v23 }
 0x143   : > { %1499 = vmatprep.subr.bf16.mxu0 %v12307_v36  ;;  %v12315_v36 = vld [vmem:[%s12947_s20 + $0x4c] ss:$12 sps:$4 sm:$0xff]  }
 0x145   : > { %1500 = vmatpush1.bf16.msra.mxu0 %v12310_v12 }
 0x146   : > { %1103 = vadd.xlane.f32.xlu0 %v13045_v24  ;;  %1105 = vadd.xlane.f32.xlu1 %v13047_v25 }
 0x14a   : > { %1107 = vadd.xlane.f32.xlu0 %v13049_v26  ;;  %1109 = vadd.xlane.f32.xlu1 %v13051_v27 }
 0x14e   : > { %1111 = vadd.xlane.f32.xlu0 %v13055_v28  ;;  %1113 = vadd.xlane.f32.xlu1 %v13057_v29 }
 0x152   : > { %1115 = vadd.xlane.f32.xlu0 %v13061_v30  ;;  %1117 = vadd.xlane.f32.xlu1 %v13063_v31 }
 0x156   : > { %1119 = vadd.xlane.f32.xlu0 %v13067_v32  ;;  %1121 = vadd.xlane.f32.xlu1 %v13069_v33 }
 0x1c7   : > { %v1092_v38 = vpop.xlane.xlu0 %1091  ;;  %v1096_v39 = vpop.xlane.xlu1 %1095 }
 0x1c8   : > { %v1124_v40 = vmul.f32 0.0078125, %v1092_v38  ;;  %v1126_v41 = vmul.f32 0.0078125, %v1096_v39 }
 0x1ca   : > { %v13079_v42 = vsub.f32 %v1073_v18, %v1124_v40  ;;  %v13081_v43 = vsub.f32 %v1075_v19, %v1126_v41  ;;  %v12311_v18 = vld [vmem:[%s12947_s20 + $0x34] ss:$12 sps:$4 sm:$0xff]  }
 0x1cb   : > { %v1094_v44 = vpop.xlane.xlu0 %1093  ;;  %v1098_v45 = vpop.xlane.xlu1 %1097  ;;  %v12313_v19 = vld [vmem:[%s12947_s20 + $0x20] ss:$12 sps:$4 sm:$0xff]   ;;  %1501 = vmatprep.subr.bf16.mxu0 %v12311_v18  ;;  %v12318_v40 = vld [vmem:[%s12947_s20 + $0x48] ss:$12 sps:$4 sm:$0xff]  }
 0x1cc   : > { %v1125_v46 = vmul.f32 0.0078125, %v1094_v44  ;;  %v1156_v47 = vmul.f32 %v13079_v42, %v13079_v42  ;;  %v1127_v48 = vmul.f32 0.0078125, %v1098_v45  ;;  %v1158_v49 = vmul.f32 %v13081_v43, %v13081_v43  ;;  %11224 = vmatprep.subr.bf16.mxu1 %v12313_v19 }
 0x1cd   : > { %11225 = vmatpush3.bf16.msra.mxu1 %v12313_v19 }
 0x1ce   : > { %1172 = vadd.xlane.f32.xlu0 %v1156_v47  ;;  %v13087_v50 = vsub.f32 %v1074_v20, %v1125_v46  ;;  %v13089_v51 = vsub.f32 %v1076_v21, %v1127_v48  ;;  %11226 = vmatprep.subr.bf16.mxu1 %v12317_v37  ;;  %v12319_v47 = vld [vmem:[%s12947_s20 + $0x64] ss:$12 sps:$4 sm:$0xff]  }
 0x1cf   : > { %v1100_v52 = vpop.xlane.xlu0 %1099  ;;  %v1102_v53 = vpop.xlane.xlu1 %1101  ;;  %v12321_v48 = vld [vmem:[%s12947_s20 + $0x50] ss:$12 sps:$4 sm:$0xff]  }
 0x1d0   : > { %v1128_v54 = vmul.f32 0.0078125, %v1100_v52  ;;  %v1157_v55 = vmul.f32 %v13087_v50, %v13087_v50  ;;  %v1129_v56 = vmul.f32 0.0078125, %v1102_v53  ;;  %v1159_v57 = vmul.f32 %v13089_v51, %v13089_v51  ;;  %v12325_v53 = vld [vmem:[%s12947_s20 + $0x68] ss:$12 sps:$4 sm:$0xff]  }
 0x1d1   : > { %11227 = vmatpush3.bf16.msra.mxu1 %v12317_v37 }
 0x1d2   : > { %1176 = vadd.xlane.f32.xlu0 %v1158_v49  ;;  %1174 = vadd.xlane.f32.xlu1 %v1157_v55  ;;  %v13095_v58 = vsub.f32 %v1077_v22, %v1128_v54  ;;  %v13097_v59 = vsub.f32 %v1078_v23, %v1129_v56  ;;  %v12322_v49 = vld [vmem:[%s12947_s20 + $0x60] ss:$12 sps:$4 sm:$0xff]   ;;  %v12326_v54 = vld [vmem:[%s12947_s20 + $0x78] ss:$12 sps:$4 sm:$0xff]  }
 0x1d3   : > { %v1104_v60 = vpop.xlane.xlu0 %1103  ;;  %v1106_v61 = vpop.xlane.xlu1 %1105  ;;  %11228 = vmatprep.subr.bf16.mxu1 %v12321_v48  ;;  %v12327_v55 = vld [vmem:[%s12947_s20 + $0x94] ss:$12 sps:$4 sm:$0xff]  }
 0x1d4   : > { %v1130_v62 = vmul.f32 0.0078125, %v1104_v60  ;;  %v1160_v63 = vmul.f32 %v13095_v58, %v13095_v58  ;;  %v1131_v0 = vmul.f32 0.0078125, %v1106_v61  ;;  %v1161_v1 = vmul.f32 %v13097_v59, %v13097_v59  ;;  %v12329_v56 = vld [vmem:[%s12947_s20 + $0x80] ss:$12 sps:$4 sm:$0xff]   ;;  %v12333_v61 = vld [vmem:[%s12947_s20 + $0x98] ss:$12 sps:$4 sm:$0xff]  }
 0x1d5   : > { %11229 = vmatpush3.bf16.msra.mxu1 %v12321_v48  ;;  %v12331_v60 = vld [vmem:[%s12947_s20 + $0xac] ss:$12 sps:$4 sm:$0xff]  }
 0x1d6   : > { %1178 = vadd.xlane.f32.xlu1 %v1159_v57  ;;  %1180 = vadd.xlane.f32.xlu0 %v1160_v63  ;;  %v13104_v2 = vsub.f32 %v13045_v24, %v1130_v62  ;;  %v13107_v3 = vsub.f32 %v13047_v25, %v1131_v0  ;;  %v12314_v25 = vld [vmem:[%s12947_s20 + $0x30] ss:$12 sps:$4 sm:$0xff]   ;;  %v12334_v62 = vld [vmem:[%s12947_s20 + $0xa8] ss:$12 sps:$4 sm:$0xff]   ;;  %v16031_v0 = vmov 0  }
 0x1d7   : > { %v1108_v4 = vpop.xlane.xlu0 %1107  ;;  %v1110_v5 = vpop.xlane.xlu1 %1109  ;;  %1502 = vmatpush1.bf16.msra.mxu0 %v12314_v25  ;;  %11230 = vmatprep.subr.bf16.mxu1 %v12325_v53  ;;  %v12330_v57 = vld [vmem:[%s12947_s20 + $0x90] ss:$12 sps:$4 sm:$0xff]  }
 0x1d8   : > { %v1132_v6 = vmul.f32 0.0078125, %v1108_v4  ;;  %v1162_v7 = vmul.f32 %v13104_v2, %v13104_v2  ;;  %v1133_v8 = vmul.f32 0.0078125, %v1110_v5  ;;  %v1163_v9 = vmul.f32 %v13107_v3, %v13107_v3  ;;  %1503 = vmatprep.subr.bf16.mxu0 %v12315_v36  ;;  %v12335_v63 = vld [vmem:[%s12947_s20 + $0xb0] ss:$12 sps:$4 sm:$0xff]   ;;  %1529 = vmatprep.mubr.bf16.mxu0 %v16031_v0 }
 0x1d9   : > { %11231 = vmatpush3.bf16.msra.mxu1 %v12325_v53 }
 0x1da   : > { %1182 = vadd.xlane.f32.xlu1 %v1161_v1  ;;  %1184 = vadd.xlane.f32.xlu0 %v1162_v7  ;;  %v13114_v10 = vsub.f32 %v13049_v26, %v1132_v6  ;;  %v13117_v11 = vsub.f32 %v13051_v27, %v1133_v8 }
 0x1db   : > { %v1112_v13 = vpop.xlane.xlu0 %1111  ;;  %v1114_v14 = vpop.xlane.xlu1 %1113  ;;  %1504 = vmatpush1.bf16.msra.mxu0 %v12318_v40  ;;  %11232 = vmatprep.subr.bf16.mxu1 %v12329_v56  ;;  %v13180_v40 = vld [vmem:[%s16136_s4] ss:$0 sm:$0xff] }
 0x1dc   : > { %v1134_v15 = vmul.f32 0.0078125, %v1112_v13  ;;  %v1164_v16 = vmul.f32 %v13114_v10, %v13114_v10  ;;  %v1135_v17 = vmul.f32 0.0078125, %v1114_v14  ;;  %v1165_v20 = vmul.f32 %v13117_v11, %v13117_v11  ;;  %1505 = vmatprep.subr.bf16.mxu0 %v12319_v47 }
 0x1dd   : > { %11233 = vmatpush3.bf16.msra.mxu1 %v12329_v56 }
 0x1de   : > { %1186 = vadd.xlane.f32.xlu1 %v1163_v9  ;;  %1188 = vadd.xlane.f32.xlu0 %v1164_v16  ;;  %v13127_v21 = vsub.f32 %v13055_v28, %v1134_v15  ;;  %v13130_v22 = vsub.f32 %v13057_v29, %v1135_v17 }
 0x1df   : > { %v1116_v23 = vpop.xlane.xlu0 %1115  ;;  %v1118_v24 = vpop.xlane.xlu1 %1117  ;;  %1506 = vmatpush1.bf16.msra.mxu0 %v12322_v49  ;;  %11234 = vmatprep.subr.bf16.mxu1 %v12333_v61 }
 0x1e0   : > { %v1136_v26 = vmul.f32 0.0078125, %v1116_v23  ;;  %v1166_v27 = vmul.f32 %v13127_v21, %v13127_v21  ;;  %v1137_v34 = vmul.f32 0.0078125, %v1118_v24  ;;  %v1167_v28 = vmul.f32 %v13130_v22, %v13130_v22 }
 0x1e1   : > { %11235 = vmatpush3.bf16.msra.mxu1 %v12333_v61 }
 0x1e2   : > { %1190 = vadd.xlane.f32.xlu1 %v1165_v20  ;;  %1192 = vadd.xlane.f32.xlu0 %v1166_v27  ;;  %v13138_v29 = vsub.f32 %v13061_v30, %v1136_v26  ;;  %v13141_v35 = vsub.f32 %v13063_v31, %v1137_v34 }
 0x1e3   : > { %v1120_v38 = vpop.xlane.xlu0 %1119  ;;  %v1122_v39 = vpop.xlane.xlu1 %1121  ;;  %11236 = vmatprep.subr.bf16.mxu1 %v12335_v63 }
 0x1e4   : > { %v1138_v41 = vmul.f32 0.0078125, %v1120_v38  ;;  %v1168_v44 = vmul.f32 %v13138_v29, %v13138_v29  ;;  %v1139_v45 = vmul.f32 0.0078125, %v1122_v39  ;;  %v1169_v30 = vmul.f32 %v13141_v35, %v13141_v35 }
 0x1e5   : > { %11237 = vmatpush3.bf16.msra.mxu1 %v12335_v63 }
 0x1e6   : > { %1194 = vadd.xlane.f32.xlu1 %v1167_v28  ;;  %1196 = vadd.xlane.f32.xlu0 %v1168_v44  ;;  %v13151_v31 = vsub.f32 %v13067_v32, %v1138_v41  ;;  %v13154_v46 = vsub.f32 %v13069_v33, %v1139_v45  ;;  %v12323_v33 = vld [vmem:[%s12947_s20 + $0x7c] ss:$12 sps:$4 sm:$0xff]   ;;  %s16312_s20 = scalar_lea.vmem %s16012_s11, %s12927_s28  ;;  %s16316_s28 = sld [smem:[#allocation3_spill]] }
 0x1e7   : > { %1507 = vmatprep.subr.bf16.mxu0 %v12323_v33  ;;  %v13189_v33 = vld [vmem:[%s16137_s29] ss:$0 sm:$0xff] }
 0x1e8   : > { %v1170_v52 = vmul.f32 %v13151_v31, %v13151_v31  ;;  %v1171_v32 = vmul.f32 %v13154_v46, %v13154_v46  ;;  %1508 = vmatpush1.bf16.msra.mxu0 %v12326_v54 }
 0x1e9   : > { %1509 = vmatprep.subr.bf16.mxu0 %v12327_v55 }
 0x1ea   : > { %1198 = vadd.xlane.f32.xlu1 %v1169_v30  ;;  %1200 = vadd.xlane.f32.xlu0 %v1170_v52 }
 0x1ec   : > { %1510 = vmatpush1.bf16.msra.mxu0 %v12330_v57  ;;  %p10780_p9 = scmp.ne.s32.totalorder %s16316_s28, 1 }
 0x1ed   : > { %1511 = vmatprep.subr.bf16.mxu0 %v12331_v60  ;;  %s16317_s4 = sld [smem:[#allocation72_spill]] (!%p10780_p9)  ;;  %vm12783_vm6 = vmmov (!%p10780_p9), 0   ;;  %vm10120_vm7 = vcmask (!%p10780_p9), 1041409   ;;  %vm10123_vm8 = vcmask (!%p10780_p9), 1042434   ;;  %vm10126_vm9 = vcmask (!%p10780_p9), 1043459  }
 0x1ee   : > { %1202 = vadd.xlane.f32.xlu1 %v1171_v32  ;;  %vm10129_vm10 = vcmask (!%p10780_p9), 1044484   ;;  %vm10132_vm11 = vcmask (!%p10780_p9), 1045509   ;;  %vm10135_vm12 = vcmask (!%p10780_p9), 1046534   ;;  %vm10137_vm13 = vcmask (!%p10780_p9), 1047559  }
 0x1f0   : > { %1512 = vmatpush1.bf16.msra.mxu0 %v12334_v62 }
 0x25b   : > { %v1173_v1 = vpop.xlane.xlu0 %1172 }
 0x25c   : > { %v1204_v4 = vmul.f32 0.0078125, %v1173_v1 }
 0x25e   : > { %v1220_v5 = vadd.f32 1e-05, %v1204_v4 }
 0x25f   : > { %v1175_v6 = vpop.xlane.xlu1 %1174  ;;  %v1177_v7 = vpop.xlane.xlu0 %1176 }
 0x260   : > { %12384 = vrsqrt.f32 %v1220_v5  ;;  %v1205_v8 = vmul.f32 0.0078125, %v1175_v6  ;;  %v1206_v9 = vmul.f32 0.0078125, %v1177_v7 }
 0x262   : > { %v1221_v12 = vadd.f32 1e-05, %v1205_v8  ;;  %v1222_v13 = vadd.f32 1e-05, %v1206_v9 }
 0x263   : > { %v1179_v14 = vpop.xlane.xlu1 %1178  ;;  %v1181_v15 = vpop.xlane.xlu0 %1180 }
 0x264   : > { %12386 = vrsqrt.f32 %v1221_v12  ;;  %v1207_v16 = vmul.f32 0.0078125, %v1179_v14  ;;  %v1208_v17 = vmul.f32 0.0078125, %v1181_v15 }
 0x265   : > { %12388 = vrsqrt.f32 %v1222_v13 }
 0x266   : > { %v1223_v18 = vadd.f32 1e-05, %v1207_v16  ;;  %v1224_v19 = vadd.f32 1e-05, %v1208_v17 }
 0x267   : > { %v1183_v20 = vpop.xlane.xlu1 %1182  ;;  %v1185_v23 = vpop.xlane.xlu0 %1184 }
 0x268   : > { %12390 = vrsqrt.f32 %v1223_v18  ;;  %v1209_v24 = vmul.f32 0.0078125, %v1183_v20  ;;  %v1210_v25 = vmul.f32 0.0078125, %v1185_v23 }
 0x269   : > { %12392 = vrsqrt.f32 %v1224_v19 }
 0x26a   : > { %v12385_v26 = vpop.eup %12384  ;;  %v1225_v27 = vadd.f32 1e-05, %v1209_v24  ;;  %v1226_v34 = vadd.f32 1e-05, %v1210_v25 }
 0x26b   : > { %v1187_v28 = vpop.xlane.xlu1 %1186  ;;  %v1189_v36 = vpop.xlane.xlu0 %1188  ;;  %v1252_v37 = vmul.f32 %v12385_v26, %v13079_v42 }
 0x26c   : > { %12394 = vrsqrt.f32 %v1225_v27  ;;  %v1211_v38 = vmul.f32 0.0078125, %v1187_v28  ;;  %v1212_v39 = vmul.f32 0.0078125, %v1189_v36 }
 0x26d   : > { %12396 = vrsqrt.f32 %v1226_v34  ;;  %v1274_v42 = vmul.f32 %v13180_v40, %v1252_v37 }
 0x26e   : > { %v12387_v41 = vpop.eup %12386  ;;  %v1227_v44 = vadd.f32 1e-05, %v1211_v38  ;;  %v1228_v45 = vadd.f32 1e-05, %v1212_v39 }
 0x26f   : > { %v12389_v30 = vpop.eup %12388  ;;  %v1191_v47 = vpop.xlane.xlu1 %1190  ;;  %v1253_v49 = vmul.f32 %v12387_v41, %v13087_v50  ;;  %v1296_v63 = vadd.f32 %v13189_v33, %v1274_v42 }
 0x270   : > { %v1193_v48 = vpop.xlane.xlu0 %1192  ;;  %12398 = vrsqrt.f32 %v1227_v44  ;;  %v1213_v52 = vmul.f32 0.0078125, %v1191_v47  ;;  %v1254_v53 = vmul.f32 %v12389_v30, %v13081_v43 }
 0x271   : > { %v1214_v32 = vmul.f32 0.0078125, %v1193_v48  ;;  %12400 = vrsqrt.f32 %v1228_v45  ;;  %v1275_v54 = vmul.f32 %v13180_v40, %v1253_v49 }
 0x272   : > { %v12391_v55 = vpop.eup %12390  ;;  %v1229_v56 = vadd.f32 1e-05, %v1213_v52  ;;  %v1276_v50 = vmul.f32 %v13180_v40, %v1254_v53 }
 0x273   : > { %v1230_v57 = vadd.f32 1e-05, %v1214_v32  ;;  %v12393_v60 = vpop.eup %12392  ;;  %v1195_v61 = vpop.xlane.xlu1 %1194  ;;  %v1297_v1 = vadd.f32 %v13189_v33, %v1275_v54  ;;  %v1255_v4 = vmul.f32 %v12391_v55, %v13089_v51 }
 0x274   : > { %v1197_v62 = vpop.xlane.xlu0 %1196  ;;  %12402 = vrsqrt.f32 %v1229_v56  ;;  %v1215_v5 = vmul.f32 0.0078125, %v1195_v61  ;;  %v1256_v8 = vmul.f32 %v12393_v60, %v13095_v58  ;;  %v1298_v14 = vadd.f32 %v13189_v33, %v1276_v50 }
 0x275   : > { %v1216_v43 = vmul.f32 0.0078125, %v1197_v62  ;;  %12404 = vrsqrt.f32 %v1230_v57  ;;  %v1312_v6 = vpack.c.bf16 %v1297_v1, %v1296_v63  ;;  %v1277_v7 = vmul.f32 %v13180_v40, %v1255_v4 }
 0x276   : > { %v12395_v9 = vpop.eup %12394  ;;  %v1231_v12 = vadd.f32 1e-05, %v1215_v5  ;;  %v1278_v19 = vmul.f32 %v13180_v40, %v1256_v8 }
 0x277   : > { %v1232_v13 = vadd.f32 1e-05, %v1216_v43  ;;  %v12397_v15 = vpop.eup %12396  ;;  %v1199_v16 = vpop.xlane.xlu1 %1198  ;;  %1530 = vmatmul.mubr.bf16.vlgmr.msra.gmra.mrb[0].mxu0 %v1312_v6  ;;  %11238 = vmatprep.mubr.bf16.mxu1 %v1312_v6  ;;  %v1299_v51 = vadd.f32 %v13189_v33, %v1277_v7  ;;  %v1257_v18 = vmul.f32 %v12395_v9, %v13097_v59 }
 0x278   : > { %v1201_v17 = vpop.xlane.xlu0 %1200  ;;  %12406 = vrsqrt.f32 %v1231_v12  ;;  %v1217_v20 = vmul.f32 0.0078125, %v1199_v16  ;;  %1539 = vmatprep.mubr.bf16.mxu0 %v16031_v0  ;;  %v1258_v58 = vmul.f32 %v12397_v15, %v13104_v2  ;;  %v1300_v37 = vadd.f32 %v13189_v33, %v1278_v19 }
 0x279   : > { %v1218_v23 = vmul.f32 0.0078125, %v1201_v17  ;;  %12408 = vrsqrt.f32 %v1232_v13  ;;  %v1313_v24 = vpack.c.bf16 %v1299_v51, %v1298_v14  ;;  %v1279_v25 = vmul.f32 %v13180_v40, %v1257_v18 }
 0x27a   : > { %v12399_v26 = vpop.eup %12398  ;;  %v1233_v27 = vadd.f32 1e-05, %v1217_v20  ;;  %v1280_v28 = vmul.f32 %v13180_v40, %v1258_v58  ;;  %v16033_v18 = vmov 0.0  }
 0x27b   : > { %v1234_v34 = vadd.f32 1e-05, %v1218_v23  ;;  %v12401_v36 = vpop.eup %12400  ;;  %v1203_v59 = vpop.xlane.xlu1 %1202  ;;  %11239 = vmatmul.mubr.bf16.vlgmr.msra.gmra.mrb[0].mxu1 %v1313_v24  ;;  %v1301_v38 = vadd.f32 %v13189_v33, %v1279_v25  ;;  %v1259_v39 = vmul.f32 %v12399_v26, %v13107_v3  ;;  %11254 = vmatprep.subr.bf16.mxu1 %v16033_v18 }
 0x27c   : > { %12410 = vrsqrt.f32 %v1233_v27  ;;  %v1219_v2 = vmul.f32 0.0078125, %v1203_v59  ;;  %v1260_v41 = vmul.f32 %v12401_v36, %v13114_v10  ;;  %v1302_v48 = vadd.f32 %v13189_v33, %v1280_v28  ;;  %11278 = vmatprep.subr.bf16.mxu0 %v16033_v18 }
 0x27d   : > { %12412 = vrsqrt.f32 %v1234_v34  ;;  %v1314_v44 = vpack.c.bf16 %v1301_v38, %v1300_v37  ;;  %v1281_v45 = vmul.f32 %v13180_v40, %v1259_v39 }
 0x27e   : > { %v12403_v30 = vpop.eup %12402  ;;  %v1235_v47 = vadd.f32 1e-05, %v1219_v2  ;;  %v1282_v3 = vmul.f32 %v13180_v40, %v1260_v41 }
 0x27f   : > { %v12405_v49 = vpop.eup %12404  ;;  %1540 = vmatmul.mubr.bf16.gmra.mrb[4].mxu0 %v1313_v24  ;;  %11242 = vmatprep.mubr.bf16.mxu1 %v1314_v44  ;;  %v1303_v42 = vadd.f32 %v13189_v33, %v1281_v45  ;;  %v1261_v52 = vmul.f32 %v12403_v30, %v13117_v11 }
 0x280   : > { %12414 = vrsqrt.f32 %v1235_v47  ;;  %1549 = vmatprep.mubr.bf16.mxu0 %v16031_v0  ;;  %v1262_v10 = vmul.f32 %v12405_v49, %v13127_v21  ;;  %v1304_v57 = vadd.f32 %v13189_v33, %v1282_v3 }
 0x281   : > { %v1315_v32 = vpack.c.bf16 %v1303_v42, %v1302_v48  ;;  %v1283_v53 = vmul.f32 %v13180_v40, %v1261_v52 }
 0x282   : > { %v12407_v54 = vpop.eup %12406  ;;  %v1284_v55 = vmul.f32 %v13180_v40, %v1262_v10 }
 0x283   : > { %v12409_v56 = vpop.eup %12408  ;;  %11243 = vmatmul.mubr.bf16.gmra.mrb[4].mxu1 %v1315_v32  ;;  %v1305_v50 = vadd.f32 %v13189_v33, %v1283_v53  ;;  %v1263_v11 = vmul.f32 %v12407_v54, %v13130_v22 }
 0x284   : > { %v1264_v60 = vmul.f32 %v12409_v56, %v13138_v29  ;;  %v1306_v63 = vadd.f32 %v13189_v33, %v1284_v55 }
 0x285   : > { %v1316_v61 = vpack.c.bf16 %v1305_v50, %v1304_v57  ;;  %v1285_v62 = vmul.f32 %v13180_v40, %v1263_v11 }
 0x286   : > { %v12411_v21 = vpop.eup %12410  ;;  %v1286_v43 = vmul.f32 %v13180_v40, %v1264_v60 }
 0x287   : > { %v12413_v1 = vpop.eup %12412  ;;  %1550 = vmatmul.mubr.bf16.gmra.mrb[8].mxu0 %v1314_v44  ;;  %11246 = vmatprep.mubr.bf16.mxu1 %v1316_v61  ;;  %v1307_v4 = vadd.f32 %v13189_v33, %v1285_v62  ;;  %v1265_v5 = vmul.f32 %v12411_v21, %v13141_v35 }
 0x288   : > { %1559 = vmatprep.mubr.bf16.mxu0 %v16031_v0  ;;  %v1266_v22 = vmul.f32 %v12413_v1, %v13151_v31  ;;  %v1308_v8 = vadd.f32 %v13189_v33, %v1286_v43 }
 0x289   : > { %v1317_v29 = vpack.c.bf16 %v1307_v4, %v1306_v63  ;;  %v1287_v6 = vmul.f32 %v13180_v40, %v1265_v5 }
 0x28a   : > { %v12415_v7 = vpop.eup %12414  ;;  %v1288_v13 = vmul.f32 %v13180_v40, %v1266_v22 }
 0x28b   : > { %11247 = vmatmul.mubr.bf16.gmra.mrb[8].mxu1 %v1317_v29  ;;  %v1309_v9 = vadd.f32 %v13189_v33, %v1287_v6  ;;  %v1267_v12 = vmul.f32 %v12415_v7, %v13154_v46  ;;  %v1354_v46 = vlaneseq }
 0x28c   : > { %v1310_v31 = vadd.f32 %v13189_v33, %v1288_v13 }
 0x28d   : > { %v1318_v35 = vpack.c.bf16 %v1309_v9, %v1308_v8  ;;  %v1289_v14 = vmul.f32 %v13180_v40, %v1267_v12  ;;  %v13243_v40 = vshrl.u32 %v1354_v46, 7 }
 0x28f   : > { %1560 = vmatmul.mubr.bf16.gmra.mrb[12].mxu0 %v1315_v32  ;;  %11250 = vmatprep.mubr.bf16.mxu1 %v1318_v35  ;;  %v1311_v15 = vadd.f32 %v13189_v33, %v1289_v14  ;;  %16138 = vst [vmem:[#allocation9_spill] sm:$0xff] %v13243_v40  ;;  %v1364_v17 = vsub.s32 2, %v13243_v40  ;;  %v1352_v33 = vld [vmem:[%s12953_s3] sm:$0x7]  ;;  %v16029_v19 = vsub.s32 1, %v13243_v40  ;;  %v16030_v23 = vsub.s32 0, %v13243_v40 }
 0x290   : > { %1569 = vmatprep.mubr.bf16.mxu0 %v16031_v0  ;;  %s12779_s3 = smov 96  }
 0x291   : > { %v1319_v16 = vpack.c.bf16 %v1311_v15, %v1310_v31  ;;  %v13247_v51 = vrot.slane %v1352_v33, %v1364_v17  ;;  %v13258_v20 = vrot.slane %v1352_v33, %v16029_v19  ;;  %v13264_v34 = vrot.slane %v1352_v33, %v16030_v23 }
 0x293   : > { %11251 = vmatmul.mubr.bf16.gmra.mrb[12].mxu1 %v1319_v16 }
 0x294   : > { %11256 = vmatprep.mubr.msk.bf16.mxu1 %vm12778_vm0, %v16033_v18 }
 0x297   : > { %1570 = vmatmul.mubr.bf16.gmra.mrb[16].mxu0 %v1316_v61 }
 0x298   : > { %1579 = vmatprep.mubr.bf16.mxu0 %v16031_v0 }
 0x29f   : > { %1580 = vmatmul.mubr.bf16.gmra.mrb[20].mxu0 %v1317_v29 }
 0x2a0   : > { %1589 = vmatprep.mubr.bf16.mxu0 %v16031_v0 }
 0x2a7   : > { %1590 = vmatmul.mubr.bf16.gmra.mrb[24].mxu0 %v1318_v35 }
 0x2a8   : > { %1599 = vmatprep.mubr.bf16.mxu0 %v16031_v0 }
 0x2af   : > { %1600 = vmatmul.mubr.bf16.gmra.mrb[28].mxu0 %v1319_v16 }
 0x2b0   : > { %11280 = vmatprep.mubr.msk.bf16.mxu0 %vm12778_vm0, %v16033_v18 }
 0x34a   : > { %v1531_v58 = vpop.f32.mrb[0].mxu0 }
 0x34b   : > { %v1533_v24 = vpop.f32.mrb[1].mxu0  ;;  %v1532_v30 = vadd.f32 %v1531_v58, %v13264_v34 }
 0x34c   : > { %v1534_v25 = vadd.f32 %v1533_v24, %v13258_v20  ;;  %v1535_v26 = vpop.f32.mrb[2].mxu0 }
 0x34d   : > { %v1537_v27 = vpop.f32.mrb[3].mxu0  ;;  %v13289_v10 = vpack.c.bf16 %v1532_v30, %v1532_v30  ;;  %v1536_v61 = vadd.f32 %v1535_v26, %v13264_v34 }
 0x34e   : > { %v13266_v28 = vpack.c.bf16 %v1534_v25, %v1534_v25  ;;  %v11240_v36 = vpop.f32.mrb[0].mxu1  ;;  %v1538_v38 = vadd.f32 %v1537_v27, %v13258_v20 }
 0x34f   : > { %v13269_v59 = vadd.f32 %v11240_v36, %v13247_v51  ;;  %v1644_v37 = vpop.f32.mrb[1].mxu1  ;;  %v13317_v22 = vpack.c.bf16 %v1536_v61, %v1536_v61 }
 0x350   : > { %v13273_v39 = vadd.f32 %v1644_v37, %v13247_v51  ;;  %v11241_v2 = vpop.f32.mrb[2].mxu1  ;;  %v1760_v41 = vsel %vm1755_vm1, %v13266_v28, 0  ;;  %v13285_v42 = vpack.c.bf16 %v1538_v38, %v1538_v38 }
 0x351   : > { %v13278_v44 = vadd.f32 %v11241_v2, %v13247_v51  ;;  %v1647_v45 = vpop.f32.mrb[3].mxu1  ;;  %11255 = vmatpush3.bf16.xpose.msra.mxu1 %v1760_v41 }
 0x352   : > { %v13282_v47 = vadd.f32 %v1647_v45, %v13247_v51  ;;  %v1541_v48 = vpop.f32.mrb[4].mxu0  ;;  %11260 = vmatprep.subr.bf16.mxu1 %v16033_v18  ;;  %v1806_v50 = vsel %vm1755_vm1, %v13285_v42, 0 }
 0x353   : > { %v1543_v49 = vpop.f32.mrb[5].mxu0  ;;  %v1542_v16 = vadd.f32 %v1541_v48, %v13264_v34 }
 0x354   : > { %v13287_v52 = vpop.f32.mrb[6].mxu0  ;;  %v1544_v55 = vadd.f32 %v1543_v49, %v13258_v20 }
 0x355   : > { %v1547_v3 = vpop.f32.mrb[7].mxu0  ;;  %v13351_v36 = vpack.c.bf16 %v1542_v16, %v1542_v16 }
 0x356   : > { %v11244_v32 = vpop.f32.mrb[4].mxu1  ;;  %v13312_v1 = vpack.c.bf16 %v1544_v55, %v1544_v55  ;;  %v1548_v9 = vadd.f32 %v1547_v3, %v13258_v20 }
 0x357   : > { %v13292_v53 = vadd.f32 %v11244_v32, %v13247_v51  ;;  %v1660_v54 = vpop.f32.mrb[5].mxu1 }
 0x358   : > { %v13296_v56 = vadd.f32 %v1660_v54, %v13247_v51  ;;  %v11245_v57 = vpop.f32.mrb[6].mxu1  ;;  %11257 = vmatmul.mubr.msk.bf16.vlgmr.msra.gmra.mrb[16].mxu1 %vm1755_vm1, %v13289_v10  ;;  %v1852_v35 = vsel %vm1755_vm1, %v13312_v1, 0  ;;  %v13346_v24 = vpack.c.bf16 %v1548_v9, %v1548_v9 }
 0x359   : > { %v13303_v11 = vadd.f32 %v11245_v57, %v13247_v51  ;;  %v1663_v60 = vpop.f32.mrb[7].mxu1  ;;  %11261 = vmatpush3.bf16.xpose.msra.mxu1 %v1806_v50  ;;  %11262 = vmatprep.mubr.msk.bf16.mxu1 %vm12778_vm0, %v16033_v18  ;;  %v1546_v57 = vadd.f32 %v13287_v52, %v13264_v34 }
 0x35a   : > { %v13309_v62 = vadd.f32 %v1663_v60, %v13247_v51  ;;  %v1551_v21 = vpop.f32.mrb[8].mxu0  ;;  %11266 = vmatprep.subr.bf16.mxu1 %v16033_v18  ;;  %v1898_v3 = vsel %vm1755_vm1, %v13346_v24, 0 }
 0x35b   : > { %v1553_v63 = vpop.f32.mrb[9].mxu0  ;;  %v1552_v46 = vadd.f32 %v1551_v21, %v13264_v34 }
 0x35c   : > { %v1554_v4 = vadd.f32 %v1553_v63, %v13258_v20  ;;  %v13315_v5 = vpop.f32.mrb[10].mxu0 }
 0x35d   : > { %v1557_v43 = vpop.f32.mrb[11].mxu0  ;;  %v13353_v37 = vpack.c.bf16 %v1552_v46, %v1552_v46 }
 0x35e   : > { %v13319_v29 = vpack.c.bf16 %v1554_v4, %v1554_v4  ;;  %v11248_v6 = vpop.f32.mrb[8].mxu1  ;;  %v1558_v30 = vadd.f32 %v1557_v43, %v13258_v20 }
 0x35f   : > { %v13322_v7 = vadd.f32 %v11248_v6, %v13247_v51  ;;  %v1676_v8 = vpop.f32.mrb[9].mxu1 }
 0x360   : > { %v13326_v12 = vadd.f32 %v1676_v8, %v13247_v51  ;;  %v11249_v13 = vpop.f32.mrb[10].mxu1  ;;  %11263 = vmatmul.mubr.msk.bf16.vlgmr.msra.gmra.mrb[20].mxu1 %vm1755_vm1, %v13317_v22  ;;  %v1944_v14 = vsel %vm1755_vm1, %v13319_v29, 0  ;;  %v13387_v63 = vpack.c.bf16 %v1558_v30, %v1558_v30 }
 0x361   : > { %v13335_v31 = vadd.f32 %v11249_v13, %v13247_v51  ;;  %v1679_v15 = vpop.f32.mrb[11].mxu1  ;;  %11267 = vmatpush3.bf16.xpose.msra.mxu1 %v1852_v35  ;;  %11279 = vmatpush3.bf16.xpose.msra.mxu0 %v1944_v14  ;;  %v1556_v14 = vadd.f32 %v13315_v5, %v13264_v34 }
 0x362   : > { %v13340_v17 = vadd.f32 %v1679_v15, %v13247_v51  ;;  %v1561_v33 = vpop.f32.mrb[12].mxu0  ;;  %11268 = vmatprep.mubr.msk.bf16.mxu1 %vm12778_vm0, %v16033_v18  ;;  %11272 = vmatprep.subr.bf16.mxu1 %v16033_v18  ;;  %v1990_v13 = vsel %vm1755_vm1, %v13387_v63, 0 }
 0x363   : > { %v1563_v58 = vpop.f32.mrb[13].mxu0  ;;  %11290 = vmatprep.subr.bf16.mxu0 %v16033_v18  ;;  %v1562_v50 = vadd.f32 %v1561_v33, %v13264_v34 }
 0x364   : > { %v1564_v25 = vadd.f32 %v1563_v58, %v13258_v20  ;;  %v13349_v26 = vpop.f32.mrb[14].mxu0 }
 0x365   : > { %v1567_v27 = vpop.f32.mrb[15].mxu0  ;;  %v13392_v6 = vpack.c.bf16 %v1562_v50, %v1562_v50 }
 0x366   : > { %v13355_v38 = vpack.c.bf16 %v1564_v25, %v1564_v25  ;;  %v11252_v2 = vpop.f32.mrb[12].mxu1  ;;  %v1568_v9 = vadd.f32 %v1567_v27, %v13258_v20  ;;  %v13417_v27 = vpack.c.bf16 %v1556_v14, %v1556_v14 }
 0x367   : > { %v13358_v41 = vadd.f32 %v11252_v2, %v13247_v51  ;;  %v1692_v45 = vpop.f32.mrb[13].mxu1 }
 0x368   : > { %v13362_v48 = vadd.f32 %v1692_v45, %v13247_v51  ;;  %v11253_v49 = vpop.f32.mrb[14].mxu1  ;;  %11269 = vmatmul.mubr.msk.bf16.vlgmr.msra.gmra.mrb[24].mxu1 %vm1755_vm1, %v13351_v36  ;;  %11281 = vmatmul.mubr.msk.bf16.vlgmr.msra.gmra.mrb[32].mxu0 %vm1755_vm1, %v13353_v37  ;;  %v2036_v32 = vsel %vm1755_vm1, %v13355_v38, 0  ;;  %v13414_v33 = vpack.c.bf16 %v1568_v9, %v1568_v9 }
 0x369   : > { %16139 = vst [vmem:[#allocation10_spill] sm:$0xff] %v13358_v41  ;;  %v13373_v54 = vadd.f32 %v11253_v49, %v13247_v51  ;;  %v1695_v55 = vpop.f32.mrb[15].mxu1  ;;  %11273 = vmatpush3.bf16.xpose.msra.mxu1 %v1898_v3  ;;  %11291 = vmatpush3.bf16.xpose.msra.mxu0 %v2036_v32  ;;  %v1566_v32 = vadd.f32 %v13349_v26, %v13264_v34 }
 0x36a   : > { %v13379_v60 = vadd.f32 %v1695_v55, %v13247_v51  ;;  %v1571_v61 = vpop.f32.mrb[16].mxu0  ;;  %11274 = vmatprep.mubr.msk.bf16.mxu1 %vm12778_vm0, %v16033_v18  ;;  %11292 = vmatprep.mubr.msk.bf16.mxu0 %vm12778_vm0, %v16033_v18  ;;  %v13390_v51 = vpack.c.bf16 %v1546_v57, %v1546_v57  ;;  %v2082_v49 = vsel %vm1755_vm1, %v13414_v33, 0 }
 0x36b   : > { %16140 = vst [vmem:[#allocation11_spill] sm:$0xff] %v13373_v54  ;;  %v1573_v21 = vpop.f32.mrb[17].mxu0  ;;  %11284 = vmatprep.subr.bf16.mxu1 %v16033_v18  ;;  %11302 = vmatprep.subr.bf16.mxu0 %v16033_v18  ;;  %v1572_v15 = vadd.f32 %v1571_v61, %v13264_v34  ;;  %v13445_v9 = vpack.c.bf16 %v1566_v32, %v1566_v32 }
 0x36c   : > { %16141 = vst [vmem:[#allocation12_spill] sm:$0xff] %v13379_v60  ;;  %v1574_v52 = vadd.f32 %v1573_v21, %v13258_v20  ;;  %v1575_v4 = vpop.f32.mrb[18].mxu0 }
 0x36d   : > { %v1577_v43 = vpop.f32.mrb[19].mxu0  ;;  %v13419_v2 = vpack.c.bf16 %v1572_v15, %v1572_v15 }
 0x36e   : > { %v13394_v8 = vpack.c.bf16 %v1574_v52, %v1574_v52  ;;  %v1578_v30 = vadd.f32 %v1577_v43, %v13258_v20 }
 0x370   : > { %11275 = vmatmul.mubr.msk.bf16.vlgmr.msra.gmra.mrb[28].mxu1 %vm1755_vm1, %v13390_v51  ;;  %11293 = vmatmul.mubr.msk.bf16.vlgmr.msra.gmra.mrb[36].mxu0 %vm1755_vm1, %v13392_v6  ;;  %v2128_v35 = vsel %vm1755_vm1, %v13394_v8, 0  ;;  %v13441_v61 = vpack.c.bf16 %v1578_v30, %v1578_v30 }
 0x371   : > { %11285 = vmatpush3.bf16.xpose.msra.mxu1 %v1990_v13  ;;  %11303 = vmatpush3.bf16.xpose.msra.mxu0 %v2128_v35 }
 0x372   : > { %v1581_v16 = vpop.f32.mrb[20].mxu0  ;;  %11286 = vmatprep.mubr.msk.bf16.mxu1 %vm12778_vm0, %v16033_v18  ;;  %11304 = vmatprep.mubr.msk.bf16.mxu0 %vm12778_vm0, %v16033_v18  ;;  %16142 = vst [vmem:[#allocation13_spill] sm:$0xff] %v13441_v61 }
 0x373   : > { %v1583_v46 = vpop.f32.mrb[21].mxu0  ;;  %11296 = vmatprep.subr.bf16.mxu1 %v16033_v18  ;;  %11314 = vmatprep.subr.bf16.mxu0 %v16033_v18  ;;  %v1582_v55 = vadd.f32 %v1581_v16, %v13264_v34  ;;  %v2174_v16 = vsel %vm1755_vm1, %v13441_v61, 0 }
 0x374   : > { %v1584_v58 = vadd.f32 %v1583_v46, %v13258_v20  ;;  %v1585_v25 = vpop.f32.mrb[22].mxu0 }
 0x375   : > { %v1587_v5 = vpop.f32.mrb[23].mxu0  ;;  %v13447_v13 = vpack.c.bf16 %v1582_v55, %v1582_v55 }
 0x376   : > { %v13421_v45 = vpack.c.bf16 %v1584_v58, %v1584_v58  ;;  %v1588_v15 = vadd.f32 %v1587_v5, %v13258_v20  ;;  %v1576_v58 = vadd.f32 %v1575_v4, %v13264_v34 }
 0x378   : > { %11287 = vmatmul.mubr.msk.bf16.vlgmr.msra.gmra.mrb[32].mxu1 %vm1755_vm1, %v13417_v27  ;;  %11305 = vmatmul.mubr.msk.bf16.vlgmr.msra.gmra.mrb[40].mxu0 %vm1755_vm1, %v13419_v2  ;;  %v2220_v3 = vsel %vm1755_vm1, %v13421_v45, 0 }
 0x379   : > { %11297 = vmatpush3.bf16.xpose.msra.mxu1 %v2082_v49  ;;  %11315 = vmatpush3.bf16.xpose.msra.mxu0 %v2220_v3  ;;  %v13469_v3 = vpack.c.bf16 %v1588_v15, %v1588_v15 }
 0x37a   : > { %v1591_v57 = vpop.f32.mrb[24].mxu0  ;;  %11298 = vmatprep.mubr.msk.bf16.mxu1 %vm12778_vm0, %v16033_v18  ;;  %11316 = vmatprep.mubr.msk.bf16.mxu0 %vm12778_vm0, %v16033_v18 }
 0x37b   : > { %v1593_v50 = vpop.f32.mrb[25].mxu0  ;;  %11308 = vmatprep.subr.bf16.mxu1 %v16033_v18  ;;  %11326 = vmatprep.subr.bf16.mxu0 %v16033_v18  ;;  %v1592_v30 = vadd.f32 %v1591_v57, %v13264_v34  ;;  %16144 = vst [vmem:[#allocation15_spill] sm:$0xff] %v13469_v3  ;;  %v2266_v15 = vsel %vm1755_vm1, %v13469_v3, 0 }
 0x37c   : > { %v1594_v21 = vadd.f32 %v1593_v50, %v13258_v20  ;;  %v1595_v52 = vpop.f32.mrb[26].mxu0  ;;  %v13473_v50 = vpack.c.bf16 %v1576_v58, %v1576_v58 }
 0x37d   : > { %v1596_v26 = vadd.f32 %v1595_v52, %v13264_v34  ;;  %v1597_v43 = vpop.f32.mrb[27].mxu0 }
 0x37e   : > { %v13449_v35 = vpack.c.bf16 %v1594_v21, %v1594_v21  ;;  %v1598_v14 = vadd.f32 %v1597_v43, %v13258_v20  ;;  %16145 = vst [vmem:[#allocation16_spill] sm:$0xff] %v13473_v50  ;;  %v13475_v21 = vpack.c.bf16 %v1592_v30, %v1592_v30 }
 0x380   : > { %16143 = vst [vmem:[#allocation14_spill] sm:$0xff] %v13449_v35  ;;  %11299 = vmatmul.mubr.msk.bf16.vlgmr.msra.gmra.mrb[36].mxu1 %vm1755_vm1, %v13445_v9  ;;  %11317 = vmatmul.mubr.msk.bf16.vlgmr.msra.gmra.mrb[44].mxu0 %vm1755_vm1, %v13447_v13  ;;  %v2312_v46 = vsel %vm1755_vm1, %v13449_v35, 0  ;;  %16146 = vst [vmem:[#allocation17_spill] sm:$0xff] %v13475_v21  ;;  %v13500_v30 = vpack.c.bf16 %v1598_v14, %v1598_v14 }
 0x381   : > { %11309 = vmatpush3.bf16.xpose.msra.mxu1 %v2174_v16  ;;  %11327 = vmatpush3.bf16.xpose.msra.mxu0 %v2312_v46  ;;  %v1586_v46 = vadd.f32 %v1585_v25, %v13264_v34 }
 0x382   : > { %v1601_v49 = vpop.f32.mrb[28].mxu0  ;;  %11310 = vmatprep.mubr.msk.bf16.mxu1 %vm12778_vm0, %v16033_v18  ;;  %11328 = vmatprep.mubr.msk.bf16.mxu0 %vm12778_vm0, %v16033_v18  ;;  %16149 = vst [vmem:[#allocation20_spill] sm:$0xff] %v13500_v30 }
 0x383   : > { %v1603_v5 = vpop.f32.mrb[29].mxu0  ;;  %11320 = vmatprep.subr.bf16.mxu1 %v16033_v18  ;;  %11338 = vmatprep.subr.bf16.mxu0 %v16033_v18  ;;  %v1602_v58 = vadd.f32 %v1601_v49, %v13264_v34  ;;  %v13502_v25 = vpack.c.bf16 %v1586_v46, %v1586_v46  ;;  %v2358_v49 = vsel %vm1755_vm1, %v13500_v30, 0 }
 0x384   : > { %v1604_v32 = vadd.f32 %v1603_v5, %v13258_v20  ;;  %v1605_v55 = vpop.f32.mrb[30].mxu0  ;;  %v13522_v5 = vpack.c.bf16 %v1596_v26, %v1596_v26 }
 0x385   : > { %v1606_v4 = vadd.f32 %v1605_v55, %v13264_v34  ;;  %v1607_v57 = vpop.f32.mrb[31].mxu0  ;;  %16150 = vst [vmem:[#allocation21_spill] sm:$0xff] %v13502_v25  ;;  %v13504_v34 = vpack.c.bf16 %v1602_v58, %v1602_v58  ;;  %v13533_v55 = vpack.c.bf16 %v13282_v47, %v13282_v47 }
 0x386   : > { %v13477_v52 = vpack.c.bf16 %v1604_v32, %v1604_v32  ;;  %v1608_v43 = vadd.f32 %v1607_v57, %v13258_v20  ;;  %v13498_v20 = vpack.c.bf16 %v13273_v39, %v13273_v39  ;;  %16153 = vst [vmem:[#allocation24_spill] sm:$0xff] %v13522_v5 }
 0x387   : > { %16151 = vst [vmem:[#allocation22_spill] sm:$0xff] %v13504_v34  ;;  %16154 = vst [vmem:[#allocation25_spill] sm:$0xff] %v13533_v55  ;;  %v13535_v57 = vpack.c.bf16 %v1606_v4, %v1606_v4  ;;  %v2752_v26 = vsel %vm2704_vm2, %v13533_v55, 0 }
 0x388   : > { %16147 = vst [vmem:[#allocation18_spill] sm:$0xff] %v13477_v52  ;;  %11311 = vmatmul.mubr.msk.bf16.vlgmr.msra.gmra.mrb[40].mxu1 %vm1755_vm1, %v13473_v50  ;;  %11329 = vmatmul.mubr.msk.bf16.vlgmr.msra.gmra.mrb[48].mxu0 %vm1755_vm1, %v13475_v21  ;;  %v2404_v16 = vsel %vm1755_vm1, %v13477_v52, 0  ;;  %16148 = vst [vmem:[#allocation19_spill] sm:$0xff] %v13498_v20  ;;  %v2706_v39 = vsel %vm2704_vm2, %v13498_v20, 0  ;;  %v13520_v14 = vpack.c.bf16 %v1608_v43, %v1608_v43 }
 0x389   : > { %11321 = vmatpush3.bf16.xpose.msra.mxu1 %v2266_v15  ;;  %11339 = vmatpush3.bf16.xpose.msra.mxu0 %v2404_v16  ;;  %16155 = vst [vmem:[#allocation26_spill] sm:$0xff] %v13535_v57 }
 0x38a   : > { %11322 = vmatprep.mubr.msk.bf16.mxu1 %vm12778_vm0, %v16033_v18  ;;  %11340 = vmatprep.mubr.msk.bf16.mxu0 %vm12778_vm0, %v16033_v18  ;;  %16152 = vst [vmem:[#allocation23_spill] sm:$0xff] %v13520_v14  ;;  %v2450_v32 = vsel %vm1755_vm1, %v13520_v14, 0 }
 0x38b   : > { %11332 = vmatprep.subr.bf16.mxu1 %v16033_v18  ;;  %11350 = vmatprep.subr.bf16.mxu0 %v16033_v18 }
 0x390   : > { %11323 = vmatmul.mubr.msk.bf16.vlgmr.msra.gmra.mrb[44].mxu1 %vm1755_vm1, %v13502_v25  ;;  %11341 = vmatmul.mubr.msk.bf16.vlgmr.msra.gmra.mrb[52].mxu0 %vm1755_vm1, %v13504_v34 }
 0x391   : > { %11333 = vmatpush3.bf16.xpose.msra.mxu1 %v2358_v49  ;;  %11351 = vmatpush3.bf16.msra.mxu0 %v2706_v39 }
 0x392   : > { %11334 = vmatprep.mubr.msk.bf16.mxu1 %vm12778_vm0, %v16033_v18  ;;  %11344 = vmatprep.subr.bf16.mxu1 %v16033_v18 }
 0x393   : > { %11352 = vmatprep.mubr.msk.bf16.mxu0 %vm12778_vm0, %v16033_v18  ;;  %11362 = vmatprep.subr.bf16.mxu0 %v16033_v18 }
 0x398   : > { %11335 = vmatmul.mubr.msk.bf16.vlgmr.msra.gmra.mrb[48].mxu1 %vm1755_vm1, %v13522_v5 }
 0x399   : > { %11345 = vmatpush3.bf16.xpose.msra.mxu1 %v2450_v32  ;;  %11346 = vmatprep.mubr.msk.bf16.mxu1 %vm12778_vm0, %v16033_v18 }
 0x39a   : > { %11356 = vmatprep.subr.bf16.mxu1 %v16033_v18 }
 0x3a0   : > { %11347 = vmatmul.mubr.msk.bf16.vlgmr.msra.gmra.mrb[52].mxu1 %vm1755_vm1, %v13535_v57 }
 0x3a1   : > { %11357 = vmatpush3.bf16.msra.mxu1 %v2752_v26  ;;  %11358 = vmatprep.mubr.msk.bf16.mxu1 %vm12778_vm0, %v16033_v18 }
 0x3a2   : > { %11368 = vmatprep.subr.bf16.mxu1 %v16033_v18 }
 0x42b   : > { %v1796_v43 = vpop.f32.mrb[16].mxu1 }
 0x42c   : > { %v11258_v15 = vpop.f32.mrb[17].mxu1  ;;  %v13544_v16 = vmul.f32 0.17677669, %v1796_v43 }
 0x42d   : > { %v1799_v47 = vpop.f32.mrb[18].mxu1 }
 0x42e   : > { %v11259_v4 = vpop.f32.mrb[19].mxu1  ;;  %v2509_v46 = vsel %vm2508_vm3, %v13544_v16, -inf }
 0x42f   : > { %2510 = vmax.xlane.f32.xlu0 %v2509_v46 }
 0x433   : > { %v1842_v58 = vpop.f32.mrb[20].mxu1 }
 0x434   : > { %v11264_v49 = vpop.f32.mrb[21].mxu1  ;;  %v13548_v39 = vmul.f32 0.17677669, %v1842_v58 }
 0x435   : > { %v1845_v32 = vpop.f32.mrb[22].mxu1 }
 0x436   : > { %v11265_v26 = vpop.f32.mrb[23].mxu1  ;;  %v2512_v19 = vsel %vm2508_vm3, %v13548_v39, -inf }
 0x437   : > { %2513 = vmax.xlane.f32.xlu1 %v2512_v19 }
 0x43b   : > { %v1888_v23 = vpop.f32.mrb[24].mxu1  ;;  %v1980_v15 = vpop.f32.mrb[32].mxu0 }
 0x43c   : > { %v11270_v43 = vpop.f32.mrb[25].mxu1  ;;  %v11282_v0 = vpop.f32.mrb[33].mxu0  ;;  %v13552_v47 = vmul.f32 0.17677669, %v1888_v23  ;;  %v13556_v49 = vmul.f32 0.17677669, %v1980_v15 }
 0x43d   : > { %v1891_v4 = vpop.f32.mrb[26].mxu1  ;;  %v1983_v18 = vpop.f32.mrb[34].mxu0 }
 0x43e   : > { %v11271_v40 = vpop.f32.mrb[27].mxu1  ;;  %v11283_v46 = vpop.f32.mrb[35].mxu0  ;;  %v2515_v58 = vsel %vm2508_vm3, %v13552_v47, -inf  ;;  %v2521_v32 = vsel %vm2508_vm3, %v13556_v49, -inf }
 0x43f   : > { %2516 = vmax.xlane.f32.xlu0 %v2515_v58 }
 0x443   : > { %v1934_v19 = vpop.f32.mrb[28].mxu1  ;;  %2522 = vmax.xlane.f32.xlu0 %v2521_v32  ;;  %v2072_v26 = vpop.f32.mrb[36].mxu0 }
 0x444   : > { %v11276_v43 = vpop.f32.mrb[29].mxu1  ;;  %v11294_v0 = vpop.f32.mrb[37].mxu0  ;;  %v13560_v23 = vmul.f32 0.17677669, %v1934_v19  ;;  %v13562_v4 = vmul.f32 0.17677669, %v2072_v26 }
 0x445   : > { %v1937_v40 = vpop.f32.mrb[30].mxu1  ;;  %v2075_v18 = vpop.f32.mrb[38].mxu0 }
 0x446   : > { %v11277_v46 = vpop.f32.mrb[31].mxu1  ;;  %v11295_v54 = vpop.f32.mrb[39].mxu0  ;;  %v2518_v15 = vsel %vm2508_vm3, %v13560_v23, -inf  ;;  %v2527_v58 = vsel %vm2508_vm3, %v13562_v4, -inf }
 0x447   : > { %2519 = vmax.xlane.f32.xlu1 %v2518_v15  ;;  %2528 = vmax.xlane.f32.xlu0 %v2527_v58 }
 0x44b   : > { %v2026_v32 = vpop.f32.mrb[32].mxu1  ;;  %v2164_v55 = vpop.f32.mrb[40].mxu0 }
 0x44c   : > { %v11288_v43 = vpop.f32.mrb[33].mxu1  ;;  %v11306_v0 = vpop.f32.mrb[41].mxu0  ;;  %v13568_v19 = vmul.f32 0.17677669, %v2026_v32  ;;  %v13570_v26 = vmul.f32 0.17677669, %v2164_v55 }
 0x44d   : > { %v2029_v40 = vpop.f32.mrb[34].mxu1  ;;  %v2167_v18 = vpop.f32.mrb[42].mxu0 }
 0x44e   : > { %v11289_v46 = vpop.f32.mrb[35].mxu1  ;;  %v11307_v54 = vpop.f32.mrb[43].mxu0  ;;  %v2524_v57 = vsel %vm2508_vm3, %v13568_v19, -inf  ;;  %v2533_v14 = vsel %vm2508_vm3, %v13570_v26, -inf }
 0x44f   : > { %2525 = vmax.xlane.f32.xlu1 %v2524_v57  ;;  %2534 = vmax.xlane.f32.xlu0 %v2533_v14 }
 0x453   : > { %v2118_v15 = vpop.f32.mrb[36].mxu1  ;;  %v2256_v58 = vpop.f32.mrb[44].mxu0 }
 0x454   : > { %v11300_v43 = vpop.f32.mrb[37].mxu1  ;;  %v11318_v0 = vpop.f32.mrb[45].mxu0  ;;  %v13576_v32 = vmul.f32 0.17677669, %v2118_v15  ;;  %v13578_v55 = vmul.f32 0.17677669, %v2256_v58 }
 0x455   : > { %v2121_v40 = vpop.f32.mrb[38].mxu1  ;;  %v2259_v18 = vpop.f32.mrb[46].mxu0 }
 0x456   : > { %v11301_v46 = vpop.f32.mrb[39].mxu1  ;;  %v11319_v54 = vpop.f32.mrb[47].mxu0  ;;  %v2530_v5 = vsel %vm2508_vm3, %v13576_v32, -inf  ;;  %v2539_v30 = vsel %vm2508_vm3, %v13578_v55, -inf }
 0x457   : > { %2531 = vmax.xlane.f32.xlu1 %v2530_v5  ;;  %2540 = vmax.xlane.f32.xlu0 %v2539_v30 }
 0x45b   : > { %v2210_v14 = vpop.f32.mrb[40].mxu1  ;;  %v2348_v57 = vpop.f32.mrb[48].mxu0 }
 0x45c   : > { %v11312_v43 = vpop.f32.mrb[41].mxu1  ;;  %v11330_v0 = vpop.f32.mrb[49].mxu0  ;;  %v13584_v15 = vmul.f32 0.17677669, %v2210_v14  ;;  %v13586_v58 = vmul.f32 0.17677669, %v2348_v57 }
 0x45d   : > { %v2213_v40 = vpop.f32.mrb[42].mxu1  ;;  %v2351_v18 = vpop.f32.mrb[50].mxu0 }
 0x45e   : > { %v11313_v46 = vpop.f32.mrb[43].mxu1  ;;  %v11331_v54 = vpop.f32.mrb[51].mxu0  ;;  %v2536_v25 = vsel %vm2508_vm3, %v13584_v15, -inf  ;;  %v2545_v3 = vsel %vm2508_vm3, %v13586_v58, -inf }
 0x45f   : > { %2537 = vmax.xlane.f32.xlu1 %v2536_v25  ;;  %2546 = vmax.xlane.f32.xlu0 %v2545_v3 }
 0x463   : > { %v2302_v30 = vpop.f32.mrb[44].mxu1  ;;  %v2440_v5 = vpop.f32.mrb[52].mxu0 }
 0x464   : > { %v11324_v43 = vpop.f32.mrb[45].mxu1  ;;  %v11342_v0 = vpop.f32.mrb[53].mxu0  ;;  %v13592_v14 = vmul.f32 0.17677669, %v2302_v30  ;;  %v13594_v57 = vmul.f32 0.17677669, %v2440_v5 }
 0x465   : > { %v2305_v40 = vpop.f32.mrb[46].mxu1  ;;  %v2443_v18 = vpop.f32.mrb[54].mxu0 }
 0x466   : > { %v11325_v46 = vpop.f32.mrb[47].mxu1  ;;  %v11343_v54 = vpop.f32.mrb[55].mxu0  ;;  %v2542_v50 = vsel %vm2508_vm3, %v13592_v14, -inf  ;;  %v2551_v60 = vsel %vm2508_vm3, %v13594_v57, -inf }
 0x467   : > { %2543 = vmax.xlane.f32.xlu1 %v2542_v50  ;;  %2552 = vmax.xlane.f32.xlu0 %v2551_v60 }
 0x46b   : > { %v2394_v3 = vpop.f32.mrb[48].mxu1 }
 0x46c   : > { %v11336_v25 = vpop.f32.mrb[49].mxu1  ;;  %v13600_v43 = vmul.f32 0.17677669, %v2394_v3 }
 0x46d   : > { %v2397_v30 = vpop.f32.mrb[50].mxu1 }
 0x46e   : > { %v11337_v0 = vpop.f32.mrb[51].mxu1  ;;  %v2548_v5 = vsel %vm2508_vm3, %v13600_v43, -inf }
 0x46f   : > { %2549 = vmax.xlane.f32.xlu1 %v2548_v5 }
 0x473   : > { %v2486_v40 = vpop.f32.mrb[52].mxu1 }
 0x474   : > { %v11348_v18 = vpop.f32.mrb[53].mxu1  ;;  %v13604_v46 = vmul.f32 0.17677669, %v2486_v40 }
 0x475   : > { %v2489_v54 = vpop.f32.mrb[54].mxu1 }
 0x476   : > { %v11349_v41 = vpop.f32.mrb[55].mxu1  ;;  %v2554_v50 = vsel %vm2508_vm3, %v13604_v46, -inf }
 0x477   : > { %2555 = vmax.xlane.f32.xlu1 %v2554_v50 }
 0x4bc   : > { %v2511_v60 = vpop.xlane.xlu0 %2510 }
 0x4bd   : > { %v2557_v3 = vsub.f32 %v13544_v16, %v2511_v60 }
 0x4bf   : > { %v2573_v25 = vmul.f32 1.442695, %v2557_v3 }
 0x4c1   : > { %12416 = vpow2.f32 %v2573_v25 }
 0x4c4   : > { %v2514_v30 = vpop.xlane.xlu1 %2513 }
 0x4c5   : > { %v2558_v0 = vsub.f32 %v13548_v39, %v2514_v30 }
 0x4c7   : > { %v2575_v61 = vmul.f32 1.442695, %v2558_v0 }
 0x4c9   : > { %12418 = vpow2.f32 %v2575_v61 }
 0x4cb   : > { %v13610_v5 = vpop.eup %12416 }
 0x4cc   : > { %v2517_v40 = vpop.xlane.xlu0 %2516  ;;  %v2605_v41 = vsel %vm2508_vm3, %v13610_v5, 0.0 }
 0x4cd   : > { %v2559_v18 = vsub.f32 %v13552_v47, %v2517_v40  ;;  %2606 = vadd.xlane.f32.xlu0 %v2605_v41 }
 0x4cf   : > { %v2577_v54 = vmul.f32 1.442695, %v2559_v18 }
 0x4d0   : > { %v2523_v50 = vpop.xlane.xlu0 %2522 }
 0x4d1   : > { %12420 = vpow2.f32 %v2577_v54  ;;  %v2561_v16 = vsub.f32 %v13556_v49, %v2523_v50 }
 0x4d3   : > { %v13616_v60 = vpop.eup %12418  ;;  %v2581_v3 = vmul.f32 1.442695, %v2561_v16 }
 0x4d4   : > { %v2520_v39 = vpop.xlane.xlu1 %2519  ;;  %v2529_v25 = vpop.xlane.xlu0 %2528  ;;  %v2608_v61 = vsel %vm2508_vm3, %v13616_v60, 0.0 }
 0x4d5   : > { %12422 = vpow2.f32 %v2581_v3  ;;  %v2560_v30 = vsub.f32 %v13560_v23, %v2520_v39  ;;  %v2563_v0 = vsub.f32 %v13562_v4, %v2529_v25  ;;  %2609 = vadd.xlane.f32.xlu1 %v2608_v61 }
 0x4d7   : > { %v2579_v47 = vmul.f32 1.442695, %v2560_v30  ;;  %v2585_v40 = vmul.f32 1.442695, %v2563_v0 }
 0x4d9   : > { %12424 = vpow2.f32 %v2579_v47 }
 0x4da   : > { %12426 = vpow2.f32 %v2585_v40 }
 0x4db   : > { %v13622_v41 = vpop.eup %12420 }
 0x4dc   : > { %v2526_v49 = vpop.xlane.xlu1 %2525  ;;  %v2535_v18 = vpop.xlane.xlu0 %2534  ;;  %v2611_v54 = vsel %vm2508_vm3, %v13622_v41, 0.0 }
 0x4dd   : > { %v2562_v50 = vsub.f32 %v13568_v19, %v2526_v49  ;;  %v2565_v16 = vsub.f32 %v13570_v26, %v2535_v18  ;;  %2612 = vadd.xlane.f32.xlu0 %v2611_v54 }
 0x4df   : > { %v13628_v23 = vpop.eup %12422  ;;  %v2583_v4 = vmul.f32 1.442695, %v2562_v50  ;;  %v2589_v3 = vmul.f32 1.442695, %v2565_v16 }
 0x4e0   : > { %v2617_v39 = vsel %vm2508_vm3, %v13628_v23, 0.0 }
 0x4e1   : > { %12428 = vpow2.f32 %v2583_v4  ;;  %2618 = vadd.xlane.f32.xlu0 %v2617_v39 }
 0x4e2   : > { %12430 = vpow2.f32 %v2589_v3 }
 0x4e3   : > { %v13632_v25 = vpop.eup %12424 }
 0x4e4   : > { %v13634_v61 = vpop.eup %12426  ;;  %v2532_v30 = vpop.xlane.xlu1 %2531  ;;  %v2614_v19 = vsel %vm2508_vm3, %v13632_v25, 0.0 }
 0x4e5   : > { %v2541_v0 = vpop.xlane.xlu0 %2540  ;;  %v2564_v26 = vsub.f32 %v13576_v32, %v2532_v30  ;;  %2615 = vadd.xlane.f32.xlu1 %v2614_v19  ;;  %v2623_v40 = vsel %vm2508_vm3, %v13634_v61, 0.0 }
 0x4e6   : > { %v2567_v47 = vsub.f32 %v13578_v55, %v2541_v0  ;;  %2624 = vadd.xlane.f32.xlu0 %v2623_v40 }
 0x4e7   : > { %v2587_v49 = vmul.f32 1.442695, %v2564_v26 }
 0x4e8   : > { %v2593_v18 = vmul.f32 1.442695, %v2567_v47 }
 0x4e9   : > { %12432 = vpow2.f32 %v2587_v49 }
 0x4ea   : > { %12434 = vpow2.f32 %v2593_v18 }
 0x4eb   : > { %v13642_v54 = vpop.eup %12428 }
 0x4ec   : > { %v13644_v50 = vpop.eup %12430  ;;  %v2538_v16 = vpop.xlane.xlu1 %2537  ;;  %v2620_v32 = vsel %vm2508_vm3, %v13642_v54, 0.0 }
 0x4ed   : > { %v2547_v4 = vpop.xlane.xlu0 %2546  ;;  %v2566_v55 = vsub.f32 %v13584_v15, %v2538_v16  ;;  %2621 = vadd.xlane.f32.xlu1 %v2620_v32  ;;  %v2629_v39 = vsel %vm2508_vm3, %v13644_v50, 0.0 }
 0x4ee   : > { %v2569_v3 = vsub.f32 %v13586_v58, %v2547_v4  ;;  %2630 = vadd.xlane.f32.xlu0 %v2629_v39 }
 0x4ef   : > { %v2591_v30 = vmul.f32 1.442695, %v2566_v55 }
 0x4f0   : > { %v2597_v0 = vmul.f32 1.442695, %v2569_v3 }
 0x4f1   : > { %12436 = vpow2.f32 %v2591_v30 }
 0x4f2   : > { %12438 = vpow2.f32 %v2597_v0 }
 0x4f3   : > { %v13652_v19 = vpop.eup %12432 }
 0x4f4   : > { %v13654_v26 = vpop.eup %12434  ;;  %v2544_v47 = vpop.xlane.xlu1 %2543  ;;  %v2626_v15 = vsel %vm2508_vm3, %v13652_v19, 0.0 }
 0x4f5   : > { %v2553_v40 = vpop.xlane.xlu0 %2552  ;;  %v2568_v58 = vsub.f32 %v13592_v14, %v2544_v47  ;;  %2627 = vadd.xlane.f32.xlu1 %v2626_v15  ;;  %v2635_v18 = vsel %vm2508_vm3, %v13654_v26, 0.0 }
 0x4f6   : > { %v2571_v49 = vsub.f32 %v13594_v57, %v2553_v40  ;;  %2636 = vadd.xlane.f32.xlu0 %v2635_v18 }
 0x4f7   : > { %v2595_v16 = vmul.f32 1.442695, %v2568_v58 }
 0x4f8   : > { %v2601_v4 = vmul.f32 1.442695, %v2571_v49 }
 0x4f9   : > { %12440 = vpow2.f32 %v2595_v16  ;;  %v13722_v16 = vpack.c.bf16 %v13269_v59, %v13269_v59 }
 0x4fa   : > { %12442 = vpow2.f32 %v2601_v4 }
 0x4fb   : > { %v13662_v32 = vpop.eup %12436  ;;  %16156 = vst [vmem:[#allocation27_spill] sm:$0xff] %v13722_v16 }
 0x4fc   : > { %v13664_v55 = vpop.eup %12438  ;;  %v2632_v3 = vsel %vm2508_vm3, %v13662_v32, 0.0  ;;  %v2550_v47 = vpop.xlane.xlu1 %2549 }
 0x4fd   : > { %2633 = vadd.xlane.f32.xlu1 %v2632_v3  ;;  %v2641_v14 = vsel %vm2508_vm3, %v13664_v55, 0.0  ;;  %v2570_v40 = vsub.f32 %v13600_v43, %v2550_v47 }
 0x4fe   : > { %2642 = vadd.xlane.f32.xlu0 %v2641_v14  ;;  %v13728_v14 = vpack.c.bf16 %v13296_v56, %v13296_v56 }
 0x4ff   : > { %v2599_v15 = vmul.f32 1.442695, %v2570_v40 }
 0x500   : > { %16157 = vst [vmem:[#allocation28_spill] sm:$0xff] %v13728_v14 }
 0x501   : > { %12444 = vpow2.f32 %v2599_v15 }
 0x503   : > { %v13670_v57 = vpop.eup %12440 }
 0x504   : > { %v13672_v39 = vpop.eup %12442  ;;  %v2638_v30 = vsel %vm2508_vm3, %v13670_v57, 0.0  ;;  %v2556_v49 = vpop.xlane.xlu1 %2555 }
 0x505   : > { %2639 = vadd.xlane.f32.xlu1 %v2638_v30  ;;  %v2647_v0 = vsel %vm2508_vm3, %v13672_v39, 0.0  ;;  %v2572_v18 = vsub.f32 %v13604_v46, %v2556_v49  ;;  %v13734_v46 = vpack.c.bf16 %v13292_v53, %v13292_v53  ;;  %v2798_v53 = vsel %vm2704_vm2, %v13722_v16, 0 }
 0x506   : > { %2648 = vadd.xlane.f32.xlu0 %v2647_v0  ;;  %v13740_v0 = vpack.c.bf16 %v13326_v12, %v13326_v12 }
 0x507   : > { %v2603_v3 = vmul.f32 1.442695, %v2572_v18  ;;  %16158 = vst [vmem:[#allocation29_spill] sm:$0xff] %v13734_v46 }
 0x508   : > { %16159 = vst [vmem:[#allocation30_spill] sm:$0xff] %v13740_v0 }
 0x50b   : > { %v13695_v58 = vpop.eup %12444 }
 0x50c   : > { %v2644_v43 = vsel %vm2508_vm3, %v13695_v58, 0.0 }
 0x516   : > { %3494 = vrot.lane.b32.xlu1 %v13285_v42, %s12779_s3 }
 0x51c   : > { %3442 = vrot.lane.b32.xlu0 %v13266_v28, %s12779_s3 }
 0x520   : > { %3546 = vrot.lane.b32.xlu0 %v13312_v1, %s12779_s3 }
 0x524   : > { %3543 = vrot.lane.b32.xlu0 %v13351_v36, %s12779_s3 }
 0x528   : > { %3650 = vrot.lane.b32.xlu0 %v13319_v29, %s12779_s3 }
 0x52c   : > { %3647 = vrot.lane.b32.xlu0 %v13353_v37, %s12779_s3 }
 0x530   : > { %3754 = vrot.lane.b32.xlu0 %v13355_v38, %s12779_s3 }
 0x534   : > { %3751 = vrot.lane.b32.xlu0 %v13392_v6, %s12779_s3 }
 0x538   : > { %3858 = vrot.lane.b32.xlu0 %v13394_v8, %s12779_s3 }
 0x53a   : > { %2645 = vadd.xlane.f32.xlu1 %v2644_v43  ;;  %v16160_v43 = vmov 0.0  }
 0x53c   : > { %3855 = vrot.lane.b32.xlu0 %v13419_v2, %s12779_s3 }
 0x540   : > { %3962 = vrot.lane.b32.xlu0 %v13421_v45, %s12779_s3 }
 0x544   : > { %3959 = vrot.lane.b32.xlu0 %v13447_v13, %s12779_s3 }
 0x548   : > { %4066 = vrot.lane.b32.xlu0 %v13449_v35, %s12779_s3 }
 0x54b   : > { %3439 = vrot.lane.b32.xlu1 %v13289_v10, %s12779_s3 }
 0x54c   : > { %4063 = vrot.lane.b32.xlu0 %v13475_v21, %s12779_s3 }
 0x550   : > { %4170 = vrot.lane.b32.xlu0 %v13477_v52, %s12779_s3 }
 0x554   : > { %4167 = vrot.lane.b32.xlu0 %v13504_v34, %s12779_s3 }
 0x558   : > { %4479 = vrot.lane.b32.xlu0 %v13498_v20, %s12779_s3 }
 0x55a   : > { %v2607_v4 = vpop.xlane.xlu0 %2606 }
 0x55b   : > { %12446 = vrcp.f32 %v2607_v4 }
 0x55c   : > { %4577 = vrot.lane.b32.xlu0 %v13722_v16, %s12779_s3  ;;  %12448 = vpow2.f32 %v2603_v3 }
 0x560   : > { %4675 = vrot.lane.b32.xlu0 %v13728_v14, %s12779_s3 }
 0x562   : > { %v2610_v59 = vpop.xlane.xlu1 %2609 }
 0x563   : > { %12450 = vrcp.f32 %v2610_v59 }
 0x564   : > { %4773 = vrot.lane.b32.xlu0 %v13734_v46, %s12779_s3 }
 0x565   : > { %v12447_v30 = vpop.eup %12446 }
 0x566   : > { %v2669_v56 = vmul.f32 %v12447_v30, %v13610_v5  ;;  %v13748_v15 = vpop.eup %12448  ;;  %v13755_v5 = vpack.c.bf16 %v13278_v44, %v13278_v44 }
 0x567   : > { %v2650_v18 = vsel %vm2508_vm3, %v13748_v15, 0.0 }
 0x568   : > { %4871 = vrot.lane.b32.xlu0 %v13740_v0, %s12779_s3  ;;  %v2685_v47 = vpack.c.bf16 %v2669_v56, %v2669_v56  ;;  %16161 = vst [vmem:[#allocation31_spill] sm:$0xff] %v13755_v5  ;;  %v2844_v59 = vsel %vm2704_vm2, %v13755_v5, 0 }
 0x56a   : > { %11353 = vmatmul.mubr.msk.bf16.vlgmr.msra.gmra.mrb[56].mxu0 %vm2508_vm3, %v2685_v47  ;;  %v2613_v40 = vpop.xlane.xlu0 %2612 }
 0x56b   : > { %11363 = vmatpush3.bf16.msra.mxu0 %v2798_v53  ;;  %12452 = vrcp.f32 %v2613_v40  ;;  %11364 = vmatprep.mubr.msk.bf16.mxu0 %vm12778_vm0, %v16160_v43 }
 0x56c   : > { %11374 = vmatprep.subr.bf16.mxu0 %v16160_v43 }
 0x56d   : > { %v12451_v12 = vpop.eup %12450 }
 0x56e   : > { %v2619_v49 = vpop.xlane.xlu0 %2618  ;;  %v2670_v4 = vmul.f32 %v12451_v12, %v13616_v60  ;;  %v2890_v12 = vsel %vm2704_vm2, %v13728_v14, 0 }
 0x56f   : > { %12454 = vrcp.f32 %v2619_v49  ;;  %2651 = vadd.xlane.f32.xlu1 %v2650_v18 }
 0x570   : > { %v2686_v3 = vpack.c.bf16 %v2670_v4, %v2670_v4  ;;  %v13776_v4 = vpack.c.bf16 %v13309_v62, %v13309_v62  ;;  %v2982_v62 = vsel %vm2704_vm2, %v13734_v46, 0 }
 0x572   : > { %11359 = vmatmul.mubr.msk.bf16.vlgmr.msra.gmra.mrb[56].mxu1 %vm2508_vm3, %v2686_v3  ;;  %v2616_v30 = vpop.xlane.xlu1 %2615  ;;  %16162 = vst [vmem:[#allocation32_spill] sm:$0xff] %v13776_v4 }
 0x573   : > { %11369 = vmatpush3.bf16.msra.mxu1 %v2844_v59  ;;  %12456 = vrcp.f32 %v2616_v30  ;;  %11370 = vmatprep.mubr.msk.bf16.mxu1 %vm12778_vm0, %v16160_v43  ;;  %v2625_v44 = vpop.xlane.xlu0 %2624 }
 0x574   : > { %11380 = vmatprep.subr.bf16.mxu1 %v16160_v43  ;;  %12458 = vrcp.f32 %v2625_v44 }
 0x575   : > { %v12453_v56 = vpop.eup %12452 }
 0x576   : > { %v2671_v60 = vmul.f32 %v12453_v56, %v13622_v41  ;;  %v2936_v56 = vsel %vm2704_vm2, %v13776_v4, 0 }
 0x578   : > { %v2687_v47 = vpack.c.bf16 %v2671_v60, %v2671_v60 }
 0x579   : > { %v12455_v53 = vpop.eup %12454 }
 0x57a   : > { %v2622_v40 = vpop.xlane.xlu1 %2621  ;;  %11365 = vmatmul.mubr.msk.bf16.vlgmr.msra.gmra.mrb[60].mxu0 %vm2508_vm3, %v2687_v47  ;;  %v2673_v18 = vmul.f32 %v12455_v53, %v13628_v23  ;;  %v13797_v53 = vpack.c.bf16 %v13303_v11, %v13303_v11  ;;  %v3074_v11 = vsel %vm2704_vm2, %v13740_v0, 0 }
 0x57b   : > { %12460 = vrcp.f32 %v2622_v40  ;;  %11375 = vmatpush3.bf16.msra.mxu0 %v2890_v12  ;;  %11376 = vmatprep.mubr.msk.bf16.mxu0 %vm12778_vm0, %v16160_v43  ;;  %v2631_v49 = vpop.xlane.xlu0 %2630 }
 0x57c   : > { %11386 = vmatprep.subr.bf16.mxu0 %v16160_v43  ;;  %12462 = vrcp.f32 %v2631_v49  ;;  %v2689_v30 = vpack.c.bf16 %v2673_v18, %v2673_v18  ;;  %16163 = vst [vmem:[#allocation33_spill] sm:$0xff] %v13797_v53  ;;  %v3028_v18 = vsel %vm2704_vm2, %v13797_v53, 0 }
 0x57d   : > { %v12457_v41 = vpop.eup %12456 }
 0x57e   : > { %v2672_v3 = vmul.f32 %v12457_v41, %v13632_v25  ;;  %v12459_v44 = vpop.eup %12458 }
 0x57f   : > { %v2675_v60 = vmul.f32 %v12459_v44, %v13634_v61  ;;  %v13823_v44 = vpack.c.bf16 %v13340_v17, %v13340_v17 }
 0x580   : > { %3491 = vrot.lane.b32.xlu1 %v13317_v22, %s12779_s3  ;;  %v2688_v59 = vpack.c.bf16 %v2672_v3, %v2672_v3 }
 0x581   : > { %v2691_v61 = vpack.c.bf16 %v2675_v60, %v2675_v60  ;;  %16165 = vst [vmem:[#allocation35_spill] sm:$0xff] %v13823_v44 }
 0x582   : > { %11371 = vmatmul.mubr.msk.bf16.vlgmr.msra.gmra.mrb[60].mxu1 %vm2508_vm3, %v2688_v59  ;;  %v2628_v23 = vpop.xlane.xlu1 %2627  ;;  %11377 = vmatmul.mubr.msk.bf16.vlgmr.msra.gmra.mrb[64].mxu0 %vm2508_vm3, %v2689_v30  ;;  %v13819_v30 = vpack.c.bf16 %v13322_v7, %v13322_v7  ;;  %v3120_v7 = vsel %vm2704_vm2, %v13823_v44, 0 }
 0x583   : > { %11381 = vmatpush3.bf16.msra.mxu1 %v2936_v56  ;;  %12464 = vrcp.f32 %v2628_v23  ;;  %11387 = vmatpush3.bf16.msra.mxu0 %v2982_v62  ;;  %v2637_v25 = vpop.xlane.xlu0 %2636 }
 0x584   : > { %3598 = vrot.lane.b32.xlu1 %v13346_v24, %s12779_s3  ;;  %11382 = vmatprep.mubr.msk.bf16.mxu1 %vm12778_vm0, %v16160_v43  ;;  %12466 = vrcp.f32 %v2637_v25  ;;  %16164 = vst [vmem:[#allocation34_spill] sm:$0xff] %v13819_v30  ;;  %v3166_v17 = vsel %vm2704_vm2, %v13819_v30, 0 }
 0x585   : > { %v12461_v47 = vpop.eup %12460  ;;  %11388 = vmatprep.mubr.msk.bf16.mxu0 %vm12778_vm0, %v16160_v43  ;;  %11392 = vmatprep.subr.bf16.mxu1 %v16160_v43 }
 0x586   : > { %11398 = vmatprep.subr.bf16.mxu0 %v16160_v43  ;;  %v2674_v40 = vmul.f32 %v12461_v47, %v13642_v54  ;;  %v12463_v49 = vpop.eup %12462 }
 0x587   : > { %v2677_v3 = vmul.f32 %v12463_v49, %v13644_v50 }
 0x588   : > { %3595 = vrot.lane.b32.xlu1 %v13390_v51, %s12779_s3  ;;  %v2690_v12 = vpack.c.bf16 %v2674_v40, %v2674_v40  ;;  %v13845_v40 = vpack.c.bf16 %v13335_v31, %v13335_v31 }
 0x589   : > { %v2693_v23 = vpack.c.bf16 %v2677_v3, %v2677_v3 }
 0x58a   : > { %11383 = vmatmul.mubr.msk.bf16.vlgmr.msra.gmra.mrb[64].mxu1 %vm2508_vm3, %v2690_v12  ;;  %v2634_v41 = vpop.xlane.xlu1 %2633  ;;  %11389 = vmatmul.mubr.msk.bf16.vlgmr.msra.gmra.mrb[68].mxu0 %vm2508_vm3, %v2691_v61  ;;  %16166 = vst [vmem:[#allocation36_spill] sm:$0xff] %v13845_v40  ;;  %v13849_v12 = vpack.c.bf16 %v13362_v48, %v13362_v48  ;;  %v3212_v31 = vsel %vm2704_vm2, %v13845_v40, 0 }
 0x58b   : > { %11393 = vmatpush3.bf16.msra.mxu1 %v3028_v18  ;;  %12468 = vrcp.f32 %v2634_v41  ;;  %11399 = vmatpush3.bf16.msra.mxu0 %v3074_v11  ;;  %v2643_v54 = vpop.xlane.xlu0 %2642 }
 0x58c   : > { %3702 = vrot.lane.b32.xlu1 %v13387_v63, %s12779_s3  ;;  %11394 = vmatprep.mubr.msk.bf16.mxu1 %vm12778_vm0, %v16160_v43  ;;  %12470 = vrcp.f32 %v2643_v54  ;;  %16167 = vst [vmem:[#allocation37_spill] sm:$0xff] %v13849_v12  ;;  %v3258_v48 = vsel %vm2704_vm2, %v13849_v12, 0  ;;  %v16169_v54 = vld [vmem:[#allocation10_spill] sm:$0xff] }
 0x58d   : > { %v12465_v59 = vpop.eup %12464  ;;  %11400 = vmatprep.mubr.msk.bf16.mxu0 %vm12778_vm0, %v16160_v43  ;;  %11404 = vmatprep.subr.bf16.mxu1 %v16160_v43  ;;  %v13871_v3 = vpack.c.bf16 %v16169_v54, %v16169_v54  ;;  %v16179_v54 = vld [vmem:[#allocation25_spill] sm:$0xff] }
 0x58e   : > { %11410 = vmatprep.subr.bf16.mxu0 %v16160_v43  ;;  %v2676_v56 = vmul.f32 %v12465_v59, %v13652_v19  ;;  %v12467_v62 = vpop.eup %12466  ;;  %v16170_v59 = vld [vmem:[#allocation12_spill] sm:$0xff] }
 0x58f   : > { %v2679_v60 = vmul.f32 %v12467_v62, %v13654_v26 }
 0x590   : > { %3699 = vrot.lane.b32.xlu1 %v13417_v27, %s12779_s3  ;;  %v2692_v50 = vpack.c.bf16 %v2676_v56, %v2676_v56  ;;  %v13875_v56 = vpack.c.bf16 %v16170_v59, %v16170_v59 }
 0x591   : > { %v2695_v49 = vpack.c.bf16 %v2679_v60, %v2679_v60 }
 0x592   : > { %11395 = vmatmul.mubr.msk.bf16.vlgmr.msra.gmra.mrb[68].mxu1 %vm2508_vm3, %v2692_v50  ;;  %v2640_v25 = vpop.xlane.xlu1 %2639  ;;  %11401 = vmatmul.mubr.msk.bf16.vlgmr.msra.gmra.mrb[72].mxu0 %vm2508_vm3, %v2693_v23 }
 0x593   : > { %11405 = vmatpush3.bf16.msra.mxu1 %v3120_v7  ;;  %12472 = vrcp.f32 %v2640_v25  ;;  %11411 = vmatpush3.bf16.msra.mxu0 %v3166_v17  ;;  %v2649_v19 = vpop.xlane.xlu0 %2648  ;;  %v3304_v25 = vsel %vm2704_vm2, %v13875_v56, 0  ;;  %v3350_v17 = vsel %vm2704_vm2, %v13871_v3, 0 }
 0x594   : > { %3806 = vrot.lane.b32.xlu1 %v13414_v33, %s12779_s3  ;;  %11406 = vmatprep.mubr.msk.bf16.mxu1 %vm12778_vm0, %v16160_v43  ;;  %12474 = vrcp.f32 %v2649_v19 }
 0x595   : > { %v12469_v47 = vpop.eup %12468  ;;  %11412 = vmatprep.mubr.msk.bf16.mxu0 %vm12778_vm0, %v16160_v43  ;;  %11416 = vmatprep.subr.bf16.mxu1 %v16160_v43 }
 0x596   : > { %11422 = vmatprep.subr.bf16.mxu0 %v16160_v43  ;;  %v2678_v61 = vmul.f32 %v12469_v47, %v13662_v32  ;;  %v12471_v18 = vpop.eup %12470  ;;  %v16168_v32 = vld [vmem:[#allocation13_spill] sm:$0xff] }
 0x597   : > { %v2681_v41 = vmul.f32 %v12471_v18, %v13664_v55  ;;  %16171 = vst [vmem:[#allocation13_spill] sm:$0xff] %v13875_v56  ;;  %v16172_v55 = vld [vmem:[#allocation16_spill] sm:$0xff]  ;;  %v3443_v60 = vpop.permute.xlu0 %3442  ;;  %v16174_v47 = vld [vmem:[#allocation21_spill] sm:$0xff] }
 0x598   : > { %3803 = vrot.lane.b32.xlu1 %v13445_v9, %s12779_s3  ;;  %v2694_v26 = vpack.c.bf16 %v2678_v61, %v2678_v61  ;;  %v16176_v18 = vld [vmem:[#allocation24_spill] sm:$0xff] }
 0x599   : > { %v2697_v62 = vpack.c.bf16 %v2681_v41, %v2681_v41  ;;  %v16178_v41 = vld [vmem:[#allocation26_spill] sm:$0xff] }
 0x59a   : > { %11407 = vmatmul.mubr.msk.bf16.vlgmr.msra.gmra.mrb[72].mxu1 %vm2508_vm3, %v2694_v26  ;;  %11413 = vmatmul.mubr.msk.bf16.vlgmr.msra.gmra.mrb[76].mxu0 %vm2508_vm3, %v2695_v49  ;;  %v3448_v26 = vsel %vm1755_vm1, %v3443_v60, 0 }
 0x59b   : > { %11417 = vmatpush3.bf16.msra.mxu1 %v3212_v31  ;;  %11423 = vmatpush3.bf16.msra.mxu0 %v3258_v48  ;;  %v3547_v49 = vpop.permute.xlu0 %3546  ;;  %v16177_v48 = vld [vmem:[#allocation23_spill] sm:$0xff] }
 0x59c   : > { %3910 = vrot.lane.b32.xlu1 %v16168_v32, %s12779_s3  ;;  %11418 = vmatprep.mubr.msk.bf16.mxu1 %vm12778_vm0, %v16160_v43 }
 0x59d   : > { %v12473_v11 = vpop.eup %12472  ;;  %11424 = vmatprep.mubr.msk.bf16.mxu0 %vm12778_vm0, %v16160_v43  ;;  %11428 = vmatprep.subr.bf16.mxu1 %v16160_v43 }
 0x59e   : > { %11434 = vmatprep.subr.bf16.mxu0 %v16160_v43  ;;  %v2680_v50 = vmul.f32 %v12473_v11, %v13670_v57  ;;  %v12475_v7 = vpop.eup %12474  ;;  %v16173_v57 = vld [vmem:[#allocation15_spill] sm:$0xff] }
 0x59f   : > { %v2683_v19 = vmul.f32 %v12475_v7, %v13672_v39  ;;  %v16175_v39 = vld [vmem:[#allocation20_spill] sm:$0xff]  ;;  %v3544_v31 = vpop.permute.xlu0 %3543 }
 0x5a0   : > { %3907 = vrot.lane.b32.xlu1 %v16172_v55, %s12779_s3  ;;  %v2696_v23 = vpack.c.bf16 %v2680_v50, %v2680_v50  ;;  %v13915_v50 = vpop.permute.xlu1 %3494 }
 0x5a1   : > { %v2699_v61 = vpack.c.bf16 %v2683_v19, %v2683_v19 }
 0x5a2   : > { %11419 = vmatmul.mubr.msk.bf16.vlgmr.msra.gmra.mrb[76].mxu1 %vm2508_vm3, %v2696_v23  ;;  %11425 = vmatmul.mubr.msk.bf16.vlgmr.msra.gmra.mrb[80].mxu0 %vm2508_vm3, %v2697_v62 }
 0x5a3   : > { %11429 = vmatpush3.bf16.msra.mxu1 %v3304_v25  ;;  %11435 = vmatpush3.bf16.msra.mxu0 %v3350_v17  ;;  %v3651_v11 = vpop.permute.xlu0 %3650  ;;  %v3552_v17 = vsel %vm1755_vm1, %v3547_v49, 0 }
 0x5a4   : > { %4014 = vrot.lane.b32.xlu1 %v16173_v57, %s12779_s3  ;;  %11436 = vmatprep.mubr.msk.bf16.mxu0 %vm12778_vm0, %v16160_v43 }
 0x5a5   : > { %11446 = vmatprep.subr.bf16.mxu0 %v16160_v43  ;;  %11430 = vmatprep.mubr.msk.bf16.mxu1 %vm12778_vm0, %v16160_v43 }
 0x5a6   : > { %11440 = vmatprep.subr.bf16.mxu1 %v16160_v43 }
 0x5a7   : > { %v3648_v59 = vpop.permute.xlu0 %3647 }
 0x5a8   : > { %4011 = vrot.lane.b32.xlu1 %v16174_v47, %s12779_s3 }
 0x5aa   : > { %11437 = vmatmul.mubr.msk.bf16.vlgmr.msra.gmra.mrb[84].mxu0 %vm2508_vm3, %v2699_v61  ;;  %v16180_v61 = vld [vmem:[#allocation11_spill] sm:$0xff] }
 0x5ab   : > { %11448 = vmatprep.mubr.msk.bf16.mxu0 %vm12778_vm0, %v16160_v43  ;;  %v3755_v23 = vpop.permute.xlu0 %3754 }
 0x5ac   : > { %11447 = vmatpush3.bf16.xpose.msra.mxu0 %v3448_v26  ;;  %4118 = vrot.lane.b32.xlu1 %v16175_v39, %s12779_s3  ;;  %v13932_v26 = vpack.c.bf16 %v16180_v61, %v16180_v61 }
 0x5ad   : > { %11458 = vmatprep.subr.bf16.mxu0 %v16160_v43 }
 0x5af   : > { %v3752_v7 = vpop.permute.xlu0 %3751 }
 0x5b0   : > { %4115 = vrot.lane.b32.xlu1 %v16176_v18, %s12779_s3 }
 0x5b3   : > { %v3859_v19 = vpop.permute.xlu0 %3858 }
 0x5b4   : > { %4222 = vrot.lane.b32.xlu1 %v16177_v48, %s12779_s3  ;;  %v3864_v61 = vsel %vm1755_vm1, %v3859_v19, 0 }
 0x5b8   : > { %4219 = vrot.lane.b32.xlu1 %v16178_v41, %s12779_s3 }
 0x5bc   : > { %4528 = vrot.lane.b32.xlu1 %v16179_v54, %s12779_s3 }
 0x5c0   : > { %4626 = vrot.lane.b32.xlu1 %v13755_v5, %s12779_s3 }
 0x5c4   : > { %4724 = vrot.lane.b32.xlu1 %v13776_v4, %s12779_s3 }
 0x5c7   : > { %v2646_v62 = vpop.xlane.xlu1 %2645 }
 0x5c8   : > { %12476 = vrcp.f32 %v2646_v62  ;;  %4822 = vrot.lane.b32.xlu1 %v13797_v53, %s12779_s3  ;;  %v3656_v62 = vsel %vm1755_vm1, %v3651_v11, 0 }
 0x5cb   : > { %v3440_v25 = vpop.permute.xlu1 %3439 }
 0x5cc   : > { %4920 = vrot.lane.b32.xlu1 %v13823_v44, %s12779_s3  ;;  %11449 = vmatmul.mubr.msk.bf16.vlgmr.msra.gmra.mrb[88].mxu0 %vm1755_vm1, %v3440_v25 }
 0x5cd   : > { %11459 = vmatpush3.bf16.xpose.msra.mxu0 %v3552_v17  ;;  %11460 = vmatprep.mubr.msk.bf16.mxu0 %vm12778_vm0, %v16160_v43  ;;  %v3856_v17 = vpop.permute.xlu0 %3855 }
 0x5ce   : > { %11470 = vmatprep.subr.bf16.mxu0 %v16160_v43 }
 0x5d0   : > { %4969 = vrot.lane.b32.xlu1 %v13819_v30, %s12779_s3 }
 0x5d1   : > { %v3963_v11 = vpop.permute.xlu0 %3962 }
 0x5d2   : > { %v12477_v60 = vpop.eup %12476 }
 0x5d3   : > { %v2682_v49 = vmul.f32 %v12477_v60, %v13695_v58  ;;  %v3396_v58 = vsel %vm2704_vm2, %v13932_v26, 0 }
 0x5d4   : > { %5018 = vrot.lane.b32.xlu1 %v13845_v40, %s12779_s3  ;;  %11461 = vmatmul.mubr.msk.bf16.vlgmr.msra.gmra.mrb[92].mxu0 %vm1755_vm1, %v3544_v31  ;;  %v3760_v31 = vsel %vm1755_vm1, %v3755_v23, 0 }
 0x5d5   : > { %11471 = vmatpush3.bf16.xpose.msra.mxu0 %v3656_v62  ;;  %v2698_v25 = vpack.c.bf16 %v2682_v49, %v2682_v49  ;;  %11472 = vmatprep.mubr.msk.bf16.mxu0 %vm12778_vm0, %v16160_v43  ;;  %v3960_v60 = vpop.permute.xlu0 %3959 }
 0x5d6   : > { %11482 = vmatprep.subr.bf16.mxu0 %v16160_v43 }
 0x5d7   : > { %11431 = vmatmul.mubr.msk.bf16.vlgmr.msra.gmra.mrb[80].mxu1 %vm2508_vm3, %v2698_v25 }
 0x5d8   : > { %11441 = vmatpush3.bf16.msra.mxu1 %v3396_v58  ;;  %11442 = vmatprep.mubr.msk.bf16.mxu1 %vm12778_vm0, %v16160_v43 }
 0x5d9   : > { %11452 = vmatprep.subr.bf16.mxu1 %v16160_v43  ;;  %v4067_v23 = vpop.permute.xlu0 %4066 }
 0x5dc   : > { %11473 = vmatmul.mubr.msk.bf16.vlgmr.msra.gmra.mrb[96].mxu0 %vm1755_vm1, %v3648_v59  ;;  %v3968_v59 = vsel %vm1755_vm1, %v3963_v11, 0 }
 0x5dd   : > { %11483 = vmatpush3.bf16.xpose.msra.mxu0 %v3760_v31  ;;  %11484 = vmatprep.mubr.msk.bf16.mxu0 %vm12778_vm0, %v16160_v43  ;;  %v4064_v19 = vpop.permute.xlu0 %4063 }
 0x5de   : > { %11494 = vmatprep.subr.bf16.mxu0 %v16160_v43 }
 0x5e1   : > { %v4171_v49 = vpop.permute.xlu0 %4170 }
 0x5e2   : > { %v4176_v25 = vsel %vm1755_vm1, %v4171_v49, 0 }
 0x5e4   : > { %11485 = vmatmul.mubr.msk.bf16.vlgmr.msra.gmra.mrb[100].mxu0 %vm1755_vm1, %v3752_v7  ;;  %v4072_v7 = vsel %vm1755_vm1, %v4067_v23, 0 }
 0x5e5   : > { %11495 = vmatpush3.bf16.xpose.msra.mxu0 %v3864_v61  ;;  %11496 = vmatprep.mubr.msk.bf16.mxu0 %vm12778_vm0, %v16160_v43  ;;  %v4168_v62 = vpop.permute.xlu0 %4167 }
 0x5e6   : > { %11506 = vmatprep.subr.bf16.mxu0 %v16160_v43 }
 0x5e9   : > { %v4480_v31 = vpop.permute.xlu0 %4479 }
 0x5ea   : > { %v4485_v11 = vsel %vm2704_vm2, %v4480_v31, 0 }
 0x5ec   : > { %11497 = vmatmul.mubr.msk.bf16.vlgmr.msra.gmra.mrb[104].mxu0 %vm1755_vm1, %v3856_v17 }
 0x5ed   : > { %11507 = vmatpush3.bf16.xpose.msra.mxu0 %v3968_v59  ;;  %11508 = vmatprep.mubr.msk.bf16.mxu0 %vm12778_vm0, %v16160_v43  ;;  %v14115_v52 = vpop.permute.xlu0 %4577 }
 0x5ee   : > { %11518 = vmatprep.subr.bf16.mxu0 %v16160_v43 }
 0x5f4   : > { %11509 = vmatmul.mubr.msk.bf16.vlgmr.msra.gmra.mrb[108].mxu0 %vm1755_vm1, %v3960_v60 }
 0x5f5   : > { %11519 = vmatpush3.bf16.xpose.msra.mxu0 %v4072_v7  ;;  %11520 = vmatprep.mubr.msk.bf16.mxu0 %vm12778_vm0, %v16160_v43  ;;  %v3500_v7 = vsel %vm1755_vm1, %v13915_v50, 0 }
 0x5f6   : > { %11530 = vmatprep.subr.bf16.mxu0 %v16160_v43 }
 0x5fc   : > { %v2652_v17 = vpop.xlane.xlu1 %2651  ;;  %11521 = vmatmul.mubr.msk.bf16.vlgmr.msra.gmra.mrb[112].mxu0 %vm1755_vm1, %v4064_v19 }
 0x5fd   : > { %12478 = vrcp.f32 %v2652_v17  ;;  %11531 = vmatpush3.bf16.xpose.msra.mxu0 %v4176_v25  ;;  %11532 = vmatprep.mubr.msk.bf16.mxu0 %vm12778_vm0, %v16160_v43 }
 0x5fe   : > { %11542 = vmatprep.subr.bf16.mxu0 %v16160_v43 }
 0x600   : > { %v3492_v58 = vpop.permute.xlu1 %3491 }
 0x604   : > { %v3599_v60 = vpop.permute.xlu1 %3598  ;;  %11533 = vmatmul.mubr.msk.bf16.vlgmr.msra.gmra.mrb[116].mxu0 %vm1755_vm1, %v4168_v62 }
 0x605   : > { %11543 = vmatpush3.bf16.msra.mxu0 %v4485_v11  ;;  %11544 = vmatprep.mubr.msk.bf16.mxu0 %vm12778_vm0, %v16160_v43  ;;  %v3604_v25 = vsel %vm1755_vm1, %v3599_v60, 0 }
 0x606   : > { %11554 = vmatprep.subr.bf16.mxu0 %v16160_v43 }
 0x607   : > { %v12479_v61 = vpop.eup %12478 }
 0x608   : > { %v3596_v23 = vpop.permute.xlu1 %3595  ;;  %v2684_v59 = vmul.f32 %v12479_v61, %v13748_v15 }
 0x60a   : > { %v2700_v19 = vpack.c.bf16 %v2684_v59, %v2684_v59 }
 0x60c   : > { %11443 = vmatmul.mubr.msk.bf16.vlgmr.msra.gmra.mrb[84].mxu1 %vm2508_vm3, %v2700_v19  ;;  %v3703_v49 = vpop.permute.xlu1 %3702 }
 0x60d   : > { %11453 = vmatpush3.bf16.xpose.msra.mxu1 %v3500_v7  ;;  %11454 = vmatprep.mubr.msk.bf16.mxu1 %vm12778_vm0, %v16160_v43  ;;  %v3708_v50 = vsel %vm1755_vm1, %v3703_v49, 0 }
 0x60e   : > { %11464 = vmatprep.subr.bf16.mxu1 %v16160_v43 }
 0x610   : > { %v3700_v62 = vpop.permute.xlu1 %3699 }
 0x614   : > { %11455 = vmatmul.mubr.msk.bf16.vlgmr.msra.gmra.mrb[88].mxu1 %vm1755_vm1, %v3492_v58  ;;  %v3807_v17 = vpop.permute.xlu1 %3806 }
 0x615   : > { %11465 = vmatpush3.bf16.xpose.msra.mxu1 %v3604_v25  ;;  %11466 = vmatprep.mubr.msk.bf16.mxu1 %vm12778_vm0, %v16160_v43  ;;  %v3812_v11 = vsel %vm1755_vm1, %v3807_v17, 0 }
 0x616   : > { %11476 = vmatprep.subr.bf16.mxu1 %v16160_v43 }
 0x618   : > { %v3804_v15 = vpop.permute.xlu1 %3803 }
 0x61c   : > { %11467 = vmatmul.mubr.msk.bf16.vlgmr.msra.gmra.mrb[92].mxu1 %vm1755_vm1, %v3596_v23  ;;  %v3911_v31 = vpop.permute.xlu1 %3910 }
 0x61d   : > { %11477 = vmatpush3.bf16.xpose.msra.mxu1 %v3708_v50  ;;  %11478 = vmatprep.mubr.msk.bf16.mxu1 %vm12778_vm0, %v16160_v43  ;;  %v3916_v23 = vsel %vm1755_vm1, %v3911_v31, 0 }
 0x61e   : > { %11488 = vmatprep.subr.bf16.mxu1 %v16160_v43 }
 0x620   : > { %v3908_v58 = vpop.permute.xlu1 %3907 }
 0x624   : > { %11479 = vmatmul.mubr.msk.bf16.vlgmr.msra.gmra.mrb[96].mxu1 %vm1755_vm1, %v3700_v62  ;;  %v4015_v60 = vpop.permute.xlu1 %4014 }
 0x625   : > { %11489 = vmatpush3.bf16.xpose.msra.mxu1 %v3812_v11  ;;  %11490 = vmatprep.mubr.msk.bf16.mxu1 %vm12778_vm0, %v16160_v43  ;;  %v4020_v19 = vsel %vm1755_vm1, %v4015_v60, 0 }
 0x626   : > { %11500 = vmatprep.subr.bf16.mxu1 %v16160_v43 }
 0x628   : > { %v4012_v61 = vpop.permute.xlu1 %4011 }
 0x62c   : > { %11491 = vmatmul.mubr.msk.bf16.vlgmr.msra.gmra.mrb[100].mxu1 %vm1755_vm1, %v3804_v15  ;;  %v4119_v59 = vpop.permute.xlu1 %4118 }
 0x62d   : > { %11501 = vmatpush3.bf16.xpose.msra.mxu1 %v3916_v23  ;;  %11502 = vmatprep.mubr.msk.bf16.mxu1 %vm12778_vm0, %v16160_v43  ;;  %v4124_v49 = vsel %vm1755_vm1, %v4119_v59, 0 }
 0x62e   : > { %11512 = vmatprep.subr.bf16.mxu1 %v16160_v43 }
 0x630   : > { %v4116_v7 = vpop.permute.xlu1 %4115 }
 0x634   : > { %11503 = vmatmul.mubr.msk.bf16.vlgmr.msra.gmra.mrb[104].mxu1 %vm1755_vm1, %v3908_v58  ;;  %v4223_v62 = vpop.permute.xlu1 %4222 }
 0x635   : > { %11513 = vmatpush3.bf16.xpose.msra.mxu1 %v4020_v19  ;;  %11514 = vmatprep.mubr.msk.bf16.mxu1 %vm12778_vm0, %v16160_v43  ;;  %v4228_v58 = vsel %vm1755_vm1, %v4223_v62, 0 }
 0x636   : > { %11524 = vmatprep.subr.bf16.mxu1 %v16160_v43 }
 0x638   : > { %v4220_v31 = vpop.permute.xlu1 %4219 }
 0x63c   : > { %11515 = vmatmul.mubr.msk.bf16.vlgmr.msra.gmra.mrb[108].mxu1 %vm1755_vm1, %v4012_v61  ;;  %v4529_v59 = vpop.permute.xlu1 %4528 }
 0x63d   : > { %11525 = vmatpush3.bf16.xpose.msra.mxu1 %v4124_v49  ;;  %v14012_v25 = vpop.f32.mrb[56].mxu0  ;;  %11526 = vmatprep.mubr.msk.bf16.mxu1 %vm12778_vm0, %v16160_v43  ;;  %v4534_v19 = vsel %vm2704_vm2, %v4529_v59, 0 }
 0x63e   : > { %16181 = vst [vmem:[#allocation10_spill] sm:$0xff] %v14012_v25  ;;  %v11354_v17 = vpop.f32.mrb[57].mxu0  ;;  %11536 = vmatprep.subr.bf16.mxu1 %v16160_v43 }
 0x63f   : > { %v2745_v15 = vpop.f32.mrb[58].mxu0 }
 0x640   : > { %v11355_v50 = vpop.f32.mrb[59].mxu0 }
 0x644   : > { %11527 = vmatmul.mubr.msk.bf16.vlgmr.msra.gmra.mrb[112].mxu1 %vm1755_vm1, %v4116_v7 }
 0x645   : > { %11537 = vmatpush3.bf16.xpose.msra.mxu1 %v4228_v58  ;;  %v14019_v11 = vpop.f32.mrb[56].mxu1  ;;  %11538 = vmatprep.mubr.msk.bf16.mxu1 %vm12778_vm0, %v16160_v43 }
 0x646   : > { %16182 = vst [vmem:[#allocation12_spill] sm:$0xff] %v14019_v11  ;;  %v11360_v60 = vpop.f32.mrb[57].mxu1  ;;  %11548 = vmatprep.subr.bf16.mxu1 %v16160_v43 }
 0x647   : > { %v2791_v61 = vpop.f32.mrb[58].mxu1 }
 0x648   : > { %v11361_v23 = vpop.f32.mrb[59].mxu1 }
 0x64c   : > { %11539 = vmatmul.mubr.msk.bf16.vlgmr.msra.gmra.mrb[116].mxu1 %vm1755_vm1, %v4220_v31 }
 0x64d   : > { %11549 = vmatpush3.bf16.msra.mxu1 %v4534_v19  ;;  %v14026_v49 = vpop.f32.mrb[60].mxu0  ;;  %11550 = vmatprep.mubr.msk.bf16.mxu1 %vm12778_vm0, %v16160_v43 }
 0x64e   : > { %16183 = vst [vmem:[#allocation16_spill] sm:$0xff] %v14026_v49  ;;  %v11366_v7 = vpop.f32.mrb[61].mxu0  ;;  %11560 = vmatprep.subr.bf16.mxu1 %v16160_v43 }
 0x64f   : > { %v2837_v62 = vpop.f32.mrb[62].mxu0 }
 0x650   : > { %v11367_v17 = vpop.f32.mrb[63].mxu0 }
 0x655   : > { %v14031_v15 = vpop.f32.mrb[60].mxu1  ;;  %v14033_v50 = vpop.f32.mrb[64].mxu0 }
 0x656   : > { %16184 = vst [vmem:[#allocation15_spill] sm:$0xff] %v14031_v15  ;;  %16185 = vst [vmem:[#allocation21_spill] sm:$0xff] %v14033_v50  ;;  %v11372_v58 = vpop.f32.mrb[61].mxu1  ;;  %v11378_v60 = vpop.f32.mrb[65].mxu0 }
 0x657   : > { %v2883_v61 = vpop.f32.mrb[62].mxu1  ;;  %v2929_v23 = vpop.f32.mrb[66].mxu0 }
 0x658   : > { %v11373_v31 = vpop.f32.mrb[63].mxu1  ;;  %v11379_v59 = vpop.f32.mrb[67].mxu0 }
 0x65d   : > { %v14035_v19 = vpop.f32.mrb[64].mxu1  ;;  %v14037_v49 = vpop.f32.mrb[68].mxu0 }
 0x65e   : > { %16186 = vst [vmem:[#allocation20_spill] sm:$0xff] %v14035_v19  ;;  %16187 = vst [vmem:[#allocation24_spill] sm:$0xff] %v14037_v49  ;;  %v11384_v25 = vpop.f32.mrb[65].mxu1  ;;  %v11390_v7 = vpop.f32.mrb[69].mxu0 }
 0x65f   : > { %v2975_v11 = vpop.f32.mrb[66].mxu1  ;;  %v3021_v0 = vpop.f32.mrb[70].mxu0 }
 0x660   : > { %v11385_v62 = vpop.f32.mrb[67].mxu1  ;;  %v11391_v17 = vpop.f32.mrb[71].mxu0 }
 0x665   : > { %v14039_v46 = vpop.f32.mrb[68].mxu1  ;;  %v14041_v15 = vpop.f32.mrb[72].mxu0 }
 0x666   : > { %16188 = vst [vmem:[#allocation23_spill] sm:$0xff] %v14039_v46  ;;  %16189 = vst [vmem:[#allocation26_spill] sm:$0xff] %v14041_v15  ;;  %v11396_v58 = vpop.f32.mrb[69].mxu1  ;;  %v11402_v60 = vpop.f32.mrb[73].mxu0 }
 0x667   : > { %v3067_v61 = vpop.f32.mrb[70].mxu1  ;;  %v3113_v23 = vpop.f32.mrb[74].mxu0 }
 0x668   : > { %v11397_v31 = vpop.f32.mrb[71].mxu1  ;;  %v11403_v59 = vpop.f32.mrb[75].mxu0 }
 0x66d   : > { %v14043_v50 = vpop.f32.mrb[72].mxu1  ;;  %v14045_v19 = vpop.f32.mrb[76].mxu0 }
 0x66e   : > { %16190 = vst [vmem:[#allocation11_spill] sm:$0xff] %v14043_v50  ;;  %16191 = vst [vmem:[#allocation38_spill] sm:$0xff] %v14045_v19  ;;  %v11408_v25 = vpop.f32.mrb[73].mxu1  ;;  %v11414_v7 = vpop.f32.mrb[77].mxu0 }
 0x66f   : > { %v3159_v11 = vpop.f32.mrb[74].mxu1  ;;  %v3205_v0 = vpop.f32.mrb[78].mxu0 }
 0x670   : > { %v11409_v62 = vpop.f32.mrb[75].mxu1  ;;  %v11415_v17 = vpop.f32.mrb[79].mxu0 }
 0x675   : > { %v14047_v49 = vpop.f32.mrb[76].mxu1  ;;  %v14049_v46 = vpop.f32.mrb[80].mxu0 }
 0x676   : > { %16192 = vst [vmem:[#allocation39_spill] sm:$0xff] %v14047_v49  ;;  %16193 = vst [vmem:[#allocation40_spill] sm:$0xff] %v14049_v46  ;;  %v11420_v58 = vpop.f32.mrb[77].mxu1  ;;  %v11426_v60 = vpop.f32.mrb[81].mxu0 }
 0x677   : > { %v3251_v61 = vpop.f32.mrb[78].mxu1  ;;  %v3297_v23 = vpop.f32.mrb[82].mxu0 }
 0x678   : > { %v11421_v31 = vpop.f32.mrb[79].mxu1  ;;  %v11427_v59 = vpop.f32.mrb[83].mxu0 }
 0x67d   : > { %v14051_v15 = vpop.f32.mrb[84].mxu0 }
 0x67e   : > { %16194 = vst [vmem:[#allocation41_spill] sm:$0xff] %v14051_v15  ;;  %v11438_v50 = vpop.f32.mrb[85].mxu0 }
 0x67f   : > { %v3389_v19 = vpop.f32.mrb[86].mxu0 }
 0x680   : > { %v11439_v25 = vpop.f32.mrb[87].mxu0 }
 0x69f   : > { %v3484_v7 = vpop.f32.mrb[88].mxu0 }
 0x6a0   : > { %v14053_v11 = vmul.f32 0.17677669, %v3484_v7  ;;  %v11450_v0 = vpop.f32.mrb[89].mxu0 }
 0x6a1   : > { %v3487_v62 = vpop.f32.mrb[90].mxu0 }
 0x6a2   : > { %v11451_v17 = vpop.f32.mrb[91].mxu0  ;;  %v4286_v46 = vsel %vm2508_vm3, %v14053_v11, -inf }
 0x6a3   : > { %4287 = vmax.xlane.f32.xlu0 %v4286_v46 }
 0x6a7   : > { %v3588_v58 = vpop.f32.mrb[92].mxu0 }
 0x6a8   : > { %v14057_v60 = vmul.f32 0.17677669, %v3588_v58  ;;  %v11462_v61 = vpop.f32.mrb[93].mxu0 }
 0x6a9   : > { %v3591_v23 = vpop.f32.mrb[94].mxu0 }
 0x6aa   : > { %v14059_v31 = vpop.f32.mrb[80].mxu1  ;;  %v11463_v50 = vpop.f32.mrb[95].mxu0  ;;  %v4292_v19 = vsel %vm2508_vm3, %v14057_v60, -inf }
 0x6ab   : > { %16195 = vst [vmem:[#allocation42_spill] sm:$0xff] %v14059_v31  ;;  %v11432_v59 = vpop.f32.mrb[81].mxu1  ;;  %4293 = vmax.xlane.f32.xlu0 %v4292_v19 }
 0x6ac   : > { %v3343_v25 = vpop.f32.mrb[82].mxu1 }
 0x6ad   : > { %v11433_v7 = vpop.f32.mrb[83].mxu1 }
 0x6af   : > { %v3692_v0 = vpop.f32.mrb[96].mxu0 }
 0x6b0   : > { %v11474_v62 = vpop.f32.mrb[97].mxu0 }
 0x6b1   : > { %v3695_v17 = vpop.f32.mrb[98].mxu0 }
 0x6b2   : > { %v11475_v15 = vpop.f32.mrb[99].mxu0 }
 0x6b7   : > { %v3796_v46 = vpop.f32.mrb[100].mxu0 }
 0x6b8   : > { %v11486_v49 = vpop.f32.mrb[101].mxu0 }
 0x6b9   : > { %v3799_v58 = vpop.f32.mrb[102].mxu0 }
 0x6ba   : > { %v11487_v14 = vpop.f32.mrb[103].mxu0 }
 0x6bf   : > { %v3900_v61 = vpop.f32.mrb[104].mxu0 }
 0x6c0   : > { %v11498_v23 = vpop.f32.mrb[105].mxu0 }
 0x6c1   : > { %v3903_v40 = vpop.f32.mrb[106].mxu0 }
 0x6c2   : > { %v11499_v31 = vpop.f32.mrb[107].mxu0 }
 0x6c7   : > { %v4004_v50 = vpop.f32.mrb[108].mxu0 }
 0x6c8   : > { %v11510_v16 = vpop.f32.mrb[109].mxu0 }
 0x6c9   : > { %v4007_v30 = vpop.f32.mrb[110].mxu0 }
 0x6ca   : > { %v11511_v20 = vpop.f32.mrb[111].mxu0 }
 0x6cf   : > { %v4108_v59 = vpop.f32.mrb[112].mxu0 }
 0x6d0   : > { %v11522_v19 = vpop.f32.mrb[113].mxu0 }
 0x6d1   : > { %v4111_v25 = vpop.f32.mrb[114].mxu0 }
 0x6d2   : > { %v11523_v7 = vpop.f32.mrb[115].mxu0 }
 0x6d7   : > { %v4212_v44 = vpop.f32.mrb[116].mxu0 }
 0x6d8   : > { %v11534_v62 = vpop.f32.mrb[117].mxu0 }
 0x6d9   : > { %v4215_v17 = vpop.f32.mrb[118].mxu0 }
 0x6da   : > { %v11535_v15 = vpop.f32.mrb[119].mxu0  ;;  %v14071_v17 = vmul.f32 0.17677669, %v3692_v0 }
 0x6df   : > { %v14063_v34 = vpop.f32.mrb[84].mxu1 }
 0x6e0   : > { %16196 = vst [vmem:[#allocation43_spill] sm:$0xff] %v14063_v34  ;;  %v11444_v49 = vpop.f32.mrb[85].mxu1 }
 0x6e1   : > { %v3435_v14 = vpop.f32.mrb[86].mxu1 }
 0x6e2   : > { %v11445_v58 = vpop.f32.mrb[87].mxu1  ;;  %v14075_v14 = vmul.f32 0.17677669, %v3796_v46  ;;  %v14087_v46 = vmul.f32 0.17677669, %v4004_v50 }
 0x6e3   : > { %v4298_v58 = vsel %vm2508_vm3, %v14071_v17, -inf  ;;  %v14099_v50 = vmul.f32 0.17677669, %v4212_v44 }
 0x6e7   : > { %v3536_v23 = vpop.f32.mrb[88].mxu1 }
 0x6e8   : > { %v14065_v40 = vmul.f32 0.17677669, %v3536_v23  ;;  %v11456_v31 = vpop.f32.mrb[89].mxu1 }
 0x6e9   : > { %v3539_v16 = vpop.f32.mrb[90].mxu1 }
 0x6ea   : > { %v11457_v30 = vpop.f32.mrb[91].mxu1  ;;  %v4289_v20 = vsel %vm2508_vm3, %v14065_v40, -inf }
 0x6eb   : > { %4290 = vmax.xlane.f32.xlu1 %v4289_v20  ;;  %v14081_v20 = vmul.f32 0.17677669, %v3900_v61 }
 0x6ef   : > { %v3640_v19 = vpop.f32.mrb[92].mxu1 }
 0x6f0   : > { %v14069_v25 = vmul.f32 0.17677669, %v3640_v19  ;;  %v11468_v7 = vpop.f32.mrb[93].mxu1 }
 0x6f1   : > { %v3643_v62 = vpop.f32.mrb[94].mxu1  ;;  %v4304_v7 = vsel %vm2508_vm3, %v14075_v14, -inf }
 0x6f2   : > { %v11469_v15 = vpop.f32.mrb[95].mxu1  ;;  %v4295_v49 = vsel %vm2508_vm3, %v14069_v25, -inf  ;;  %v4310_v62 = vsel %vm2508_vm3, %v14081_v20, -inf }
 0x6f3   : > { %4296 = vmax.xlane.f32.xlu0 %v4295_v49 }
 0x6f7   : > { %v3744_v23 = vpop.f32.mrb[96].mxu1  ;;  %4299 = vmax.xlane.f32.xlu0 %v4298_v58 }
 0x6f8   : > { %v14079_v31 = vmul.f32 0.17677669, %v3744_v23  ;;  %v11480_v16 = vpop.f32.mrb[97].mxu1  ;;  %v14093_v23 = vmul.f32 0.17677669, %v4108_v59 }
 0x6f9   : > { %v3747_v30 = vpop.f32.mrb[98].mxu1 }
 0x6fa   : > { %v11481_v0 = vpop.f32.mrb[99].mxu1  ;;  %v4301_v19 = vsel %vm2508_vm3, %v14079_v31, -inf }
 0x6fb   : > { %4302 = vmax.xlane.f32.xlu1 %v4301_v19  ;;  %4305 = vmax.xlane.f32.xlu0 %v4304_v7  ;;  %v4316_v0 = vsel %vm2508_vm3, %v14087_v46, -inf  ;;  %v4322_v19 = vsel %vm2508_vm3, %v14093_v23, -inf }
 0x6ff   : > { %v3848_v15 = vpop.f32.mrb[100].mxu1  ;;  %4311 = vmax.xlane.f32.xlu0 %v4310_v62 }
 0x700   : > { %v14091_v49 = vmul.f32 0.17677669, %v3848_v15  ;;  %v11492_v61 = vpop.f32.mrb[101].mxu1 }
 0x701   : > { %v3851_v58 = vpop.f32.mrb[102].mxu1 }
 0x702   : > { %v11493_v16 = vpop.f32.mrb[103].mxu1  ;;  %v4307_v30 = vsel %vm2508_vm3, %v14091_v49, -inf }
 0x703   : > { %4308 = vmax.xlane.f32.xlu1 %v4307_v30  ;;  %4317 = vmax.xlane.f32.xlu0 %v4316_v0  ;;  %v4328_v16 = vsel %vm2508_vm3, %v14099_v50, -inf }
 0x707   : > { %v3952_v7 = vpop.f32.mrb[104].mxu1  ;;  %4323 = vmax.xlane.f32.xlu0 %v4322_v19 }
 0x708   : > { %v14103_v62 = vmul.f32 0.17677669, %v3952_v7  ;;  %v11504_v59 = vpop.f32.mrb[105].mxu1 }
 0x709   : > { %v3955_v15 = vpop.f32.mrb[106].mxu1 }
 0x70a   : > { %v11505_v61 = vpop.f32.mrb[107].mxu1  ;;  %v4313_v58 = vsel %vm2508_vm3, %v14103_v62, -inf }
 0x70b   : > { %4314 = vmax.xlane.f32.xlu1 %v4313_v58  ;;  %4329 = vmax.xlane.f32.xlu0 %v4328_v16 }
 0x70f   : > { %v4056_v44 = vpop.f32.mrb[108].mxu1 }
 0x710   : > { %v14109_v30 = vmul.f32 0.17677669, %v4056_v44  ;;  %v11516_v0 = vpop.f32.mrb[109].mxu1  ;;  %v14119_v44 = vpop.permute.xlu0 %4675 }
 0x711   : > { %v4059_v34 = vpop.f32.mrb[110].mxu1 }
 0x712   : > { %v11517_v53 = vpop.f32.mrb[111].mxu1  ;;  %v4319_v19 = vsel %vm2508_vm3, %v14109_v30, -inf }
 0x713   : > { %4320 = vmax.xlane.f32.xlu1 %v4319_v19 }
 0x714   : > { %v14123_v19 = vpop.permute.xlu0 %4773 }
 0x715   : > { %16197 = vst [vmem:[#allocation44_spill] sm:$0xff] %v14123_v19 }
 0x717   : > { %v4160_v7 = vpop.f32.mrb[112].mxu1 }
 0x718   : > { %v14113_v59 = vmul.f32 0.17677669, %v4160_v7  ;;  %v11528_v15 = vpop.f32.mrb[113].mxu1  ;;  %v14125_v7 = vpop.permute.xlu0 %4871 }
 0x719   : > { %v4163_v61 = vpop.f32.mrb[114].mxu1  ;;  %16198 = vst [vmem:[#allocation45_spill] sm:$0xff] %v14125_v7 }
 0x71a   : > { %v11529_v4 = vpop.f32.mrb[115].mxu1  ;;  %v4325_v58 = vsel %vm2508_vm3, %v14113_v59, -inf }
 0x71b   : > { %4326 = vmax.xlane.f32.xlu1 %v4325_v58 }
 0x71f   : > { %v4264_v16 = vpop.f32.mrb[116].mxu1 }
 0x720   : > { %v11540_v34 = vpop.f32.mrb[117].mxu1 }
 0x721   : > { %v4267_v53 = vpop.f32.mrb[118].mxu1  ;;  %5067 = vrot.lane.b32.xlu0 %v13849_v12, %s12779_s3 }
 0x722   : > { %v11541_v0 = vpop.f32.mrb[119].mxu1 }
 0x72c   : > { %5116 = vrot.lane.b32.xlu1 %v13875_v56, %s12779_s3 }
 0x730   : > { %v4288_v4 = vpop.xlane.xlu0 %4287 }
 0x731   : > { %v4334_v15 = vsub.f32 %v14053_v11, %v4288_v4  ;;  %v14139_v11 = vmul.f32 0.17677669, %v4264_v16 }
 0x733   : > { %v4350_v61 = vmul.f32 1.442695, %v4334_v15  ;;  %v4331_v4 = vsel %vm2508_vm3, %v14139_v11, -inf }
 0x735   : > { %12480 = vpow2.f32 %v4350_v61 }
 0x738   : > { %v4294_v58 = vpop.xlane.xlu0 %4293 }
 0x739   : > { %v4336_v34 = vsub.f32 %v14057_v60, %v4294_v58  ;;  %v14143_v60 = vpop.permute.xlu1 %4626 }
 0x73b   : > { %v4354_v53 = vmul.f32 1.442695, %v4336_v34 }
 0x73d   : > { %12482 = vpow2.f32 %v4354_v53  ;;  %v14145_v15 = vpop.permute.xlu1 %4724 }
 0x73f   : > { %v14131_v21 = vpop.eup %12480 }
 0x740   : > { %v4382_v0 = vsel %vm2508_vm3, %v14131_v21, 0.0 }
 0x741   : > { %4383 = vadd.xlane.f32.xlu0 %v4382_v0  ;;  %v14147_v61 = vpop.permute.xlu1 %4822 }
 0x742   : > { %16199 = vst [vmem:[#allocation46_spill] sm:$0xff] %v14147_v61 }
 0x745   : > { %v14149_v58 = vpop.permute.xlu1 %4920 }
 0x746   : > { %16200 = vst [vmem:[#allocation47_spill] sm:$0xff] %v14149_v58 }
 0x747   : > { %v14135_v12 = vpop.eup %12482 }
 0x748   : > { %v4388_v56 = vsel %vm2508_vm3, %v14135_v12, 0.0 }
 0x749   : > { %4389 = vadd.xlane.f32.xlu0 %v4388_v56  ;;  %v14151_v34 = vpop.permute.xlu1 %4969 }
 0x74a   : > { %16201 = vst [vmem:[#allocation48_spill] sm:$0xff] %v14151_v34 }
 0x74d   : > { %v14153_v53 = vpop.permute.xlu1 %5018 }
 0x74e   : > { %16202 = vst [vmem:[#allocation49_spill] sm:$0xff] %v14153_v53 }
 0x750   : > { %4332 = vmax.xlane.f32.xlu1 %v4331_v4 }
 0x778   : > { %v4291_v0 = vpop.xlane.xlu1 %4290 }
 0x779   : > { %v4335_v56 = vsub.f32 %v14065_v40, %v4291_v0 }
 0x77b   : > { %v4352_v16 = vmul.f32 1.442695, %v4335_v56 }
 0x77d   : > { %12484 = vpow2.f32 %v4352_v16 }
 0x780   : > { %v4297_v7 = vpop.xlane.xlu0 %4296 }
 0x781   : > { %v4337_v4 = vsub.f32 %v14069_v25, %v4297_v7 }
 0x783   : > { %v4356_v5 = vmul.f32 1.442695, %v4337_v4 }
 0x784   : > { %v4300_v35 = vpop.xlane.xlu0 %4299 }
 0x785   : > { %12486 = vpow2.f32 %v4356_v5  ;;  %v4338_v54 = vsub.f32 %v14071_v17, %v4300_v35 }
 0x787   : > { %v14158_v61 = vpop.eup %12484  ;;  %v4358_v58 = vmul.f32 1.442695, %v4338_v54 }
 0x788   : > { %v4303_v19 = vpop.xlane.xlu1 %4302  ;;  %v4306_v34 = vpop.xlane.xlu0 %4305  ;;  %v4385_v53 = vsel %vm2508_vm3, %v14158_v61, 0.0 }
 0x789   : > { %12488 = vpow2.f32 %v4358_v58  ;;  %v4339_v40 = vsub.f32 %v14079_v31, %v4303_v19  ;;  %v4340_v0 = vsub.f32 %v14075_v14, %v4306_v34  ;;  %4386 = vadd.xlane.f32.xlu1 %v4385_v53 }
 0x78b   : > { %v4360_v25 = vmul.f32 1.442695, %v4339_v40  ;;  %v4362_v7 = vmul.f32 1.442695, %v4340_v0 }
 0x78c   : > { %v4312_v56 = vpop.xlane.xlu0 %4311 }
 0x78d   : > { %12490 = vpow2.f32 %v4360_v25  ;;  %v4342_v5 = vsub.f32 %v14081_v20, %v4312_v56 }
 0x78e   : > { %12492 = vpow2.f32 %v4362_v7 }
 0x78f   : > { %v14164_v35 = vpop.eup %12486  ;;  %v4366_v14 = vmul.f32 1.442695, %v4342_v5 }
 0x790   : > { %v4309_v54 = vpop.xlane.xlu1 %4308  ;;  %v4318_v17 = vpop.xlane.xlu0 %4317  ;;  %v4391_v16 = vsel %vm2508_vm3, %v14164_v35, 0.0 }
 0x791   : > { %v4341_v58 = vsub.f32 %v14091_v49, %v4309_v54  ;;  %4392 = vadd.xlane.f32.xlu1 %v4391_v16  ;;  %v4344_v34 = vsub.f32 %v14087_v46, %v4318_v17 }
 0x793   : > { %v14170_v31 = vpop.eup %12488  ;;  %v4364_v19 = vmul.f32 1.442695, %v4341_v58  ;;  %v4370_v40 = vmul.f32 1.442695, %v4344_v34 }
 0x794   : > { %v4324_v53 = vpop.xlane.xlu0 %4323  ;;  %v4394_v4 = vsel %vm2508_vm3, %v14170_v31, 0.0 }
 0x795   : > { %12494 = vpow2.f32 %v4364_v19  ;;  %4395 = vadd.xlane.f32.xlu0 %v4394_v4  ;;  %v4346_v0 = vsub.f32 %v14093_v23, %v4324_v53 }
 0x796   : > { %12496 = vpow2.f32 %v4366_v14 }
 0x797   : > { %v14175_v20 = vpop.eup %12490  ;;  %12498 = vpow2.f32 %v4370_v40  ;;  %v4374_v5 = vmul.f32 1.442695, %v4346_v0 }
 0x798   : > { %v14178_v49 = vpop.eup %12492  ;;  %v4315_v25 = vpop.xlane.xlu1 %4314  ;;  %v4397_v7 = vsel %vm2508_vm3, %v14175_v20, 0.0 }
 0x799   : > { %v4343_v46 = vsub.f32 %v14103_v62, %v4315_v25  ;;  %4398 = vadd.xlane.f32.xlu1 %v4397_v7  ;;  %v4400_v56 = vsel %vm2508_vm3, %v14178_v49, 0.0 }
 0x79a   : > { %4401 = vadd.xlane.f32.xlu0 %v4400_v56 }
 0x79b   : > { %v4368_v54 = vmul.f32 1.442695, %v4343_v46 }
 0x79d   : > { %12500 = vpow2.f32 %v4368_v54 }
 0x79e   : > { %12502 = vpow2.f32 %v4374_v5 }
 0x79f   : > { %v14185_v17 = vpop.eup %12494 }
 0x7a0   : > { %v4321_v23 = vpop.xlane.xlu1 %4320  ;;  %v4403_v16 = vsel %vm2508_vm3, %v14185_v17, 0.0  ;;  %v14189_v58 = vpop.eup %12496 }
 0x7a1   : > { %v4345_v62 = vsub.f32 %v14109_v30, %v4321_v23  ;;  %4404 = vadd.xlane.f32.xlu1 %v4403_v16  ;;  %v4406_v19 = vsel %vm2508_vm3, %v14189_v58, 0.0  ;;  %v14194_v34 = vpop.eup %12498 }
 0x7a2   : > { %v4412_v40 = vsel %vm2508_vm3, %v14194_v34, 0.0 }
 0x7a3   : > { %v4372_v14 = vmul.f32 1.442695, %v4345_v62 }
 0x7a5   : > { %12504 = vpow2.f32 %v4372_v14  ;;  %4407 = vadd.xlane.f32.xlu1 %v4406_v19 }
 0x7a7   : > { %v14196_v53 = vpop.eup %12500 }
 0x7a8   : > { %v4327_v4 = vpop.xlane.xlu1 %4326  ;;  %v4409_v0 = vsel %vm2508_vm3, %v14196_v53, 0.0  ;;  %v14202_v25 = vpop.eup %12502 }
 0x7a9   : > { %v4347_v30 = vsub.f32 %v14113_v59, %v4327_v4  ;;  %4413 = vadd.xlane.f32.xlu1 %v4412_v40  ;;  %4410 = vadd.xlane.f32.xlu0 %v4409_v0  ;;  %v4418_v46 = vsel %vm2508_vm3, %v14202_v25, 0.0  ;;  %v4330_v59 = vpop.xlane.xlu0 %4329 }
 0x7aa   : > { %v4348_v62 = vsub.f32 %v14099_v50, %v4330_v59  ;;  %v4583_v50 = vsel %vm2704_vm2, %v14115_v52, 0 }
 0x7ab   : > { %v4376_v7 = vmul.f32 1.442695, %v4347_v30 }
 0x7ac   : > { %v4378_v19 = vmul.f32 1.442695, %v4348_v62  ;;  %v14222_v0 = vpop.permute.xlu1 %5116 }
 0x7ad   : > { %12506 = vpow2.f32 %v4376_v7  ;;  %4419 = vadd.xlane.f32.xlu1 %v4418_v46  ;;  %v14217_v16 = vpop.permute.xlu0 %5067 }
 0x7af   : > { %v14207_v56 = vpop.eup %12504 }
 0x7b0   : > { %v4415_v5 = vsel %vm2508_vm3, %v14207_v56, 0.0 }
 0x7b1   : > { %4416 = vadd.xlane.f32.xlu0 %v4415_v5 }
 0x7b7   : > { %v14211_v54 = vpop.eup %12506 }
 0x7b8   : > { %v4421_v23 = vsel %vm2508_vm3, %v14211_v54, 0.0 }
 0x7b9   : > { %4422 = vadd.xlane.f32.xlu0 %v4421_v23 }
 0x7be   : > { %5214 = vrot.lane.b32.xlu1 %v13932_v26, %s12779_s3 }
 0x7ce   : > { %v4384_v14 = vpop.xlane.xlu0 %4383 }
 0x7cf   : > { %12508 = vrcp.f32 %v4384_v14  ;;  %5165 = vrot.lane.b32.xlu0 %v13871_v3, %s12779_s3 }
 0x7d0   : > { %12510 = vpow2.f32 %v4378_v19 }
 0x7d6   : > { %v4390_v4 = vpop.xlane.xlu0 %4389 }
 0x7d7   : > { %12512 = vrcp.f32 %v4390_v4 }
 0x7d9   : > { %v12509_v40 = vpop.eup %12508 }
 0x7da   : > { %v4446_v30 = vmul.f32 %v12509_v40, %v14131_v21  ;;  %v14225_v5 = vpop.eup %12510 }
 0x7db   : > { %v4424_v21 = vsel %vm2508_vm3, %v14225_v5, 0.0 }
 0x7dc   : > { %v4462_v7 = vpack.c.bf16 %v4446_v30, %v4446_v30 }
 0x7dd   : > { %v4333_v46 = vpop.xlane.xlu1 %4332 }
 0x7de   : > { %v4349_v23 = vsub.f32 %v14139_v11, %v4333_v46  ;;  %11545 = vmatmul.mubr.msk.bf16.vlgmr.msra.gmra.mrb[120].mxu0 %vm2508_vm3, %v4462_v7  ;;  %v4681_v11 = vsel %vm2704_vm2, %v14119_v44, 0 }
 0x7df   : > { %11555 = vmatpush3.bf16.msra.mxu0 %v4583_v50  ;;  %11556 = vmatprep.mubr.msk.bf16.mxu0 %vm12778_vm0, %v16160_v43  ;;  %v4632_v50 = vsel %vm2704_vm2, %v14143_v60, 0 }
 0x7e0   : > { %v4380_v59 = vmul.f32 1.442695, %v4349_v23  ;;  %11566 = vmatprep.subr.bf16.mxu0 %v16160_v43 }
 0x7e1   : > { %v12513_v62 = vpop.eup %12512 }
 0x7e2   : > { %12514 = vpow2.f32 %v4380_v59  ;;  %4425 = vadd.xlane.f32.xlu1 %v4424_v21  ;;  %v4448_v14 = vmul.f32 %v12513_v62, %v14135_v12 }
 0x7e4   : > { %v4464_v52 = vpack.c.bf16 %v4448_v14, %v4448_v14  ;;  %v4730_v14 = vsel %vm2704_vm2, %v14145_v15, 0 }
 0x7e6   : > { %11557 = vmatmul.mubr.msk.bf16.vlgmr.msra.gmra.mrb[124].mxu0 %vm2508_vm3, %v4464_v52 }
 0x7e7   : > { %11567 = vmatpush3.bf16.msra.mxu0 %v4681_v11  ;;  %11568 = vmatprep.mubr.msk.bf16.mxu0 %vm12778_vm0, %v16160_v43 }
 0x7e8   : > { %11578 = vmatprep.subr.bf16.mxu0 %v16160_v43 }
 0x7ec   : > { %v14243_v19 = vpop.eup %12514 }
 0x7ed   : > { %v4427_v4 = vsel %vm2508_vm3, %v14243_v19, 0.0 }
 0x7ee   : > { %4428 = vadd.xlane.f32.xlu0 %v4427_v4 }
 0x7f3   : > { %5314 = vrot.lane.b32.xlu1 %v13285_v42, %s12780_s25 }
 0x7f7   : > { %5312 = vrot.lane.b32.xlu1 %v13317_v22, %s12780_s25 }
 0x7fb   : > { %5414 = vrot.lane.b32.xlu1 %v13346_v24, %s12780_s25 }
 0x7ff   : > { %5412 = vrot.lane.b32.xlu1 %v13390_v51, %s12780_s25 }
 0x803   : > { %5514 = vrot.lane.b32.xlu1 %v13387_v63, %s12780_s25 }
 0x804   : > { %5264 = vrot.lane.b32.xlu0 %v13266_v28, %s12780_s25 }
 0x807   : > { %5512 = vrot.lane.b32.xlu1 %v13417_v27, %s12780_s25 }
 0x808   : > { %5262 = vrot.lane.b32.xlu0 %v13289_v10, %s12780_s25 }
 0x80b   : > { %5614 = vrot.lane.b32.xlu1 %v13414_v33, %s12780_s25 }
 0x80c   : > { %5364 = vrot.lane.b32.xlu0 %v13312_v1, %s12780_s25 }
 0x80f   : > { %5612 = vrot.lane.b32.xlu1 %v13445_v9, %s12780_s25 }
 0x810   : > { %5362 = vrot.lane.b32.xlu0 %v13351_v36, %s12780_s25 }
 0x813   : > { %5714 = vrot.lane.b32.xlu1 %v16168_v32, %s12780_s25 }
 0x814   : > { %5464 = vrot.lane.b32.xlu0 %v13319_v29, %s12780_s25 }
 0x816   : > { %v4387_v12 = vpop.xlane.xlu1 %4386 }
 0x817   : > { %12516 = vrcp.f32 %v4387_v12  ;;  %5712 = vrot.lane.b32.xlu1 %v16172_v55, %s12780_s25  ;;  %v16203_v12 = vld [vmem:[#allocation44_spill] sm:$0xff] }
 0x818   : > { %5462 = vrot.lane.b32.xlu0 %v13353_v37, %s12780_s25 }
 0x81b   : > { %5814 = vrot.lane.b32.xlu1 %v16173_v57, %s12780_s25 }
 0x81c   : > { %5564 = vrot.lane.b32.xlu0 %v13355_v38, %s12780_s25 }
 0x81e   : > { %v4393_v44 = vpop.xlane.xlu1 %4392 }
 0x81f   : > { %12518 = vrcp.f32 %v4393_v44  ;;  %5812 = vrot.lane.b32.xlu1 %v16174_v47, %s12780_s25  ;;  %v4779_v44 = vsel %vm2704_vm2, %v16203_v12, 0 }
 0x820   : > { %5562 = vrot.lane.b32.xlu0 %v13392_v6, %s12780_s25 }
 0x821   : > { %v12517_v40 = vpop.eup %12516 }
 0x822   : > { %v4396_v30 = vpop.xlane.xlu0 %4395  ;;  %v4447_v7 = vmul.f32 %v12517_v40, %v14158_v61 }
 0x823   : > { %12520 = vrcp.f32 %v4396_v30  ;;  %5914 = vrot.lane.b32.xlu1 %v16175_v39, %s12780_s25  ;;  %v16204_v30 = vld [vmem:[#allocation25_spill] sm:$0xff] }
 0x824   : > { %5664 = vrot.lane.b32.xlu0 %v13394_v8, %s12780_s25  ;;  %v4463_v46 = vpack.c.bf16 %v4447_v7, %v4447_v7  ;;  %v16205_v7 = vld [vmem:[#allocation14_spill] sm:$0xff] }
 0x826   : > { %11551 = vmatmul.mubr.msk.bf16.vlgmr.msra.gmra.mrb[120].mxu1 %vm2508_vm3, %v4463_v46  ;;  %v4399_v23 = vpop.xlane.xlu1 %4398 }
 0x827   : > { %11561 = vmatpush3.bf16.msra.mxu1 %v4632_v50  ;;  %12522 = vrcp.f32 %v4399_v23  ;;  %v4402_v59 = vpop.xlane.xlu0 %4401  ;;  %5912 = vrot.lane.b32.xlu1 %v16176_v18, %s12780_s25  ;;  %v16206_v23 = vld [vmem:[#allocation46_spill] sm:$0xff] }
 0x828   : > { %12524 = vrcp.f32 %v4402_v59  ;;  %5662 = vrot.lane.b32.xlu0 %v13419_v2, %s12780_s25  ;;  %11562 = vmatprep.mubr.msk.bf16.mxu1 %vm12778_vm0, %v16160_v43  ;;  %v4828_v59 = vsel %vm2704_vm2, %v16206_v23, 0  ;;  %v16214_v23 = vld [vmem:[#allocation22_spill] sm:$0xff] }
 0x829   : > { %v12519_v61 = vpop.eup %12518  ;;  %11572 = vmatprep.subr.bf16.mxu1 %v16160_v43 }
 0x82a   : > { %v4449_v60 = vmul.f32 %v12519_v61, %v14164_v35 }
 0x82b   : > { %6014 = vrot.lane.b32.xlu1 %v16177_v48, %s12780_s25 }
 0x82c   : > { %5764 = vrot.lane.b32.xlu0 %v13421_v45, %s12780_s25  ;;  %v4465_v62 = vpack.c.bf16 %v4449_v60, %v4449_v60  ;;  %v16207_v60 = vld [vmem:[#allocation31_spill] sm:$0xff] }
 0x82d   : > { %v12521_v21 = vpop.eup %12520 }
 0x82e   : > { %11563 = vmatmul.mubr.msk.bf16.vlgmr.msra.gmra.mrb[124].mxu1 %vm2508_vm3, %v4465_v62  ;;  %v4405_v52 = vpop.xlane.xlu1 %4404  ;;  %v4450_v11 = vmul.f32 %v12521_v21, %v14170_v31  ;;  %v16208_v62 = vld [vmem:[#allocation17_spill] sm:$0xff] }
 0x82f   : > { %11573 = vmatpush3.bf16.msra.mxu1 %v4730_v14  ;;  %12526 = vrcp.f32 %v4405_v52  ;;  %6012 = vrot.lane.b32.xlu1 %v16178_v41, %s12780_s25  ;;  %v16209_v14 = vld [vmem:[#allocation45_spill] sm:$0xff] }
 0x830   : > { %5762 = vrot.lane.b32.xlu0 %v13447_v13, %s12780_s25  ;;  %v4466_v35 = vpack.c.bf16 %v4450_v11, %v4450_v11  ;;  %11574 = vmatprep.mubr.msk.bf16.mxu1 %vm12778_vm0, %v16160_v43  ;;  %v4877_v52 = vsel %vm2704_vm2, %v16209_v14, 0 }
 0x831   : > { %v12523_v4 = vpop.eup %12522  ;;  %11584 = vmatprep.subr.bf16.mxu1 %v16160_v43 }
 0x832   : > { %v12525_v15 = vpop.eup %12524  ;;  %v4408_v31 = vpop.xlane.xlu1 %4407  ;;  %11569 = vmatmul.mubr.msk.bf16.vlgmr.msra.gmra.mrb[128].mxu0 %vm2508_vm3, %v4466_v35  ;;  %v4451_v40 = vmul.f32 %v12523_v4, %v14175_v20  ;;  %v16210_v4 = vld [vmem:[#allocation32_spill] sm:$0xff] }
 0x833   : > { %12528 = vrcp.f32 %v4408_v31  ;;  %11579 = vmatpush3.bf16.msra.mxu0 %v4779_v44  ;;  %6318 = vrot.lane.b32.xlu1 %v16204_v30, %s12780_s25  ;;  %v4452_v50 = vmul.f32 %v12525_v15, %v14178_v49  ;;  %v16211_v15 = vld [vmem:[#allocation18_spill] sm:$0xff]  ;;  %v16212_v31 = vld [vmem:[#allocation47_spill] sm:$0xff] }
 0x834   : > { %5864 = vrot.lane.b32.xlu0 %v16205_v7, %s12780_s25  ;;  %v4467_v46 = vpack.c.bf16 %v4451_v40, %v4451_v40  ;;  %11580 = vmatprep.mubr.msk.bf16.mxu0 %vm12778_vm0, %v16160_v43  ;;  %v4926_v40 = vsel %vm2704_vm2, %v16212_v31, 0 }
 0x835   : > { %11590 = vmatprep.subr.bf16.mxu0 %v16160_v43  ;;  %v4468_v21 = vpack.c.bf16 %v4452_v50, %v4452_v50  ;;  %v16213_v50 = vld [vmem:[#allocation33_spill] sm:$0xff] }
 0x836   : > { %11575 = vmatmul.mubr.msk.bf16.vlgmr.msra.gmra.mrb[128].mxu1 %vm2508_vm3, %v4467_v46  ;;  %v4414_v20 = vpop.xlane.xlu1 %4413  ;;  %v4411_v61 = vpop.xlane.xlu0 %4410 }
 0x837   : > { %11585 = vmatpush3.bf16.msra.mxu1 %v4828_v59  ;;  %12530 = vrcp.f32 %v4414_v20  ;;  %6414 = vrot.lane.b32.xlu1 %v16207_v60, %s12780_s25 }
 0x838   : > { %12532 = vrcp.f32 %v4411_v61  ;;  %5862 = vrot.lane.b32.xlu0 %v16208_v62, %s12780_s25  ;;  %11586 = vmatprep.mubr.msk.bf16.mxu1 %vm12778_vm0, %v16160_v43 }
 0x839   : > { %v12527_v49 = vpop.eup %12526  ;;  %11596 = vmatprep.subr.bf16.mxu1 %v16160_v43 }
 0x83a   : > { %11581 = vmatmul.mubr.msk.bf16.vlgmr.msra.gmra.mrb[132].mxu0 %vm2508_vm3, %v4468_v21  ;;  %v4453_v11 = vmul.f32 %v12527_v49, %v14185_v17  ;;  %v4420_v35 = vpop.xlane.xlu1 %4419  ;;  %v16215_v21 = vld [vmem:[#allocation48_spill] sm:$0xff] }
 0x83b   : > { %11591 = vmatpush3.bf16.msra.mxu0 %v4877_v52  ;;  %6510 = vrot.lane.b32.xlu1 %v16210_v4, %s12780_s25  ;;  %12534 = vrcp.f32 %v4420_v35  ;;  %v4975_v49 = vsel %vm2704_vm2, %v16215_v21, 0  ;;  %v16217_v52 = vld [vmem:[#allocation19_spill] sm:$0xff]  ;;  %v16222_v21 = vld [vmem:[#allocation28_spill] sm:$0xff] }
 0x83c   : > { %5964 = vrot.lane.b32.xlu0 %v16211_v15, %s12780_s25  ;;  %v4469_v12 = vpack.c.bf16 %v4453_v11, %v4453_v11  ;;  %11592 = vmatprep.mubr.msk.bf16.mxu0 %vm12778_vm0, %v16160_v43 }
 0x83d   : > { %v12529_v44 = vpop.eup %12528  ;;  %11602 = vmatprep.subr.bf16.mxu0 %v16160_v43 }
 0x83e   : > { %11587 = vmatmul.mubr.msk.bf16.vlgmr.msra.gmra.mrb[132].mxu1 %vm2508_vm3, %v4469_v12  ;;  %v4417_v17 = vpop.xlane.xlu0 %4416  ;;  %v4454_v46 = vmul.f32 %v12529_v44, %v14189_v58  ;;  %v16216_v58 = vld [vmem:[#allocation35_spill] sm:$0xff]  ;;  %v16218_v44 = vld [vmem:[#allocation49_spill] sm:$0xff] }
 0x83f   : > { %11597 = vmatpush3.bf16.msra.mxu1 %v4926_v40  ;;  %12536 = vrcp.f32 %v4417_v17  ;;  %6606 = vrot.lane.b32.xlu1 %v16213_v50, %s12780_s25  ;;  %v5024_v31 = vsel %vm2704_vm2, %v16218_v44, 0  ;;  %v16220_v17 = vld [vmem:[#allocation27_spill] sm:$0xff]  ;;  %v5215_v44 = vpop.permute.xlu1 %5214 }
 0x840   : > { %5962 = vrot.lane.b32.xlu0 %v16214_v23, %s12780_s25  ;;  %v4470_v59 = vpack.c.bf16 %v4454_v46, %v4454_v46  ;;  %11598 = vmatprep.mubr.msk.bf16.mxu1 %vm12778_vm0, %v16160_v43 }
 0x841   : > { %v12531_v20 = vpop.eup %12530  ;;  %11608 = vmatprep.subr.bf16.mxu1 %v16160_v43 }
 0x842   : > { %v12533_v61 = vpop.eup %12532  ;;  %11593 = vmatmul.mubr.msk.bf16.vlgmr.msra.gmra.mrb[136].mxu0 %vm2508_vm3, %v4470_v59  ;;  %v4456_v11 = vmul.f32 %v12531_v20, %v14194_v34  ;;  %v5073_v59 = vsel %vm2704_vm2, %v14217_v16, 0  ;;  %v5122_v16 = vsel %vm2704_vm2, %v14222_v0, 0 }
 0x843   : > { %11603 = vmatpush3.bf16.msra.mxu0 %v4975_v49  ;;  %6702 = vrot.lane.b32.xlu1 %v16216_v58, %s12780_s25  ;;  %v4455_v14 = vmul.f32 %v12533_v61, %v14196_v53  ;;  %v16219_v53 = vld [vmem:[#allocation34_spill] sm:$0xff]  ;;  %v16221_v61 = vld [vmem:[#allocation36_spill] sm:$0xff] }
 0x844   : > { %6270 = vrot.lane.b32.xlu0 %v16217_v52, %s12780_s25  ;;  %11604 = vmatprep.mubr.msk.bf16.mxu0 %vm12778_vm0, %v16160_v43  ;;  %v4472_v46 = vpack.c.bf16 %v4456_v11, %v4456_v11 }
 0x845   : > { %v4471_v35 = vpack.c.bf16 %v4455_v14, %v4455_v14  ;;  %11614 = vmatprep.subr.bf16.mxu0 %v16160_v43  ;;  %v12535_v40 = vpop.eup %12534 }
 0x846   : > { %v4423_v12 = vpop.xlane.xlu0 %4422  ;;  %v4458_v14 = vmul.f32 %v12535_v40, %v14202_v25 }
 0x847   : > { %11599 = vmatmul.mubr.msk.bf16.vlgmr.msra.gmra.mrb[136].mxu1 %vm2508_vm3, %v4471_v35  ;;  %12538 = vrcp.f32 %v4423_v12  ;;  %6750 = vrot.lane.b32.xlu1 %v16219_v53, %s12780_s25 }
 0x848   : > { %11609 = vmatpush3.bf16.msra.mxu1 %v5024_v31  ;;  %6366 = vrot.lane.b32.xlu0 %v16220_v17, %s12780_s25  ;;  %v4474_v35 = vpack.c.bf16 %v4458_v14, %v4458_v14  ;;  %v16224_v31 = vld [vmem:[#allocation30_spill] sm:$0xff] }
 0x849   : > { %v12537_v34 = vpop.eup %12536  ;;  %11610 = vmatprep.mubr.msk.bf16.mxu1 %vm12778_vm0, %v16160_v43  ;;  %11620 = vmatprep.subr.bf16.mxu1 %v16160_v43 }
 0x84a   : > { %11605 = vmatmul.mubr.msk.bf16.vlgmr.msra.gmra.mrb[140].mxu0 %vm2508_vm3, %v4472_v46  ;;  %v4457_v20 = vmul.f32 %v12537_v34, %v14207_v56  ;;  %v5166_v11 = vpop.permute.xlu0 %5165  ;;  %v16223_v56 = vld [vmem:[#allocation29_spill] sm:$0xff]  ;;  %v5220_v46 = vsel %vm2704_vm2, %v5215_v44, 0 }
 0x84b   : > { %11615 = vmatpush3.bf16.msra.mxu0 %v5073_v59  ;;  %6798 = vrot.lane.b32.xlu1 %v16221_v61, %s12780_s25  ;;  %v5171_v25 = vsel %vm2704_vm2, %v5166_v11, 0 }
 0x84c   : > { %6462 = vrot.lane.b32.xlu0 %v16222_v21, %s12780_s25  ;;  %v4473_v49 = vpack.c.bf16 %v4457_v20, %v4457_v20  ;;  %11616 = vmatprep.mubr.msk.bf16.mxu0 %vm12778_vm0, %v16160_v43 }
 0x84d   : > { %11626 = vmatprep.subr.bf16.mxu0 %v16160_v43 }
 0x84f   : > { %11611 = vmatmul.mubr.msk.bf16.vlgmr.msra.gmra.mrb[140].mxu1 %vm2508_vm3, %v4473_v49 }
 0x850   : > { %11621 = vmatpush3.bf16.msra.mxu1 %v5122_v16  ;;  %6558 = vrot.lane.b32.xlu0 %v16223_v56, %s12780_s25 }
 0x851   : > { %v12539_v12 = vpop.eup %12538  ;;  %11622 = vmatprep.mubr.msk.bf16.mxu1 %vm12778_vm0, %v16160_v43  ;;  %11632 = vmatprep.subr.bf16.mxu1 %v16160_v43 }
 0x852   : > { %11617 = vmatmul.mubr.msk.bf16.vlgmr.msra.gmra.mrb[144].mxu0 %vm2508_vm3, %v4474_v35  ;;  %v4459_v0 = vmul.f32 %v12539_v12, %v14211_v54 }
 0x853   : > { %11627 = vmatpush3.bf16.msra.mxu0 %v5171_v25  ;;  %11628 = vmatprep.mubr.msk.bf16.mxu0 %vm12778_vm0, %v16160_v43 }
 0x854   : > { %6654 = vrot.lane.b32.xlu0 %v16224_v31, %s12780_s25  ;;  %v4475_v40 = vpack.c.bf16 %v4459_v0, %v4459_v0  ;;  %11638 = vmatprep.subr.bf16.mxu0 %v16160_v43 }
 0x857   : > { %11623 = vmatmul.mubr.msk.bf16.vlgmr.msra.gmra.mrb[144].mxu1 %vm2508_vm3, %v4475_v40 }
 0x858   : > { %11633 = vmatpush3.bf16.msra.mxu1 %v5220_v46  ;;  %11634 = vmatprep.mubr.msk.bf16.mxu1 %vm12778_vm0, %v16160_v43 }
 0x859   : > { %11644 = vmatprep.subr.bf16.mxu1 %v16160_v43 }
 0x86f   : > { %v4426_v54 = vpop.xlane.xlu1 %4425 }
 0x870   : > { %12540 = vrcp.f32 %v4426_v54 }
 0x873   : > { %v5315_v34 = vpop.permute.xlu1 %5314 }
 0x877   : > { %v5313_v59 = vpop.permute.xlu1 %5312 }
 0x87a   : > { %v12541_v20 = vpop.eup %12540 }
 0x87b   : > { %v5415_v49 = vpop.permute.xlu1 %5414  ;;  %v4429_v14 = vpop.xlane.xlu0 %4428  ;;  %v4460_v16 = vmul.f32 %v12541_v20, %v14225_v5 }
 0x87c   : > { %12542 = vrcp.f32 %v4429_v14 }
 0x87d   : > { %v4476_v11 = vpack.c.bf16 %v4460_v16, %v4460_v16  ;;  %v5320_v16 = vsel %vm1755_vm1, %v5315_v34, 0 }
 0x87f   : > { %v5413_v35 = vpop.permute.xlu1 %5412  ;;  %11629 = vmatmul.mubr.msk.bf16.vlgmr.msra.gmra.mrb[148].mxu0 %vm2508_vm3, %v4476_v11  ;;  %v5265_v12 = vpop.permute.xlu0 %5264 }
 0x880   : > { %v5270_v25 = vsel %vm1755_vm1, %v5265_v12, 0  ;;  %11640 = vmatprep.mubr.msk.bf16.mxu0 %vm12778_vm0, %v16160_v43 }
 0x881   : > { %11639 = vmatpush3.bf16.xpose.msra.mxu0 %v5270_v25 }
 0x882   : > { %11650 = vmatprep.subr.bf16.mxu0 %v16160_v43 }
 0x883   : > { %v5515_v0 = vpop.permute.xlu1 %5514  ;;  %v5263_v44 = vpop.permute.xlu0 %5262 }
 0x886   : > { %v12543_v40 = vpop.eup %12542 }
 0x887   : > { %v5513_v46 = vpop.permute.xlu1 %5512  ;;  %v5365_v54 = vpop.permute.xlu0 %5364  ;;  %v4461_v5 = vmul.f32 %v12543_v40, %v14243_v19 }
 0x888   : > { %v5370_v20 = vsel %vm1755_vm1, %v5365_v54, 0  ;;  %11641 = vmatmul.mubr.msk.bf16.vlgmr.msra.gmra.mrb[152].mxu0 %vm1755_vm1, %v5263_v44  ;;  %v5420_v44 = vsel %vm1755_vm1, %v5415_v49, 0 }
 0x889   : > { %11651 = vmatpush3.bf16.xpose.msra.mxu0 %v5370_v20  ;;  %v4477_v14 = vpack.c.bf16 %v4461_v5, %v4461_v5  ;;  %11652 = vmatprep.mubr.msk.bf16.mxu0 %vm12778_vm0, %v16160_v43 }
 0x88a   : > { %11662 = vmatprep.subr.bf16.mxu0 %v16160_v43 }
 0x88b   : > { %11635 = vmatmul.mubr.msk.bf16.vlgmr.msra.gmra.mrb[148].mxu1 %vm2508_vm3, %v4477_v14  ;;  %v5363_v11 = vpop.permute.xlu0 %5362  ;;  %v5615_v12 = vpop.permute.xlu1 %5614 }
 0x88c   : > { %11645 = vmatpush3.bf16.xpose.msra.mxu1 %v5320_v16  ;;  %11646 = vmatprep.mubr.msk.bf16.mxu1 %vm12778_vm0, %v16160_v43 }
 0x88d   : > { %11656 = vmatprep.subr.bf16.mxu1 %v16160_v43 }
 0x88f   : > { %v5465_v19 = vpop.permute.xlu0 %5464  ;;  %v5613_v34 = vpop.permute.xlu1 %5612 }
 0x890   : > { %v5470_v25 = vsel %vm1755_vm1, %v5465_v19, 0  ;;  %11653 = vmatmul.mubr.msk.bf16.vlgmr.msra.gmra.mrb[156].mxu0 %vm1755_vm1, %v5363_v11 }
 0x891   : > { %11663 = vmatpush3.bf16.xpose.msra.mxu0 %v5470_v25  ;;  %11664 = vmatprep.mubr.msk.bf16.mxu0 %vm12778_vm0, %v16160_v43 }
 0x892   : > { %11674 = vmatprep.subr.bf16.mxu0 %v16160_v43 }
 0x893   : > { %11647 = vmatmul.mubr.msk.bf16.vlgmr.msra.gmra.mrb[152].mxu1 %vm1755_vm1, %v5313_v59  ;;  %v5463_v40 = vpop.permute.xlu0 %5462  ;;  %v5715_v5 = vpop.permute.xlu1 %5714  ;;  %v5520_v59 = vsel %vm1755_vm1, %v5515_v0, 0 }
 0x894   : > { %11657 = vmatpush3.bf16.xpose.msra.mxu1 %v5420_v44  ;;  %11658 = vmatprep.mubr.msk.bf16.mxu1 %vm12778_vm0, %v16160_v43 }
 0x895   : > { %11668 = vmatprep.subr.bf16.mxu1 %v16160_v43 }
 0x897   : > { %v5565_v54 = vpop.permute.xlu0 %5564  ;;  %v5713_v14 = vpop.permute.xlu1 %5712 }
 0x898   : > { %v5570_v20 = vsel %vm1755_vm1, %v5565_v54, 0  ;;  %11665 = vmatmul.mubr.msk.bf16.vlgmr.msra.gmra.mrb[160].mxu0 %vm1755_vm1, %v5463_v40 }
 0x899   : > { %11675 = vmatpush3.bf16.xpose.msra.mxu0 %v5570_v20  ;;  %11676 = vmatprep.mubr.msk.bf16.mxu0 %vm12778_vm0, %v16160_v43 }
 0x89a   : > { %11686 = vmatprep.subr.bf16.mxu0 %v16160_v43 }
 0x89b   : > { %11659 = vmatmul.mubr.msk.bf16.vlgmr.msra.gmra.mrb[156].mxu1 %vm1755_vm1, %v5413_v35  ;;  %v5563_v49 = vpop.permute.xlu0 %5562  ;;  %v5620_v35 = vsel %vm1755_vm1, %v5615_v12, 0  ;;  %v5815_v19 = vpop.permute.xlu1 %5814 }
 0x89c   : > { %11669 = vmatpush3.bf16.xpose.msra.mxu1 %v5520_v59  ;;  %11670 = vmatprep.mubr.msk.bf16.mxu1 %vm12778_vm0, %v16160_v43 }
 0x89d   : > { %11680 = vmatprep.subr.bf16.mxu1 %v16160_v43 }
 0x89f   : > { %v5665_v16 = vpop.permute.xlu0 %5664  ;;  %v5813_v12 = vpop.permute.xlu1 %5812 }
 0x8a0   : > { %v5670_v11 = vsel %vm1755_vm1, %v5665_v16, 0  ;;  %11677 = vmatmul.mubr.msk.bf16.vlgmr.msra.gmra.mrb[164].mxu0 %vm1755_vm1, %v5563_v49 }
 0x8a1   : > { %11687 = vmatpush3.bf16.xpose.msra.mxu0 %v5670_v11  ;;  %11688 = vmatprep.mubr.msk.bf16.mxu0 %vm12778_vm0, %v16160_v43 }
 0x8a2   : > { %11698 = vmatprep.subr.bf16.mxu0 %v16160_v43 }
 0x8a3   : > { %11671 = vmatmul.mubr.msk.bf16.vlgmr.msra.gmra.mrb[160].mxu1 %vm1755_vm1, %v5513_v46  ;;  %v5663_v0 = vpop.permute.xlu0 %5662  ;;  %v5720_v46 = vsel %vm1755_vm1, %v5715_v5, 0  ;;  %v5915_v20 = vpop.permute.xlu1 %5914  ;;  %v5820_v5 = vsel %vm1755_vm1, %v5815_v19, 0 }
 0x8a4   : > { %11681 = vmatpush3.bf16.xpose.msra.mxu1 %v5620_v35  ;;  %11682 = vmatprep.mubr.msk.bf16.mxu1 %vm12778_vm0, %v16160_v43  ;;  %v5920_v19 = vsel %vm1755_vm1, %v5915_v20, 0 }
 0x8a5   : > { %11692 = vmatprep.subr.bf16.mxu1 %v16160_v43 }
 0x8a7   : > { %v5765_v25 = vpop.permute.xlu0 %5764 }
 0x8a8   : > { %v5770_v44 = vsel %vm1755_vm1, %v5765_v25, 0  ;;  %11689 = vmatmul.mubr.msk.bf16.vlgmr.msra.gmra.mrb[168].mxu0 %vm1755_vm1, %v5663_v0  ;;  %v5913_v0 = vpop.permute.xlu1 %5912 }
 0x8a9   : > { %11699 = vmatpush3.bf16.xpose.msra.mxu0 %v5770_v44  ;;  %11700 = vmatprep.mubr.msk.bf16.mxu0 %vm12778_vm0, %v16160_v43 }
 0x8aa   : > { %11710 = vmatprep.subr.bf16.mxu0 %v16160_v43 }
 0x8ab   : > { %11683 = vmatmul.mubr.msk.bf16.vlgmr.msra.gmra.mrb[164].mxu1 %vm1755_vm1, %v5613_v34  ;;  %v5763_v40 = vpop.permute.xlu0 %5762 }
 0x8ac   : > { %11693 = vmatpush3.bf16.xpose.msra.mxu1 %v5720_v46  ;;  %11694 = vmatprep.mubr.msk.bf16.mxu1 %vm12778_vm0, %v16160_v43 }
 0x8ad   : > { %11704 = vmatprep.subr.bf16.mxu1 %v16160_v43 }
 0x8af   : > { %v5865_v54 = vpop.permute.xlu0 %5864 }
 0x8b0   : > { %v5870_v59 = vsel %vm1755_vm1, %v5865_v54, 0  ;;  %11701 = vmatmul.mubr.msk.bf16.vlgmr.msra.gmra.mrb[172].mxu0 %vm1755_vm1, %v5763_v40  ;;  %v6015_v54 = vpop.permute.xlu1 %6014 }
 0x8b1   : > { %v14476_v49 = vpop.f32.mrb[120].mxu0  ;;  %11711 = vmatpush3.bf16.xpose.msra.mxu0 %v5870_v59  ;;  %11712 = vmatprep.mubr.msk.bf16.mxu0 %vm12778_vm0, %v16160_v43  ;;  %v6020_v20 = vsel %vm1755_vm1, %v6015_v54, 0 }
 0x8b2   : > { %16225 = vst [vmem:[#allocation44_spill] sm:$0xff] %v14476_v49  ;;  %v11546_v34 = vpop.f32.mrb[121].mxu0  ;;  %11722 = vmatprep.subr.bf16.mxu0 %v16160_v43 }
 0x8b3   : > { %11695 = vmatmul.mubr.msk.bf16.vlgmr.msra.gmra.mrb[168].mxu1 %vm1755_vm1, %v5713_v14  ;;  %v5863_v16 = vpop.permute.xlu0 %5862  ;;  %v4524_v11 = vpop.f32.mrb[122].mxu0 }
 0x8b4   : > { %11705 = vmatpush3.bf16.xpose.msra.mxu1 %v5820_v5  ;;  %11706 = vmatprep.mubr.msk.bf16.mxu1 %vm12778_vm0, %v16160_v43  ;;  %v11547_v35 = vpop.f32.mrb[123].mxu0 }
 0x8b5   : > { %11716 = vmatprep.subr.bf16.mxu1 %v16160_v43 }
 0x8b7   : > { %v5965_v25 = vpop.permute.xlu0 %5964 }
 0x8b8   : > { %v5970_v44 = vsel %vm1755_vm1, %v5965_v25, 0  ;;  %11713 = vmatmul.mubr.msk.bf16.vlgmr.msra.gmra.mrb[176].mxu0 %vm1755_vm1, %v5863_v16 }
 0x8b9   : > { %v14488_v46 = vpop.f32.mrb[124].mxu0  ;;  %11723 = vmatpush3.bf16.xpose.msra.mxu0 %v5970_v44  ;;  %11724 = vmatprep.mubr.msk.bf16.mxu0 %vm12778_vm0, %v16160_v43 }
 0x8ba   : > { %16226 = vst [vmem:[#allocation46_spill] sm:$0xff] %v14488_v46  ;;  %v11558_v14 = vpop.f32.mrb[125].mxu0  ;;  %11734 = vmatprep.subr.bf16.mxu0 %v16160_v43 }
 0x8bb   : > { %11707 = vmatmul.mubr.msk.bf16.vlgmr.msra.gmra.mrb[172].mxu1 %vm1755_vm1, %v5813_v12  ;;  %v5963_v40 = vpop.permute.xlu0 %5962  ;;  %v4622_v59 = vpop.f32.mrb[126].mxu0 }
 0x8bc   : > { %11717 = vmatpush3.bf16.xpose.msra.mxu1 %v5920_v19  ;;  %11718 = vmatprep.mubr.msk.bf16.mxu1 %vm12778_vm0, %v16160_v43  ;;  %v11559_v34 = vpop.f32.mrb[127].mxu0  ;;  %v6013_v12 = vpop.permute.xlu1 %6012 }
 0x8bd   : > { %11728 = vmatprep.subr.bf16.mxu1 %v16160_v43 }
 0x8bf   : > { %v6271_v5 = vpop.permute.xlu0 %6270 }
 0x8c0   : > { %v6276_v16 = vsel %vm2704_vm2, %v6271_v5, 0  ;;  %11725 = vmatmul.mubr.msk.bf16.vlgmr.msra.gmra.mrb[180].mxu0 %vm1755_vm1, %v5963_v40  ;;  %v6319_v11 = vpop.permute.xlu1 %6318 }
 0x8c1   : > { %11735 = vmatpush3.bf16.msra.mxu0 %v6276_v16  ;;  %11736 = vmatprep.mubr.msk.bf16.mxu0 %vm12778_vm0, %v16160_v43  ;;  %v6324_v35 = vsel %vm2704_vm2, %v6319_v11, 0 }
 0x8c2   : > { %11746 = vmatprep.subr.bf16.mxu0 %v16160_v43 }
 0x8c3   : > { %11719 = vmatmul.mubr.msk.bf16.vlgmr.msra.gmra.mrb[176].mxu1 %vm1755_vm1, %v5913_v0 }
 0x8c4   : > { %11729 = vmatpush3.bf16.xpose.msra.mxu1 %v6020_v20  ;;  %11730 = vmatprep.mubr.msk.bf16.mxu1 %vm12778_vm0, %v16160_v43 }
 0x8c5   : > { %11740 = vmatprep.subr.bf16.mxu1 %v16160_v43 }
 0x8cb   : > { %11731 = vmatmul.mubr.msk.bf16.vlgmr.msra.gmra.mrb[180].mxu1 %vm1755_vm1, %v6013_v12 }
 0x8cc   : > { %11741 = vmatpush3.bf16.msra.mxu1 %v6324_v35  ;;  %11742 = vmatprep.mubr.msk.bf16.mxu1 %vm12778_vm0, %v16160_v43 }
 0x8cd   : > { %11752 = vmatprep.subr.bf16.mxu1 %v16160_v43 }
 0x8f9   : > { %v14513_v25 = vpop.f32.mrb[120].mxu1 }
 0x8fa   : > { %16227 = vst [vmem:[#allocation45_spill] sm:$0xff] %v14513_v25  ;;  %v11552_v44 = vpop.f32.mrb[121].mxu1 }
 0x8fb   : > { %v4573_v14 = vpop.f32.mrb[122].mxu1 }
 0x8fc   : > { %v11553_v19 = vpop.f32.mrb[123].mxu1 }
 0x901   : > { %v14517_v40 = vpop.f32.mrb[124].mxu1 }
 0x902   : > { %16228 = vst [vmem:[#allocation47_spill] sm:$0xff] %v14517_v40  ;;  %v11564_v59 = vpop.f32.mrb[125].mxu1 }
 0x903   : > { %v4671_v34 = vpop.f32.mrb[126].mxu1 }
 0x904   : > { %v11565_v5 = vpop.f32.mrb[127].mxu1 }
 0x905   : > { %v14521_v16 = vpop.f32.mrb[128].mxu0 }
 0x906   : > { %16229 = vst [vmem:[#allocation48_spill] sm:$0xff] %v14521_v16  ;;  %v11570_v12 = vpop.f32.mrb[129].mxu0 }
 0x907   : > { %v4720_v20 = vpop.f32.mrb[130].mxu0 }
 0x908   : > { %v11571_v11 = vpop.f32.mrb[131].mxu0 }
 0x909   : > { %v14523_v35 = vpop.f32.mrb[128].mxu1 }
 0x90a   : > { %16230 = vst [vmem:[#allocation49_spill] sm:$0xff] %v14523_v35  ;;  %v11576_v14 = vpop.f32.mrb[129].mxu1 }
 0x90b   : > { %v4769_v19 = vpop.f32.mrb[130].mxu1 }
 0x90c   : > { %v11577_v0 = vpop.f32.mrb[131].mxu1 }
 0x90d   : > { %v14527_v49 = vpop.f32.mrb[132].mxu0 }
 0x90e   : > { %16231 = vst [vmem:[#allocation50_spill] sm:$0xff] %v14527_v49  ;;  %v11582_v25 = vpop.f32.mrb[133].mxu0 }
 0x90f   : > { %v4818_v54 = vpop.f32.mrb[134].mxu0 }
 0x910   : > { %v11583_v59 = vpop.f32.mrb[135].mxu0 }
 0x911   : > { %v14529_v34 = vpop.f32.mrb[132].mxu1 }
 0x912   : > { %16232 = vst [vmem:[#allocation51_spill] sm:$0xff] %v14529_v34  ;;  %v11588_v12 = vpop.f32.mrb[133].mxu1 }
 0x913   : > { %v4867_v20 = vpop.f32.mrb[134].mxu1 }
 0x914   : > { %v11589_v11 = vpop.f32.mrb[135].mxu1 }
 0x915   : > { %v14533_v46 = vpop.f32.mrb[136].mxu0 }
 0x916   : > { %16233 = vst [vmem:[#allocation52_spill] sm:$0xff] %v14533_v46  ;;  %v11594_v40 = vpop.f32.mrb[137].mxu0 }
 0x917   : > { %v4916_v44 = vpop.f32.mrb[138].mxu0 }
 0x918   : > { %v11595_v14 = vpop.f32.mrb[139].mxu0 }
 0x91a   : > { %v14535_v19 = vpop.f32.mrb[136].mxu1 }
 0x91b   : > { %16234 = vst [vmem:[#allocation53_spill] sm:$0xff] %v14535_v19  ;;  %v11600_v0 = vpop.f32.mrb[137].mxu1 }
 0x91c   : > { %v4965_v54 = vpop.f32.mrb[138].mxu1 }
 0x91d   : > { %v11601_v59 = vpop.f32.mrb[139].mxu1  ;;  %v14539_v16 = vpop.f32.mrb[140].mxu0 }
 0x91e   : > { %16235 = vst [vmem:[#allocation54_spill] sm:$0xff] %v14539_v16  ;;  %v11606_v35 = vpop.f32.mrb[141].mxu0 }
 0x91f   : > { %v5014_v5 = vpop.f32.mrb[142].mxu0 }
 0x920   : > { %v11607_v12 = vpop.f32.mrb[143].mxu0 }
 0x922   : > { %v14541_v20 = vpop.f32.mrb[140].mxu1 }
 0x923   : > { %16236 = vst [vmem:[#allocation55_spill] sm:$0xff] %v14541_v20  ;;  %v11612_v44 = vpop.f32.mrb[141].mxu1 }
 0x924   : > { %v5063_v11 = vpop.f32.mrb[142].mxu1 }
 0x925   : > { %v11613_v14 = vpop.f32.mrb[143].mxu1  ;;  %v14545_v49 = vpop.f32.mrb[144].mxu0 }
 0x926   : > { %16237 = vst [vmem:[#allocation56_spill] sm:$0xff] %v14545_v49  ;;  %v11618_v34 = vpop.f32.mrb[145].mxu0 }
 0x927   : > { %v5112_v25 = vpop.f32.mrb[146].mxu0 }
 0x928   : > { %v11619_v0 = vpop.f32.mrb[147].mxu0 }
 0x92a   : > { %v14547_v54 = vpop.f32.mrb[144].mxu1 }
 0x92b   : > { %16238 = vst [vmem:[#allocation57_spill] sm:$0xff] %v14547_v54  ;;  %v11624_v5 = vpop.f32.mrb[145].mxu1 }
 0x92c   : > { %v5161_v59 = vpop.f32.mrb[146].mxu1 }
 0x92d   : > { %v11625_v12 = vpop.f32.mrb[147].mxu1 }
 0x952   : > { %v14551_v46 = vpop.f32.mrb[148].mxu0 }
 0x953   : > { %16239 = vst [vmem:[#allocation58_spill] sm:$0xff] %v14551_v46  ;;  %v11630_v19 = vpop.f32.mrb[149].mxu0 }
 0x954   : > { %v5210_v40 = vpop.f32.mrb[150].mxu0 }
 0x955   : > { %v11631_v44 = vpop.f32.mrb[151].mxu0 }
 0x95b   : > { %v5306_v11 = vpop.f32.mrb[152].mxu0 }
 0x95c   : > { %v14553_v14 = vmul.f32 0.17677669, %v5306_v11  ;;  %v11642_v16 = vpop.f32.mrb[153].mxu0 }
 0x95d   : > { %v5309_v34 = vpop.f32.mrb[154].mxu0 }
 0x95e   : > { %v14555_v25 = vpop.f32.mrb[148].mxu1  ;;  %v11643_v0 = vpop.f32.mrb[155].mxu0  ;;  %v6078_v20 = vsel %vm2508_vm3, %v14553_v14, -inf }
 0x95f   : > { %16240 = vst [vmem:[#allocation59_spill] sm:$0xff] %v14555_v25  ;;  %v11636_v59 = vpop.f32.mrb[149].mxu1  ;;  %6079 = vmax.xlane.f32.xlu0 %v6078_v20 }
 0x960   : > { %v5259_v12 = vpop.f32.mrb[150].mxu1 }
 0x961   : > { %v11637_v19 = vpop.f32.mrb[151].mxu1 }
 0x963   : > { %v5406_v40 = vpop.f32.mrb[156].mxu0 }
 0x964   : > { %v14561_v44 = vmul.f32 0.17677669, %v5406_v40  ;;  %v11654_v11 = vpop.f32.mrb[157].mxu0 }
 0x965   : > { %v5409_v35 = vpop.f32.mrb[158].mxu0 }
 0x966   : > { %v5356_v16 = vpop.f32.mrb[152].mxu1  ;;  %v11655_v34 = vpop.f32.mrb[159].mxu0  ;;  %v6084_v0 = vsel %vm2508_vm3, %v14561_v44, -inf }
 0x967   : > { %v14565_v49 = vmul.f32 0.17677669, %v5356_v16  ;;  %v11648_v54 = vpop.f32.mrb[153].mxu1  ;;  %6085 = vmax.xlane.f32.xlu0 %v6084_v0 }
 0x968   : > { %v5359_v61 = vpop.f32.mrb[154].mxu1 }
 0x969   : > { %v11649_v5 = vpop.f32.mrb[155].mxu1  ;;  %v6081_v20 = vsel %vm2508_vm3, %v14565_v49, -inf }
 0x96a   : > { %6082 = vmax.xlane.f32.xlu1 %v6081_v20 }
 0x96b   : > { %v5506_v59 = vpop.f32.mrb[160].mxu0 }
 0x96c   : > { %v11666_v12 = vpop.f32.mrb[161].mxu0  ;;  %v14571_v25 = vmul.f32 0.17677669, %v5506_v59 }
 0x96d   : > { %v5509_v19 = vpop.f32.mrb[162].mxu0 }
 0x96e   : > { %v5456_v40 = vpop.f32.mrb[156].mxu1  ;;  %v11667_v35 = vpop.f32.mrb[163].mxu0  ;;  %v6090_v12 = vsel %vm2508_vm3, %v14571_v25, -inf }
 0x96f   : > { %v14569_v11 = vmul.f32 0.17677669, %v5456_v40  ;;  %v11660_v34 = vpop.f32.mrb[157].mxu1 }
 0x970   : > { %v5459_v46 = vpop.f32.mrb[158].mxu1 }
 0x971   : > { %v11661_v16 = vpop.f32.mrb[159].mxu1  ;;  %v6087_v61 = vsel %vm2508_vm3, %v14569_v11, -inf }
 0x972   : > { %6088 = vmax.xlane.f32.xlu0 %v6087_v61 }
 0x973   : > { %v5606_v54 = vpop.f32.mrb[164].mxu0 }
 0x974   : > { %v11678_v5 = vpop.f32.mrb[165].mxu0  ;;  %v14575_v0 = vmul.f32 0.17677669, %v5606_v54 }
 0x975   : > { %v5609_v20 = vpop.f32.mrb[166].mxu0 }
 0x976   : > { %v5556_v19 = vpop.f32.mrb[160].mxu1  ;;  %6091 = vmax.xlane.f32.xlu0 %v6090_v12  ;;  %v11679_v40 = vpop.f32.mrb[167].mxu0  ;;  %v6096_v61 = vsel %vm2508_vm3, %v14575_v0, -inf }
 0x977   : > { %v14579_v35 = vmul.f32 0.17677669, %v5556_v19  ;;  %v11672_v46 = vpop.f32.mrb[161].mxu1 }
 0x978   : > { %v5559_v59 = vpop.f32.mrb[162].mxu1 }
 0x979   : > { %v11673_v34 = vpop.f32.mrb[163].mxu1  ;;  %v6093_v16 = vsel %vm2508_vm3, %v14579_v35, -inf }
 0x97a   : > { %6094 = vmax.xlane.f32.xlu1 %v6093_v16  ;;  %6097 = vmax.xlane.f32.xlu0 %v6096_v61 }
 0x97b   : > { %v5706_v54 = vpop.f32.mrb[168].mxu0 }
 0x97c   : > { %v14585_v5 = vmul.f32 0.17677669, %v5706_v54  ;;  %v11690_v20 = vpop.f32.mrb[169].mxu0 }
 0x97d   : > { %v5709_v53 = vpop.f32.mrb[170].mxu0 }
 0x97e   : > { %v5656_v12 = vpop.f32.mrb[164].mxu1  ;;  %v11691_v40 = vpop.f32.mrb[171].mxu0  ;;  %v6102_v19 = vsel %vm2508_vm3, %v14585_v5, -inf }
 0x97f   : > { %v14589_v46 = vmul.f32 0.17677669, %v5656_v12  ;;  %v11684_v59 = vpop.f32.mrb[165].mxu1  ;;  %6103 = vmax.xlane.f32.xlu0 %v6102_v19 }
 0x980   : > { %v5659_v34 = vpop.f32.mrb[166].mxu1 }
 0x981   : > { %v11685_v31 = vpop.f32.mrb[167].mxu1  ;;  %v6099_v16 = vsel %vm2508_vm3, %v14589_v46, -inf }
 0x982   : > { %6100 = vmax.xlane.f32.xlu1 %v6099_v16 }
 0x983   : > { %v5806_v61 = vpop.f32.mrb[172].mxu0 }
 0x984   : > { %v14593_v54 = vmul.f32 0.17677669, %v5806_v61  ;;  %v11702_v20 = vpop.f32.mrb[173].mxu0 }
 0x985   : > { %v5809_v53 = vpop.f32.mrb[174].mxu0 }
 0x986   : > { %v5756_v58 = vpop.f32.mrb[168].mxu1  ;;  %v11703_v40 = vpop.f32.mrb[175].mxu0  ;;  %v6108_v56 = vsel %vm2508_vm3, %v14593_v54, -inf }
 0x987   : > { %v14597_v12 = vmul.f32 0.17677669, %v5756_v58  ;;  %v11696_v59 = vpop.f32.mrb[169].mxu1  ;;  %6109 = vmax.xlane.f32.xlu0 %v6108_v56 }
 0x988   : > { %v5759_v19 = vpop.f32.mrb[170].mxu1 }
 0x989   : > { %v11697_v31 = vpop.f32.mrb[171].mxu1  ;;  %v6105_v34 = vsel %vm2508_vm3, %v14597_v12, -inf }
 0x98a   : > { %6106 = vmax.xlane.f32.xlu1 %v6105_v34 }
 0x98b   : > { %v5906_v16 = vpop.f32.mrb[176].mxu0 }
 0x98c   : > { %v14601_v61 = vmul.f32 0.17677669, %v5906_v16  ;;  %v11714_v20 = vpop.f32.mrb[177].mxu0 }
 0x98d   : > { %v5909_v53 = vpop.f32.mrb[178].mxu0 }
 0x98e   : > { %v5856_v21 = vpop.f32.mrb[172].mxu1  ;;  %v11715_v40 = vpop.f32.mrb[179].mxu0  ;;  %v6114_v17 = vsel %vm2508_vm3, %v14601_v61, -inf }
 0x98f   : > { %v14605_v58 = vmul.f32 0.17677669, %v5856_v21  ;;  %v11708_v59 = vpop.f32.mrb[173].mxu1  ;;  %6115 = vmax.xlane.f32.xlu0 %v6114_v17 }
 0x990   : > { %v5859_v56 = vpop.f32.mrb[174].mxu1 }
 0x991   : > { %v11709_v19 = vpop.f32.mrb[175].mxu1  ;;  %v6111_v31 = vsel %vm2508_vm3, %v14605_v58, -inf }
 0x992   : > { %6112 = vmax.xlane.f32.xlu1 %v6111_v31 }
 0x993   : > { %v6006_v34 = vpop.f32.mrb[180].mxu0 }
 0x994   : > { %v14609_v16 = vmul.f32 0.17677669, %v6006_v34  ;;  %v11726_v20 = vpop.f32.mrb[181].mxu0 }
 0x995   : > { %v6009_v53 = vpop.f32.mrb[182].mxu0 }
 0x996   : > { %v5956_v52 = vpop.f32.mrb[176].mxu1  ;;  %v11727_v40 = vpop.f32.mrb[183].mxu0  ;;  %v6120_v50 = vsel %vm2508_vm3, %v14609_v16, -inf  ;;  %v16241_v53 = vld [vmem:[#allocation13_spill] sm:$0xff] }
 0x997   : > { %v14613_v21 = vmul.f32 0.17677669, %v5956_v52  ;;  %v11720_v59 = vpop.f32.mrb[177].mxu1  ;;  %6121 = vmax.xlane.f32.xlu0 %v6120_v50  ;;  %v16242_v40 = vld [vmem:[#allocation37_spill] sm:$0xff] }
 0x998   : > { %v5959_v17 = vpop.f32.mrb[178].mxu1  ;;  %v14625_v59 = vpop.permute.xlu1 %6414 }
 0x999   : > { %v11721_v56 = vpop.f32.mrb[179].mxu1  ;;  %v6117_v19 = vsel %vm2508_vm3, %v14613_v21, -inf  ;;  %v14627_v17 = vpop.permute.xlu0 %6366 }
 0x99a   : > { %6118 = vmax.xlane.f32.xlu1 %v6117_v19 }
 0x99c   : > { %v14629_v56 = vpop.permute.xlu1 %6510 }
 0x99e   : > { %v6056_v31 = vpop.f32.mrb[180].mxu1 }
 0x99f   : > { %v11732_v34 = vpop.f32.mrb[181].mxu1  ;;  %v14621_v52 = vmul.f32 0.17677669, %v6056_v31 }
 0x9a0   : > { %v6059_v23 = vpop.f32.mrb[182].mxu1  ;;  %v14633_v19 = vpop.permute.xlu1 %6606 }
 0x9a1   : > { %v11733_v20 = vpop.f32.mrb[183].mxu1  ;;  %v6123_v50 = vsel %vm2508_vm3, %v14621_v52, -inf  ;;  %v14631_v23 = vpop.permute.xlu0 %6462  ;;  %16243 = vst [vmem:[#allocation60_spill] sm:$0xff] %v14633_v19 }
 0x9a4   : > { %v14637_v20 = vpop.permute.xlu1 %6702 }
 0x9a5   : > { %v14635_v34 = vpop.permute.xlu0 %6558  ;;  %16245 = vst [vmem:[#allocation62_spill] sm:$0xff] %v14637_v20 }
 0x9a6   : > { %16244 = vst [vmem:[#allocation61_spill] sm:$0xff] %v14635_v34 }
 0x9a9   : > { %v14639_v31 = vpop.permute.xlu0 %6654 }
 0x9ab   : > { %6894 = vrot.lane.b32.xlu1 %v16241_v53, %s12780_s25  ;;  %v14641_v53 = vpop.permute.xlu1 %6750 }
 0x9ac   : > { %16246 = vst [vmem:[#allocation63_spill] sm:$0xff] %v14641_v53 }
 0x9ad   : > { %6846 = vrot.lane.b32.xlu0 %v16242_v40, %s12780_s25 }
 0x9af   : > { %v14644_v15 = vpop.permute.xlu1 %6798 }
 0x9cf   : > { %6124 = vmax.xlane.f32.xlu1 %v6123_v50 }
 0x9ec   : > { %v6080_v40 = vpop.xlane.xlu0 %6079 }
 0x9ed   : > { %v6126_v50 = vsub.f32 %v14553_v14, %v6080_v40 }
 0x9ef   : > { %v6142_v4 = vmul.f32 1.442695, %v6126_v50 }
 0x9f1   : > { %12544 = vpow2.f32 %v6142_v4 }
 0x9f4   : > { %v6086_v60 = vpop.xlane.xlu0 %6085 }
 0x9f5   : > { %v6128_v62 = vsub.f32 %v14561_v44, %v6086_v60 }
 0x9f7   : > { %v6146_v30 = vmul.f32 1.442695, %v6128_v62  ;;  %v6083_v19 = vpop.xlane.xlu1 %6082 }
 0x9f8   : > { %v6127_v7 = vsub.f32 %v14565_v49, %v6083_v19 }
 0x9f9   : > { %12546 = vpow2.f32 %v6146_v30 }
 0x9fa   : > { %v6144_v20 = vmul.f32 1.442695, %v6127_v7 }
 0x9fb   : > { %v14648_v34 = vpop.eup %12544 }
 0x9fc   : > { %12548 = vpow2.f32 %v6144_v20  ;;  %v6174_v53 = vsel %vm2508_vm3, %v14648_v34, 0.0 }
 0x9fd   : > { %6175 = vadd.xlane.f32.xlu0 %v6174_v53 }
 0x9ff   : > { %v6089_v14 = vpop.xlane.xlu0 %6088 }
 0xa00   : > { %v6129_v4 = vsub.f32 %v14569_v11, %v6089_v14 }
 0xa02   : > { %v6148_v40 = vmul.f32 1.442695, %v6129_v4 }
 0xa03   : > { %v14653_v50 = vpop.eup %12546  ;;  %v6092_v60 = vpop.xlane.xlu0 %6091 }
 0xa04   : > { %12550 = vpow2.f32 %v6148_v40  ;;  %v6130_v62 = vsub.f32 %v14571_v25, %v6092_v60  ;;  %v6180_v30 = vsel %vm2508_vm3, %v14653_v50, 0.0 }
 0xa05   : > { %6181 = vadd.xlane.f32.xlu0 %v6180_v30 }
 0xa06   : > { %v14658_v7 = vpop.eup %12548  ;;  %v6150_v49 = vmul.f32 1.442695, %v6130_v62 }
 0xa07   : > { %v6095_v44 = vpop.xlane.xlu1 %6094  ;;  %v6098_v19 = vpop.xlane.xlu0 %6097  ;;  %v6177_v53 = vsel %vm2508_vm3, %v14658_v7, 0.0 }
 0xa08   : > { %12552 = vpow2.f32 %v6150_v49  ;;  %v6131_v11 = vsub.f32 %v14579_v35, %v6095_v44  ;;  %v6132_v20 = vsub.f32 %v14575_v0, %v6098_v19  ;;  %6178 = vadd.xlane.f32.xlu1 %v6177_v53 }
 0xa0a   : > { %v6152_v14 = vmul.f32 1.442695, %v6131_v11  ;;  %v6154_v25 = vmul.f32 1.442695, %v6132_v20 }
 0xa0c   : > { %12554 = vpow2.f32 %v6152_v14  ;;  %v6104_v4 = vpop.xlane.xlu0 %6103 }
 0xa0d   : > { %12556 = vpow2.f32 %v6154_v25  ;;  %v6134_v60 = vsub.f32 %v14585_v5, %v6104_v4 }
 0xa0e   : > { %v14664_v40 = vpop.eup %12550 }
 0xa0f   : > { %v6101_v62 = vpop.xlane.xlu1 %6100  ;;  %v6183_v30 = vsel %vm2508_vm3, %v14664_v40, 0.0  ;;  %v6158_v0 = vmul.f32 1.442695, %v6134_v60 }
 0xa10   : > { %v6133_v49 = vsub.f32 %v14589_v46, %v6101_v62  ;;  %6184 = vadd.xlane.f32.xlu1 %v6183_v30 }
 0xa12   : > { %v14670_v35 = vpop.eup %12552  ;;  %v6156_v44 = vmul.f32 1.442695, %v6133_v49 }
 0xa13   : > { %v6186_v19 = vsel %vm2508_vm3, %v14670_v35, 0.0 }
 0xa14   : > { %12558 = vpow2.f32 %v6156_v44  ;;  %v6110_v53 = vpop.xlane.xlu0 %6109  ;;  %6187 = vadd.xlane.f32.xlu0 %v6186_v19 }
 0xa15   : > { %v6136_v11 = vsub.f32 %v14593_v54, %v6110_v53  ;;  %12560 = vpow2.f32 %v6158_v0 }
 0xa16   : > { %v14675_v5 = vpop.eup %12554 }
 0xa17   : > { %v14677_v20 = vpop.eup %12556  ;;  %v6162_v14 = vmul.f32 1.442695, %v6136_v11  ;;  %v6107_v46 = vpop.xlane.xlu1 %6106  ;;  %v6189_v25 = vsel %vm2508_vm3, %v14675_v5, 0.0 }
 0xa18   : > { %v6135_v4 = vsub.f32 %v14597_v12, %v6107_v46  ;;  %6190 = vadd.xlane.f32.xlu1 %v6189_v25  ;;  %v6192_v60 = vsel %vm2508_vm3, %v14677_v20, 0.0 }
 0xa19   : > { %6193 = vadd.xlane.f32.xlu0 %v6192_v60  ;;  %12562 = vpow2.f32 %v6162_v14 }
 0xa1a   : > { %v6160_v62 = vmul.f32 1.442695, %v6135_v4 }
 0xa1c   : > { %12564 = vpow2.f32 %v6160_v62  ;;  %v6116_v54 = vpop.xlane.xlu0 %6115 }
 0xa1d   : > { %v6138_v30 = vsub.f32 %v14601_v61, %v6116_v54 }
 0xa1e   : > { %v14685_v49 = vpop.eup %12558 }
 0xa1f   : > { %v6166_v0 = vmul.f32 1.442695, %v6138_v30  ;;  %v6113_v44 = vpop.xlane.xlu1 %6112  ;;  %v6195_v19 = vsel %vm2508_vm3, %v14685_v49, 0.0  ;;  %v14689_v53 = vpop.eup %12560 }
 0xa20   : > { %v6137_v12 = vsub.f32 %v14605_v58, %v6113_v44  ;;  %6196 = vadd.xlane.f32.xlu1 %v6195_v19  ;;  %v6198_v14 = vsel %vm2508_vm3, %v14689_v53, 0.0 }
 0xa21   : > { %12566 = vpow2.f32 %v6166_v0 }
 0xa22   : > { %v6164_v11 = vmul.f32 1.442695, %v6137_v12 }
 0xa23   : > { %v14694_v46 = vpop.eup %12562 }
 0xa24   : > { %12568 = vpow2.f32 %v6164_v11  ;;  %6199 = vadd.xlane.f32.xlu1 %v6198_v14  ;;  %v6204_v4 = vsel %vm2508_vm3, %v14694_v46, 0.0  ;;  %v6122_v12 = vpop.xlane.xlu0 %6121 }
 0xa25   : > { %v6140_v11 = vsub.f32 %v14609_v16, %v6122_v12 }
 0xa26   : > { %v14696_v61 = vpop.eup %12564 }
 0xa27   : > { %v6119_v25 = vpop.xlane.xlu1 %6118  ;;  %v6201_v60 = vsel %vm2508_vm3, %v14696_v61, 0.0  ;;  %v6170_v14 = vmul.f32 1.442695, %v6140_v11 }
 0xa28   : > { %v6139_v58 = vsub.f32 %v14613_v21, %v6119_v25  ;;  %6205 = vadd.xlane.f32.xlu1 %v6204_v4  ;;  %6202 = vadd.xlane.f32.xlu0 %v6201_v60 }
 0xa2a   : > { %v6168_v62 = vmul.f32 1.442695, %v6139_v58 }
 0xa2b   : > { %v14703_v54 = vpop.eup %12566  ;;  %v14720_v25 = vpop.permute.xlu1 %6894 }
 0xa2c   : > { %12570 = vpow2.f32 %v6168_v62  ;;  %v6210_v30 = vsel %vm2508_vm3, %v14703_v54, 0.0 }
 0xa2d   : > { %6211 = vadd.xlane.f32.xlu1 %v6210_v30  ;;  %12572 = vpow2.f32 %v6170_v14  ;;  %v16251_v14 = vld [vmem:[#allocation17_spill] sm:$0xff] }
 0xa2e   : > { %v14707_v0 = vpop.eup %12568 }
 0xa2f   : > { %v6207_v44 = vsel %vm2508_vm3, %v14707_v0, 0.0 }
 0xa30   : > { %6208 = vadd.xlane.f32.xlu0 %v6207_v44 }
 0xa36   : > { %v14711_v19 = vpop.eup %12570 }
 0xa37   : > { %v6213_v21 = vsel %vm2508_vm3, %v14711_v19, 0.0  ;;  %v14723_v58 = vpop.eup %12572 }
 0xa38   : > { %6214 = vadd.xlane.f32.xlu0 %v6213_v21  ;;  %v6216_v30 = vsel %vm2508_vm3, %v14723_v58, 0.0  ;;  %v16250_v21 = vld [vmem:[#allocation60_spill] sm:$0xff] }
 0xa39   : > { %v6612_v12 = vsel %vm2704_vm2, %v16250_v21, 0 }
 0xa3e   : > { %6990 = vrot.lane.b32.xlu1 %v13932_v26, %s12780_s25 }
 0xa4e   : > { %6942 = vrot.lane.b32.xlu0 %v13871_v3, %s12780_s25 }
 0xa5c   : > { %v6125_v4 = vpop.xlane.xlu1 %6124 }
 0xa5d   : > { %v6141_v60 = vsub.f32 %v14621_v52, %v6125_v4  ;;  %v14743_v52 = vpop.permute.xlu0 %6846 }
 0xa5f   : > { %v6172_v62 = vmul.f32 1.442695, %v6141_v60  ;;  %v16252_v60 = vld [vmem:[#allocation31_spill] sm:$0xff] }
 0xa61   : > { %12574 = vpow2.f32 %v6172_v62  ;;  %v6660_v62 = vsel %vm2704_vm2, %v14639_v31, 0  ;;  %v16255_v31 = vld [vmem:[#allocation62_spill] sm:$0xff] }
 0xa62   : > { %6217 = vadd.xlane.f32.xlu1 %v6216_v30 }
 0xa6b   : > { %v14727_v44 = vpop.eup %12574 }
 0xa6c   : > { %v6219_v16 = vsel %vm2508_vm3, %v14727_v44, 0.0 }
 0xa6d   : > { %6220 = vadd.xlane.f32.xlu0 %v6219_v16 }
 0xa73   : > { %7090 = vrot.lane.b32.xlu1 %v13285_v42, %s12781_s6 }
 0xa77   : > { %7088 = vrot.lane.b32.xlu1 %v13317_v22, %s12781_s6 }
 0xa7b   : > { %7190 = vrot.lane.b32.xlu1 %v13346_v24, %s12781_s6 }
 0xa7f   : > { %7188 = vrot.lane.b32.xlu1 %v13390_v51, %s12781_s6 }
 0xa83   : > { %7040 = vrot.lane.b32.xlu0 %v13266_v28, %s12781_s6  ;;  %7290 = vrot.lane.b32.xlu1 %v13387_v63, %s12781_s6 }
 0xa87   : > { %7038 = vrot.lane.b32.xlu0 %v13289_v10, %s12781_s6  ;;  %7288 = vrot.lane.b32.xlu1 %v13417_v27, %s12781_s6 }
 0xa8a   : > { %v6176_v42 = vpop.xlane.xlu0 %6175 }
 0xa8b   : > { %12576 = vrcp.f32 %v6176_v42  ;;  %7140 = vrot.lane.b32.xlu0 %v13312_v1, %s12781_s6  ;;  %7390 = vrot.lane.b32.xlu1 %v13414_v33, %s12781_s6  ;;  %v16253_v42 = vld [vmem:[#allocation18_spill] sm:$0xff] }
 0xa8f   : > { %7138 = vrot.lane.b32.xlu0 %v13351_v36, %s12781_s6  ;;  %7388 = vrot.lane.b32.xlu1 %v13445_v9, %s12781_s6  ;;  %v6372_v36 = vsel %vm2704_vm2, %v14627_v17, 0  ;;  %v6468_v9 = vsel %vm2704_vm2, %v14631_v23, 0  ;;  %v6516_v17 = vsel %vm2704_vm2, %v14629_v56, 0  ;;  %v16247_v56 = vld [vmem:[#allocation61_spill] sm:$0xff] }
 0xa92   : > { %v6182_v28 = vpop.xlane.xlu0 %6181 }
 0xa93   : > { %12578 = vrcp.f32 %v6182_v28  ;;  %7240 = vrot.lane.b32.xlu0 %v13319_v29, %s12781_s6  ;;  %7490 = vrot.lane.b32.xlu1 %v16168_v32, %s12781_s6 }
 0xa95   : > { %v12577_v10 = vpop.eup %12576  ;;  %v6179_v22 = vpop.xlane.xlu1 %6178 }
 0xa96   : > { %12580 = vrcp.f32 %v6179_v22  ;;  %v6238_v1 = vmul.f32 %v12577_v10, %v14648_v34  ;;  %v6564_v34 = vsel %vm2704_vm2, %v16247_v56, 0  ;;  %v16254_v22 = vld [vmem:[#allocation32_spill] sm:$0xff] }
 0xa97   : > { %7238 = vrot.lane.b32.xlu0 %v13353_v37, %s12781_s6  ;;  %7488 = vrot.lane.b32.xlu1 %v16172_v55, %s12781_s6 }
 0xa98   : > { %v6254_v24 = vpack.c.bf16 %v6238_v1, %v6238_v1  ;;  %v6708_v1 = vsel %vm2704_vm2, %v16255_v31, 0 }
 0xa9a   : > { %11737 = vmatmul.mubr.msk.bf16.vlgmr.msra.gmra.mrb[184].mxu0 %vm2508_vm3, %v6254_v24 }
 0xa9b   : > { %11747 = vmatpush3.bf16.msra.mxu0 %v6372_v36  ;;  %7340 = vrot.lane.b32.xlu0 %v13355_v38, %s12781_s6  ;;  %v16256_v36 = vld [vmem:[#allocation22_spill] sm:$0xff] }
 0xa9c   : > { %7590 = vrot.lane.b32.xlu1 %v16173_v57, %s12781_s6  ;;  %11748 = vmatprep.mubr.msk.bf16.mxu0 %vm12778_vm0, %v16160_v43 }
 0xa9d   : > { %v12579_v29 = vpop.eup %12578  ;;  %v6185_v37 = vpop.xlane.xlu1 %6184  ;;  %11758 = vmatprep.subr.bf16.mxu0 %v16160_v43 }
 0xa9e   : > { %12582 = vrcp.f32 %v6185_v37  ;;  %v6240_v63 = vmul.f32 %v12579_v29, %v14653_v50 }
 0xa9f   : > { %7338 = vrot.lane.b32.xlu0 %v13392_v6, %s12781_s6  ;;  %v6420_v6 = vsel %vm2704_vm2, %v14625_v59, 0 }
 0xaa0   : > { %v12581_v51 = vpop.eup %12580  ;;  %7588 = vrot.lane.b32.xlu1 %v16174_v47, %s12781_s6  ;;  %v6256_v38 = vpack.c.bf16 %v6240_v63, %v6240_v63  ;;  %v16257_v63 = vld [vmem:[#allocation33_spill] sm:$0xff] }
 0xaa1   : > { %v6188_v33 = vpop.xlane.xlu0 %6187  ;;  %v6239_v27 = vmul.f32 %v12581_v51, %v14658_v7 }
 0xaa2   : > { %12584 = vrcp.f32 %v6188_v33  ;;  %11749 = vmatmul.mubr.msk.bf16.vlgmr.msra.gmra.mrb[188].mxu0 %vm2508_vm3, %v6256_v38  ;;  %v16258_v38 = vld [vmem:[#allocation63_spill] sm:$0xff] }
 0xaa3   : > { %11759 = vmatpush3.bf16.msra.mxu0 %v6468_v9  ;;  %7440 = vrot.lane.b32.xlu0 %v13394_v8, %s12781_s6  ;;  %v6255_v32 = vpack.c.bf16 %v6239_v27, %v6239_v27  ;;  %v6756_v33 = vsel %vm2704_vm2, %v16258_v38, 0  ;;  %v16259_v27 = vld [vmem:[#allocation19_spill] sm:$0xff] }
 0xaa4   : > { %7690 = vrot.lane.b32.xlu1 %v16175_v39, %s12781_s6  ;;  %11760 = vmatprep.mubr.msk.bf16.mxu0 %vm12778_vm0, %v16160_v43 }
 0xaa5   : > { %11743 = vmatmul.mubr.msk.bf16.vlgmr.msra.gmra.mrb[184].mxu1 %vm2508_vm3, %v6255_v32  ;;  %v6191_v55 = vpop.xlane.xlu1 %6190  ;;  %11770 = vmatprep.subr.bf16.mxu0 %v16160_v43 }
 0xaa6   : > { %11753 = vmatpush3.bf16.msra.mxu1 %v6420_v6  ;;  %12586 = vrcp.f32 %v6191_v55  ;;  %v6194_v57 = vpop.xlane.xlu0 %6193  ;;  %11754 = vmatprep.mubr.msk.bf16.mxu1 %vm12778_vm0, %v16160_v43  ;;  %v6804_v55 = vsel %vm2704_vm2, %v14644_v15, 0 }
 0xaa7   : > { %12588 = vrcp.f32 %v6194_v57  ;;  %7438 = vrot.lane.b32.xlu0 %v13419_v2, %s12781_s6  ;;  %11764 = vmatprep.subr.bf16.mxu1 %v16160_v43 }
 0xaa8   : > { %v12583_v8 = vpop.eup %12582  ;;  %7688 = vrot.lane.b32.xlu1 %v16176_v18, %s12781_s6 }
 0xaa9   : > { %v6241_v47 = vmul.f32 %v12583_v8, %v14664_v40 }
 0xaab   : > { %7540 = vrot.lane.b32.xlu0 %v13421_v45, %s12781_s6  ;;  %v6257_v39 = vpack.c.bf16 %v6241_v47, %v6241_v47 }
 0xaac   : > { %v12585_v59 = vpop.eup %12584  ;;  %7790 = vrot.lane.b32.xlu1 %v16177_v48, %s12781_s6 }
 0xaad   : > { %11755 = vmatmul.mubr.msk.bf16.vlgmr.msra.gmra.mrb[188].mxu1 %vm2508_vm3, %v6257_v39  ;;  %v6197_v2 = vpop.xlane.xlu1 %6196  ;;  %v6242_v23 = vmul.f32 %v12585_v59, %v14670_v35  ;;  %v16249_v35 = vld [vmem:[#allocation25_spill] sm:$0xff]  ;;  %v16261_v39 = vld [vmem:[#allocation28_spill] sm:$0xff] }
 0xaae   : > { %11765 = vmatpush3.bf16.msra.mxu1 %v6516_v17  ;;  %12590 = vrcp.f32 %v6197_v2  ;;  %11766 = vmatprep.mubr.msk.bf16.mxu1 %vm12778_vm0, %v16160_v43  ;;  %v6900_v2 = vsel %vm2704_vm2, %v14720_v25, 0 }
 0xaaf   : > { %7538 = vrot.lane.b32.xlu0 %v13447_v13, %s12781_s6  ;;  %v6258_v45 = vpack.c.bf16 %v6242_v23, %v6242_v23  ;;  %11776 = vmatprep.subr.bf16.mxu1 %v16160_v43  ;;  %v16248_v13 = vld [vmem:[#allocation14_spill] sm:$0xff] }
 0xab0   : > { %v12587_v18 = vpop.eup %12586  ;;  %7788 = vrot.lane.b32.xlu1 %v16178_v41, %s12781_s6 }
 0xab1   : > { %v12589_v48 = vpop.eup %12588  ;;  %v6200_v50 = vpop.xlane.xlu1 %6199  ;;  %11761 = vmatmul.mubr.msk.bf16.vlgmr.msra.gmra.mrb[192].mxu0 %vm2508_vm3, %v6258_v45  ;;  %v6243_v7 = vmul.f32 %v12587_v18, %v14675_v5 }
 0xab2   : > { %12592 = vrcp.f32 %v6200_v50  ;;  %11771 = vmatpush3.bf16.msra.mxu0 %v6564_v34  ;;  %11772 = vmatprep.mubr.msk.bf16.mxu0 %vm12778_vm0, %v16160_v43  ;;  %v6244_v41 = vmul.f32 %v12589_v48, %v14677_v20 }
 0xab3   : > { %7640 = vrot.lane.b32.xlu0 %v16248_v13, %s12781_s6  ;;  %v6259_v40 = vpack.c.bf16 %v6243_v7, %v6243_v7  ;;  %11782 = vmatprep.subr.bf16.mxu0 %v16160_v43 }
 0xab4   : > { %8094 = vrot.lane.b32.xlu1 %v16249_v35, %s12781_s6  ;;  %v6260_v20 = vpack.c.bf16 %v6244_v41, %v6244_v41 }
 0xab5   : > { %11767 = vmatmul.mubr.msk.bf16.vlgmr.msra.gmra.mrb[192].mxu1 %vm2508_vm3, %v6259_v40  ;;  %v6206_v5 = vpop.xlane.xlu1 %6205  ;;  %v6203_v11 = vpop.xlane.xlu0 %6202 }
 0xab6   : > { %11777 = vmatpush3.bf16.msra.mxu1 %v6612_v12  ;;  %12594 = vrcp.f32 %v6206_v5  ;;  %11778 = vmatprep.mubr.msk.bf16.mxu1 %vm12778_vm0, %v16160_v43 }
 0xab7   : > { %12596 = vrcp.f32 %v6203_v11  ;;  %7638 = vrot.lane.b32.xlu0 %v16251_v14, %s12781_s6  ;;  %11788 = vmatprep.subr.bf16.mxu1 %v16160_v43 }
 0xab8   : > { %v12591_v4 = vpop.eup %12590  ;;  %8190 = vrot.lane.b32.xlu1 %v16252_v60, %s12781_s6 }
 0xab9   : > { %11773 = vmatmul.mubr.msk.bf16.vlgmr.msra.gmra.mrb[196].mxu0 %vm2508_vm3, %v6260_v20  ;;  %v6245_v30 = vmul.f32 %v12591_v4, %v14685_v49 }
 0xaba   : > { %11783 = vmatpush3.bf16.msra.mxu0 %v6660_v62  ;;  %v6212_v16 = vpop.xlane.xlu1 %6211  ;;  %11784 = vmatprep.mubr.msk.bf16.mxu0 %vm12778_vm0, %v16160_v43 }
 0xabb   : > { %7740 = vrot.lane.b32.xlu0 %v16253_v42, %s12781_s6  ;;  %v6261_v28 = vpack.c.bf16 %v6245_v30, %v6245_v30  ;;  %11794 = vmatprep.subr.bf16.mxu0 %v16160_v43  ;;  %12598 = vrcp.f32 %v6212_v16 }
 0xabc   : > { %v12593_v10 = vpop.eup %12592  ;;  %8286 = vrot.lane.b32.xlu1 %v16254_v22, %s12781_s6 }
 0xabd   : > { %11779 = vmatmul.mubr.msk.bf16.vlgmr.msra.gmra.mrb[196].mxu1 %vm2508_vm3, %v6261_v28  ;;  %v6209_v49 = vpop.xlane.xlu0 %6208  ;;  %v6246_v24 = vmul.f32 %v12593_v10, %v14689_v53 }
 0xabe   : > { %11789 = vmatpush3.bf16.msra.mxu1 %v6708_v1  ;;  %12600 = vrcp.f32 %v6209_v49  ;;  %11790 = vmatprep.mubr.msk.bf16.mxu1 %vm12778_vm0, %v16160_v43  ;;  %v6991_v25 = vpop.permute.xlu1 %6990 }
 0xabf   : > { %7738 = vrot.lane.b32.xlu0 %v16256_v36, %s12781_s6  ;;  %v6262_v29 = vpack.c.bf16 %v6246_v24, %v6246_v24  ;;  %11800 = vmatprep.subr.bf16.mxu1 %v16160_v43  ;;  %v6996_v56 = vsel %vm2704_vm2, %v6991_v25, 0 }
 0xac0   : > { %v12595_v37 = vpop.eup %12594  ;;  %8382 = vrot.lane.b32.xlu1 %v16257_v63, %s12781_s6 }
 0xac1   : > { %v12597_v51 = vpop.eup %12596  ;;  %11785 = vmatmul.mubr.msk.bf16.vlgmr.msra.gmra.mrb[200].mxu0 %vm2508_vm3, %v6262_v29  ;;  %v6248_v9 = vmul.f32 %v12595_v37, %v14694_v46  ;;  %v6852_v46 = vsel %vm2704_vm2, %v14743_v52, 0 }
 0xac2   : > { %11795 = vmatpush3.bf16.msra.mxu0 %v6756_v33  ;;  %v6247_v53 = vmul.f32 %v12597_v51, %v14696_v61  ;;  %11796 = vmatprep.mubr.msk.bf16.mxu0 %vm12778_vm0, %v16160_v43  ;;  %v16260_v61 = vld [vmem:[#allocation27_spill] sm:$0xff] }
 0xac3   : > { %8046 = vrot.lane.b32.xlu0 %v16259_v27, %s12781_s6  ;;  %11806 = vmatprep.subr.bf16.mxu0 %v16160_v43  ;;  %v6264_v8 = vpack.c.bf16 %v6248_v9, %v6248_v9 }
 0xac4   : > { %v6263_v32 = vpack.c.bf16 %v6247_v53, %v6247_v53 }
 0xac5   : > { %v6215_v6 = vpop.xlane.xlu0 %6214  ;;  %v12599_v57 = vpop.eup %12598 }
 0xac6   : > { %11791 = vmatmul.mubr.msk.bf16.vlgmr.msra.gmra.mrb[200].mxu1 %vm2508_vm3, %v6263_v32  ;;  %12602 = vrcp.f32 %v6215_v6  ;;  %v6250_v17 = vmul.f32 %v12599_v57, %v14703_v54 }
 0xac7   : > { %11801 = vmatpush3.bf16.msra.mxu1 %v6804_v55  ;;  %8142 = vrot.lane.b32.xlu0 %v16260_v61, %s12781_s6 }
 0xac8   : > { %v12601_v47 = vpop.eup %12600  ;;  %11802 = vmatprep.mubr.msk.bf16.mxu1 %vm12778_vm0, %v16160_v43  ;;  %11812 = vmatprep.subr.bf16.mxu1 %v16160_v43  ;;  %v6266_v23 = vpack.c.bf16 %v6250_v17, %v6250_v17 }
 0xac9   : > { %11797 = vmatmul.mubr.msk.bf16.vlgmr.msra.gmra.mrb[204].mxu0 %vm2508_vm3, %v6264_v8  ;;  %v6249_v15 = vmul.f32 %v12601_v47, %v14707_v0  ;;  %v6943_v52 = vpop.permute.xlu0 %6942  ;;  %v16262_v0 = vld [vmem:[#allocation29_spill] sm:$0xff] }
 0xaca   : > { %11807 = vmatpush3.bf16.msra.mxu0 %v6852_v46  ;;  %11808 = vmatprep.mubr.msk.bf16.mxu0 %vm12778_vm0, %v16160_v43  ;;  %v6948_v18 = vsel %vm2704_vm2, %v6943_v52, 0 }
 0xacb   : > { %8238 = vrot.lane.b32.xlu0 %v16261_v39, %s12781_s6  ;;  %v6265_v59 = vpack.c.bf16 %v6249_v15, %v6249_v15  ;;  %11818 = vmatprep.subr.bf16.mxu0 %v16160_v43 }
 0xace   : > { %11803 = vmatmul.mubr.msk.bf16.vlgmr.msra.gmra.mrb[204].mxu1 %vm2508_vm3, %v6265_v59 }
 0xacf   : > { %11813 = vmatpush3.bf16.msra.mxu1 %v6900_v2  ;;  %8334 = vrot.lane.b32.xlu0 %v16262_v0, %s12781_s6 }
 0xad0   : > { %v12603_v45 = vpop.eup %12602  ;;  %11814 = vmatprep.mubr.msk.bf16.mxu1 %vm12778_vm0, %v16160_v43  ;;  %11824 = vmatprep.subr.bf16.mxu1 %v16160_v43 }
 0xad1   : > { %11809 = vmatmul.mubr.msk.bf16.vlgmr.msra.gmra.mrb[208].mxu0 %vm2508_vm3, %v6266_v23  ;;  %v6251_v54 = vmul.f32 %v12603_v45, %v14711_v19 }
 0xad2   : > { %11819 = vmatpush3.bf16.msra.mxu0 %v6948_v18  ;;  %11820 = vmatprep.mubr.msk.bf16.mxu0 %vm12778_vm0, %v16160_v43 }
 0xad3   : > { %v6267_v48 = vpack.c.bf16 %v6251_v54, %v6251_v54  ;;  %11830 = vmatprep.subr.bf16.mxu0 %v16160_v43 }
 0xad6   : > { %11815 = vmatmul.mubr.msk.bf16.vlgmr.msra.gmra.mrb[208].mxu1 %vm2508_vm3, %v6267_v48 }
 0xad7   : > { %11825 = vmatpush3.bf16.msra.mxu1 %v6996_v56  ;;  %11826 = vmatprep.mubr.msk.bf16.mxu1 %vm12778_vm0, %v16160_v43 }
 0xad8   : > { %11836 = vmatprep.subr.bf16.mxu1 %v16160_v43 }
 0xaef   : > { %v6218_v34 = vpop.xlane.xlu1 %6217 }
 0xaf0   : > { %12604 = vrcp.f32 %v6218_v34 }
 0xaf3   : > { %v7091_v19 = vpop.permute.xlu1 %7090 }
 0xaf4   : > { %v7096_v16 = vsel %vm1755_vm1, %v7091_v19, 0 }
 0xaf7   : > { %v7089_v50 = vpop.permute.xlu1 %7088 }
 0xafa   : > { %v12605_v7 = vpop.eup %12604  ;;  %v6221_v13 = vpop.xlane.xlu0 %6220 }
 0xafb   : > { %12606 = vrcp.f32 %v6221_v13  ;;  %v7191_v40 = vpop.permute.xlu1 %7190  ;;  %v6252_v41 = vmul.f32 %v12605_v7, %v14723_v58 }
 0xafc   : > { %v7196_v31 = vsel %vm1755_vm1, %v7191_v40, 0 }
 0xafd   : > { %v6268_v35 = vpack.c.bf16 %v6252_v41, %v6252_v41 }
 0xafe   : > { %v7041_v21 = vpop.permute.xlu0 %7040 }
 0xaff   : > { %v7046_v12 = vsel %vm1755_vm1, %v7041_v21, 0  ;;  %v7189_v5 = vpop.permute.xlu1 %7188  ;;  %11821 = vmatmul.mubr.msk.bf16.vlgmr.msra.gmra.mrb[212].mxu0 %vm2508_vm3, %v6268_v35 }
 0xb00   : > { %11831 = vmatpush3.bf16.xpose.msra.mxu0 %v7046_v12  ;;  %11832 = vmatprep.mubr.msk.bf16.mxu0 %vm12778_vm0, %v16160_v43 }
 0xb01   : > { %11842 = vmatprep.subr.bf16.mxu0 %v16160_v43 }
 0xb02   : > { %v7039_v11 = vpop.permute.xlu0 %7038 }
 0xb03   : > { %v7291_v14 = vpop.permute.xlu1 %7290 }
 0xb04   : > { %v7296_v29 = vsel %vm1755_vm1, %v7291_v14, 0 }
 0xb05   : > { %v12607_v20 = vpop.eup %12606 }
 0xb06   : > { %v7141_v4 = vpop.permute.xlu0 %7140  ;;  %v6253_v60 = vmul.f32 %v12607_v20, %v14727_v44 }
 0xb07   : > { %v7146_v58 = vsel %vm1755_vm1, %v7141_v4, 0  ;;  %v7289_v62 = vpop.permute.xlu1 %7288  ;;  %11833 = vmatmul.mubr.msk.bf16.vlgmr.msra.gmra.mrb[216].mxu0 %vm1755_vm1, %v7039_v11 }
 0xb08   : > { %11843 = vmatpush3.bf16.xpose.msra.mxu0 %v7146_v58  ;;  %v6269_v30 = vpack.c.bf16 %v6253_v60, %v6253_v60  ;;  %11844 = vmatprep.mubr.msk.bf16.mxu0 %vm12778_vm0, %v16160_v43 }
 0xb09   : > { %11854 = vmatprep.subr.bf16.mxu0 %v16160_v43 }
 0xb0a   : > { %11827 = vmatmul.mubr.msk.bf16.vlgmr.msra.gmra.mrb[212].mxu1 %vm2508_vm3, %v6269_v30  ;;  %v7139_v42 = vpop.permute.xlu0 %7138 }
 0xb0b   : > { %11837 = vmatpush3.bf16.xpose.msra.mxu1 %v7096_v16  ;;  %v7391_v28 = vpop.permute.xlu1 %7390  ;;  %11838 = vmatprep.mubr.msk.bf16.mxu1 %vm12778_vm0, %v16160_v43 }
 0xb0c   : > { %11848 = vmatprep.subr.bf16.mxu1 %v16160_v43  ;;  %v7396_v33 = vsel %vm1755_vm1, %v7391_v28, 0 }
 0xb0e   : > { %v7241_v44 = vpop.permute.xlu0 %7240 }
 0xb0f   : > { %v7246_v10 = vsel %vm1755_vm1, %v7241_v44, 0  ;;  %11845 = vmatmul.mubr.msk.bf16.vlgmr.msra.gmra.mrb[220].mxu0 %vm1755_vm1, %v7139_v42  ;;  %v7389_v22 = vpop.permute.xlu1 %7388 }
 0xb10   : > { %11855 = vmatpush3.bf16.xpose.msra.mxu0 %v7246_v10  ;;  %11856 = vmatprep.mubr.msk.bf16.mxu0 %vm12778_vm0, %v16160_v43 }
 0xb11   : > { %11866 = vmatprep.subr.bf16.mxu0 %v16160_v43 }
 0xb12   : > { %11839 = vmatmul.mubr.msk.bf16.vlgmr.msra.gmra.mrb[216].mxu1 %vm1755_vm1, %v7089_v50  ;;  %v7239_v1 = vpop.permute.xlu0 %7238 }
 0xb13   : > { %11849 = vmatpush3.bf16.xpose.msra.mxu1 %v7196_v31  ;;  %11850 = vmatprep.mubr.msk.bf16.mxu1 %vm12778_vm0, %v16160_v43  ;;  %v7491_v24 = vpop.permute.xlu1 %7490 }
 0xb14   : > { %11860 = vmatprep.subr.bf16.mxu1 %v16160_v43  ;;  %v7496_v55 = vsel %vm1755_vm1, %v7491_v24, 0 }
 0xb16   : > { %v7341_v49 = vpop.permute.xlu0 %7340 }
 0xb17   : > { %v7346_v36 = vsel %vm1755_vm1, %v7341_v49, 0  ;;  %11857 = vmatmul.mubr.msk.bf16.vlgmr.msra.gmra.mrb[224].mxu0 %vm1755_vm1, %v7239_v1  ;;  %v7489_v63 = vpop.permute.xlu1 %7488 }
 0xb18   : > { %11867 = vmatpush3.bf16.xpose.msra.mxu0 %v7346_v36  ;;  %11868 = vmatprep.mubr.msk.bf16.mxu0 %vm12778_vm0, %v16160_v43 }
 0xb19   : > { %11878 = vmatprep.subr.bf16.mxu0 %v16160_v43 }
 0xb1a   : > { %11851 = vmatmul.mubr.msk.bf16.vlgmr.msra.gmra.mrb[220].mxu1 %vm1755_vm1, %v7189_v5  ;;  %v7339_v37 = vpop.permute.xlu0 %7338 }
 0xb1b   : > { %11861 = vmatpush3.bf16.xpose.msra.mxu1 %v7296_v29  ;;  %11862 = vmatprep.mubr.msk.bf16.mxu1 %vm12778_vm0, %v16160_v43  ;;  %v7591_v27 = vpop.permute.xlu1 %7590 }
 0xb1c   : > { %11872 = vmatprep.subr.bf16.mxu1 %v16160_v43  ;;  %v7596_v46 = vsel %vm1755_vm1, %v7591_v27, 0 }
 0xb1e   : > { %v7441_v51 = vpop.permute.xlu0 %7440 }
 0xb1f   : > { %v7446_v38 = vsel %vm1755_vm1, %v7441_v51, 0  ;;  %11869 = vmatmul.mubr.msk.bf16.vlgmr.msra.gmra.mrb[228].mxu0 %vm1755_vm1, %v7339_v37  ;;  %v7589_v6 = vpop.permute.xlu1 %7588 }
 0xb20   : > { %11879 = vmatpush3.bf16.xpose.msra.mxu0 %v7446_v38  ;;  %11880 = vmatprep.mubr.msk.bf16.mxu0 %vm12778_vm0, %v16160_v43 }
 0xb21   : > { %11890 = vmatprep.subr.bf16.mxu0 %v16160_v43 }
 0xb22   : > { %11863 = vmatmul.mubr.msk.bf16.vlgmr.msra.gmra.mrb[224].mxu1 %vm1755_vm1, %v7289_v62  ;;  %v7439_v53 = vpop.permute.xlu0 %7438 }
 0xb23   : > { %11873 = vmatpush3.bf16.xpose.msra.mxu1 %v7396_v33  ;;  %11874 = vmatprep.mubr.msk.bf16.mxu1 %vm12778_vm0, %v16160_v43  ;;  %v7691_v8 = vpop.permute.xlu1 %7690 }
 0xb24   : > { %11884 = vmatprep.subr.bf16.mxu1 %v16160_v43  ;;  %v7696_v2 = vsel %vm1755_vm1, %v7691_v8, 0 }
 0xb26   : > { %v7541_v9 = vpop.permute.xlu0 %7540 }
 0xb27   : > { %v7546_v32 = vsel %vm1755_vm1, %v7541_v9, 0  ;;  %11881 = vmatmul.mubr.msk.bf16.vlgmr.msra.gmra.mrb[232].mxu0 %vm1755_vm1, %v7439_v53  ;;  %v7689_v39 = vpop.permute.xlu1 %7688 }
 0xb28   : > { %11891 = vmatpush3.bf16.xpose.msra.mxu0 %v7546_v32  ;;  %11892 = vmatprep.mubr.msk.bf16.mxu0 %vm12778_vm0, %v16160_v43 }
 0xb29   : > { %11902 = vmatprep.subr.bf16.mxu0 %v16160_v43 }
 0xb2a   : > { %11875 = vmatmul.mubr.msk.bf16.vlgmr.msra.gmra.mrb[228].mxu1 %vm1755_vm1, %v7389_v22  ;;  %v7539_v57 = vpop.permute.xlu0 %7538 }
 0xb2b   : > { %11885 = vmatpush3.bf16.xpose.msra.mxu1 %v7496_v55  ;;  %11886 = vmatprep.mubr.msk.bf16.mxu1 %vm12778_vm0, %v16160_v43  ;;  %v7791_v0 = vpop.permute.xlu1 %7790 }
 0xb2c   : > { %11896 = vmatprep.subr.bf16.mxu1 %v16160_v43  ;;  %v7796_v54 = vsel %vm1755_vm1, %v7791_v0, 0 }
 0xb2e   : > { %v7641_v61 = vpop.permute.xlu0 %7640 }
 0xb2f   : > { %v7646_v47 = vsel %vm1755_vm1, %v7641_v61, 0  ;;  %11893 = vmatmul.mubr.msk.bf16.vlgmr.msra.gmra.mrb[236].mxu0 %vm1755_vm1, %v7539_v57  ;;  %v7789_v18 = vpop.permute.xlu1 %7788 }
 0xb30   : > { %11903 = vmatpush3.bf16.xpose.msra.mxu0 %v7646_v47  ;;  %11904 = vmatprep.mubr.msk.bf16.mxu0 %vm12778_vm0, %v16160_v43 }
 0xb31   : > { %11914 = vmatprep.subr.bf16.mxu0 %v16160_v43 }
 0xb32   : > { %11887 = vmatmul.mubr.msk.bf16.vlgmr.msra.gmra.mrb[232].mxu1 %vm1755_vm1, %v7489_v63  ;;  %v7639_v15 = vpop.permute.xlu0 %7638 }
 0xb33   : > { %11897 = vmatpush3.bf16.xpose.msra.mxu1 %v7596_v46  ;;  %11898 = vmatprep.mubr.msk.bf16.mxu1 %vm12778_vm0, %v16160_v43  ;;  %v8095_v25 = vpop.permute.xlu1 %8094 }
 0xb34   : > { %11908 = vmatprep.subr.bf16.mxu1 %v16160_v43  ;;  %v8100_v48 = vsel %vm2704_vm2, %v8095_v25, 0 }
 0xb36   : > { %v7741_v59 = vpop.permute.xlu0 %7740 }
 0xb37   : > { %v7746_v17 = vsel %vm1755_vm1, %v7741_v59, 0  ;;  %11905 = vmatmul.mubr.msk.bf16.vlgmr.msra.gmra.mrb[240].mxu0 %vm1755_vm1, %v7639_v15 }
 0xb38   : > { %11915 = vmatpush3.bf16.xpose.msra.mxu0 %v7746_v17  ;;  %11916 = vmatprep.mubr.msk.bf16.mxu0 %vm12778_vm0, %v16160_v43 }
 0xb39   : > { %11926 = vmatprep.subr.bf16.mxu0 %v16160_v43 }
 0xb3a   : > { %11899 = vmatmul.mubr.msk.bf16.vlgmr.msra.gmra.mrb[236].mxu1 %vm1755_vm1, %v7589_v6  ;;  %v7739_v52 = vpop.permute.xlu0 %7738 }
 0xb3b   : > { %11909 = vmatpush3.bf16.xpose.msra.mxu1 %v7696_v2  ;;  %11910 = vmatprep.mubr.msk.bf16.mxu1 %vm12778_vm0, %v16160_v43 }
 0xb3c   : > { %11920 = vmatprep.subr.bf16.mxu1 %v16160_v43 }
 0xb3e   : > { %v8047_v23 = vpop.permute.xlu0 %8046 }
 0xb3f   : > { %v8052_v45 = vsel %vm2704_vm2, %v8047_v23, 0  ;;  %11917 = vmatmul.mubr.msk.bf16.vlgmr.msra.gmra.mrb[244].mxu0 %vm1755_vm1, %v7739_v52 }
 0xb40   : > { %11927 = vmatpush3.bf16.msra.mxu0 %v8052_v45  ;;  %11928 = vmatprep.mubr.msk.bf16.mxu0 %vm12778_vm0, %v16160_v43 }
 0xb41   : > { %11938 = vmatprep.subr.bf16.mxu0 %v16160_v43 }
 0xb42   : > { %11911 = vmatmul.mubr.msk.bf16.vlgmr.msra.gmra.mrb[240].mxu1 %vm1755_vm1, %v7689_v39 }
 0xb43   : > { %11921 = vmatpush3.bf16.xpose.msra.mxu1 %v7796_v54  ;;  %11922 = vmatprep.mubr.msk.bf16.mxu1 %vm12778_vm0, %v16160_v43 }
 0xb44   : > { %11932 = vmatprep.subr.bf16.mxu1 %v16160_v43 }
 0xb4a   : > { %11923 = vmatmul.mubr.msk.bf16.vlgmr.msra.gmra.mrb[244].mxu1 %vm1755_vm1, %v7789_v18 }
 0xb4b   : > { %11933 = vmatpush3.bf16.msra.mxu1 %v8100_v48  ;;  %11934 = vmatprep.mubr.msk.bf16.mxu1 %vm12778_vm0, %v16160_v43 }
 0xb4c   : > { %11944 = vmatprep.subr.bf16.mxu1 %v16160_v43 }
 0xb6d   : > { %v15001_v56 = vpop.f32.mrb[184].mxu0 }
 0xb6e   : > { %v11738_v34 = vpop.f32.mrb[185].mxu0 }
 0xb6f   : > { %v6315_v19 = vpop.f32.mrb[186].mxu0 }
 0xb70   : > { %v11739_v50 = vpop.f32.mrb[187].mxu0 }
 0xb75   : > { %v15003_v7 = vpop.f32.mrb[188].mxu0 }
 0xb76   : > { %v11750_v13 = vpop.f32.mrb[189].mxu0 }
 0xb77   : > { %v6411_v40 = vpop.f32.mrb[190].mxu0 }
 0xb78   : > { %v15005_v41 = vpop.f32.mrb[184].mxu1  ;;  %v11751_v35 = vpop.f32.mrb[191].mxu0 }
 0xb79   : > { %v12194_v21 = vpack.i.bf16 %v15005_v41, %v15001_v56  ;;  %v11744_v12 = vpop.f32.mrb[185].mxu1 }
 0xb7a   : > { %v6363_v5 = vpop.f32.mrb[186].mxu1 }
 0xb7b   : > { %v11745_v11 = vpop.f32.mrb[187].mxu1 }
 0xb80   : > { %v15009_v14 = vpop.f32.mrb[188].mxu1 }
 0xb81   : > { %v12199_v20 = vpack.i.bf16 %v15009_v14, %v15003_v7  ;;  %v11756_v4 = vpop.f32.mrb[189].mxu1 }
 0xb82   : > { %v6459_v60 = vpop.f32.mrb[190].mxu1 }
 0xb83   : > { %v11757_v58 = vpop.f32.mrb[191].mxu1 }
 0xb84   : > { %v15013_v62 = vpop.f32.mrb[192].mxu0 }
 0xb85   : > { %v11762_v30 = vpop.f32.mrb[193].mxu0 }
 0xb86   : > { %v6507_v16 = vpop.f32.mrb[194].mxu0 }
 0xb87   : > { %v11763_v42 = vpop.f32.mrb[195].mxu0 }
 0xb88   : > { %v15015_v28 = vpop.f32.mrb[192].mxu1 }
 0xb89   : > { %v12224_v44 = vpack.i.bf16 %v15015_v28, %v15013_v62  ;;  %v11768_v10 = vpop.f32.mrb[193].mxu1 }
 0xb8a   : > { %v6555_v22 = vpop.f32.mrb[194].mxu1 }
 0xb8b   : > { %v11769_v31 = vpop.f32.mrb[195].mxu1 }
 0xb8c   : > { %v15019_v1 = vpop.f32.mrb[196].mxu0 }
 0xb8d   : > { %v11774_v49 = vpop.f32.mrb[197].mxu0 }
 0xb8e   : > { %v6603_v24 = vpop.f32.mrb[198].mxu0 }
 0xb8f   : > { %v11775_v36 = vpop.f32.mrb[199].mxu0 }
 0xb90   : > { %v15021_v29 = vpop.f32.mrb[196].mxu1 }
 0xb91   : > { %v12229_v37 = vpack.i.bf16 %v15021_v29, %v15019_v1  ;;  %v11780_v63 = vpop.f32.mrb[197].mxu1 }
 0xb92   : > { %v6651_v51 = vpop.f32.mrb[198].mxu1 }
 0xb93   : > { %v11781_v38 = vpop.f32.mrb[199].mxu1 }
 0xb94   : > { %v15025_v33 = vpop.f32.mrb[200].mxu0 }
 0xb95   : > { %v11786_v53 = vpop.f32.mrb[201].mxu0 }
 0xb96   : > { %v6699_v27 = vpop.f32.mrb[202].mxu0 }
 0xb97   : > { %v11787_v9 = vpop.f32.mrb[203].mxu0 }
 0xb99   : > { %v15027_v32 = vpop.f32.mrb[200].mxu1 }
 0xb9a   : > { %v12254_v6 = vpack.i.bf16 %v15027_v32, %v15025_v33  ;;  %v11792_v55 = vpop.f32.mrb[201].mxu1 }
 0xb9b   : > { %v6747_v57 = vpop.f32.mrb[202].mxu1 }
 0xb9c   : > { %v11793_v61 = vpop.f32.mrb[203].mxu1  ;;  %v15031_v8 = vpop.f32.mrb[204].mxu0 }
 0xb9d   : > { %v11798_v47 = vpop.f32.mrb[205].mxu0 }
 0xb9e   : > { %v6795_v46 = vpop.f32.mrb[206].mxu0 }
 0xb9f   : > { %v11799_v15 = vpop.f32.mrb[207].mxu0 }
 0xba1   : > { %v15033_v39 = vpop.f32.mrb[204].mxu1 }
 0xba2   : > { %v12259_v59 = vpack.i.bf16 %v15033_v39, %v15031_v8  ;;  %v11804_v17 = vpop.f32.mrb[205].mxu1  ;;  %v16291_v8 = vld [vmem:[#allocation59_spill] sm:$0xff]  ;;  %v16292_v39 = vld [vmem:[#allocation58_spill] sm:$0xff] }
 0xba3   : > { %v6843_v2 = vpop.f32.mrb[206].mxu1 }
 0xba4   : > { %v11805_v52 = vpop.f32.mrb[207].mxu1  ;;  %v15037_v0 = vpop.f32.mrb[208].mxu0 }
 0xba5   : > { %v11810_v23 = vpop.f32.mrb[209].mxu0 }
 0xba6   : > { %v6891_v45 = vpop.f32.mrb[210].mxu0 }
 0xba7   : > { %v11811_v18 = vpop.f32.mrb[211].mxu0 }
 0xba9   : > { %v15039_v54 = vpop.f32.mrb[208].mxu1 }
 0xbaa   : > { %v12284_v25 = vpack.i.bf16 %v15039_v54, %v15037_v0  ;;  %v11816_v48 = vpop.f32.mrb[209].mxu1 }
 0xbab   : > { %v6939_v34 = vpop.f32.mrb[210].mxu1 }
 0xbac   : > { %v11817_v19 = vpop.f32.mrb[211].mxu1 }
 0xbd2   : > { %v15043_v50 = vpop.f32.mrb[212].mxu0 }
 0xbd3   : > { %v11822_v13 = vpop.f32.mrb[213].mxu0 }
 0xbd4   : > { %v6987_v40 = vpop.f32.mrb[214].mxu0 }
 0xbd5   : > { %v11823_v35 = vpop.f32.mrb[215].mxu0 }
 0xbda   : > { %v7082_v12 = vpop.f32.mrb[216].mxu0 }
 0xbdb   : > { %v15045_v5 = vmul.f32 0.17677669, %v7082_v12  ;;  %v11834_v11 = vpop.f32.mrb[217].mxu0 }
 0xbdc   : > { %v7085_v4 = vpop.f32.mrb[218].mxu0 }
 0xbdd   : > { %v15047_v60 = vpop.f32.mrb[212].mxu1  ;;  %v11835_v58 = vpop.f32.mrb[219].mxu0  ;;  %v7854_v30 = vsel %vm2508_vm3, %v15045_v5, -inf }
 0xbde   : > { %v12289_v16 = vpack.i.bf16 %v15047_v60, %v15043_v50  ;;  %v11828_v42 = vpop.f32.mrb[213].mxu1  ;;  %7855 = vmax.xlane.f32.xlu0 %v7854_v30 }
 0xbdf   : > { %v7035_v10 = vpop.f32.mrb[214].mxu1 }
 0xbe0   : > { %v11829_v22 = vpop.f32.mrb[215].mxu1 }
 0xbe2   : > { %v7182_v31 = vpop.f32.mrb[220].mxu0 }
 0xbe3   : > { %v15053_v49 = vmul.f32 0.17677669, %v7182_v31  ;;  %v11846_v24 = vpop.f32.mrb[221].mxu0 }
 0xbe4   : > { %v7185_v36 = vpop.f32.mrb[222].mxu0 }
 0xbe5   : > { %v7132_v63 = vpop.f32.mrb[216].mxu1  ;;  %v11847_v51 = vpop.f32.mrb[223].mxu0  ;;  %v7860_v38 = vsel %vm2508_vm3, %v15053_v49, -inf }
 0xbe6   : > { %v15057_v53 = vmul.f32 0.17677669, %v7132_v63  ;;  %v11840_v27 = vpop.f32.mrb[217].mxu1  ;;  %7861 = vmax.xlane.f32.xlu0 %v7860_v38 }
 0xbe7   : > { %v7135_v9 = vpop.f32.mrb[218].mxu1 }
 0xbe8   : > { %v11841_v55 = vpop.f32.mrb[219].mxu1  ;;  %v7857_v57 = vsel %vm2508_vm3, %v15057_v53, -inf }
 0xbe9   : > { %7858 = vmax.xlane.f32.xlu1 %v7857_v57 }
 0xbea   : > { %v7282_v61 = vpop.f32.mrb[224].mxu0 }
 0xbeb   : > { %v11858_v47 = vpop.f32.mrb[225].mxu0  ;;  %v15063_v45 = vmul.f32 0.17677669, %v7282_v61 }
 0xbec   : > { %v7285_v46 = vpop.f32.mrb[226].mxu0 }
 0xbed   : > { %v7232_v15 = vpop.f32.mrb[220].mxu1  ;;  %v11859_v17 = vpop.f32.mrb[227].mxu0  ;;  %v7866_v35 = vsel %vm2508_vm3, %v15063_v45, -inf }
 0xbee   : > { %v15061_v2 = vmul.f32 0.17677669, %v7232_v15  ;;  %v11852_v52 = vpop.f32.mrb[221].mxu1 }
 0xbef   : > { %v7235_v23 = vpop.f32.mrb[222].mxu1 }
 0xbf0   : > { %v11853_v18 = vpop.f32.mrb[223].mxu1  ;;  %v7863_v48 = vsel %vm2508_vm3, %v15061_v2, -inf }
 0xbf1   : > { %7864 = vmax.xlane.f32.xlu0 %v7863_v48 }
 0xbf2   : > { %v7382_v34 = vpop.f32.mrb[228].mxu0 }
 0xbf3   : > { %v11870_v19 = vpop.f32.mrb[229].mxu0  ;;  %v15067_v13 = vmul.f32 0.17677669, %v7382_v34 }
 0xbf4   : > { %v7385_v40 = vpop.f32.mrb[230].mxu0 }
 0xbf5   : > { %v7332_v12 = vpop.f32.mrb[224].mxu1  ;;  %7867 = vmax.xlane.f32.xlu0 %v7866_v35  ;;  %v11871_v11 = vpop.f32.mrb[231].mxu0  ;;  %v7872_v22 = vsel %vm2508_vm3, %v15067_v13, -inf }
 0xbf6   : > { %v15071_v4 = vmul.f32 0.17677669, %v7332_v12  ;;  %v11864_v58 = vpop.f32.mrb[225].mxu1 }
 0xbf7   : > { %v7335_v30 = vpop.f32.mrb[226].mxu1 }
 0xbf8   : > { %v11865_v42 = vpop.f32.mrb[227].mxu1  ;;  %v7869_v10 = vsel %vm2508_vm3, %v15071_v4, -inf }
 0xbf9   : > { %7870 = vmax.xlane.f32.xlu1 %v7869_v10  ;;  %7873 = vmax.xlane.f32.xlu0 %v7872_v22 }
 0xbfa   : > { %v7482_v31 = vpop.f32.mrb[232].mxu0 }
 0xbfb   : > { %v15077_v24 = vmul.f32 0.17677669, %v7482_v31  ;;  %v11882_v36 = vpop.f32.mrb[233].mxu0 }
 0xbfc   : > { %v7485_v63 = vpop.f32.mrb[234].mxu0 }
 0xbfd   : > { %v7432_v51 = vpop.f32.mrb[228].mxu1  ;;  %v11883_v38 = vpop.f32.mrb[235].mxu0  ;;  %v7878_v27 = vsel %vm2508_vm3, %v15077_v24, -inf }
 0xbfe   : > { %v15081_v9 = vmul.f32 0.17677669, %v7432_v51  ;;  %v11876_v55 = vpop.f32.mrb[229].mxu1  ;;  %7879 = vmax.xlane.f32.xlu0 %v7878_v27 }
 0xbff   : > { %v7435_v57 = vpop.f32.mrb[230].mxu1 }
 0xc00   : > { %v11877_v61 = vpop.f32.mrb[231].mxu1  ;;  %v7875_v47 = vsel %vm2508_vm3, %v15081_v9, -inf }
 0xc01   : > { %7876 = vmax.xlane.f32.xlu1 %v7875_v47 }
 0xc02   : > { %v7582_v46 = vpop.f32.mrb[236].mxu0 }
 0xc03   : > { %v15085_v15 = vmul.f32 0.17677669, %v7582_v46  ;;  %v11894_v17 = vpop.f32.mrb[237].mxu0 }
 0xc04   : > { %v7585_v52 = vpop.f32.mrb[238].mxu0 }
 0xc05   : > { %v7532_v23 = vpop.f32.mrb[232].mxu1  ;;  %v11895_v18 = vpop.f32.mrb[239].mxu0  ;;  %v7884_v48 = vsel %vm2508_vm3, %v15085_v15, -inf }
 0xc06   : > { %v15089_v34 = vmul.f32 0.17677669, %v7532_v23  ;;  %v11888_v19 = vpop.f32.mrb[233].mxu1  ;;  %7885 = vmax.xlane.f32.xlu0 %v7884_v48 }
 0xc07   : > { %v7535_v40 = vpop.f32.mrb[234].mxu1 }
 0xc08   : > { %v11889_v35 = vpop.f32.mrb[235].mxu1  ;;  %v7881_v12 = vsel %vm2508_vm3, %v15089_v34, -inf }
 0xc09   : > { %7882 = vmax.xlane.f32.xlu1 %v7881_v12 }
 0xc0a   : > { %v7682_v11 = vpop.f32.mrb[240].mxu0 }
 0xc0b   : > { %v15093_v58 = vmul.f32 0.17677669, %v7682_v11  ;;  %v11906_v30 = vpop.f32.mrb[241].mxu0 }
 0xc0c   : > { %v7685_v42 = vpop.f32.mrb[242].mxu0 }
 0xc0d   : > { %v7632_v10 = vpop.f32.mrb[236].mxu1  ;;  %v11907_v22 = vpop.f32.mrb[243].mxu0  ;;  %v7890_v31 = vsel %vm2508_vm3, %v15093_v58, -inf  ;;  %v16263_v42 = vld [vmem:[#allocation35_spill] sm:$0xff] }
 0xc0e   : > { %v15097_v36 = vmul.f32 0.17677669, %v7632_v10  ;;  %v11900_v63 = vpop.f32.mrb[237].mxu1  ;;  %7891 = vmax.xlane.f32.xlu0 %v7890_v31  ;;  %v16264_v10 = vld [vmem:[#allocation30_spill] sm:$0xff]  ;;  %v16266_v31 = vld [vmem:[#allocation36_spill] sm:$0xff] }
 0xc0f   : > { %v7635_v51 = vpop.f32.mrb[238].mxu1  ;;  %v16265_v22 = vld [vmem:[#allocation34_spill] sm:$0xff] }
 0xc10   : > { %v11901_v38 = vpop.f32.mrb[239].mxu1  ;;  %v7887_v27 = vsel %vm2508_vm3, %v15097_v36, -inf }
 0xc11   : > { %7888 = vmax.xlane.f32.xlu1 %v7887_v27  ;;  %v15121_v38 = vpop.permute.xlu0 %8142 }
 0xc12   : > { %v7782_v55 = vpop.f32.mrb[244].mxu0 }
 0xc13   : > { %v15101_v57 = vmul.f32 0.17677669, %v7782_v55  ;;  %v11918_v61 = vpop.f32.mrb[245].mxu0  ;;  %v15125_v55 = vpop.permute.xlu1 %8190 }
 0xc14   : > { %v7785_v47 = vpop.f32.mrb[246].mxu0 }
 0xc15   : > { %v7732_v46 = vpop.f32.mrb[240].mxu1  ;;  %v11919_v17 = vpop.f32.mrb[247].mxu0  ;;  %v7896_v52 = vsel %vm2508_vm3, %v15101_v57, -inf }
 0xc16   : > { %v15105_v23 = vmul.f32 0.17677669, %v7732_v46  ;;  %v11912_v18 = vpop.f32.mrb[241].mxu1  ;;  %7897 = vmax.xlane.f32.xlu0 %v7896_v52  ;;  %v15123_v27 = vpop.permute.xlu0 %8238 }
 0xc17   : > { %v7735_v48 = vpop.f32.mrb[242].mxu1  ;;  %v15129_v46 = vpop.permute.xlu1 %8286 }
 0xc18   : > { %v11913_v19 = vpop.f32.mrb[243].mxu1  ;;  %v7893_v40 = vsel %vm2508_vm3, %v15105_v23, -inf }
 0xc19   : > { %7894 = vmax.xlane.f32.xlu1 %v7893_v40 }
 0xc1a   : > { %v15127_v61 = vpop.permute.xlu0 %8334 }
 0xc1b   : > { %v15132_v18 = vpop.permute.xlu1 %8382 }
 0xc1d   : > { %v7832_v35 = vpop.f32.mrb[244].mxu1 }
 0xc1e   : > { %v11924_v12 = vpop.f32.mrb[245].mxu1  ;;  %v15117_v63 = vmul.f32 0.17677669, %v7832_v35 }
 0xc1f   : > { %v7835_v11 = vpop.f32.mrb[246].mxu1 }
 0xc20   : > { %v11925_v30 = vpop.f32.mrb[247].mxu1  ;;  %v7899_v51 = vsel %vm2508_vm3, %v15117_v63, -inf }
 0xc2a   : > { %8478 = vrot.lane.b32.xlu1 %v16263_v42, %s12781_s6 }
 0xc2c   : > { %8430 = vrot.lane.b32.xlu0 %v16264_v10, %s12781_s6 }
 0xc2e   : > { %8526 = vrot.lane.b32.xlu1 %v16265_v22, %s12781_s6 }
 0xc32   : > { %8574 = vrot.lane.b32.xlu1 %v16266_v31, %s12781_s6 }
 0xc56   : > { %7900 = vmax.xlane.f32.xlu1 %v7899_v51 }
 0xc6b   : > { %v7856_v47 = vpop.xlane.xlu0 %7855 }
 0xc6c   : > { %v7902_v17 = vsub.f32 %v15045_v5, %v7856_v47 }
 0xc6e   : > { %v7918_v52 = vmul.f32 1.442695, %v7902_v17 }
 0xc70   : > { %12608 = vpow2.f32 %v7918_v52 }
 0xc73   : > { %v7862_v48 = vpop.xlane.xlu0 %7861 }
 0xc74   : > { %v7904_v19 = vsub.f32 %v15053_v49, %v7862_v48 }
 0xc76   : > { %v7922_v40 = vmul.f32 1.442695, %v7904_v19  ;;  %v7859_v35 = vpop.xlane.xlu1 %7858 }
 0xc77   : > { %v7903_v12 = vsub.f32 %v15057_v53, %v7859_v35 }
 0xc78   : > { %12610 = vpow2.f32 %v7922_v40 }
 0xc79   : > { %v7920_v11 = vmul.f32 1.442695, %v7903_v12 }
 0xc7a   : > { %v15136_v30 = vpop.eup %12608 }
 0xc7b   : > { %12612 = vpow2.f32 %v7920_v11  ;;  %v7950_v42 = vsel %vm2508_vm3, %v15136_v30, 0.0 }
 0xc7c   : > { %7951 = vadd.xlane.f32.xlu0 %v7950_v42 }
 0xc7e   : > { %v7865_v5 = vpop.xlane.xlu0 %7864 }
 0xc7f   : > { %v7905_v10 = vsub.f32 %v15061_v2, %v7865_v5 }
 0xc81   : > { %v7924_v22 = vmul.f32 1.442695, %v7905_v10 }
 0xc82   : > { %v15141_v31 = vpop.eup %12610  ;;  %v7868_v49 = vpop.xlane.xlu0 %7867 }
 0xc83   : > { %12614 = vpow2.f32 %v7924_v22  ;;  %v7906_v51 = vsub.f32 %v15063_v45, %v7868_v49  ;;  %v7956_v53 = vsel %vm2508_vm3, %v15141_v31, 0.0 }
 0xc84   : > { %7957 = vadd.xlane.f32.xlu0 %v7956_v53 }
 0xc85   : > { %v15146_v47 = vpop.eup %12612  ;;  %v7926_v17 = vmul.f32 1.442695, %v7906_v51 }
 0xc86   : > { %v7871_v52 = vpop.xlane.xlu1 %7870  ;;  %v7874_v48 = vpop.xlane.xlu0 %7873  ;;  %v7953_v19 = vsel %vm2508_vm3, %v15146_v47, 0.0 }
 0xc87   : > { %12616 = vpow2.f32 %v7926_v17  ;;  %v7907_v2 = vsub.f32 %v15071_v4, %v7871_v52  ;;  %v7908_v40 = vsub.f32 %v15067_v13, %v7874_v48  ;;  %7954 = vadd.xlane.f32.xlu1 %v7953_v19 }
 0xc89   : > { %v7928_v35 = vmul.f32 1.442695, %v7907_v2  ;;  %v7930_v45 = vmul.f32 1.442695, %v7908_v40 }
 0xc8b   : > { %12618 = vpow2.f32 %v7928_v35  ;;  %v7880_v12 = vpop.xlane.xlu0 %7879 }
 0xc8c   : > { %12620 = vpow2.f32 %v7930_v45  ;;  %v7910_v42 = vsub.f32 %v15077_v24, %v7880_v12 }
 0xc8d   : > { %v15152_v11 = vpop.eup %12614 }
 0xc8e   : > { %v7877_v5 = vpop.xlane.xlu1 %7876  ;;  %v7959_v10 = vsel %vm2508_vm3, %v15152_v11, 0.0  ;;  %v7934_v13 = vmul.f32 1.442695, %v7910_v42 }
 0xc8f   : > { %v7909_v22 = vsub.f32 %v15081_v9, %v7877_v5  ;;  %7960 = vadd.xlane.f32.xlu1 %v7959_v10 }
 0xc91   : > { %v15158_v4 = vpop.eup %12616  ;;  %v7932_v49 = vmul.f32 1.442695, %v7909_v22 }
 0xc92   : > { %v7962_v51 = vsel %vm2508_vm3, %v15158_v4, 0.0 }
 0xc93   : > { %12622 = vpow2.f32 %v7932_v49  ;;  %v7886_v53 = vpop.xlane.xlu0 %7885  ;;  %7963 = vadd.xlane.f32.xlu0 %v7962_v51 }
 0xc94   : > { %v7912_v17 = vsub.f32 %v15085_v15, %v7886_v53  ;;  %12624 = vpow2.f32 %v7934_v13 }
 0xc95   : > { %v15163_v24 = vpop.eup %12618 }
 0xc96   : > { %v15165_v52 = vpop.eup %12620  ;;  %v7938_v48 = vmul.f32 1.442695, %v7912_v17  ;;  %v7883_v9 = vpop.xlane.xlu1 %7882  ;;  %v7965_v19 = vsel %vm2508_vm3, %v15163_v24, 0.0  ;;  %v16267_v17 = vld [vmem:[#allocation13_spill] sm:$0xff] }
 0xc97   : > { %v7911_v2 = vsub.f32 %v15089_v34, %v7883_v9  ;;  %7966 = vadd.xlane.f32.xlu1 %v7965_v19  ;;  %v7968_v40 = vsel %vm2508_vm3, %v15165_v52, 0.0  ;;  %v16268_v9 = vld [vmem:[#allocation37_spill] sm:$0xff] }
 0xc98   : > { %7969 = vadd.xlane.f32.xlu0 %v7968_v40  ;;  %12626 = vpow2.f32 %v7938_v48 }
 0xc99   : > { %v7936_v35 = vmul.f32 1.442695, %v7911_v2 }
 0xc9b   : > { %12628 = vpow2.f32 %v7936_v35  ;;  %v7892_v48 = vpop.xlane.xlu0 %7891 }
 0xc9c   : > { %v7914_v19 = vsub.f32 %v15093_v58, %v7892_v48 }
 0xc9d   : > { %v15172_v15 = vpop.eup %12622 }
 0xc9e   : > { %v7889_v45 = vpop.xlane.xlu1 %7888  ;;  %v7971_v12 = vsel %vm2508_vm3, %v15172_v15, 0.0  ;;  %v15176_v42 = vpop.eup %12624  ;;  %v7942_v40 = vmul.f32 1.442695, %v7914_v19 }
 0xc9f   : > { %v7913_v5 = vsub.f32 %v15097_v36, %v7889_v45  ;;  %7972 = vadd.xlane.f32.xlu1 %v7971_v12  ;;  %v7974_v10 = vsel %vm2508_vm3, %v15176_v42, 0.0 }
 0xca1   : > { %v7940_v34 = vmul.f32 1.442695, %v7913_v5 }
 0xca2   : > { %v15181_v22 = vpop.eup %12626 }
 0xca3   : > { %12630 = vpow2.f32 %v7940_v34  ;;  %7975 = vadd.xlane.f32.xlu1 %v7974_v10  ;;  %v7980_v49 = vsel %vm2508_vm3, %v15181_v22, 0.0  ;;  %v7898_v2 = vpop.xlane.xlu0 %7897 }
 0xca4   : > { %v7916_v35 = vsub.f32 %v15101_v57, %v7898_v2  ;;  %12632 = vpow2.f32 %v7942_v40 }
 0xca5   : > { %v15183_v13 = vpop.eup %12628 }
 0xca6   : > { %v7977_v51 = vsel %vm2508_vm3, %v15183_v13, 0.0  ;;  %v7895_v45 = vpop.xlane.xlu1 %7894  ;;  %v7946_v12 = vmul.f32 1.442695, %v7916_v35 }
 0xca7   : > { %7981 = vadd.xlane.f32.xlu1 %v7980_v49  ;;  %7978 = vadd.xlane.f32.xlu0 %v7977_v51  ;;  %v7915_v5 = vsub.f32 %v15105_v23, %v7895_v45  ;;  %v16269_v45 = vld [vmem:[#allocation47_spill] sm:$0xff] }
 0xca8   : > { %12634 = vpow2.f32 %v7946_v12  ;;  %v16270_v12 = vld [vmem:[#allocation46_spill] sm:$0xff] }
 0xca9   : > { %v7944_v34 = vmul.f32 1.442695, %v7915_v5  ;;  %v16271_v5 = vpack.i.bf16 %v16269_v45, %v16270_v12 }
 0xcaa   : > { %v15200_v10 = vpop.permute.xlu1 %8478 }
 0xcab   : > { %12636 = vpow2.f32 %v7944_v34 }
 0xcad   : > { %v15189_v36 = vpop.eup %12630 }
 0xcae   : > { %v7983_v53 = vsel %vm2508_vm3, %v15189_v36, 0.0  ;;  %v15202_v49 = vpop.eup %12632  ;;  %v15204_v51 = vpop.permute.xlu1 %8526 }
 0xcaf   : > { %7984 = vadd.xlane.f32.xlu0 %v7983_v53  ;;  %v7986_v58 = vsel %vm2508_vm3, %v15202_v49, 0.0 }
 0xcb2   : > { %v15208_v53 = vpop.eup %12634  ;;  %v15210_v57 = vpop.permute.xlu1 %8574 }
 0xcb3   : > { %v7992_v23 = vsel %vm2508_vm3, %v15208_v53, 0.0 }
 0xcb8   : > { %8670 = vrot.lane.b32.xlu1 %v16267_v17, %s12781_s6  ;;  %v15214_v17 = vpop.eup %12636 }
 0xcc5   : > { %8622 = vrot.lane.b32.xlu0 %v16268_v9, %s12781_s6  ;;  %v7989_v9 = vsel %vm2508_vm3, %v15214_v17, 0.0 }
 0xcdc   : > { %7987 = vadd.xlane.f32.xlu1 %v7986_v58  ;;  %v16273_v58 = vld [vmem:[#allocation44_spill] sm:$0xff] }
 0xce0   : > { %7993 = vadd.xlane.f32.xlu1 %v7992_v23 }
 0xce3   : > { %v7901_v48 = vpop.xlane.xlu1 %7900 }
 0xce4   : > { %v7917_v19 = vsub.f32 %v15117_v63, %v7901_v48  ;;  %7990 = vadd.xlane.f32.xlu0 %v7989_v9  ;;  %v15233_v63 = vpop.permute.xlu0 %8430 }
 0xce6   : > { %v7948_v2 = vmul.f32 1.442695, %v7917_v19 }
 0xce8   : > { %12638 = vpow2.f32 %v7948_v2 }
 0xcf1   : > { %8766 = vrot.lane.b32.xlu1 %v13932_v26, %s12781_s6  ;;  %v16272_v26 = vld [vmem:[#allocation45_spill] sm:$0xff] }
 0xcf2   : > { %v15221_v40 = vpop.eup %12638  ;;  %v16274_v23 = vpack.i.bf16 %v16272_v26, %v16273_v58 }
 0xcf3   : > { %v7995_v35 = vsel %vm2508_vm3, %v15221_v40, 0.0 }
 0xcf4   : > { %7996 = vadd.xlane.f32.xlu0 %v7995_v35 }
 0xcf5   : > { %12190 = vrot.lane.b32.xlu1 %v16271_v5, %s12781_s6 }
 0xcf9   : > { %12200 = vrot.lane.b32.xlu1 %v12199_v20, %s12780_s25 }
 0xd09   : > { %v7952_v34 = vpop.xlane.xlu0 %7951 }
 0xd0a   : > { %12640 = vrcp.f32 %v7952_v34  ;;  %8718 = vrot.lane.b32.xlu0 %v13871_v3, %s12781_s6  ;;  %v8148_v3 = vsel %vm2704_vm2, %v15121_v38, 0  ;;  %v8244_v38 = vsel %vm2704_vm2, %v15123_v27, 0 }
 0xd0e   : > { %12185 = vrot.lane.b32.xlu0 %v16274_v23, %s12781_s6 }
 0xd11   : > { %v7958_v48 = vpop.xlane.xlu0 %7957 }
 0xd12   : > { %12642 = vrcp.f32 %v7958_v48  ;;  %12195 = vrot.lane.b32.xlu0 %v12194_v21, %s12780_s25 }
 0xd14   : > { %v12641_v7 = vpop.eup %12640  ;;  %v7955_v14 = vpop.xlane.xlu1 %7954 }
 0xd15   : > { %v8014_v20 = vmul.f32 %v12641_v7, %v15136_v30  ;;  %12644 = vrcp.f32 %v7955_v14  ;;  %v8340_v14 = vsel %vm2704_vm2, %v15127_v61, 0 }
 0xd17   : > { %v8030_v9 = vpack.c.bf16 %v8014_v20, %v8014_v20 }
 0xd19   : > { %11929 = vmatmul.mubr.msk.bf16.vlgmr.msra.gmra.mrb[248].mxu0 %vm2508_vm3, %v8030_v9 }
 0xd1a   : > { %11939 = vmatpush3.bf16.msra.mxu0 %v8148_v3  ;;  %11940 = vmatprep.mubr.msk.bf16.mxu0 %vm12778_vm0, %v16160_v43  ;;  %v8388_v3 = vsel %vm2704_vm2, %v15132_v18, 0 }
 0xd1b   : > { %11950 = vmatprep.subr.bf16.mxu0 %v16160_v43 }
 0xd1c   : > { %v12643_v19 = vpop.eup %12642  ;;  %v7961_v56 = vpop.xlane.xlu1 %7960 }
 0xd1d   : > { %v8016_v41 = vmul.f32 %v12643_v19, %v15141_v31  ;;  %12646 = vrcp.f32 %v7961_v56  ;;  %v8196_v31 = vsel %vm2704_vm2, %v15125_v55, 0  ;;  %v8292_v55 = vsel %vm2704_vm2, %v15129_v46, 0 }
 0xd1f   : > { %v12645_v21 = vpop.eup %12644  ;;  %v8032_v30 = vpack.c.bf16 %v8016_v41, %v8016_v41 }
 0xd20   : > { %v8015_v2 = vmul.f32 %v12645_v21, %v15146_v47  ;;  %v7964_v35 = vpop.xlane.xlu0 %7963 }
 0xd21   : > { %12648 = vrcp.f32 %v7964_v35  ;;  %11941 = vmatmul.mubr.msk.bf16.vlgmr.msra.gmra.mrb[252].mxu0 %vm2508_vm3, %v8032_v30  ;;  %v8484_v30 = vsel %vm2704_vm2, %v15200_v10, 0 }
 0xd22   : > { %11951 = vmatpush3.bf16.msra.mxu0 %v8244_v38  ;;  %v8031_v45 = vpack.c.bf16 %v8015_v2, %v8015_v2  ;;  %11952 = vmatprep.mubr.msk.bf16.mxu0 %vm12778_vm0, %v16160_v43 }
 0xd23   : > { %11962 = vmatprep.subr.bf16.mxu0 %v16160_v43 }
 0xd24   : > { %11935 = vmatmul.mubr.msk.bf16.vlgmr.msra.gmra.mrb[248].mxu1 %vm2508_vm3, %v8031_v45  ;;  %v7967_v47 = vpop.xlane.xlu1 %7966  ;;  %v8532_v45 = vsel %vm2704_vm2, %v15204_v51, 0 }
 0xd25   : > { %11945 = vmatpush3.bf16.msra.mxu1 %v8196_v31  ;;  %12650 = vrcp.f32 %v7967_v47  ;;  %v7970_v12 = vpop.xlane.xlu0 %7969  ;;  %11946 = vmatprep.mubr.msk.bf16.mxu1 %vm12778_vm0, %v16160_v43  ;;  %v8580_v47 = vsel %vm2704_vm2, %v15210_v57, 0 }
 0xd26   : > { %12652 = vrcp.f32 %v7970_v12  ;;  %11956 = vmatprep.subr.bf16.mxu1 %v16160_v43 }
 0xd27   : > { %v12647_v27 = vpop.eup %12646 }
 0xd28   : > { %v8017_v5 = vmul.f32 %v12647_v27, %v15152_v11 }
 0xd2a   : > { %v8033_v34 = vpack.c.bf16 %v8017_v5, %v8017_v5 }
 0xd2b   : > { %v12649_v26 = vpop.eup %12648 }
 0xd2c   : > { %v8018_v58 = vmul.f32 %v12649_v26, %v15158_v4  ;;  %11947 = vmatmul.mubr.msk.bf16.vlgmr.msra.gmra.mrb[252].mxu1 %vm2508_vm3, %v8033_v34  ;;  %v7973_v23 = vpop.xlane.xlu1 %7972 }
 0xd2d   : > { %11957 = vmatpush3.bf16.msra.mxu1 %v8292_v55  ;;  %12654 = vrcp.f32 %v7973_v23  ;;  %11958 = vmatprep.mubr.msk.bf16.mxu1 %vm12778_vm0, %v16160_v43 }
 0xd2e   : > { %v8034_v48 = vpack.c.bf16 %v8018_v58, %v8018_v58  ;;  %11968 = vmatprep.subr.bf16.mxu1 %v16160_v43 }
 0xd2f   : > { %v12651_v7 = vpop.eup %12650 }
 0xd30   : > { %v12653_v11 = vpop.eup %12652  ;;  %v8019_v46 = vmul.f32 %v12651_v7, %v15163_v24  ;;  %v7976_v20 = vpop.xlane.xlu1 %7975  ;;  %11953 = vmatmul.mubr.msk.bf16.vlgmr.msra.gmra.mrb[0].mxu0 %vm2508_vm3, %v8034_v48 }
 0xd31   : > { %12656 = vrcp.f32 %v7976_v20  ;;  %11963 = vmatpush3.bf16.msra.mxu0 %v8340_v14  ;;  %11964 = vmatprep.mubr.msk.bf16.mxu0 %vm12778_vm0, %v16160_v43  ;;  %v8020_v9 = vmul.f32 %v12653_v11, %v15165_v52  ;;  %v8436_v52 = vsel %vm2704_vm2, %v15233_v63, 0 }
 0xd32   : > { %v8035_v4 = vpack.c.bf16 %v8019_v46, %v8019_v46  ;;  %11974 = vmatprep.subr.bf16.mxu0 %v16160_v43 }
 0xd33   : > { %v8036_v19 = vpack.c.bf16 %v8020_v9, %v8020_v9 }
 0xd34   : > { %11959 = vmatmul.mubr.msk.bf16.vlgmr.msra.gmra.mrb[0].mxu1 %vm2508_vm3, %v8035_v4  ;;  %v7982_v61 = vpop.xlane.xlu1 %7981  ;;  %v7979_v24 = vpop.xlane.xlu0 %7978 }
 0xd35   : > { %11969 = vmatpush3.bf16.msra.mxu1 %v8388_v3  ;;  %12658 = vrcp.f32 %v7982_v61  ;;  %11970 = vmatprep.mubr.msk.bf16.mxu1 %vm12778_vm0, %v16160_v43 }
 0xd36   : > { %12660 = vrcp.f32 %v7979_v24  ;;  %11980 = vmatprep.subr.bf16.mxu1 %v16160_v43 }
 0xd37   : > { %v12655_v56 = vpop.eup %12654 }
 0xd38   : > { %v8021_v41 = vmul.f32 %v12655_v56, %v15172_v15  ;;  %11965 = vmatmul.mubr.msk.bf16.vlgmr.msra.gmra.mrb[4].mxu0 %vm2508_vm3, %v8036_v19  ;;  %v8671_v57 = vpop.permute.xlu1 %8670 }
 0xd39   : > { %11975 = vmatpush3.bf16.msra.mxu0 %v8436_v52  ;;  %11976 = vmatprep.mubr.msk.bf16.mxu0 %vm12778_vm0, %v16160_v43  ;;  %v8676_v34 = vsel %vm2704_vm2, %v8671_v57, 0  ;;  %v16275_v52 = vmov 0   ;;  %v16277_v57 = vld [vmem:[#allocation48_spill] sm:$0xff] }
 0xd3a   : > { %v8037_v18 = vpack.c.bf16 %v8021_v41, %v8021_v41  ;;  %11986 = vmatprep.subr.bf16.mxu0 %v16160_v43  ;;  %v12338_v41 = vld [vmem:[%s12958_s22 + $0x10] sm:$0xff]  }
 0xd3b   : > { %v12657_v21 = vpop.eup %12656 }
 0xd3c   : > { %v8022_v2 = vmul.f32 %v12657_v21, %v15176_v42  ;;  %11971 = vmatmul.mubr.msk.bf16.vlgmr.msra.gmra.mrb[4].mxu1 %vm2508_vm3, %v8037_v18  ;;  %v7985_v63 = vpop.xlane.xlu0 %7984  ;;  %v12339_v18 = vld [vmem:[%s12958_s22 + $0x18] sm:$0xff]   ;;  %v12340_v21 = vld [vmem:[%s12958_s22 + $0x20] sm:$0xff]  }
 0xd3d   : > { %11981 = vmatpush3.bf16.msra.mxu1 %v8484_v30  ;;  %12662 = vrcp.f32 %v7985_v63  ;;  %11982 = vmatprep.mubr.msk.bf16.mxu1 %vm12778_vm0, %v16160_v43 }
 0xd3e   : > { %v8038_v15 = vpack.c.bf16 %v8022_v2, %v8022_v2  ;;  %11992 = vmatprep.subr.bf16.mxu1 %v16160_v43  ;;  %v12341_v2 = vld [vmem:[%s12958_s22 + $0x28] sm:$0xff]  }
 0xd3f   : > { %v12659_v35 = vpop.eup %12658 }
 0xd40   : > { %v12661_v38 = vpop.eup %12660  ;;  %11977 = vmatmul.mubr.msk.bf16.vlgmr.msra.gmra.mrb[8].mxu0 %vm2508_vm3, %v8038_v15  ;;  %v8024_v10 = vmul.f32 %v12659_v35, %v15181_v22  ;;  %v8623_v12 = vpop.permute.xlu0 %8622  ;;  %v12342_v35 = vld [vmem:[%s12958_s22 + $0x30] sm:$0xff]  }
 0xd41   : > { %v8023_v42 = vmul.f32 %v12661_v38, %v15183_v13  ;;  %11987 = vmatpush3.bf16.msra.mxu0 %v8532_v45  ;;  %11988 = vmatprep.mubr.msk.bf16.mxu0 %vm12778_vm0, %v16160_v43  ;;  %v8628_v22 = vsel %vm2704_vm2, %v8623_v12, 0 }
 0xd42   : > { %11998 = vmatprep.subr.bf16.mxu0 %v16160_v43  ;;  %v8040_v51 = vpack.c.bf16 %v8024_v10, %v8024_v10  ;;  %v12343_v10 = vld [vmem:[%s12958_s22 + $0x38] sm:$0xff]  }
 0xd43   : > { %v8039_v31 = vpack.c.bf16 %v8023_v42, %v8023_v42 }
 0xd45   : > { %11983 = vmatmul.mubr.msk.bf16.vlgmr.msra.gmra.mrb[8].mxu1 %vm2508_vm3, %v8039_v31 }
 0xd46   : > { %11993 = vmatpush3.bf16.msra.mxu1 %v8580_v47  ;;  %11994 = vmatprep.mubr.msk.bf16.mxu1 %vm12778_vm0, %v16160_v43 }
 0xd47   : > { %v12663_v13 = vpop.eup %12662  ;;  %12004 = vmatprep.subr.bf16.mxu1 %v16160_v43 }
 0xd48   : > { %v8025_v27 = vmul.f32 %v12663_v13, %v15189_v36  ;;  %11989 = vmatmul.mubr.msk.bf16.vlgmr.msra.gmra.mrb[12].mxu0 %vm2508_vm3, %v8040_v51 }
 0xd49   : > { %11999 = vmatpush3.bf16.msra.mxu0 %v8628_v22  ;;  %12000 = vmatprep.mubr.msk.bf16.mxu0 %vm12778_vm0, %v16160_v43  ;;  %v16276_v22 = vld [vmem:[#allocation49_spill] sm:$0xff] }
 0xd4a   : > { %v8041_v5 = vpack.c.bf16 %v8025_v27, %v8025_v27  ;;  %12010 = vmatprep.subr.bf16.mxu0 %v16160_v43 }
 0xd4d   : > { %11995 = vmatmul.mubr.msk.bf16.vlgmr.msra.gmra.mrb[12].mxu1 %vm2508_vm3, %v8041_v5  ;;  %v16278_v5 = vpack.i.bf16 %v16276_v22, %v16277_v57 }
 0xd4e   : > { %12005 = vmatpush3.bf16.msra.mxu1 %v8676_v34  ;;  %12006 = vmatprep.mubr.msk.bf16.mxu1 %vm12778_vm0, %v16160_v43 }
 0xd4f   : > { %12016 = vmatprep.subr.bf16.mxu1 %v16160_v43 }
 0xd69   : > { %v7988_v36 = vpop.xlane.xlu1 %7987 }
 0xd6a   : > { %12664 = vrcp.f32 %v7988_v36 }
 0xd6d   : > { %v7994_v58 = vpop.xlane.xlu1 %7993 }
 0xd71   : > { %v7991_v26 = vpop.xlane.xlu0 %7990  ;;  %v8767_v14 = vpop.permute.xlu1 %8766 }
 0xd72   : > { %12666 = vrcp.f32 %v7991_v26  ;;  %v8772_v4 = vsel %vm2704_vm2, %v8767_v14, 0  ;;  %v16280_v14 = vld [vmem:[#allocation50_spill] sm:$0xff] }
 0xd73   : > { %12668 = vrcp.f32 %v7994_v58 }
 0xd74   : > { %v12665_v55 = vpop.eup %12664 }
 0xd75   : > { %v8026_v23 = vmul.f32 %v12665_v55, %v15202_v49 }
 0xd77   : > { %v8042_v48 = vpack.c.bf16 %v8026_v23, %v8026_v23 }
 0xd79   : > { %12001 = vmatmul.mubr.msk.bf16.vlgmr.msra.gmra.mrb[16].mxu0 %vm2508_vm3, %v8042_v48 }
 0xd7a   : > { %12012 = vmatprep.mubr.msk.bf16.mxu0 %vm12778_vm0, %v16160_v43 }
 0xd7c   : > { %v12667_v7 = vpop.eup %12666 }
 0xd7d   : > { %v8027_v11 = vmul.f32 %v12667_v7, %v15214_v17  ;;  %v12669_v20 = vpop.eup %12668 }
 0xd7e   : > { %v8028_v49 = vmul.f32 %v12669_v20, %v15208_v53  ;;  %v12337_v53 = vld [vmem:[%s12958_s22 + $0x8] sm:$0xff]  }
 0xd7f   : > { %v8043_v46 = vpack.c.bf16 %v8027_v11, %v8027_v11  ;;  %v16279_v11 = vld [vmem:[#allocation51_spill] sm:$0xff] }
 0xd80   : > { %v8044_v61 = vpack.c.bf16 %v8028_v49, %v8028_v49 }
 0xd81   : > { %12007 = vmatmul.mubr.msk.bf16.vlgmr.msra.gmra.mrb[16].mxu1 %vm2508_vm3, %v8043_v46  ;;  %v7997_v9 = vpop.xlane.xlu0 %7996  ;;  %v16281_v46 = vpack.i.bf16 %v16279_v11, %v16280_v14 }
 0xd82   : > { %12017 = vmatpush3.bf16.msra.mxu1 %v8772_v4  ;;  %12670 = vrcp.f32 %v7997_v9  ;;  %12018 = vmatprep.mubr.msk.bf16.mxu1 %vm12778_vm0, %v16160_v43  ;;  %v12336_v43 = vld [vmem:[%s12958_s22] sm:$0xff]   ;;  %s16318_s22 = sld [smem:[#allocation74_spill]] (!%p10780_p9) }
 0xd85   : > { %v8719_v3 = vpop.permute.xlu0 %8718 }
 0xd86   : > { %v8724_v17 = vsel %vm2704_vm2, %v8719_v3, 0 }
 0xd87   : > { %12011 = vmatpush3.bf16.msra.mxu0 %v8724_v17 }
 0xd88   : > { %12022 = vmatprep.subr.bf16.mxu0 %v12336_v43  ;;  %s16319_s27 = smov (!%p10780_p9), %s16318_s22 }
 0xd89   : > { %v12186_v14 = vpop.permute.xlu0 %12185 }
 0xd8a   : > { %12013 = vmatmul.mubr.msk.bf16.vlgmr.msra.gmra.mrb[20].mxu0 %vm2508_vm3, %v8044_v61  ;;  %v16282_v61 = vld [vmem:[#allocation53_spill] sm:$0xff] }
 0xd8b   : > { %12023 = vmatpush3.bf16.msra.mxu0 %v12336_v43 }
 0xd8c   : > { %v12671_v24 = vpop.eup %12670  ;;  %12024 = vmatprep.subr.bf16.mxu0 %v12337_v53 }
 0xd8d   : > { %v8029_v19 = vmul.f32 %v12671_v24, %v15221_v40  ;;  %v16283_v24 = vld [vmem:[#allocation52_spill] sm:$0xff] }
 0xd8f   : > { %v8045_v56 = vpack.c.bf16 %v8029_v19, %v8029_v19  ;;  %12025 = vmatpush3.bf16.msra.mxu0 %v12337_v53  ;;  %v16284_v19 = vpack.i.bf16 %v16282_v61, %v16283_v24  ;;  %v16295_v24 = vld [vmem:[#allocation10_spill] sm:$0xff] }
 0xd90   : > { %12026 = vmatprep.subr.bf16.mxu0 %v12338_v41 }
 0xd91   : > { %12019 = vmatmul.mubr.msk.bf16.vlgmr.msra.gmra.mrb[20].mxu1 %vm2508_vm3, %v8045_v56 }
 0xd92   : > { %9634 = vmatprep.mubr.bf16.mxu1 %v16275_v52 }
 0xd93   : > { %12027 = vmatpush3.bf16.msra.mxu0 %v12338_v41 }
 0xd94   : > { %12028 = vmatprep.subr.bf16.mxu0 %v12339_v18 }
 0xd97   : > { %12029 = vmatpush3.bf16.msra.mxu0 %v12339_v18 }
 0xd98   : > { %12030 = vmatprep.subr.bf16.mxu0 %v12340_v21 }
 0xd9b   : > { %12031 = vmatpush3.bf16.msra.mxu0 %v12340_v21 }
 0xd9c   : > { %12032 = vmatprep.subr.bf16.mxu0 %v12341_v2 }
 0xd9f   : > { %12033 = vmatpush3.bf16.msra.mxu0 %v12341_v2 }
 0xda0   : > { %12034 = vmatprep.subr.bf16.mxu0 %v12342_v35 }
 0xda3   : > { %12035 = vmatpush3.bf16.msra.mxu0 %v12342_v35 }
 0xda4   : > { %12036 = vmatprep.subr.bf16.mxu0 %v12343_v10 }
 0xda7   : > { %12037 = vmatpush3.bf16.msra.mxu0 %v12343_v10 }
 0xdec   : > { %v8088_v40 = vpop.f32.mrb[248].mxu0 }
 0xded   : > { %v11930_v30 = vpop.f32.mrb[249].mxu0 }
 0xdee   : > { %v8091_v63 = vpop.f32.mrb[250].mxu0  ;;  %v16286_v30 = vld [vmem:[#allocation54_spill] sm:$0xff] }
 0xdef   : > { %v11931_v15 = vpop.f32.mrb[251].mxu0 }
 0xdf4   : > { %v8184_v38 = vpop.f32.mrb[252].mxu0 }
 0xdf5   : > { %v11942_v45 = vpop.f32.mrb[253].mxu0 }
 0xdf6   : > { %v8187_v42 = vpop.f32.mrb[254].mxu0 }
 0xdf7   : > { %v8136_v31 = vpop.f32.mrb[248].mxu1  ;;  %v11943_v47 = vpop.f32.mrb[255].mxu0 }
 0xdf8   : > { %v12204_v12 = vpack.i.bf16 %v8136_v31, %v8088_v40  ;;  %v11936_v51 = vpop.f32.mrb[249].mxu1  ;;  %v16285_v40 = vld [vmem:[#allocation55_spill] sm:$0xff]  ;;  %v16288_v31 = vld [vmem:[#allocation57_spill] sm:$0xff]  ;;  %v16289_v47 = vld [vmem:[#allocation56_spill] sm:$0xff] }
 0xdf9   : > { %v8139_v13 = vpop.f32.mrb[250].mxu1  ;;  %v16287_v2 = vpack.i.bf16 %v16285_v40, %v16286_v30 }
 0xdfa   : > { %v11937_v27 = vpop.f32.mrb[251].mxu1  ;;  %12205 = vrot.lane.b32.xlu0 %v12204_v12, %s12779_s3  ;;  %v16290_v12 = vpack.i.bf16 %v16288_v31, %v16289_v47 }
 0xdfe   : > { %12215 = vrot.lane.b32.xlu0 %v16278_v5, %s12781_s6 }
 0xdff   : > { %v8232_v34 = vpop.f32.mrb[252].mxu1 }
 0xe00   : > { %v12209_v36 = vpack.i.bf16 %v8232_v34, %v8184_v38  ;;  %v11948_v26 = vpop.f32.mrb[253].mxu1 }
 0xe01   : > { %v8235_v55 = vpop.f32.mrb[254].mxu1 }
 0xe02   : > { %v11949_v58 = vpop.f32.mrb[255].mxu1  ;;  %12225 = vrot.lane.b32.xlu0 %v12224_v44, %s12780_s25  ;;  %12210 = vrot.lane.b32.xlu1 %v12209_v36, %s12779_s3 }
 0xe03   : > { %v8280_v23 = vpop.f32.mrb[0].mxu0 }
 0xe04   : > { %v11954_v48 = vpop.f32.mrb[1].mxu0 }
 0xe05   : > { %v8283_v7 = vpop.f32.mrb[2].mxu0 }
 0xe06   : > { %12220 = vrot.lane.b32.xlu1 %v16281_v46, %s12781_s6  ;;  %v11955_v20 = vpop.f32.mrb[3].mxu0 }
 0xe07   : > { %v8328_v4 = vpop.f32.mrb[0].mxu1 }
 0xe08   : > { %v12234_v9 = vpack.i.bf16 %v8328_v4, %v8280_v23  ;;  %v11960_v49 = vpop.f32.mrb[1].mxu1 }
 0xe09   : > { %v8331_v3 = vpop.f32.mrb[2].mxu1  ;;  %v12188_v49 = vunpack.i.h.bf16 %v12186_v14 }
 0xe0a   : > { %v11961_v17 = vpop.f32.mrb[3].mxu1  ;;  %12230 = vrot.lane.b32.xlu1 %v12229_v37, %s12780_s25  ;;  %12235 = vrot.lane.b32.xlu0 %v12234_v9, %s12779_s3  ;;  %v12191_v9 = vpop.permute.xlu1 %12190  ;;  %v12187_v3 = vunpack.i.l.bf16 %v12186_v14 }
 0xe0b   : > { %v8376_v62 = vpop.f32.mrb[4].mxu0  ;;  %v12192_v40 = vunpack.i.l.bf16 %v12191_v9 }
 0xe0c   : > { %v11966_v28 = vpop.f32.mrb[5].mxu0 }
 0xe0d   : > { %v8379_v44 = vpop.f32.mrb[6].mxu0 }
 0xe0e   : > { %12245 = vrot.lane.b32.xlu0 %v16284_v19, %s12781_s6  ;;  %v11967_v56 = vpop.f32.mrb[7].mxu0  ;;  %v16294_v44 = vld [vmem:[#allocation12_spill] sm:$0xff]  ;;  %v9006_v19 = vsel %vm1755_vm1, %v16295_v24, %v12187_v3 }
 0xe0f   : > { %v8424_v43 = vpop.f32.mrb[4].mxu1  ;;  %v9007_v61 = vsel %vm1755_vm1, %v16294_v44, %v12188_v49 }
 0xe10   : > { %v12239_v53 = vpack.i.bf16 %v8424_v43, %v8376_v62  ;;  %v11972_v41 = vpop.f32.mrb[5].mxu1 }
 0xe11   : > { %v8427_v18 = vpop.f32.mrb[6].mxu1 }
 0xe12   : > { %v11973_v21 = vpop.f32.mrb[7].mxu1  ;;  %12255 = vrot.lane.b32.xlu0 %v12254_v6, %s12780_s25  ;;  %12240 = vrot.lane.b32.xlu1 %v12239_v53, %s12779_s3  ;;  %v12201_v18 = vpop.permute.xlu1 %12200 }
 0xe13   : > { %v8472_v1 = vpop.f32.mrb[8].mxu0 }
 0xe14   : > { %v11978_v29 = vpop.f32.mrb[9].mxu0 }
 0xe15   : > { %v8475_v37 = vpop.f32.mrb[10].mxu0 }
 0xe16   : > { %12250 = vrot.lane.b32.xlu1 %v16287_v2, %s12781_s6  ;;  %v11979_v63 = vpop.f32.mrb[11].mxu0  ;;  %v12193_v37 = vunpack.i.h.bf16 %v12191_v9  ;;  %v12203_v2 = vunpack.i.h.bf16 %v12201_v18 }
 0xe17   : > { %v12202_v63 = vunpack.i.l.bf16 %v12201_v18 }
 0xe18   : > { %v8520_v15 = vpop.f32.mrb[8].mxu1 }
 0xe19   : > { %v12264_v35 = vpack.i.bf16 %v8520_v15, %v8472_v1  ;;  %v11984_v38 = vpop.f32.mrb[9].mxu1 }
 0xe1a   : > { %v8523_v45 = vpop.f32.mrb[10].mxu1  ;;  %12260 = vrot.lane.b32.xlu1 %v12259_v59, %s12780_s25  ;;  %v16293_v59 = vpack.i.bf16 %v16291_v8, %v16292_v39 }
 0xe1b   : > { %v11985_v33 = vpop.f32.mrb[11].mxu1  ;;  %12265 = vrot.lane.b32.xlu0 %v12264_v35, %s12779_s3  ;;  %v8568_v32 = vpop.f32.mrb[12].mxu0  ;;  %v16296_v35 = vld [vmem:[#allocation15_spill] sm:$0xff]  ;;  %v16297_v45 = vld [vmem:[#allocation16_spill] sm:$0xff] }
 0xe1c   : > { %v11990_v6 = vpop.f32.mrb[13].mxu0  ;;  %v9009_v38 = vsel %vm1755_vm1, %v16296_v35, %v12193_v37  ;;  %v9008_v33 = vsel %vm1755_vm1, %v16297_v45, %v12192_v40 }
 0xe1d   : > { %v8571_v42 = vpop.f32.mrb[14].mxu0 }
 0xe1e   : > { %v11991_v10 = vpop.f32.mrb[15].mxu0  ;;  %v9025_v42 = vsel %vm9022_vm4, %v9008_v33, %v12202_v63 }
 0xe1f   : > { %12275 = vrot.lane.b32.xlu0 %v16290_v12, %s12781_s6  ;;  %v9026_v10 = vsel %vm9022_vm4, %v9009_v38, %v12203_v2 }
 0xe20   : > { %v8616_v51 = vpop.f32.mrb[12].mxu1 }
 0xe21   : > { %v12269_v13 = vpack.i.bf16 %v8616_v51, %v8568_v32  ;;  %v11996_v27 = vpop.f32.mrb[13].mxu1 }
 0xe22   : > { %v8619_v22 = vpop.f32.mrb[14].mxu1 }
 0xe23   : > { %v11997_v57 = vpop.f32.mrb[15].mxu1  ;;  %12285 = vrot.lane.b32.xlu0 %v12284_v25, %s12780_s25  ;;  %12270 = vrot.lane.b32.xlu1 %v12269_v13, %s12779_s3 }
 0xe27   : > { %12280 = vrot.lane.b32.xlu1 %v16293_v59, %s12781_s6  ;;  %v16298_v59 = vld [vmem:[#allocation20_spill] sm:$0xff] }
 0xe2b   : > { %12290 = vrot.lane.b32.xlu1 %v12289_v16, %s12780_s25  ;;  %v12196_v16 = vpop.permute.xlu0 %12195 }
 0xe2c   : > { %v12198_v17 = vunpack.i.h.bf16 %v12196_v16  ;;  %v12197_v62 = vunpack.i.l.bf16 %v12196_v16 }
 0xe2e   : > { %v9023_v53 = vsel %vm9022_vm4, %v9006_v19, %v12197_v62  ;;  %v9024_v41 = vsel %vm9022_vm4, %v9007_v61, %v12198_v17 }
 0xe4c   : > { %v8664_v5 = vpop.f32.mrb[16].mxu0 }
 0xe4d   : > { %v12002_v34 = vpop.f32.mrb[17].mxu0 }
 0xe4e   : > { %v8667_v36 = vpop.f32.mrb[18].mxu0  ;;  %v16299_v34 = vld [vmem:[#allocation21_spill] sm:$0xff] }
 0xe4f   : > { %v12003_v26 = vpop.f32.mrb[19].mxu0 }
 0xe54   : > { %v8712_v55 = vpop.f32.mrb[16].mxu1 }
 0xe55   : > { %v12294_v58 = vpack.i.bf16 %v8712_v55, %v8664_v5  ;;  %v12008_v0 = vpop.f32.mrb[17].mxu1 }
 0xe56   : > { %v8715_v54 = vpop.f32.mrb[18].mxu1 }
 0xe57   : > { %v12009_v25 = vpop.f32.mrb[19].mxu1  ;;  %12295 = vrot.lane.b32.xlu0 %v12294_v58, %s12779_s3 }
 0xe5d   : > { %v8760_v23 = vpop.f32.mrb[20].mxu0 }
 0xe5e   : > { %v12014_v48 = vpop.f32.mrb[21].mxu0 }
 0xe5f   : > { %v8763_v7 = vpop.f32.mrb[22].mxu0 }
 0xe60   : > { %v12015_v11 = vpop.f32.mrb[23].mxu0 }
 0xe64   : > { %v8808_v46 = vpop.f32.mrb[20].mxu1 }
 0xe65   : > { %v12299_v20 = vpack.i.bf16 %v8808_v46, %v8760_v23  ;;  %v12020_v50 = vpop.f32.mrb[21].mxu1 }
 0xe66   : > { %v8811_v60 = vpop.f32.mrb[22].mxu1 }
 0xe67   : > { %v12021_v4 = vpop.f32.mrb[23].mxu1  ;;  %12300 = vrot.lane.b32.xlu1 %v12299_v20, %s12779_s3  ;;  %v16300_v60 = vld [vmem:[#allocation23_spill] sm:$0xff] }
 0xe68   : > { %v16301_v4 = vld [vmem:[#allocation24_spill] sm:$0xff] }
 0xe6c   : > { %v12206_v28 = vpop.permute.xlu0 %12205 }
 0xe6d   : > { %v12208_v56 = vunpack.i.h.bf16 %v12206_v28  ;;  %v12207_v43 = vunpack.i.l.bf16 %v12206_v28 }
 0xe6f   : > { %v9040_v21 = vsel %vm9039_vm5, %v9023_v53, %v12207_v43  ;;  %v9041_v1 = vsel %vm9039_vm5, %v9024_v41, %v12208_v56 }
 0xe70   : > { %v9056_v29 = vpack.c.bf16 %v9041_v1, %v9040_v21  ;;  %v12216_v30 = vpop.permute.xlu0 %12215  ;;  %v16302_v21 = vld [vmem:[#allocation11_spill] sm:$0xff] }
 0xe71   : > { %v12218_v13 = vunpack.i.h.bf16 %v12216_v30  ;;  %v12217_v27 = vunpack.i.l.bf16 %v12216_v30 }
 0xe72   : > { %12038 = vmatprep.mubr.bf16.mxu0 %v9056_v29  ;;  %v16303_v29 = vld [vmem:[#allocation26_spill] sm:$0xff] }
 0xe73   : > { %v9011_v5 = vsel %vm1755_vm1, %v16298_v59, %v12218_v13  ;;  %v9010_v36 = vsel %vm1755_vm1, %v16299_v34, %v12217_v27 }
 0xe74   : > { %v12211_v15 = vpop.permute.xlu1 %12210  ;;  %v12226_v31 = vpop.permute.xlu0 %12225 }
 0xe75   : > { %v12213_v32 = vunpack.i.h.bf16 %v12211_v15  ;;  %v12212_v6 = vunpack.i.l.bf16 %v12211_v15  ;;  %v12228_v57 = vunpack.i.h.bf16 %v12226_v31  ;;  %v12227_v8 = vunpack.i.l.bf16 %v12226_v31  ;;  %v16304_v31 = vld [vmem:[#allocation39_spill] sm:$0xff] }
 0xe77   : > { %v9043_v47 = vsel %vm9039_vm5, %v9026_v10, %v12213_v32  ;;  %v9042_v12 = vsel %vm9039_vm5, %v9025_v42, %v12212_v6  ;;  %v9027_v58 = vsel %vm9022_vm4, %v9010_v36, %v12227_v8  ;;  %v9028_v0 = vsel %vm9022_vm4, %v9011_v5, %v12228_v57 }
 0xe78   : > { %v9057_v51 = vpack.c.bf16 %v9043_v47, %v9042_v12  ;;  %v12221_v22 = vpop.permute.xlu1 %12220  ;;  %v16305_v12 = vld [vmem:[#allocation38_spill] sm:$0xff] }
 0xe79   : > { %v12223_v7 = vunpack.i.h.bf16 %v12221_v22  ;;  %v12222_v11 = vunpack.i.l.bf16 %v12221_v22 }
 0xe7a   : > { %12039 = vmatmul.mubr.bf16.vlgmr.msra.gmra.mrb[24].mxu0 %v9057_v51 }
 0xe7b   : > { %v9013_v16 = vsel %vm1755_vm1, %v16300_v60, %v12223_v7  ;;  %v9012_v9 = vsel %vm1755_vm1, %v16301_v4, %v12222_v11 }
 0xe7c   : > { %v12236_v39 = vpop.permute.xlu0 %12235  ;;  %v12231_v54 = vpop.permute.xlu1 %12230 }
 0xe7d   : > { %v12238_v26 = vunpack.i.h.bf16 %v12236_v39  ;;  %v12237_v55 = vunpack.i.l.bf16 %v12236_v39  ;;  %v12233_v14 = vunpack.i.h.bf16 %v12231_v54  ;;  %v12232_v46 = vunpack.i.l.bf16 %v12231_v54  ;;  %v16306_v54 = vld [vmem:[#allocation42_spill] sm:$0xff] }
 0xe7f   : > { %v9044_v25 = vsel %vm9039_vm5, %v9027_v58, %v12237_v55  ;;  %v9045_v23 = vsel %vm9039_vm5, %v9028_v0, %v12238_v26  ;;  %v9029_v17 = vsel %vm9022_vm4, %v9012_v9, %v12232_v46  ;;  %v9030_v62 = vsel %vm9022_vm4, %v9013_v16, %v12233_v14 }
 0xe80   : > { %v9058_v48 = vpack.c.bf16 %v9045_v23, %v9044_v25  ;;  %v12246_v20 = vpop.permute.xlu0 %12245  ;;  %v16307_v23 = vld [vmem:[#allocation40_spill] sm:$0xff] }
 0xe81   : > { %v12248_v19 = vunpack.i.h.bf16 %v12246_v20  ;;  %v12247_v56 = vunpack.i.l.bf16 %v12246_v20 }
 0xe82   : > { %12042 = vmatprep.mubr.bf16.mxu0 %v9058_v48 }
 0xe83   : > { %v9015_v1 = vsel %vm1755_vm1, %v16302_v21, %v12248_v19  ;;  %v9014_v37 = vsel %vm1755_vm1, %v16303_v29, %v12247_v56  ;;  %v15475_v29 = vld [vmem:[%s16310_s16] ss:$0 sm:$0xff] }
 0xe84   : > { %v12241_v50 = vpop.permute.xlu1 %12240  ;;  %v12256_v61 = vpop.permute.xlu0 %12255 }
 0xe85   : > { %v12243_v49 = vunpack.i.h.bf16 %v12241_v50  ;;  %v12242_v3 = vunpack.i.l.bf16 %v12241_v50  ;;  %v12258_v53 = vunpack.i.h.bf16 %v12256_v61  ;;  %v12257_v41 = vunpack.i.l.bf16 %v12256_v61  ;;  %v16309_v61 = vld [vmem:[#allocation41_spill] sm:$0xff] }
 0xe87   : > { %v9047_v28 = vsel %vm9039_vm5, %v9030_v62, %v12243_v49  ;;  %v9046_v44 = vsel %vm9039_vm5, %v9029_v17, %v12242_v3  ;;  %v9031_v2 = vsel %vm9022_vm4, %v9014_v37, %v12257_v41  ;;  %v9032_v63 = vsel %vm9022_vm4, %v9015_v1, %v12258_v53 }
 0xe88   : > { %v9059_v24 = vpack.c.bf16 %v9047_v28, %v9046_v44  ;;  %v12251_v43 = vpop.permute.xlu1 %12250  ;;  %v16308_v28 = vld [vmem:[#allocation43_spill] sm:$0xff] }
 0xe89   : > { %v12253_v33 = vunpack.i.h.bf16 %v12251_v43  ;;  %v12252_v32 = vunpack.i.l.bf16 %v12251_v43 }
 0xe8a   : > { %12043 = vmatmul.mubr.bf16.gmra.mrb[28].mxu0 %v9059_v24 }
 0xe8b   : > { %v9017_v47 = vsel %vm1755_vm1, %v16304_v31, %v12253_v33  ;;  %v9016_v51 = vsel %vm1755_vm1, %v16305_v12, %v12252_v32 }
 0xe8c   : > { %v12261_v15 = vpop.permute.xlu1 %12260 }
 0xe8d   : > { %v12266_v18 = vpop.permute.xlu0 %12265  ;;  %v12263_v6 = vunpack.i.h.bf16 %v12261_v15  ;;  %v12262_v42 = vunpack.i.l.bf16 %v12261_v15  ;;  %v12705_v15 = vld [vmem:[#allocation2 + $0x10] sm:$0xff] }
 0xe8e   : > { %v12268_v40 = vunpack.i.h.bf16 %v12266_v18  ;;  %v12267_v30 = vunpack.i.l.bf16 %v12266_v18 }
 0xe8f   : > { %v9033_v22 = vsel %vm9022_vm4, %v9016_v51, %v12262_v42  ;;  %v9034_v57 = vsel %vm9022_vm4, %v9017_v47, %v12263_v6  ;;  %v12707_v42 = vld [vmem:[#allocation2 + $0x18] sm:$0xff]  ;;  %v12708_v51 = vld [vmem:[#allocation2 + $0x20] sm:$0xff] }
 0xe90   : > { %v9048_v35 = vsel %vm9039_vm5, %v9031_v2, %v12267_v30  ;;  %v9049_v38 = vsel %vm9039_vm5, %v9032_v63, %v12268_v40  ;;  %v12704_v40 = vld [vmem:[#allocation2] sm:$0xff] }
 0xe91   : > { %v9060_v45 = vpack.c.bf16 %v9049_v38, %v9048_v35  ;;  %v12276_v5 = vpop.permute.xlu0 %12275 }
 0xe92   : > { %v12278_v36 = vunpack.i.h.bf16 %v12276_v5  ;;  %v12277_v26 = vunpack.i.l.bf16 %v12276_v5 }
 0xe93   : > { %12046 = vmatprep.mubr.bf16.mxu0 %v9060_v45  ;;  %v12706_v45 = vld [vmem:[#allocation2 + $0x8] sm:$0xff] }
 0xe94   : > { %v9019_v25 = vsel %vm1755_vm1, %v16306_v54, %v12278_v36  ;;  %v9018_v48 = vsel %vm1755_vm1, %v16307_v23, %v12277_v26 }
 0xe95   : > { %v12271_v10 = vpop.permute.xlu1 %12270  ;;  %v12286_v34 = vpop.permute.xlu0 %12285 }
 0xe96   : > { %v12273_v13 = vunpack.i.h.bf16 %v12271_v10  ;;  %v12272_v27 = vunpack.i.l.bf16 %v12271_v10  ;;  %v12288_v55 = vunpack.i.h.bf16 %v12286_v34  ;;  %v12287_v58 = vunpack.i.l.bf16 %v12286_v34  ;;  %v12711_v34 = vld [vmem:[#allocation2 + $0x38] sm:$0xff] }
 0xe98   : > { %v9051_v8 = vsel %vm9039_vm5, %v9034_v57, %v12273_v13  ;;  %v9050_v39 = vsel %vm9039_vm5, %v9033_v22, %v12272_v27  ;;  %v9035_v14 = vsel %vm9022_vm4, %v9018_v48, %v12287_v58  ;;  %v9036_v46 = vsel %vm9022_vm4, %v9019_v25, %v12288_v55  ;;  %v12709_v57 = vld [vmem:[#allocation2 + $0x30] sm:$0xff]  ;;  %v12712_v25 = vld [vmem:[#allocation2 + $0x40] sm:$0xff] }
 0xe99   : > { %v9061_v59 = vpack.c.bf16 %v9051_v8, %v9050_v39  ;;  %v12281_v16 = vpop.permute.xlu1 %12280 }
 0xe9a   : > { %v12283_v9 = vunpack.i.h.bf16 %v12281_v16  ;;  %v12282_v49 = vunpack.i.l.bf16 %v12281_v16 }
 0xe9b   : > { %12047 = vmatmul.mubr.bf16.gmra.mrb[32].mxu0 %v9061_v59  ;;  %v12710_v59 = vld [vmem:[#allocation2 + $0x28] sm:$0xff] }
 0xe9c   : > { %v9021_v44 = vsel %vm1755_vm1, %v16308_v28, %v12283_v9  ;;  %v9020_v24 = vsel %vm1755_vm1, %v16309_v61, %v12282_v49 }
 0xe9d   : > { %v12291_v4 = vpop.permute.xlu1 %12290 }
 0xe9e   : > { %v12293_v3 = vunpack.i.h.bf16 %v12291_v4  ;;  %v12292_v17 = vunpack.i.l.bf16 %v12291_v4 }
 0xea0   : > { %v9037_v43 = vsel %vm9022_vm4, %v9020_v24, %v12292_v17  ;;  %v9038_v53 = vsel %vm9022_vm4, %v9021_v44, %v12293_v3  ;;  %v12717_v24 = vld [vmem:[#allocation2 + $0x70] sm:$0xff] }
 0xec9   : > { %v12296_v0 = vpop.permute.xlu0 %12295 }
 0xeca   : > { %v12298_v7 = vunpack.i.h.bf16 %v12296_v0  ;;  %v12297_v11 = vunpack.i.l.bf16 %v12296_v0 }
 0xecc   : > { %v9052_v20 = vsel %vm9039_vm5, %v9035_v14, %v12297_v11  ;;  %v9053_v50 = vsel %vm9039_vm5, %v9036_v46, %v12298_v7  ;;  %v12713_v11 = vld [vmem:[#allocation2 + $0x50] sm:$0xff] }
 0xecd   : > { %v9062_v60 = vpack.c.bf16 %v9053_v50, %v9052_v20  ;;  %v12714_v20 = vld [vmem:[#allocation2 + $0x48] sm:$0xff] }
 0xecf   : > { %12050 = vmatprep.mubr.bf16.mxu0 %v9062_v60  ;;  %v12715_v60 = vld [vmem:[#allocation2 + $0x58] sm:$0xff] }
 0xed9   : > { %v12301_v62 = vpop.permute.xlu1 %12300 }
 0xeda   : > { %v12303_v19 = vunpack.i.h.bf16 %v12301_v62  ;;  %v12302_v56 = vunpack.i.l.bf16 %v12301_v62  ;;  %v12716_v62 = vld [vmem:[#allocation2 + $0x60] sm:$0xff] }
 0xedc   : > { %v9055_v41 = vsel %vm9039_vm5, %v9038_v53, %v12303_v19  ;;  %v9054_v18 = vsel %vm9039_vm5, %v9037_v43, %v12302_v56  ;;  %v12718_v43 = vld [vmem:[#allocation2 + $0x68] sm:$0xff] }
 0xedd   : > { %v9063_v21 = vpack.c.bf16 %v9055_v41, %v9054_v18  ;;  %v12719_v41 = vld [vmem:[#allocation2 + $0x78] sm:$0xff] }
 0xedf   : > { %12051 = vmatmul.mubr.bf16.gmra.mrb[36].mxu0 %v9063_v21 }
 0xf4d   : > { %v12040_v1 = vpop.f32.mrb[24].mxu0 }
 0xf4e   : > { %v9162_v37 = vpop.f32.mrb[25].mxu0  ;;  %v9227_v35 = vadd.f32 %v12705_v15, %v12040_v1 }
 0xf4f   : > { %v9225_v30 = vadd.f32 %v12704_v40, %v9162_v37  ;;  %v12041_v2 = vpop.f32.mrb[26].mxu0  ;;  %v12344_v40 = vld [vmem:[%s12976_s7] ss:$8 sps:$4 sm:$0xff]  }
 0xf50   : > { %v9165_v63 = vpop.f32.mrb[27].mxu0  ;;  %v15485_v6 = vadd.f32 %v15475_v29, %v9227_v35  ;;  %v9228_v10 = vadd.f32 %v12707_v42, %v12041_v2  ;;  %v12349_v2 = vld [vmem:[%s12976_s7 + $0x14] ss:$8 sps:$4 sm:$0xff]  }
 0xf51   : > { %v15478_v38 = vadd.f32 %v15475_v29, %v9225_v30  ;;  %v9226_v33 = vadd.f32 %v12706_v45, %v9165_v63  ;;  %v12346_v30 = vld [vmem:[%s12976_s7 + $0x4] ss:$8 sps:$4 sm:$0xff]   ;;  %v12347_v63 = vld [vmem:[%s12976_s7 + $0x10] ss:$8 sps:$4 sm:$0xff]  }
 0xf52   : > { %v15490_v31 = vadd.f32 %v15475_v29, %v9228_v10  ;;  %9602 = vmatprep.subr.bf16.mxu1 %v12346_v30 }
 0xf53   : > { %v15481_v32 = vadd.f32 %v15475_v29, %v9226_v33  ;;  %9266 = vadd.xlane.f32.xlu0 %v15478_v38  ;;  %9603 = vmatpush1.bf16.msra.mxu1 %v12344_v40 }
 0xf54   : > { %9604 = vmatprep.subr.bf16.mxu1 %v12349_v2 }
 0xf55   : > { %9268 = vadd.xlane.f32.xlu1 %v15481_v32 }
 0xf57   : > { %9270 = vadd.xlane.f32.xlu0 %v15485_v6  ;;  %9605 = vmatpush1.bf16.msra.mxu1 %v12347_v63 }
 0xf5b   : > { %9272 = vadd.xlane.f32.xlu0 %v15490_v31 }
 0xf5d   : > { %v12044_v47 = vpop.f32.mrb[28].mxu0 }
 0xf5e   : > { %v9178_v12 = vpop.f32.mrb[29].mxu0  ;;  %v9231_v8 = vadd.f32 %v12709_v57, %v12044_v47 }
 0xf5f   : > { %v9229_v13 = vadd.f32 %v12708_v51, %v9178_v12  ;;  %v12045_v27 = vpop.f32.mrb[30].mxu0 }
 0xf60   : > { %v9181_v22 = vpop.f32.mrb[31].mxu0  ;;  %v9232_v36 = vadd.f32 %v12711_v34, %v12045_v27  ;;  %v15501_v55 = vadd.f32 %v15475_v29, %v9231_v8 }
 0xf61   : > { %v15494_v39 = vadd.f32 %v15475_v29, %v9229_v13  ;;  %v9230_v5 = vadd.f32 %v12710_v59, %v9181_v22 }
 0xf62   : > { %v15505_v58 = vadd.f32 %v15475_v29, %v9232_v36 }
 0xf63   : > { %v15497_v26 = vadd.f32 %v15475_v29, %v9230_v5  ;;  %9274 = vadd.xlane.f32.xlu0 %v15494_v39 }
 0xf65   : > { %9276 = vadd.xlane.f32.xlu1 %v15497_v26 }
 0xf67   : > { %9278 = vadd.xlane.f32.xlu0 %v15501_v55 }
 0xf69   : > { %9280 = vadd.xlane.f32.xlu1 %v15505_v58 }
 0xf6e   : > { %v12048_v0 = vpop.f32.mrb[32].mxu0 }
 0xf6f   : > { %v9194_v54 = vpop.f32.mrb[33].mxu0  ;;  %v9235_v14 = vadd.f32 %v12713_v11, %v12048_v0 }
 0xf70   : > { %v9233_v23 = vadd.f32 %v12712_v25, %v9194_v54  ;;  %v12049_v48 = vpop.f32.mrb[34].mxu0 }
 0xf71   : > { %v9197_v7 = vpop.f32.mrb[35].mxu0  ;;  %v9236_v16 = vadd.f32 %v12715_v60, %v12049_v48  ;;  %v15517_v9 = vadd.f32 %v15475_v29, %v9235_v14  ;;  %v12352_v14 = vld [vmem:[%s12976_s7 + $0x24] ss:$8 sps:$4 sm:$0xff]  }
 0xf72   : > { %v15510_v46 = vadd.f32 %v15475_v29, %v9233_v23  ;;  %v9234_v50 = vadd.f32 %v12714_v20, %v9197_v7  ;;  %9606 = vmatprep.subr.bf16.mxu1 %v12352_v14 }
 0xf73   : > { %v15521_v49 = vadd.f32 %v15475_v29, %v9236_v16  ;;  %v12350_v16 = vld [vmem:[%s12976_s7 + $0x20] ss:$8 sps:$4 sm:$0xff]  }
 0xf74   : > { %v15513_v4 = vadd.f32 %v15475_v29, %v9234_v50  ;;  %9282 = vadd.xlane.f32.xlu0 %v15510_v46  ;;  %9607 = vmatpush1.bf16.msra.mxu1 %v12350_v16 }
 0xf76   : > { %9284 = vadd.xlane.f32.xlu1 %v15513_v4 }
 0xf78   : > { %9286 = vadd.xlane.f32.xlu0 %v15517_v9 }
 0xf7a   : > { %9288 = vadd.xlane.f32.xlu1 %v15521_v49 }
 0xfb2   : > { %v12052_v3 = vpop.f32.mrb[36].mxu0 }
 0xfb3   : > { %v9210_v17 = vpop.f32.mrb[37].mxu0  ;;  %v9239_v19 = vadd.f32 %v12717_v24, %v12052_v3  ;;  %v12356_v24 = vld [vmem:[%s12976_s7 + $0x40] ss:$8 sps:$4 sm:$0xff]  }
 0xfb4   : > { %v9237_v28 = vadd.f32 %v12716_v62, %v9210_v17  ;;  %v12053_v44 = vpop.f32.mrb[38].mxu0  ;;  %v12355_v62 = vld [vmem:[%s12976_s7 + $0x34] ss:$8 sps:$4 sm:$0xff]  }
 0xfb5   : > { %v9213_v61 = vpop.f32.mrb[39].mxu0  ;;  %v9240_v18 = vadd.f32 %v12719_v41, %v12053_v44  ;;  %v15533_v1 = vadd.f32 %v15475_v29, %v9239_v19  ;;  %v12353_v44 = vld [vmem:[%s12976_s7 + $0x30] ss:$8 sps:$4 sm:$0xff]   ;;  %9608 = vmatprep.subr.bf16.mxu1 %v12355_v62 }
 0xfb6   : > { %v15526_v56 = vadd.f32 %v15475_v29, %v9237_v28  ;;  %v9238_v53 = vadd.f32 %v12718_v43, %v9213_v61  ;;  %9609 = vmatpush1.bf16.msra.mxu1 %v12353_v44  ;;  %v12358_v61 = vld [vmem:[%s12976_s7 + $0x44] ss:$8 sps:$4 sm:$0xff]  }
 0xfb7   : > { %v15537_v37 = vadd.f32 %v15475_v29, %v9240_v18  ;;  %9610 = vmatprep.subr.bf16.mxu1 %v12358_v61  ;;  %v12359_v18 = vld [vmem:[%s12976_s7 + $0x50] ss:$8 sps:$4 sm:$0xff]  }
 0xfb8   : > { %v15529_v21 = vadd.f32 %v15475_v29, %v9238_v53  ;;  %9290 = vadd.xlane.f32.xlu0 %v15526_v56  ;;  %v12361_v53 = vld [vmem:[%s12976_s7 + $0x54] ss:$8 sps:$4 sm:$0xff]  }
 0xfba   : > { %9292 = vadd.xlane.f32.xlu1 %v15529_v21  ;;  %9611 = vmatpush1.bf16.msra.mxu1 %v12356_v24 }
 0xfbb   : > { %9612 = vmatprep.subr.bf16.mxu1 %v12361_v53 }
 0xfbc   : > { %9294 = vadd.xlane.f32.xlu0 %v15533_v1 }
 0xfbe   : > { %9296 = vadd.xlane.f32.xlu1 %v15537_v37  ;;  %9613 = vmatpush1.bf16.msra.mxu1 %v12359_v18 }
 0xfe0   : > { %v9267_v15 = vpop.xlane.xlu0 %9266 }
 0xfe1   : > { %v9298_v35 = vmul.f32 0.0078125, %v9267_v15 }
 0xfe2   : > { %v9269_v45 = vpop.xlane.xlu1 %9268 }
 0xfe3   : > { %v15546_v33 = vsub.f32 %v15478_v38, %v9298_v35  ;;  %v9299_v29 = vmul.f32 0.0078125, %v9269_v45  ;;  %v12364_v45 = vld [vmem:[%s12976_s7 + $0x64] ss:$8 sps:$4 sm:$0xff]  }
 0xfe4   : > { %v9271_v42 = vpop.xlane.xlu0 %9270  ;;  %9614 = vmatprep.subr.bf16.mxu1 %v12364_v45  ;;  %v15639_v45 = vld [vmem:[%s12987_s0] sm:$0xff]  }
 0xfe5   : > { %v15549_v10 = vsub.f32 %v15481_v32, %v9299_v29  ;;  %v9300_v47 = vmul.f32 0.0078125, %v9271_v42  ;;  %v9330_v12 = vmul.f32 %v15546_v33, %v15546_v33  ;;  %v12362_v42 = vld [vmem:[%s12976_s7 + $0x60] ss:$8 sps:$4 sm:$0xff]  }
 0xfe6   : > { %9615 = vmatpush1.bf16.msra.mxu1 %v12362_v42 }
 0xfe7   : > { %v15554_v51 = vsub.f32 %v15485_v6, %v9300_v47  ;;  %9346 = vadd.xlane.f32.xlu0 %v9330_v12  ;;  %v9331_v13 = vmul.f32 %v15549_v10, %v15549_v10 }
 0xfe8   : > { %v9273_v27 = vpop.xlane.xlu0 %9272 }
 0xfe9   : > { %v9301_v22 = vmul.f32 0.0078125, %v9273_v27  ;;  %9348 = vadd.xlane.f32.xlu1 %v9331_v13  ;;  %v9332_v57 = vmul.f32 %v15554_v51, %v15554_v51 }
 0xfeb   : > { %v15561_v8 = vsub.f32 %v15490_v31, %v9301_v22  ;;  %9350 = vadd.xlane.f32.xlu0 %v9332_v57  ;;  %v12367_v57 = vld [vmem:[%s12976_s7 + $0x74] ss:$8 sps:$4 sm:$0xff]  }
 0xfec   : > { %9616 = vmatprep.subr.bf16.mxu1 %v12367_v57  ;;  %v12372_v57 = vld [vmem:[%s12987_s0 + $0x50] sm:$0xff]  }
 0xfed   : > { %v9333_v59 = vmul.f32 %v15561_v8, %v15561_v8 }
 0xfef   : > { %9352 = vadd.xlane.f32.xlu1 %v9333_v59  ;;  %v12365_v59 = vld [vmem:[%s12976_s7 + $0x70] ss:$8 sps:$4 sm:$0xff]  }
 0xff0   : > { %v9275_v5 = vpop.xlane.xlu0 %9274  ;;  %9617 = vmatpush1.bf16.msra.mxu1 %v12365_v59  ;;  %v15646_v59 = vld [vmem:[%s12987_s0 + $0x10] sm:$0xff]  }
 0xff1   : > { %v9302_v34 = vmul.f32 0.0078125, %v9275_v5 }
 0xff2   : > { %v9277_v36 = vpop.xlane.xlu1 %9276 }
 0xff3   : > { %v15566_v0 = vsub.f32 %v15494_v39, %v9302_v34  ;;  %v9303_v54 = vmul.f32 0.0078125, %v9277_v36 }
 0xff4   : > { %v9279_v25 = vpop.xlane.xlu0 %9278 }
 0xff5   : > { %v15569_v23 = vsub.f32 %v15497_v26, %v9303_v54  ;;  %v9304_v48 = vmul.f32 0.0078125, %v9279_v25  ;;  %v9334_v7 = vmul.f32 %v15566_v0, %v15566_v0 }
 0xff6   : > { %v9281_v11 = vpop.xlane.xlu1 %9280 }
 0xff7   : > { %v15575_v20 = vsub.f32 %v15501_v55, %v9304_v48  ;;  %v9305_v50 = vmul.f32 0.0078125, %v9281_v11  ;;  %9354 = vadd.xlane.f32.xlu0 %v9334_v7  ;;  %v9335_v60 = vmul.f32 %v15569_v23, %v15569_v23 }
 0xff9   : > { %v15581_v3 = vsub.f32 %v15505_v58, %v9305_v50  ;;  %9356 = vadd.xlane.f32.xlu1 %v9335_v60  ;;  %v9336_v17 = vmul.f32 %v15575_v20, %v15575_v20 }
 0xffb   : > { %9358 = vadd.xlane.f32.xlu0 %v9336_v17  ;;  %v9337_v28 = vmul.f32 %v15581_v3, %v15581_v3 }
 0xffd   : > { %9360 = vadd.xlane.f32.xlu1 %v9337_v28 }
0x1001   : > { %v9283_v19 = vpop.xlane.xlu0 %9282 }
0x1002   : > { %v9306_v43 = vmul.f32 0.0078125, %v9283_v19 }
0x1003   : > { %v9285_v41 = vpop.xlane.xlu1 %9284 }
0x1004   : > { %v15594_v40 = vsub.f32 %v15510_v46, %v9306_v43  ;;  %v9307_v30 = vmul.f32 0.0078125, %v9285_v41 }
0x1005   : > { %v9287_v2 = vpop.xlane.xlu0 %9286 }
0x1006   : > { %v15597_v63 = vsub.f32 %v15513_v4, %v9307_v30  ;;  %v9308_v15 = vmul.f32 0.0078125, %v9287_v2  ;;  %v9338_v35 = vmul.f32 %v15594_v40, %v15594_v40 }
0x1007   : > { %v9289_v29 = vpop.xlane.xlu1 %9288 }
0x1008   : > { %v15604_v47 = vsub.f32 %v15517_v9, %v9308_v15  ;;  %v9309_v12 = vmul.f32 0.0078125, %v9289_v29  ;;  %9362 = vadd.xlane.f32.xlu0 %v9338_v35  ;;  %v9339_v13 = vmul.f32 %v15597_v63, %v15597_v63  ;;  %v12368_v35 = vld [vmem:[%s12987_s0 + $0x40] sm:$0xff]   ;;  %v12370_v29 = vld [vmem:[%s12987_s0 + $0x48] sm:$0xff]  }
0x1009   : > { %11108 = vmatprep.subr.bf16.mxu0 %v12368_v35  ;;  %12110 = vmatprep.subr.bf16.mxu1 %v12368_v35  ;;  %v15682_v35 = vld [vmem:[%s12987_s0 + $0x20] sm:$0xff]  }
0x100a   : > { %v15609_v27 = vsub.f32 %v15521_v49, %v9309_v12  ;;  %9364 = vadd.xlane.f32.xlu1 %v9339_v13  ;;  %v9340_v22 = vmul.f32 %v15604_v47, %v15604_v47  ;;  %11109 = vmatpush3.bf16.msra.mxu0 %v15639_v45  ;;  %v12371_v13 = vld [vmem:[%s12987_s0 + $0x8] sm:$0xff]  }
0x100b   : > { %11110 = vmatprep.subr.bf16.mxu0 %v12370_v29 }
0x100c   : > { %9366 = vadd.xlane.f32.xlu0 %v9340_v22  ;;  %v9341_v5 = vmul.f32 %v15609_v27, %v15609_v27 }
0x100e   : > { %9368 = vadd.xlane.f32.xlu1 %v9341_v5  ;;  %11111 = vmatpush3.bf16.msra.mxu0 %v12371_v13 }
0x100f   : > { %11112 = vmatprep.subr.bf16.mxu0 %v12372_v57 }
0x1012   : > { %11113 = vmatpush3.bf16.msra.mxu0 %v15646_v59 }
0x1045   : > { %v9291_v34 = vpop.xlane.xlu0 %9290 }
0x1046   : > { %v9310_v36 = vmul.f32 0.0078125, %v9291_v34  ;;  %v15653_v34 = vld [vmem:[%s16311_s18] ss:$0 sm:$0xff] }
0x1047   : > { %v9293_v54 = vpop.xlane.xlu1 %9292 }
0x1048   : > { %v15618_v25 = vsub.f32 %v15526_v56, %v9310_v36  ;;  %v9311_v48 = vmul.f32 0.0078125, %v9293_v54  ;;  %v15656_v36 = vld [vmem:[%s12987_s0 + $0x58] sm:$0xff]  }
0x1049   : > { %v9295_v7 = vpop.xlane.xlu0 %9294  ;;  %11114 = vmatprep.subr.bf16.mxu0 %v15656_v36 }
0x104a   : > { %v15621_v11 = vsub.f32 %v15529_v21, %v9311_v48  ;;  %v9312_v14 = vmul.f32 0.0078125, %v9295_v7  ;;  %v9342_v50 = vmul.f32 %v15618_v25, %v15618_v25 }
0x104b   : > { %v9297_v60 = vpop.xlane.xlu1 %9296 }
0x104c   : > { %v15626_v16 = vsub.f32 %v15533_v1, %v9312_v14  ;;  %v9313_v17 = vmul.f32 0.0078125, %v9297_v60  ;;  %9370 = vadd.xlane.f32.xlu0 %v9342_v50  ;;  %v9343_v62 = vmul.f32 %v15621_v11, %v15621_v11 }
0x104e   : > { %v15631_v28 = vsub.f32 %v15537_v37, %v9313_v17  ;;  %9372 = vadd.xlane.f32.xlu1 %v9343_v62  ;;  %v9344_v44 = vmul.f32 %v15626_v16, %v15626_v16  ;;  %v15663_v62 = vld [vmem:[%s12987_s0 + $0x18] sm:$0xff]  }
0x104f   : > { %11115 = vmatpush3.bf16.msra.mxu0 %v15663_v62 }
0x1050   : > { %9374 = vadd.xlane.f32.xlu0 %v9344_v44  ;;  %v9345_v61 = vmul.f32 %v15631_v28, %v15631_v28 }
0x1052   : > { %9376 = vadd.xlane.f32.xlu1 %v9345_v61  ;;  %v15670_v61 = vld [vmem:[%s16312_s20] ss:$0 sm:$0xff] }
0x1074   : > { %v9347_v24 = vpop.xlane.xlu0 %9346 }
0x1075   : > { %v9378_v19 = vmul.f32 0.0078125, %v9347_v24 }
0x1076   : > { %v9349_v43 = vpop.xlane.xlu1 %9348 }
0x1077   : > { %v9394_v53 = vadd.f32 1e-05, %v9378_v19  ;;  %v9379_v41 = vmul.f32 0.0078125, %v9349_v43  ;;  %v15674_v19 = vld [vmem:[%s12987_s0 + $0x60] sm:$0xff]  }
0x1078   : > { %v9351_v18 = vpop.xlane.xlu0 %9350  ;;  %11116 = vmatprep.subr.bf16.mxu0 %v15674_v19 }
0x1079   : > { %12672 = vrsqrt.f32 %v9394_v53  ;;  %v9395_v30 = vadd.f32 1e-05, %v9379_v41  ;;  %v9380_v2 = vmul.f32 0.0078125, %v9351_v18  ;;  %11117 = vmatpush3.bf16.msra.mxu0 %v15682_v35 }
0x107b   : > { %12674 = vrsqrt.f32 %v9395_v30  ;;  %v9396_v15 = vadd.f32 1e-05, %v9380_v2 }
0x107c   : > { %v9353_v42 = vpop.xlane.xlu1 %9352 }
0x107d   : > { %12676 = vrsqrt.f32 %v9396_v15  ;;  %v9381_v12 = vmul.f32 0.0078125, %v9353_v42 }
0x107f   : > { %v9397_v22 = vadd.f32 1e-05, %v9381_v12 }
0x1081   : > { %12678 = vrsqrt.f32 %v9397_v22 }
0x1083   : > { %v12673_v5 = vpop.eup %12672 }
0x1084   : > { %v9426_v54 = vmul.f32 %v12673_v5, %v15546_v33  ;;  %v9355_v48 = vpop.xlane.xlu0 %9354  ;;  %v12378_v5 = vld [vmem:[%s12987_s0 + $0x68] sm:$0xff]  }
0x1085   : > { %v12675_v7 = vpop.eup %12674  ;;  %v9382_v14 = vmul.f32 0.0078125, %v9355_v48  ;;  %11118 = vmatprep.subr.bf16.mxu0 %v12378_v5 }
0x1086   : > { %v9448_v50 = vmul.f32 %v15653_v34, %v9426_v54  ;;  %v9427_v60 = vmul.f32 %v12675_v7, %v15549_v10  ;;  %v9357_v17 = vpop.xlane.xlu1 %9356 }
0x1087   : > { %v12677_v44 = vpop.eup %12676  ;;  %v9398_v33 = vadd.f32 1e-05, %v9382_v14  ;;  %v9383_v24 = vmul.f32 0.0078125, %v9357_v17 }
0x1088   : > { %v9449_v10 = vmul.f32 %v15653_v34, %v9427_v60  ;;  %v9359_v43 = vpop.xlane.xlu0 %9358  ;;  %v9470_v18 = vadd.f32 %v15670_v61, %v9448_v50  ;;  %v9428_v2 = vmul.f32 %v12677_v44, %v15554_v51 }
0x1089   : > { %12680 = vrsqrt.f32 %v9398_v33  ;;  %v9399_v53 = vadd.f32 1e-05, %v9383_v24  ;;  %v9384_v41 = vmul.f32 0.0078125, %v9359_v43 }
0x108a   : > { %v9471_v30 = vadd.f32 %v15670_v61, %v9449_v10  ;;  %v9361_v15 = vpop.xlane.xlu1 %9360  ;;  %v9450_v14 = vmul.f32 %v15653_v34, %v9428_v2 }
0x108b   : > { %v12679_v42 = vpop.eup %12678  ;;  %12682 = vrsqrt.f32 %v9399_v53  ;;  %v9400_v12 = vadd.f32 1e-05, %v9384_v41  ;;  %v9385_v22 = vmul.f32 0.0078125, %v9361_v15 }
0x108c   : > { %v9486_v54 = vpack.c.bf16 %v9471_v30, %v9470_v18  ;;  %v9429_v48 = vmul.f32 %v12679_v42, %v15561_v8  ;;  %v9472_v8 = vadd.f32 %v15670_v61, %v9450_v14 }
0x108d   : > { %12684 = vrsqrt.f32 %v9400_v12  ;;  %v9401_v7 = vadd.f32 1e-05, %v9385_v22 }
0x108e   : > { %v9451_v51 = vmul.f32 %v15653_v34, %v9429_v48  ;;  %9635 = vmatmul.mubr.bf16.vlgmr.msra.gmra.mrb[24].mxu1 %v9486_v54 }
0x108f   : > { %12686 = vrsqrt.f32 %v9401_v7  ;;  %9644 = vmatprep.mubr.bf16.mxu1 %v16275_v52  ;;  %12118 = vmatpush3.bf16.msra.mxu1 %v15639_v45 }
0x1090   : > { %v9473_v50 = vadd.f32 %v15670_v61, %v9451_v51  ;;  %12111 = vmatprep.subr.bf16.mxu1 %v12370_v29 }
0x1092   : > { %v9487_v17 = vpack.c.bf16 %v9473_v50, %v9472_v8 }
0x1093   : > { %v12681_v60 = vpop.eup %12680  ;;  %12119 = vmatpush3.bf16.msra.mxu1 %v12371_v13 }
0x1094   : > { %v9430_v44 = vmul.f32 %v12681_v60, %v15566_v0  ;;  %12112 = vmatprep.subr.bf16.mxu1 %v12372_v57 }
0x1095   : > { %v12683_v33 = vpop.eup %12682  ;;  %v9363_v24 = vpop.xlane.xlu0 %9362 }
0x1096   : > { %v9452_v10 = vmul.f32 %v15653_v34, %v9430_v44  ;;  %v9431_v43 = vmul.f32 %v12683_v33, %v15569_v23  ;;  %v9386_v53 = vmul.f32 0.0078125, %v9363_v24  ;;  %9645 = vmatmul.mubr.bf16.gmra.mrb[28].mxu1 %v9487_v17 }
0x1097   : > { %v12685_v41 = vpop.eup %12684  ;;  %v9365_v18 = vpop.xlane.xlu1 %9364  ;;  %9654 = vmatprep.mubr.bf16.mxu1 %v16275_v52  ;;  %12120 = vmatpush3.bf16.msra.mxu1 %v15646_v59 }
0x1098   : > { %v9453_v45 = vmul.f32 %v15653_v34, %v9431_v43  ;;  %v9402_v29 = vadd.f32 1e-05, %v9386_v53  ;;  %v9474_v13 = vadd.f32 %v15670_v61, %v9452_v10  ;;  %v9387_v30 = vmul.f32 0.0078125, %v9365_v18  ;;  %12113 = vmatprep.subr.bf16.mxu1 %v15656_v36 }
0x1099   : > { %v12687_v0 = vpop.eup %12686  ;;  %v9367_v57 = vpop.xlane.xlu0 %9366  ;;  %v9432_v2 = vmul.f32 %v12685_v41, %v15575_v20 }
0x109a   : > { %v9475_v23 = vadd.f32 %v15670_v61, %v9453_v45  ;;  %v9433_v15 = vmul.f32 %v12687_v0, %v15581_v3  ;;  %12688 = vrsqrt.f32 %v9402_v29  ;;  %v9403_v42 = vadd.f32 1e-05, %v9387_v30 }
0x109b   : > { %v9388_v12 = vmul.f32 0.0078125, %v9367_v57  ;;  %v9369_v22 = vpop.xlane.xlu1 %9368  ;;  %12121 = vmatpush3.bf16.msra.mxu1 %v15663_v62  ;;  %v9454_v36 = vmul.f32 %v15653_v34, %v9432_v2 }
0x109c   : > { %v9488_v54 = vpack.c.bf16 %v9475_v23, %v9474_v13  ;;  %v9455_v59 = vmul.f32 %v15653_v34, %v9433_v15  ;;  %v9389_v48 = vmul.f32 0.0078125, %v9369_v22  ;;  %12690 = vrsqrt.f32 %v9403_v42  ;;  %12114 = vmatprep.subr.bf16.mxu1 %v15674_v19  ;;  %v12379_v42 = vld [vmem:[%s12987_s0 + $0x28] sm:$0xff]   ;;  %v12380_v22 = vld [vmem:[%s12987_s0 + $0x70] sm:$0xff]  }
0x109d   : > { %v9404_v7 = vadd.f32 1e-05, %v9388_v12  ;;  %v9476_v3 = vadd.f32 %v15670_v61, %v9454_v36  ;;  %11119 = vmatpush3.bf16.msra.mxu0 %v12379_v42  ;;  %v12383_v36 = vld [vmem:[%s12987_s0 + $0x38] sm:$0xff]  }
0x109e   : > { %v9405_v14 = vadd.f32 1e-05, %v9389_v48  ;;  %9655 = vmatmul.mubr.bf16.gmra.mrb[32].mxu1 %v9488_v54  ;;  %v9477_v20 = vadd.f32 %v15670_v61, %v9455_v59  ;;  %v12381_v54 = vld [vmem:[%s12987_s0 + $0x30] sm:$0xff]   ;;  %11120 = vmatprep.subr.bf16.mxu0 %v12380_v22  ;;  %v12382_v48 = vld [vmem:[%s12987_s0 + $0x78] sm:$0xff]  }
0x109f   : > { %12692 = vrsqrt.f32 %v9404_v7  ;;  %9664 = vmatprep.mubr.bf16.mxu1 %v16275_v52  ;;  %12122 = vmatpush3.bf16.msra.mxu1 %v15682_v35 }
0x10a0   : > { %12694 = vrsqrt.f32 %v9405_v14  ;;  %12115 = vmatprep.subr.bf16.mxu1 %v12378_v5  ;;  %v9489_v51 = vpack.c.bf16 %v9477_v20, %v9476_v3 }
0x10a1   : > { %11121 = vmatpush3.bf16.msra.mxu0 %v12381_v54 }
0x10a2   : > { %11122 = vmatprep.subr.bf16.mxu0 %v12382_v48 }
0x10a3   : > { %12123 = vmatpush3.bf16.msra.mxu1 %v12379_v42 }
0x10a4   : > { %v12689_v62 = vpop.eup %12688  ;;  %12116 = vmatprep.subr.bf16.mxu1 %v12380_v22 }
0x10a5   : > { %v9434_v50 = vmul.f32 %v12689_v62, %v15594_v40  ;;  %11123 = vmatpush3.bf16.msra.mxu0 %v12383_v36 }
0x10a6   : > { %9665 = vmatmul.mubr.bf16.gmra.mrb[36].mxu1 %v9489_v51  ;;  %v12691_v19 = vpop.eup %12690 }
0x10a7   : > { %9674 = vmatprep.mubr.bf16.mxu1 %v16275_v52  ;;  %v9456_v8 = vmul.f32 %v15653_v34, %v9434_v50  ;;  %v9435_v60 = vmul.f32 %v12691_v19, %v15597_v63  ;;  %12124 = vmatpush3.bf16.msra.mxu1 %v12381_v54 }
0x10a8   : > { %12117 = vmatprep.subr.bf16.mxu1 %v12382_v48 }
0x10a9   : > { %v12693_v17 = vpop.eup %12692  ;;  %v9457_v33 = vmul.f32 %v15653_v34, %v9435_v60  ;;  %v9478_v5 = vadd.f32 %v15670_v61, %v9456_v8 }
0x10aa   : > { %v12695_v44 = vpop.eup %12694  ;;  %v9436_v40 = vmul.f32 %v12693_v17, %v15604_v47 }
0x10ab   : > { %v9437_v35 = vmul.f32 %v12695_v44, %v15609_v27  ;;  %v9479_v24 = vadd.f32 %v15670_v61, %v9457_v33  ;;  %12125 = vmatpush3.bf16.msra.mxu1 %v12383_v36 }
0x10ac   : > { %v9458_v53 = vmul.f32 %v15653_v34, %v9436_v40  ;;  %v16313_v40 = vld [vmem:[#allocation9_spill] sm:$0xff] }
0x10ad   : > { %v9490_v10 = vpack.c.bf16 %v9479_v24, %v9478_v5  ;;  %v9459_v43 = vmul.f32 %v15653_v34, %v9437_v35  ;;  %v9510_v24 = vld [vmem:[%s12982_s23] sm:$0x3]  ;;  %s16320_s23 = sld [smem:[#allocation73_spill]] (!%p10780_p9) }
0x10ae   : > { %v9480_v41 = vadd.f32 %v15670_v61, %v9458_v53 }
0x10af   : > { %9675 = vmatmul.mubr.bf16.gmra.mrb[40].mxu1 %v9490_v10  ;;  %v9481_v63 = vadd.f32 %v15670_v61, %v9459_v43  ;;  %v16314_v10 = vsub.s32 0, %v16313_v40 }
0x10b0   : > { %9684 = vmatprep.mubr.bf16.mxu1 %v16275_v52 }
0x10b1   : > { %v9491_v18 = vpack.c.bf16 %v9481_v63, %v9480_v41 }
0x10b7   : > { %9685 = vmatmul.mubr.bf16.gmra.mrb[44].mxu1 %v9491_v18 }
0x10b8   : > { %9694 = vmatprep.mubr.bf16.mxu1 %v16275_v52 }
0x10d9   : > { %v9371_v27 = vpop.xlane.xlu0 %9370 }
0x10da   : > { %v9390_v45 = vmul.f32 0.0078125, %v9371_v27 }
0x10db   : > { %v9373_v47 = vpop.xlane.xlu1 %9372 }
0x10dc   : > { %v9406_v29 = vadd.f32 1e-05, %v9390_v45  ;;  %v9391_v0 = vmul.f32 0.0078125, %v9373_v47 }
0x10dd   : > { %v9375_v13 = vpop.xlane.xlu0 %9374 }
0x10de   : > { %12696 = vrsqrt.f32 %v9406_v29  ;;  %v9407_v30 = vadd.f32 1e-05, %v9391_v0  ;;  %v9392_v57 = vmul.f32 0.0078125, %v9375_v13 }
0x10df   : > { %v9377_v23 = vpop.xlane.xlu1 %9376 }
0x10e0   : > { %12698 = vrsqrt.f32 %v9407_v30  ;;  %v9408_v2 = vadd.f32 1e-05, %v9392_v57  ;;  %v9393_v15 = vmul.f32 0.0078125, %v9377_v23 }
0x10e2   : > { %12700 = vrsqrt.f32 %v9408_v2  ;;  %v9409_v12 = vadd.f32 1e-05, %v9393_v15 }
0x10e4   : > { %12702 = vrsqrt.f32 %v9409_v12 }
0x10e8   : > { %v12697_v59 = vpop.eup %12696 }
0x10e9   : > { %v9438_v7 = vmul.f32 %v12697_v59, %v15618_v25 }
0x10ea   : > { %v12699_v14 = vpop.eup %12698 }
0x10eb   : > { %v9460_v20 = vmul.f32 %v15653_v34, %v9438_v7  ;;  %v9439_v3 = vmul.f32 %v12699_v14, %v15621_v11 }
0x10ec   : > { %v12701_v62 = vpop.eup %12700 }
0x10ed   : > { %v9461_v51 = vmul.f32 %v15653_v34, %v9439_v3  ;;  %v9482_v19 = vadd.f32 %v15670_v61, %v9460_v20  ;;  %v9440_v25 = vmul.f32 %v12701_v62, %v15626_v16  ;;  %v15749_v16 = vrot.slane %v9510_v24, %v16314_v10 }
0x10ee   : > { %v12703_v50 = vpop.eup %12702 }
0x10ef   : > { %v9483_v8 = vadd.f32 %v15670_v61, %v9461_v51  ;;  %v9441_v60 = vmul.f32 %v12703_v50, %v15631_v28  ;;  %v9462_v11 = vmul.f32 %v15653_v34, %v9440_v25  ;;  %v16315_v28 = vsub.s32 1, %v16313_v40 }
0x10f1   : > { %v9492_v17 = vpack.c.bf16 %v9483_v8, %v9482_v19  ;;  %v9463_v44 = vmul.f32 %v15653_v34, %v9441_v60  ;;  %v9484_v35 = vadd.f32 %v15670_v61, %v9462_v11  ;;  %v15753_v43 = vrot.slane %v9510_v24, %v16315_v28 }
0x10f3   : > { %9695 = vmatmul.mubr.bf16.gmra.mrb[48].mxu1 %v9492_v17  ;;  %v9485_v33 = vadd.f32 %v15670_v61, %v9463_v44 }
0x10f4   : > { %9704 = vmatprep.mubr.bf16.mxu1 %v16275_v52 }
0x10f5   : > { %v9493_v5 = vpack.c.bf16 %v9485_v33, %v9484_v35 }
0x10fb   : > { %9705 = vmatmul.mubr.bf16.gmra.mrb[52].mxu1 %v9493_v5 }
0x1161   : > { %v9636_v53 = vpop.f32.mrb[24].mxu1 }
0x1162   : > { %v9637_v34 = vadd.f32 %v9636_v53, %v15749_v16  ;;  %v9638_v63 = vpop.f32.mrb[25].mxu1 }
0x1163   : > { %v9639_v52 = vadd.f32 %v9638_v63, %v15753_v43  ;;  %v9640_v41 = vpop.f32.mrb[26].mxu1 }
0x1164   : > { %v9641_v61 = vadd.f32 %v9640_v41, %v15749_v16  ;;  %v9642_v18 = vpop.f32.mrb[27].mxu1  ;;  %v9715_v45 = vmax.f32 %v9637_v34, 0.0 }
0x1165   : > { %v9643_v27 = vadd.f32 %v9642_v18, %v15753_v43  ;;  %v9716_v29 = vmax.f32 %v9639_v52, 0.0 }
0x1166   : > { %v9717_v47 = vmax.f32 %v9641_v61, 0.0 }
0x1167   : > { %v9718_v0 = vmax.f32 %v9643_v27, 0.0 }
0x1168   : > { %v9747_v13 = vpack.c.bf16 %v9717_v47, %v9715_v45 }
0x1169   : > { %v9748_v30 = vpack.c.bf16 %v9718_v0, %v9716_v29  ;;  %v9646_v57 = vpop.f32.mrb[28].mxu1 }
0x116a   : > { %v9647_v23 = vadd.f32 %v9646_v57, %v15749_v16  ;;  %v9648_v2 = vpop.f32.mrb[29].mxu1 }
0x116b   : > { %v9649_v15 = vadd.f32 %v9648_v2, %v15753_v43  ;;  %v9650_v42 = vpop.f32.mrb[30].mxu1  ;;  %9923 = vmatprep.mubr.bf16.mxu0 %v9748_v30 }
0x116c   : > { %v9651_v12 = vadd.f32 %v9650_v42, %v15749_v16  ;;  %v9652_v22 = vpop.f32.mrb[31].mxu1  ;;  %9924 = vmatmul.mubr.bf16.vlgmr.msra.gmra.mrb[40].mxu0 %v9747_v13  ;;  %v9719_v59 = vmax.f32 %v9647_v23, 0.0 }
0x116d   : > { %v9653_v54 = vadd.f32 %v9652_v22, %v15753_v43  ;;  %v9720_v7 = vmax.f32 %v9649_v15, 0.0 }
0x116e   : > { %v9721_v48 = vmax.f32 %v9651_v12, 0.0 }
0x116f   : > { %v9722_v36 = vmax.f32 %v9653_v54, 0.0 }
0x1170   : > { %v9749_v14 = vpack.c.bf16 %v9721_v48, %v9719_v59 }
0x1171   : > { %v9750_v20 = vpack.c.bf16 %v9722_v36, %v9720_v7  ;;  %v9656_v3 = vpop.f32.mrb[32].mxu1 }
0x1172   : > { %v9657_v62 = vadd.f32 %v9656_v3, %v15749_v16  ;;  %v9658_v51 = vpop.f32.mrb[33].mxu1 }
0x1173   : > { %v9659_v50 = vadd.f32 %v9658_v51, %v15753_v43  ;;  %v9660_v19 = vpop.f32.mrb[34].mxu1  ;;  %9931 = vmatprep.mubr.bf16.mxu0 %v9750_v20 }
0x1174   : > { %v9661_v8 = vadd.f32 %v9660_v19, %v15749_v16  ;;  %v9662_v25 = vpop.f32.mrb[35].mxu1  ;;  %9932 = vmatmul.mubr.bf16.gmra.mrb[44].mxu0 %v9749_v14  ;;  %v9723_v17 = vmax.f32 %v9657_v62, 0.0 }
0x1175   : > { %v9663_v60 = vadd.f32 %v9662_v25, %v15753_v43  ;;  %v9724_v11 = vmax.f32 %v9659_v50, 0.0 }
0x1176   : > { %v9725_v44 = vmax.f32 %v9661_v8, 0.0 }
0x1177   : > { %v9726_v33 = vmax.f32 %v9663_v60, 0.0 }
0x1178   : > { %v9751_v35 = vpack.c.bf16 %v9725_v44, %v9723_v17 }
0x1179   : > { %v9752_v5 = vpack.c.bf16 %v9726_v33, %v9724_v11  ;;  %v9666_v24 = vpop.f32.mrb[36].mxu1 }
0x117a   : > { %v9667_v40 = vadd.f32 %v9666_v24, %v15749_v16  ;;  %v9668_v10 = vpop.f32.mrb[37].mxu1 }
0x117b   : > { %v9669_v28 = vadd.f32 %v9668_v10, %v15753_v43  ;;  %v9670_v53 = vpop.f32.mrb[38].mxu1  ;;  %9939 = vmatprep.mubr.bf16.mxu0 %v9752_v5 }
0x117c   : > { %v9671_v34 = vadd.f32 %v9670_v53, %v15749_v16  ;;  %v9672_v63 = vpop.f32.mrb[39].mxu1  ;;  %9940 = vmatmul.mubr.bf16.gmra.mrb[48].mxu0 %v9751_v35  ;;  %v9727_v41 = vmax.f32 %v9667_v40, 0.0 }
0x117d   : > { %v9673_v52 = vadd.f32 %v9672_v63, %v15753_v43  ;;  %v9728_v18 = vmax.f32 %v9669_v28, 0.0 }
0x117e   : > { %v9729_v61 = vmax.f32 %v9671_v34, 0.0 }
0x117f   : > { %v9730_v27 = vmax.f32 %v9673_v52, 0.0 }
0x1180   : > { %v9753_v45 = vpack.c.bf16 %v9729_v61, %v9727_v41 }
0x1181   : > { %v9754_v47 = vpack.c.bf16 %v9730_v27, %v9728_v18 }
0x1182   : > { %v9676_v29 = vpop.f32.mrb[40].mxu1 }
0x1183   : > { %9947 = vmatprep.mubr.bf16.mxu0 %v9754_v47  ;;  %v9677_v0 = vadd.f32 %v9676_v29, %v15749_v16  ;;  %v9678_v13 = vpop.f32.mrb[41].mxu1 }
0x1184   : > { %9948 = vmatmul.mubr.bf16.gmra.mrb[52].mxu0 %v9753_v45  ;;  %v9679_v30 = vadd.f32 %v9678_v13, %v15753_v43  ;;  %v9680_v57 = vpop.f32.mrb[42].mxu1 }
0x1185   : > { %v9681_v23 = vadd.f32 %v9680_v57, %v15749_v16  ;;  %v9682_v2 = vpop.f32.mrb[43].mxu1  ;;  %v9731_v42 = vmax.f32 %v9677_v0, 0.0 }
0x1186   : > { %v9683_v15 = vadd.f32 %v9682_v2, %v15753_v43  ;;  %v9732_v22 = vmax.f32 %v9679_v30, 0.0 }
0x1187   : > { %v9733_v12 = vmax.f32 %v9681_v23, 0.0 }
0x1188   : > { %v9734_v54 = vmax.f32 %v9683_v15, 0.0 }
0x1189   : > { %v9755_v59 = vpack.c.bf16 %v9733_v12, %v9731_v42 }
0x118a   : > { %v9756_v48 = vpack.c.bf16 %v9734_v54, %v9732_v22  ;;  %v9686_v7 = vpop.f32.mrb[44].mxu1 }
0x118b   : > { %v9687_v36 = vadd.f32 %v9686_v7, %v15749_v16  ;;  %v9688_v14 = vpop.f32.mrb[45].mxu1 }
0x118c   : > { %v9689_v20 = vadd.f32 %v9688_v14, %v15753_v43  ;;  %v9690_v3 = vpop.f32.mrb[46].mxu1  ;;  %9955 = vmatprep.mubr.bf16.mxu0 %v9756_v48 }
0x118d   : > { %v9691_v62 = vadd.f32 %v9690_v3, %v15749_v16  ;;  %v9692_v51 = vpop.f32.mrb[47].mxu1  ;;  %9956 = vmatmul.mubr.bf16.gmra.mrb[56].mxu0 %v9755_v59  ;;  %v9735_v19 = vmax.f32 %v9687_v36, 0.0 }
0x118e   : > { %v9693_v50 = vadd.f32 %v9692_v51, %v15753_v43  ;;  %v9736_v25 = vmax.f32 %v9689_v20, 0.0 }
0x118f   : > { %v9737_v8 = vmax.f32 %v9691_v62, 0.0 }
0x1190   : > { %v9738_v60 = vmax.f32 %v9693_v50, 0.0 }
0x1191   : > { %v9757_v17 = vpack.c.bf16 %v9737_v8, %v9735_v19 }
0x1192   : > { %v9758_v44 = vpack.c.bf16 %v9738_v60, %v9736_v25 }
0x1194   : > { %9963 = vmatprep.mubr.bf16.mxu0 %v9758_v44 }
0x1195   : > { %9964 = vmatmul.mubr.bf16.gmra.mrb[60].mxu0 %v9757_v17 }
0x11c6   : > { %v9696_v11 = vpop.f32.mrb[48].mxu1 }
0x11c7   : > { %v9697_v33 = vadd.f32 %v9696_v11, %v15749_v16  ;;  %v9698_v35 = vpop.f32.mrb[49].mxu1 }
0x11c8   : > { %v9699_v5 = vadd.f32 %v9698_v35, %v15753_v43  ;;  %v9700_v24 = vpop.f32.mrb[50].mxu1 }
0x11c9   : > { %v9701_v40 = vadd.f32 %v9700_v24, %v15749_v16  ;;  %v9702_v10 = vpop.f32.mrb[51].mxu1  ;;  %v9739_v53 = vmax.f32 %v9697_v33, 0.0 }
0x11ca   : > { %v9703_v28 = vadd.f32 %v9702_v10, %v15753_v43  ;;  %v9740_v63 = vmax.f32 %v9699_v5, 0.0 }
0x11cb   : > { %v9741_v34 = vmax.f32 %v9701_v40, 0.0 }
0x11cc   : > { %v9742_v52 = vmax.f32 %v9703_v28, 0.0 }
0x11cd   : > { %v9759_v41 = vpack.c.bf16 %v9741_v34, %v9739_v53 }
0x11ce   : > { %v9760_v61 = vpack.c.bf16 %v9742_v52, %v9740_v63  ;;  %v9706_v18 = vpop.f32.mrb[52].mxu1 }
0x11cf   : > { %v9707_v27 = vadd.f32 %v9706_v18, %v15749_v16  ;;  %v9708_v45 = vpop.f32.mrb[53].mxu1 }
0x11d0   : > { %v9709_v47 = vadd.f32 %v9708_v45, %v15753_v43  ;;  %v9710_v29 = vpop.f32.mrb[54].mxu1  ;;  %9971 = vmatprep.mubr.bf16.mxu1 %v9760_v61 }
0x11d1   : > { %v9711_v0 = vadd.f32 %v9710_v29, %v15749_v16  ;;  %v9712_v13 = vpop.f32.mrb[55].mxu1  ;;  %9972 = vmatmul.mubr.bf16.vlgmr.msra.gmra.mrb[56].mxu1 %v9759_v41  ;;  %v9743_v57 = vmax.f32 %v9707_v27, 0.0  ;;  %v15792_v16 = vld [vmem:[%s836_s24] ss:$0 sm:$0xff]  ;;  %s16321_s24 = sld [smem:[#allocation75_spill]] (!%p10780_p9) }
0x11d2   : > { %v9713_v30 = vadd.f32 %v9712_v13, %v15753_v43  ;;  %v9744_v2 = vmax.f32 %v9709_v47, 0.0 }
0x11d3   : > { %v9745_v23 = vmax.f32 %v9711_v0, 0.0 }
0x11d4   : > { %v9746_v15 = vmax.f32 %v9713_v30, 0.0 }
0x11d5   : > { %v9761_v42 = vpack.c.bf16 %v9745_v23, %v9743_v57 }
0x11d6   : > { %v9762_v12 = vpack.c.bf16 %v9746_v15, %v9744_v2 }
0x11d8   : > { %9979 = vmatprep.mubr.bf16.mxu1 %v9762_v12 }
0x11d9   : > { %9980 = vmatmul.mubr.bf16.gmra.mrb[60].mxu1 %v9761_v42 }
0x123f   : > { %v11124_v22 = vpop.f32.mrb[40].mxu0 }
0x1240   : > { %v11125_v54 = vpop.f32.mrb[41].mxu0 }
0x1241   : > { %v11126_v59 = vadd.f32 %v11125_v54, %v11124_v22  ;;  %v11127_v48 = vpop.f32.mrb[42].mxu0 }
0x1242   : > { %v11128_v7 = vpop.f32.mrb[43].mxu0 }
0x1243   : > { %v9988_v43 = vadd.f32 %v11126_v59, %v15478_v38  ;;  %v11129_v36 = vadd.f32 %v11128_v7, %v11127_v48 }
0x1245   : > { %v15796_v14 = vadd.f32 %v15792_v16, %v9988_v43  ;;  %v9989_v20 = vadd.f32 %v11129_v36, %v15481_v32 }
0x1247   : > { %10027 = vst [vmem:[#allocation2] sm:$0xff] %v15796_v14  ;;  %v15801_v3 = vadd.f32 %v15792_v16, %v9989_v20  ;;  %v11130_v62 = vpop.f32.mrb[44].mxu0 }
0x1248   : > { %v11131_v51 = vpop.f32.mrb[45].mxu0 }
0x1249   : > { %10028 = vst [vmem:[#allocation2 + $0x8] sm:$0xff] %v15801_v3  ;;  %v11132_v50 = vadd.f32 %v11131_v51, %v11130_v62  ;;  %v11133_v19 = vpop.f32.mrb[46].mxu0 }
0x124a   : > { %v11134_v8 = vpop.f32.mrb[47].mxu0 }
0x124b   : > { %v9990_v38 = vadd.f32 %v11132_v50, %v15485_v6  ;;  %v11135_v25 = vadd.f32 %v11134_v8, %v11133_v19 }
0x124d   : > { %v15806_v60 = vadd.f32 %v15792_v16, %v9990_v38  ;;  %v9991_v32 = vadd.f32 %v11135_v25, %v15490_v31 }
0x124f   : > { %10029 = vst [vmem:[#allocation2 + $0x10] sm:$0xff] %v15806_v60  ;;  %v15811_v17 = vadd.f32 %v15792_v16, %v9991_v32  ;;  %v11136_v44 = vpop.f32.mrb[48].mxu0 }
0x1250   : > { %v11137_v11 = vpop.f32.mrb[49].mxu0 }
0x1251   : > { %10030 = vst [vmem:[#allocation2 + $0x18] sm:$0xff] %v15811_v17  ;;  %v11138_v33 = vadd.f32 %v11137_v11, %v11136_v44  ;;  %v11139_v35 = vpop.f32.mrb[50].mxu0 }
0x1252   : > { %v11140_v5 = vpop.f32.mrb[51].mxu0 }
0x1253   : > { %v9992_v6 = vadd.f32 %v11138_v33, %v15494_v39  ;;  %v11141_v24 = vadd.f32 %v11140_v5, %v11139_v35  ;;  %v10047_v35 = vpack.c.bf16 (!%p10780_p9), %v15796_v14, %v15796_v14  ;;  %v12782_v5 = vmov (!%p10780_p9), 0.0  }
0x1254   : > { %12054 = vmatprep.subr.bf16.mxu0 (!%p10780_p9), %v12782_v5  ;;  %12074 = vmatprep.subr.bf16.mxu1 (!%p10780_p9), %v12782_v5  ;;  %v10050_v14 = vpack.c.bf16 (!%p10780_p9), %v15811_v17, %v15811_v17 }
0x1255   : > { %v15816_v40 = vadd.f32 %v15792_v16, %v9992_v6  ;;  %v9993_v31 = vadd.f32 %v11141_v24, %v15497_v26  ;;  %v12721_v6 = vld [vmem:[%s16317_s4 + $0x8] sm:$0xff] (!%p10780_p9)   ;;  %12070 = vmatprep.mubr.msk.bf16.mxu0 (!%p10780_p9), %vm12783_vm6, %v12782_v5  ;;  %12090 = vmatprep.mubr.msk.bf16.mxu1 (!%p10780_p9), %vm12783_vm6, %v12782_v5 }
0x1257   : > { %10031 = vst [vmem:[#allocation2 + $0x20] sm:$0xff] %v15816_v40  ;;  %v15821_v10 = vadd.f32 %v15792_v16, %v9993_v31  ;;  %v11142_v28 = vpop.f32.mrb[52].mxu0 }
0x1258   : > { %v11143_v53 = vpop.f32.mrb[53].mxu0 }
0x1259   : > { %10032 = vst [vmem:[#allocation2 + $0x28] sm:$0xff] %v15821_v10  ;;  %v11144_v34 = vadd.f32 %v11143_v53, %v11142_v28  ;;  %v11145_v63 = vpop.f32.mrb[54].mxu0  ;;  %v10102_v28 = vunpack.c.l.b16 (!%p10780_p9), %v10047_v35 }
0x125a   : > { %v11146_v52 = vpop.f32.mrb[55].mxu0 }
0x125b   : > { %v9994_v39 = vadd.f32 %v11144_v34, %v15501_v55  ;;  %v11147_v41 = vadd.f32 %v11146_v52, %v11145_v63  ;;  %v10052_v63 = vpack.c.bf16 (!%p10780_p9), %v15821_v10, %v15821_v10  ;;  %v12728_v10 = vld [vmem:[%s16318_s22] sm:$0xff] (!%p10780_p9)  }
0x125c   : > { %12075 = vmatpush3.bf16.msra.mxu1 (!%p10780_p9), %v12728_v10 }
0x125d   : > { %v15826_v61 = vadd.f32 %v15792_v16, %v9994_v39  ;;  %v9995_v26 = vadd.f32 %v11147_v41, %v15505_v58  ;;  %v10105_v39 = vunpack.c.l.b16 (!%p10780_p9), %v10050_v14  ;;  %12076 = vmatprep.subr.bf16.mxu1 (!%p10780_p9), %v12782_v5 }
0x125f   : > { %10033 = vst [vmem:[#allocation2 + $0x30] sm:$0xff] %v15826_v61  ;;  %v15831_v18 = vadd.f32 %v15792_v16, %v9995_v26 }
0x1260   : > { %v11148_v27 = vpop.f32.mrb[56].mxu0 }
0x1261   : > { %10034 = vst [vmem:[#allocation2 + $0x38] sm:$0xff] %v15831_v18  ;;  %v11149_v45 = vpop.f32.mrb[57].mxu0 }
0x1262   : > { %v11150_v47 = vadd.f32 %v11149_v45, %v11148_v27  ;;  %v11151_v29 = vpop.f32.mrb[58].mxu0 }
0x1263   : > { %v11152_v0 = vpop.f32.mrb[59].mxu0 }
0x1264   : > { %v9996_v55 = vadd.f32 %v11150_v47, %v15510_v46  ;;  %v11153_v13 = vadd.f32 %v11152_v0, %v11151_v29  ;;  %v10118_v29 = vrot.slane (!%p10780_p9), %v10102_v28, 7  ;;  %v12733_v28 = vld [vmem:[%s16319_s27 + $0x28] sm:$0xff] (!%p10780_p9)  }
0x1266   : > { %v15836_v30 = vadd.f32 %v15792_v16, %v9996_v55  ;;  %v9997_v58 = vadd.f32 %v11153_v13, %v15513_v4 }
0x1268   : > { %10035 = vst [vmem:[#allocation2 + $0x40] sm:$0xff] %v15836_v30  ;;  %v15841_v57 = vadd.f32 %v15792_v16, %v9997_v58  ;;  %v11154_v23 = vpop.f32.mrb[60].mxu0  ;;  %v10107_v58 = vunpack.c.l.b16 (!%p10780_p9), %v10052_v63 }
0x1269   : > { %v11155_v2 = vpop.f32.mrb[61].mxu0 }
0x126a   : > { %10036 = vst [vmem:[#allocation2 + $0x48] sm:$0xff] %v15841_v57  ;;  %v11156_v15 = vadd.f32 %v11155_v2, %v11154_v23  ;;  %v11157_v42 = vpop.f32.mrb[62].mxu0  ;;  %v10056_v24 = vpack.c.bf16 (!%p10780_p9), %v15841_v57, %v15841_v57  ;;  %v10125_v2 = vrot.slane (!%p10780_p9), %v10105_v39, 4 }
0x126b   : > { %v11158_v12 = vpop.f32.mrb[63].mxu0 }
0x126c   : > { %v9998_v46 = vadd.f32 %v11156_v15, %v15517_v9  ;;  %v11159_v22 = vadd.f32 %v11158_v12, %v11157_v42  ;;  %v10111_v45 = vunpack.c.l.b16 (!%p10780_p9), %v10056_v24  ;;  %v10053_v15 = vpack.c.bf16 (!%p10780_p9), %v15826_v61, %v15826_v61 }
0x126e   : > { %v15846_v54 = vadd.f32 %v15792_v16, %v9998_v46  ;;  %v9999_v4 = vadd.f32 %v11159_v22, %v15521_v49  ;;  %v12729_v46 = vld [vmem:[%s16319_s27 + $0x8] sm:$0xff] (!%p10780_p9)   ;;  %v12724_v22 = vld [vmem:[%s16317_s4 + $0x20] sm:$0xff] (!%p10780_p9)  }
0x126f   : > { %12077 = vmatpush3.bf16.msra.mxu1 (!%p10780_p9), %v12729_v46 }
0x1270   : > { %10037 = vst [vmem:[#allocation2 + $0x50] sm:$0xff] %v15846_v54  ;;  %v15851_v59 = vadd.f32 %v15792_v16, %v9999_v4  ;;  %v10057_v31 = vpack.c.bf16 (!%p10780_p9), %v15846_v54, %v15846_v54  ;;  %12078 = vmatprep.subr.bf16.mxu1 (!%p10780_p9), %v12782_v5 }
0x1272   : > { %10038 = vst [vmem:[#allocation2 + $0x58] sm:$0xff] %v15851_v59  ;;  %v10058_v17 = vpack.c.bf16 (!%p10780_p9), %v15851_v59, %v15851_v59  ;;  %v10112_v47 = vunpack.c.l.b16 (!%p10780_p9), %v10057_v31  ;;  %v10140_v59 = vrot.slane (!%p10780_p9), %v10111_v45, 6 }
0x1274   : > { %v10113_v55 = vunpack.c.l.b16 (!%p10780_p9), %v10058_v17  ;;  %v12734_v17 = vld [vmem:[%s16319_s27 + $0x30] sm:$0xff] (!%p10780_p9)  }
0x12a4   : > { %v11160_v48 = vpop.f32.mrb[56].mxu1 }
0x12a5   : > { %v11161_v7 = vpop.f32.mrb[57].mxu1 }
0x12a6   : > { %v11162_v43 = vadd.f32 %v11161_v7, %v11160_v48  ;;  %v11163_v36 = vpop.f32.mrb[58].mxu1  ;;  %v10142_v48 = vrot.slane (!%p10780_p9), %v10112_v47, 5  ;;  %v10144_v7 = vrot.slane (!%p10780_p9), %v10113_v55, 4 }
0x12a7   : > { %v11164_v20 = vpop.f32.mrb[59].mxu1 }
0x12a8   : > { %v10000_v9 = vadd.f32 %v11162_v43, %v15526_v56  ;;  %v11165_v62 = vadd.f32 %v11164_v20, %v11163_v36  ;;  %v10131_v36 = vrot.slane (!%p10780_p9), %v10107_v58, 2 }
0x12aa   : > { %v10023_v51 = vadd.f32 %v15792_v16, %v10000_v9  ;;  %v10001_v50 = vadd.f32 %v11165_v62, %v15529_v21  ;;  %v12730_v9 = vld [vmem:[%s16319_s27 + $0x10] sm:$0xff] (!%p10780_p9)   ;;  %v10108_v62 = vunpack.c.l.b16 (!%p10780_p9), %v10053_v15 }
0x12ab   : > { %12079 = vmatpush3.bf16.msra.mxu1 (!%p10780_p9), %v12730_v9 }
0x12ac   : > { %10039 = vst [vmem:[#allocation2 + $0x60] sm:$0xff] %v10023_v51  ;;  %v15858_v49 = vadd.f32 %v15792_v16, %v10001_v50  ;;  %v11166_v19 = vpop.f32.mrb[60].mxu1  ;;  %v10059_v52 = vpack.c.bf16 (!%p10780_p9), %v10023_v51, %v10023_v51  ;;  %12080 = vmatprep.subr.bf16.mxu1 (!%p10780_p9), %v12782_v5 }
0x12ad   : > { %v11167_v8 = vpop.f32.mrb[61].mxu1 }
0x12ae   : > { %10040 = vst [vmem:[#allocation2 + $0x68] sm:$0xff] %v15858_v49  ;;  %v11168_v38 = vadd.f32 %v11167_v8, %v11166_v19  ;;  %v11169_v25 = vpop.f32.mrb[62].mxu1  ;;  %v10060_v41 = vpack.c.bf16 (!%p10780_p9), %v15858_v49, %v15858_v49  ;;  %v10114_v57 = vunpack.c.l.b16 (!%p10780_p9), %v10059_v52 }
0x12af   : > { %v11170_v32 = vpop.f32.mrb[63].mxu1 }
0x12b0   : > { %v10002_v44 = vadd.f32 %v11168_v38, %v15533_v1  ;;  %v11171_v11 = vadd.f32 %v11170_v32, %v11169_v25  ;;  %10046 = sbr.rel (%p10780_p9) target bundleno = 5253 (0x1485), region = 108  ;;  %v12720_v1 = vld [vmem:[%s16317_s4] sm:$0xff] (!%p10780_p9)   ;;  %v10115_v54 = vunpack.c.l.b16 (!%p10780_p9), %v10060_v41  ;;  %v10146_v20 = vrot.slane (!%p10780_p9), %v10114_v57, 3  ;;  %v12725_v25 = vld [vmem:[%s16317_s4 + $0x28] sm:$0xff] (!%p10780_p9)  }
0x12b1   : > { %12055 = vmatpush3.bf16.msra.mxu0 (!%p10780_p9), %v12720_v1  ;;  %v10054_v32 = vpack.c.bf16 (!%p10780_p9), %v15831_v18, %v15831_v18  ;;  %v12731_v1 = vld [vmem:[%s16319_s27 + $0x18] sm:$0xff] (!%p10780_p9)   ;;  %v12726_v18 = vld [vmem:[%s16317_s4 + $0x30] sm:$0xff] (!%p10780_p9)  }
0x12b2   : > { %v15863_v56 = vadd.f32 %v15792_v16, %v10002_v44  ;;  %v10003_v33 = vadd.f32 %v11171_v11, %v15537_v37  ;;  %v10048_v37 = vpack.c.bf16 (!%p10780_p9), %v15801_v3, %v15801_v3  ;;  %12056 = vmatprep.subr.bf16.mxu0 (!%p10780_p9), %v12782_v5  ;;  %v10051_v3 = vpack.c.bf16 (!%p10780_p9), %v15816_v40, %v15816_v40  ;;  %v12722_v40 = vld [vmem:[%s16317_s4 + $0x10] sm:$0xff] (!%p10780_p9)  }
0x12b3   : > { %v10148_v19 = vrot.slane (!%p10780_p9), %v10115_v54, 2  ;;  %12081 = vmatpush3.bf16.msra.mxu1 (!%p10780_p9), %v12731_v1 }
0x12b4   : > { %10041 = vst [vmem:[#allocation2 + $0x70] sm:$0xff] %v15863_v56  ;;  %v15868_v21 = vadd.f32 %v15792_v16, %v10003_v33  ;;  %v10049_v16 = vpack.c.bf16 (!%p10780_p9), %v15806_v60, %v15806_v60  ;;  %v10055_v60 = vpack.c.bf16 (!%p10780_p9), %v15836_v30, %v15836_v30  ;;  %v10103_v53 = vunpack.c.l.b16 (!%p10780_p9), %v10048_v37  ;;  %v12723_v30 = vld [vmem:[%s16317_s4 + $0x18] sm:$0xff] (!%p10780_p9)   ;;  %12082 = vmatprep.subr.bf16.mxu1 (!%p10780_p9), %v12782_v5 }
0x12b5   : > { %12057 = vmatpush3.bf16.msra.mxu0 (!%p10780_p9), %v12721_v6  ;;  %v10106_v26 = vunpack.c.l.b16 (!%p10780_p9), %v10051_v3  ;;  %v10061_v42 = vpack.c.bf16 (!%p10780_p9), %v15863_v56, %v15863_v56  ;;  %v10134_v56 = vrot.slane (!%p10780_p9), %v10108_v62, 1  ;;  %v12732_v3 = vld [vmem:[%s16319_s27 + $0x20] sm:$0xff] (!%p10780_p9)  }
0x12b6   : > { %10042 = vst [vmem:[#allocation2 + $0x78] sm:$0xff] %v15868_v21  ;;  %v10104_v34 = vunpack.c.l.b16 (!%p10780_p9), %v10049_v16  ;;  %12058 = vmatprep.subr.bf16.mxu0 (!%p10780_p9), %v12782_v5  ;;  %v10110_v27 = vunpack.c.l.b16 (!%p10780_p9), %v10055_v60  ;;  %v10119_v0 = vrot.slane (!%p10780_p9), %v10103_v53, 6  ;;  %v10062_v44 = vpack.c.bf16 (!%p10780_p9), %v15868_v21, %v15868_v21  ;;  %v12727_v60 = vld [vmem:[%s16317_s4 + $0x38] sm:$0xff] (!%p10780_p9)  }
0x12b7   : > { %v10128_v61 = vrot.slane %v10106_v26, 3  ;;  %v10116_v51 = vunpack.c.l.b16 %v10061_v42  ;;  %v10109_v21 = vunpack.c.l.b16 %v10054_v32  ;;  %12083 = vmatpush3.bf16.msra.mxu1 %v12732_v3 }
0x12b8   : > { %v10122_v13 = vrot.slane %v10104_v34, 5  ;;  %v10121_v23 = vsel %vm10120_vm7, %v10119_v0, %v10118_v29  ;;  %v10139_v4 = vrot.slane %v10110_v27, 7  ;;  %v10117_v16 = vunpack.c.l.b16 %v10062_v44  ;;  %12084 = vmatprep.subr.bf16.mxu1 %v12782_v5  ;;  %v12735_v34 = vld [vmem:[%s16319_s27 + $0x38] sm:$0xff]   ;;  %v10790_v29 = vld [vmem:[%s16321_s24] ss:$0 sm:$0xff] }
0x12b9   : > { %12059 = vmatpush3.bf16.msra.mxu0 %v12722_v40  ;;  %v10150_v33 = vrot.slane %v10116_v51, 1  ;;  %v10781_v40 = vld [vmem:[%s16320_s23] ss:$0 sm:$0xff] }
0x12ba   : > { %12060 = vmatprep.subr.bf16.mxu0 %v12782_v5  ;;  %v10124_v12 = vsel %vm10123_vm8, %v10122_v13, %v10121_v23  ;;  %v10141_v50 = vsel %vm10120_vm7, %v10140_v59, %v10139_v4 }
0x12bb   : > { %v10127_v43 = vsel %vm10126_vm9, %v10125_v2, %v10124_v12  ;;  %v10143_v49 = vsel %vm10123_vm8, %v10142_v48, %v10141_v50  ;;  %12085 = vmatpush3.bf16.msra.mxu1 %v12733_v28 }
0x12bc   : > { %v10130_v8 = vsel %vm10129_vm10, %v10128_v61, %v10127_v43  ;;  %v10145_v38 = vsel %vm10126_vm9, %v10144_v7, %v10143_v49  ;;  %12086 = vmatprep.subr.bf16.mxu1 %v12782_v5 }
0x12bd   : > { %12061 = vmatpush3.bf16.msra.mxu0 %v12723_v30  ;;  %v10147_v11 = vsel %vm10129_vm10, %v10146_v20, %v10145_v38  ;;  %v10133_v35 = vsel %vm10132_vm11, %v10131_v36, %v10130_v8 }
0x12be   : > { %12062 = vmatprep.subr.bf16.mxu0 %v12782_v5  ;;  %v10149_v37 = vsel %vm10132_vm11, %v10148_v19, %v10147_v11  ;;  %v10136_v6 = vsel %vm10135_vm12, %v10134_v56, %v10133_v35 }
0x12bf   : > { %v10151_v14 = vsel %vm10135_vm12, %v10150_v33, %v10149_v37  ;;  %v10138_v24 = vsel %vm10137_vm13, %v10109_v21, %v10136_v6  ;;  %12087 = vmatpush3.bf16.msra.mxu1 %v12734_v17 }
0x12c0   : > { %v10152_v31 = vsel %vm10137_vm13, %v10117_v16, %v10151_v14  ;;  %12088 = vmatprep.subr.bf16.mxu1 %v12782_v5 }
0x12c1   : > { %12063 = vmatpush3.bf16.msra.mxu0 %v12724_v22  ;;  %v10153_v53 = vpack.c.b16 %v10152_v31, %v10138_v24 }
0x12c2   : > { %12064 = vmatprep.subr.bf16.mxu0 %v12782_v5 }
0x12c3   : > { %12089 = vmatpush3.bf16.msra.mxu1 %v12735_v34 }
0x12c5   : > { %12065 = vmatpush3.bf16.msra.mxu0 %v12725_v25 }
0x12c6   : > { %12066 = vmatprep.subr.bf16.mxu0 %v12782_v5 }
0x12c9   : > { %12067 = vmatpush3.bf16.msra.mxu0 %v12726_v18 }
0x12ca   : > { %12068 = vmatprep.subr.bf16.mxu0 %v12782_v5 }
0x12cd   : > { %12069 = vmatpush3.bf16.msra.mxu0 %v12727_v60 }
0x12d0   : > { %12071 = vmatmul.mubr.bf16.vlgmr.msra.gmra.mrb[0].mxu0 %v10153_v53 }
0x13a3   : > { %v10237_v63 = vpop.f32.mrb[0].mxu0 }
0x13a4   : > { %v10238_v52 = vadd.f32 %v10781_v40, %v10237_v63  ;;  %v12072_v39 = vpop.f32.mrb[1].mxu0 }
0x13a5   : > { %v10240_v41 = vpop.f32.mrb[2].mxu0 }
0x13a6   : > { %v10241_v26 = vadd.f32 %v10781_v40, %v10240_v41  ;;  %v12073_v27 = vpop.f32.mrb[3].mxu0  ;;  %v10244_v45 = vmax.f32 %v10238_v52, 0.0 }
0x13a8   : > { %v10245_v47 = vmax.f32 %v10241_v26, 0.0 }
0x13aa   : > { %v10246_v5 = vpack.c.bf16 %v10245_v47, %v10244_v45 }
0x13ac   : > { %12091 = vmatmul.mubr.bf16.vlgmr.msra.gmra.mrb[0].mxu1 %v10246_v5 }
0x147f   : > { %v10352_v0 = vpop.f32.mrb[0].mxu1 }
0x1480   : > { %v10353_v55 = vadd.f32 %v10790_v29, %v10352_v0  ;;  %v12092_v13 = vpop.f32.mrb[1].mxu1 }
0x1481   : > { %v10355_v10 = vpop.f32.mrb[2].mxu1 }
0x1482   : > { %10359 = vst [vmem:[%s12996_s8] sm:$0xff] %v10353_v55  ;;  %v10356_v30 = vadd.f32 %v10790_v29, %v10355_v10  ;;  %v12093_v58 = vpop.f32.mrb[3].mxu1 }
0x1484   : > { %10360 = vst [vmem:[%s12996_s8 + $0x8] sm:$0xff] %v10356_v30 }
0x1485 PF: > { %s16322_s26 = sld [smem:[#allocation6_spill]]  ;;  %s16323_s1 = sld [smem:[#allocation4_spill]] }
0x1486   : > { %s16324_s22 = sld [smem:[#allocation5_spill]]  ;;  %s16325_s23 = sld [smem:[#allocation7_spill]] }
0x1487   : > { %s16326_s24 = sld [smem:[#allocation8_spill]] }
0x148b   : > { %s30_s2 = sadd.s32 1, %s16322_s26  }
0x148c   : > { %p27_p10 = scmp.ge.s32.totalorder %s30_s2, 10  }
0x148e   :  { %29 = sbr.rel (!%p27_p10) target bundleno = 14 (0xe), region = 174 }

</bundles_post_ra>
